<compile_context>
chip_gen: v7x
topology: tpu7x:2x2x1
jax: 0.10.0
libtpu: 0.0.40
codegen_flags: <defaults>
</compile_context>

<pallas_src>
import math

import jax
import jax.numpy as jnp
from jax import lax
from jax.experimental import pallas as pl
from jax.experimental.pallas import tpu as pltpu


def _make_kernel(H, W, Cin, Cout, L, conv_dtype):
    Ho, Wo = H // 2, W // 2
    inv_hw = 1.0 / float(H * W)
    inv_hw2 = 1.0 / float(Ho * Wo)
    cdt = conv_dtype

    def kernel(x_ref, w1_ref, w2_ref, b1_ref, b2_ref,
               s1w_ref, s1b_ref, s2w_ref, s2b_ref,
               xo_ref, wo_ref, pad_ref):
        # ---- zero only the 1-pixel halo of the padded scratch (conv_dtype).
        # The interior is fully overwritten every grid step; re-zeroing the
        # halo each step keeps this correct when the batch axis is sharded
        # across TensorCores.
        zrow = jnp.zeros((1, W + 2, Cin), cdt)
        zcol = jnp.zeros((H, 1, Cin), cdt)
        pad_ref[0:1, :, :] = zrow
        pad_ref[H + 1:H + 2, :, :] = zrow
        pad_ref[1:H + 1, 0:1, :] = zcol
        pad_ref[1:H + 1, W + 1:W + 2, :] = zcol

        # ---- in-kernel zero padding: copy the (H, W, Cin) input block into
        # the interior, staying in conv_dtype (no f32 up/down-cast round trip).
        pad_ref[1:H + 1, 1:W + 1, :] = x_ref[0]

        def conv3x3(w_ref):
            # Per-dy im2col: three (H*W, 3*Cin) slabs in conv_dtype, three
            # accumulating MXU matmuls with f32 accumulation.
            acc = None
            for dy in range(3):
                rows = pad_ref[dy:dy + H]                     # (H, W+2, Cin)
                slab = jnp.concatenate(
                    [rows[:, dx:dx + W, :].reshape(H * W, Cin)
                     for dx in range(3)], axis=1)             # (H*W, 3*Cin)
                part = jnp.dot(slab, w_ref[dy],               # (3*Cin, C)
                               preferred_element_type=jnp.float32)
                acc = part if acc is None else acc + part
            return acc                                        # (H*W, C) f32

        # ---- conv_1 (3x3, stride 1, pad 1) + bias_1 + leaky_relu(0.2) ----
        y = conv3x3(w1_ref) + b1_ref[...]
        y = jnp.maximum(y, 0.2 * y)

        # ---- style_1 stats (single pass) + instance_norm_1 (rsqrt * mul) ----
        m1 = jnp.sum(y, axis=0, keepdims=True) * inv_hw               # (1, Cin)
        v1 = jnp.maximum(jnp.sum(y * y, axis=0, keepdims=True) * inv_hw
                         - m1 * m1, 0.0)
        style1 = jnp.concatenate([m1, jnp.sqrt(v1)], axis=1)          # (1, 2*Cin)
        yn = (y - m1) * lax.rsqrt(v1 + 1e-5)

        # ---- stage normalized map back into the padded scratch (halo zero) --
        pad_ref[1:H + 1, 1:W + 1, :] = yn.reshape(H, W, Cin).astype(cdt)

        # ---- conv_2 (3x3, stride 1, pad 1) ----
        zf = conv3x3(w2_ref)                                  # (H*W, Cout) f32

        # ---- 2x2 average pool, stride 2 -- value-level pair sums; no VMEM
        # staging buffer / strided re-loads (sublane pair-reduce -> XLU).
        zh = jnp.sum(zf.reshape(Ho, 2, W, Cout), axis=1)      # pool over H
        z = jnp.sum(zh.reshape(Ho, Wo, 2, Cout), axis=2) * 0.25   # pool over W
        z = z.reshape(Ho * Wo, Cout)

        z = z + b2_ref[...]                                   # + bias_2
        z = jnp.maximum(z, 0.2 * z)                           # leaky_relu(0.2)

        # ---- style_2 stats + instance_norm_2 ----
        m2 = jnp.sum(z, axis=0, keepdims=True) * inv_hw2              # (1, Cout)
        v2 = jnp.maximum(jnp.sum(z * z, axis=0, keepdims=True) * inv_hw2
                         - m2 * m2, 0.0)
        style2 = jnp.concatenate([m2, jnp.sqrt(v2)], axis=1)          # (1, 2*Cout)
        xo_ref[0] = ((z - m2) * lax.rsqrt(v2 + 1e-5)).astype(xo_ref.dtype)

        # ---- style linear layers -> w = cat(w1, w2) (kept in f32) ----
        w1v = jnp.dot(style1, s1w_ref[...],
                      preferred_element_type=jnp.float32) + s1b_ref[...]
        w2v = jnp.dot(style2, s2w_ref[...],
                      preferred_element_type=jnp.float32) + s2b_ref[...]
        wo_ref[0] = jnp.concatenate([w1v, w2v], axis=1)       # (1, 2*L)

    return kernel


def _vmem_limit_bytes():
    """Per-generation VMEM budget: ~85% of physical, capped at 128 MiB."""
    try:
        cap = int(pltpu.get_tpu_info().vmem_capacity_bytes)
    except Exception:
        cap = 64 * 1024 * 1024          # conservative fallback (v7x physical)
    return int(min(cap * 0.85, 128 * 1024 * 1024))


def encode_block_forward(x_nchw, params, conv_dtype=jnp.float32,
                         out_dtype=jnp.float32):
    N, Cin, H, W = x_nchw.shape
    Cout = params["conv2_w"].shape[-1]
    L = params["s1_w"].shape[-1]
    Ho, Wo = H // 2, W // 2
    assert H % 2 == 0 and W % 8 == 0, "need even H and W multiple of 8"
    # (prefer W % 16 == 0 for the bf16 scratch path: 16-row sublane packing)

    # NHWC, unpadded (padding happens in-kernel); bf16 here halves input DMA.
    x = jnp.transpose(x_nchw, (0, 2, 3, 1)).astype(conv_dtype)
    # Conv weights pre-reshaped to per-dy im2col layout (3, 3*Cin, C),
    # column index inside a dy-slice = dx*Cin + cin.
    w1 = params["conv1_w"].astype(conv_dtype).reshape(3, 3 * Cin, Cin)
    w2 = params["conv2_w"].astype(conv_dtype).reshape(3, 3 * Cin, Cout)

    def full(shape):
        n = len(shape)
        return pl.BlockSpec(shape, lambda b, n=n: (0,) * n)

    kernel = _make_kernel(H, W, Cin, Cout, L, conv_dtype)
    out_x, out_w = pl.pallas_call(
        kernel,
        out_shape=(
            jax.ShapeDtypeStruct((N, Ho * Wo, Cout), out_dtype),
            jax.ShapeDtypeStruct((N, 1, 2 * L), jnp.float32),
        ),
        grid_spec=pltpu.PrefetchScalarGridSpec(
            num_scalar_prefetch=0,
            grid=(N,),
            in_specs=[
                pl.BlockSpec((1, H, W, Cin), lambda b: (b, 0, 0, 0)),
                full((3, 3 * Cin, Cin)),     # conv_1 weights (per-dy im2col)
                full((3, 3 * Cin, Cout)),    # conv_2 weights (per-dy im2col)
                full((1, Cin)),              # bias_1
                full((1, Cout)),             # bias_2
                full((2 * Cin, L)),          # style_1 weight (pre-scaled)
                full((1, L)),                # style_1 bias
                full((2 * Cout, L)),         # style_2 weight (pre-scaled)
                full((1, L)),                # style_2 bias
            ],
            out_specs=[
                pl.BlockSpec((1, Ho * Wo, Cout), lambda b: (b, 0, 0)),
                pl.BlockSpec((1, 1, 2 * L), lambda b: (b, 0, 0)),
            ],
            scratch_shapes=[
                pltpu.VMEM((H + 2, W + 2, Cin), conv_dtype),  # padded map
            ],
        ),
        compiler_params=pltpu.CompilerParams(
            dimension_semantics=("parallel",),     # batch is independent
            vmem_limit_bytes=_vmem_limit_bytes(),  # per-generation budget
        ),
    )(
        x, w1, w2,
        params["bias1"][None, :].astype(jnp.float32),
        params["bias2"][None, :].astype(jnp.float32),
        params["s1_w"].astype(jnp.float32),
        params["s1_b"][None, :].astype(jnp.float32),
        params["s2_w"].astype(jnp.float32),
        params["s2_b"][None, :].astype(jnp.float32),
    )

    x_out = jnp.transpose(out_x.reshape(N, Ho, Wo, Cout), (0, 3, 1, 2))  # NCHW
    w_out = out_w.reshape(N, 2 * L)
    return x_out, w_out


def init_params(key, Cin, Cout, L):
    # LREQ (learning-rate-equalized) layers: weights ~ N(0,1) scaled at forward
    # time by gain/sqrt(fan_in); the scale is folded into the weights here.
    ks = jax.random.split(key, 4)
    gain = math.sqrt(2.0)
    conv1_w = jax.random.normal(ks[0], (3, 3, Cin, Cin), jnp.float32) * (
        gain / math.sqrt(Cin * 9))
    conv2_w = jax.random.normal(ks[1], (3, 3, Cin, Cout), jnp.float32) * (
        gain / math.sqrt(Cin * 9))
    s1_w = jax.random.normal(ks[2], (2 * Cin, L), jnp.float32) * (
        gain / math.sqrt(2 * Cin))
    s2_w = jax.random.normal(ks[3], (2 * Cout, L), jnp.float32) * (
        gain / math.sqrt(2 * Cout))
    return dict(
        conv1_w=conv1_w, conv2_w=conv2_w,
        bias1=jnp.zeros((Cin,), jnp.float32),    # nn.Parameter zeros(1,Cin,1,1)
        bias2=jnp.zeros((Cout,), jnp.float32),   # nn.Parameter zeros(1,Cout,1,1)
        s1_w=s1_w, s1_b=jnp.zeros((L,), jnp.float32),
        s2_w=s2_w, s2_b=jnp.zeros((L,), jnp.float32),
    )


def reference_forward(x_nchw, params):
    """Pure-JAX reference mirroring the PyTorch forward (fused_scale=False)."""
    x = jnp.transpose(x_nchw, (0, 2, 3, 1)).astype(jnp.float32)
    dn = ("NHWC", "HWIO", "NHWC")
    y = lax.conv_general_dilated(x, params["conv1_w"], (1, 1),
                                 ((1, 1), (1, 1)), dimension_numbers=dn)
    y = y + params["bias1"][None, None, None, :]
    y = jnp.where(y >= 0, y, 0.2 * y)
    m = y.mean(axis=(1, 2), keepdims=True)
    v = ((y - m) ** 2).mean(axis=(1, 2), keepdims=True)
    style1 = jnp.concatenate([m[:, 0, 0, :], jnp.sqrt(v)[:, 0, 0, :]], axis=1)
    y = (y - m) / jnp.sqrt(v + 1e-5)
    z = lax.conv_general_dilated(y, params["conv2_w"], (1, 1),
                                 ((1, 1), (1, 1)), dimension_numbers=dn)
    N, H, W, C = z.shape
    z = z.reshape(N, H // 2, 2, W // 2, 2, C).mean(axis=(2, 4))
    z = z + params["bias2"][None, None, None, :]
    z = jnp.where(z >= 0, z, 0.2 * z)
    m2 = z.mean(axis=(1, 2), keepdims=True)
    v2 = ((z - m2) ** 2).mean(axis=(1, 2), keepdims=True)
    style2 = jnp.concatenate([m2[:, 0, 0, :], jnp.sqrt(v2)[:, 0, 0, :]], axis=1)
    z = (z - m2) / jnp.sqrt(v2 + 1e-5)
    w1 = style1 @ params["s1_w"] + params["s1_b"]
    w2 = style2 @ params["s2_w"] + params["s2_b"]
    w = jnp.concatenate([w1, w2], axis=1)
    return jnp.transpose(z, (0, 3, 1, 2)), w


if __name__ == "__main__":
    N, Cin, Cout, H, W, L = 2, 4, 8, 16, 16, 32
    key = jax.random.PRNGKey(0)
    kx, kp = jax.random.split(key)
    x = jax.random.normal(kx, (N, Cin, H, W), jnp.float32)
    params = init_params(kp, Cin, Cout, L)

    x_ref, w_ref = reference_forward(x, params)

    # f32 matmul-operand path: tight check against the f32 reference.
    x_out, w_out = encode_block_forward(x, params, conv_dtype=jnp.float32)
    jax.block_until_ready((x_out, w_out))
    assert x_out.shape == (N, Cout, H // 2, W // 2), x_out.shape
    assert w_out.shape == (N, 2 * L), w_out.shape
    assert jnp.allclose(x_out, x_ref, atol=1e-3, rtol=1e-3), "feature map mismatch"
    assert jnp.allclose(w_out, w_ref, atol=1e-3, rtol=1e-3), "style vector mismatch"

    # bf16 matmul-operand path (bf16 padded scratch + native bf16 MXU); f32
    # accumulation and f32 stats/norm, so only conv operands are rounded.
    x_bf, w_bf = encode_block_forward(x, params, conv_dtype=jnp.bfloat16)
    jax.block_until_ready((x_bf, w_bf))
    assert jnp.allclose(x_bf, x_ref, atol=5e-2, rtol=5e-2), "bf16 feature mismatch"
    assert jnp.allclose(w_bf, w_ref, atol=5e-2, rtol=5e-2), "bf16 style mismatch"

    print("KERNEL_OK")
</pallas_src>

<mosaic_0001>
module attributes {stable_mosaic.version = 11 : i64} {
  func.func @kernel(%arg0: i32, %arg1: memref<1x16x16x4xf32, #tpu.memory_space<vmem>>, %arg2: memref<3x12x4xf32, #tpu.memory_space<vmem>>, %arg3: memref<3x12x8xf32, #tpu.memory_space<vmem>>, %arg4: memref<1x4xf32, #tpu.memory_space<vmem>>, %arg5: memref<1x8xf32, #tpu.memory_space<vmem>>, %arg6: memref<8x32xf32, #tpu.memory_space<vmem>>, %arg7: memref<1x32xf32, #tpu.memory_space<vmem>>, %arg8: memref<16x32xf32, #tpu.memory_space<vmem>>, %arg9: memref<1x32xf32, #tpu.memory_space<vmem>>, %arg10: memref<1x64x8xf32, #tpu.memory_space<vmem>>, %arg11: memref<1x1x64xf32, #tpu.memory_space<vmem>>, %arg12: memref<18x18x4xf32, #tpu.memory_space<vmem>>) attributes {dimension_semantics = [#tpu.dimension_semantics<parallel>], iteration_bounds = array<i64: 2>, scalar_prefetch = 0 : i64, scratch_operands = 1 : i64, tpu.core_type = #tpu.core_type<tc>, window_params = [{transform_indices = @transform_0, window_bounds = array<i64: 1, 16, 16, 4>}, {pipeline_mode = #tpu.pipeline_mode<synchronous>, transform_indices = @transform_1, window_bounds = array<i64: 3, 12, 4>}, {pipeline_mode = #tpu.pipeline_mode<synchronous>, transform_indices = @transform_2, window_bounds = array<i64: 3, 12, 8>}, {pipeline_mode = #tpu.pipeline_mode<synchronous>, transform_indices = @transform_3, window_bounds = array<i64: 1, 4>}, {pipeline_mode = #tpu.pipeline_mode<synchronous>, transform_indices = @transform_4, window_bounds = array<i64: 1, 8>}, {pipeline_mode = #tpu.pipeline_mode<synchronous>, transform_indices = @transform_5, window_bounds = array<i64: 8, 32>}, {pipeline_mode = #tpu.pipeline_mode<synchronous>, transform_indices = @transform_6, window_bounds = array<i64: 1, 32>}, {pipeline_mode = #tpu.pipeline_mode<synchronous>, transform_indices = @transform_7, window_bounds = array<i64: 16, 32>}, {pipeline_mode = #tpu.pipeline_mode<synchronous>, transform_indices = @transform_8, window_bounds = array<i64: 1, 32>}, {transform_indices = @transform_9, window_bounds = array<i64: 1, 64, 8>}, {transform_indices = @transform_10, window_bounds = array<i64: 1, 1, 64>}]} {
    %cst = arith.constant 0.000000e+00 : f32
    %0 = vector.broadcast %cst : f32 to vector<1x18x4xf32>
    %cst_0 = arith.constant 0.000000e+00 : f32
    %1 = vector.broadcast %cst_0 : f32 to vector<16x1x4xf32>
    %c0 = arith.constant 0 : index
    %c0_1 = arith.constant 0 : index
    %c0_2 = arith.constant 0 : index
    %2 = vector.load %arg12[%c0, %c0_1, %c0_2] : memref<18x18x4xf32, #tpu.memory_space<vmem>>, vector<1x18x4xf32>
    tpu.vector_store %arg12[%c0, %c0_1, %c0_2], %0 {strides = array<i32>} : memref<18x18x4xf32, #tpu.memory_space<vmem>>, vector<1x18x4xf32>,
    %c17 = arith.constant 17 : index
    %c0_3 = arith.constant 0 : index
    %c0_4 = arith.constant 0 : index
    %3 = vector.load %arg12[%c17, %c0_3, %c0_4] : memref<18x18x4xf32, #tpu.memory_space<vmem>>, vector<1x18x4xf32>
    tpu.vector_store %arg12[%c17, %c0_3, %c0_4], %0 {strides = array<i32>} : memref<18x18x4xf32, #tpu.memory_space<vmem>>, vector<1x18x4xf32>,
    %c1 = arith.constant 1 : index
    %c0_5 = arith.constant 0 : index
    %c0_6 = arith.constant 0 : index
    %4 = vector.load %arg12[%c1, %c0_5, %c0_6] : memref<18x18x4xf32, #tpu.memory_space<vmem>>, vector<16x1x4xf32>
    tpu.vector_store %arg12[%c1, %c0_5, %c0_6], %1 {strides = array<i32>} : memref<18x18x4xf32, #tpu.memory_space<vmem>>, vector<16x1x4xf32>,
    %c1_7 = arith.constant 1 : index
    %c17_8 = arith.constant 17 : index
    %c0_9 = arith.constant 0 : index
    %5 = vector.load %arg12[%c1_7, %c17_8, %c0_9] : memref<18x18x4xf32, #tpu.memory_space<vmem>>, vector<16x1x4xf32>
    tpu.vector_store %arg12[%c1_7, %c17_8, %c0_9], %1 {strides = array<i32>} : memref<18x18x4xf32, #tpu.memory_space<vmem>>, vector<16x1x4xf32>,
    %c0_10 = arith.constant 0 : index
    %c0_11 = arith.constant 0 : index
    %c0_12 = arith.constant 0 : index
    %c0_13 = arith.constant 0 : index
    %6 = vector.load %arg1[%c0_10, %c0_11, %c0_12, %c0_13] : memref<1x16x16x4xf32, #tpu.memory_space<vmem>>, vector<1x16x16x4xf32>
    %7 = vector.shape_cast %6 : vector<1x16x16x4xf32> to vector<16x16x4xf32>
    %c1_14 = arith.constant 1 : index
    %c1_15 = arith.constant 1 : index
    %c0_16 = arith.constant 0 : index
    %8 = vector.load %arg12[%c1_14, %c1_15, %c0_16] : memref<18x18x4xf32, #tpu.memory_space<vmem>>, vector<16x16x4xf32>
    tpu.vector_store %arg12[%c1_14, %c1_15, %c0_16], %7 {strides = array<i32>} : memref<18x18x4xf32, #tpu.memory_space<vmem>>, vector<16x16x4xf32>,
    %c0_17 = arith.constant 0 : index
    %c0_18 = arith.constant 0 : index
    %c0_19 = arith.constant 0 : index
    %9 = vector.load %arg12[%c0_17, %c0_18, %c0_19] : memref<18x18x4xf32, #tpu.memory_space<vmem>>, vector<16x18x4xf32>
    %10 = vector.extract_strided_slice %9 {offsets = [0, 0, 0], sizes = [16, 16, 4], strides = [1, 1, 1]} : vector<16x18x4xf32> to vector<16x16x4xf32>
    %11 = vector.shape_cast %10 : vector<16x16x4xf32> to vector<256x4xf32>
    %12 = vector.extract_strided_slice %9 {offsets = [0, 1, 0], sizes = [16, 16, 4], strides = [1, 1, 1]} : vector<16x18x4xf32> to vector<16x16x4xf32>
    %13 = vector.shape_cast %12 : vector<16x16x4xf32> to vector<256x4xf32>
    %14 = vector.extract_strided_slice %9 {offsets = [0, 2, 0], sizes = [16, 16, 4], strides = [1, 1, 1]} : vector<16x18x4xf32> to vector<16x16x4xf32>
    %15 = vector.shape_cast %14 : vector<16x16x4xf32> to vector<256x4xf32>
    %16 = tpu.concatenate %11, %13, %15 in 1 : vector<256x4xf32>, vector<256x4xf32>, vector<256x4xf32> -> vector<256x12xf32>
    %c0_20 = arith.constant 0 : index
    %c0_21 = arith.constant 0 : index
    %c0_22 = arith.constant 0 : index
    %17 = vector.load %arg2[%c0_20, %c0_21, %c0_22] : memref<3x12x4xf32, #tpu.memory_space<vmem>>, vector<1x12x4xf32>
    %18 = vector.shape_cast %17 : vector<1x12x4xf32> to vector<12x4xf32>
    %cst_23 = arith.constant dense<0.000000e+00> : vector<256x4xf32>
    %19 = tpu.matmul %16, %18, %cst_23 {dimension_numbers = #tpu.dot_dimension_numbers<[1], [0], [0], [1], [0, 0, 1, 1], [], []>} : vector<256x12xf32>, vector<12x4xf32>, vector<256x4xf32> -> vector<256x4xf32>
    %c1_24 = arith.constant 1 : index
    %c0_25 = arith.constant 0 : index
    %c0_26 = arith.constant 0 : index
    %20 = vector.load %arg12[%c1_24, %c0_25, %c0_26] : memref<18x18x4xf32, #tpu.memory_space<vmem>>, vector<16x18x4xf32>
    %21 = vector.extract_strided_slice %20 {offsets = [0, 0, 0], sizes = [16, 16, 4], strides = [1, 1, 1]} : vector<16x18x4xf32> to vector<16x16x4xf32>
    %22 = vector.shape_cast %21 : vector<16x16x4xf32> to vector<256x4xf32>
    %23 = vector.extract_strided_slice %20 {offsets = [0, 1, 0], sizes = [16, 16, 4], strides = [1, 1, 1]} : vector<16x18x4xf32> to vector<16x16x4xf32>
    %24 = vector.shape_cast %23 : vector<16x16x4xf32> to vector<256x4xf32>
    %25 = vector.extract_strided_slice %20 {offsets = [0, 2, 0], sizes = [16, 16, 4], strides = [1, 1, 1]} : vector<16x18x4xf32> to vector<16x16x4xf32>
    %26 = vector.shape_cast %25 : vector<16x16x4xf32> to vector<256x4xf32>
    %27 = tpu.concatenate %22, %24, %26 in 1 : vector<256x4xf32>, vector<256x4xf32>, vector<256x4xf32> -> vector<256x12xf32>
    %c1_27 = arith.constant 1 : index
    %c0_28 = arith.constant 0 : index
    %c0_29 = arith.constant 0 : index
    %28 = vector.load %arg2[%c1_27, %c0_28, %c0_29] : memref<3x12x4xf32, #tpu.memory_space<vmem>>, vector<1x12x4xf32>
    %29 = vector.shape_cast %28 : vector<1x12x4xf32> to vector<12x4xf32>
    %cst_30 = arith.constant dense<0.000000e+00> : vector<256x4xf32>
    %30 = tpu.matmul %27, %29, %cst_30 {dimension_numbers = #tpu.dot_dimension_numbers<[1], [0], [0], [1], [0, 0, 1, 1], [], []>} : vector<256x12xf32>, vector<12x4xf32>, vector<256x4xf32> -> vector<256x4xf32>
    %31 = arith.addf %19, %30 : vector<256x4xf32>
    %c2 = arith.constant 2 : index
    %c0_31 = arith.constant 0 : index
    %c0_32 = arith.constant 0 : index
    %32 = vector.load %arg12[%c2, %c0_31, %c0_32] : memref<18x18x4xf32, #tpu.memory_space<vmem>>, vector<16x18x4xf32>
    %33 = vector.extract_strided_slice %32 {offsets = [0, 0, 0], sizes = [16, 16, 4], strides = [1, 1, 1]} : vector<16x18x4xf32> to vector<16x16x4xf32>
    %34 = vector.shape_cast %33 : vector<16x16x4xf32> to vector<256x4xf32>
    %35 = vector.extract_strided_slice %32 {offsets = [0, 1, 0], sizes = [16, 16, 4], strides = [1, 1, 1]} : vector<16x18x4xf32> to vector<16x16x4xf32>
    %36 = vector.shape_cast %35 : vector<16x16x4xf32> to vector<256x4xf32>
    %37 = vector.extract_strided_slice %32 {offsets = [0, 2, 0], sizes = [16, 16, 4], strides = [1, 1, 1]} : vector<16x18x4xf32> to vector<16x16x4xf32>
    %38 = vector.shape_cast %37 : vector<16x16x4xf32> to vector<256x4xf32>
    %39 = tpu.concatenate %34, %36, %38 in 1 : vector<256x4xf32>, vector<256x4xf32>, vector<256x4xf32> -> vector<256x12xf32>
    %c2_33 = arith.constant 2 : index
    %c0_34 = arith.constant 0 : index
    %c0_35 = arith.constant 0 : index
    %40 = vector.load %arg2[%c2_33, %c0_34, %c0_35] : memref<3x12x4xf32, #tpu.memory_space<vmem>>, vector<1x12x4xf32>
    %41 = vector.shape_cast %40 : vector<1x12x4xf32> to vector<12x4xf32>
    %cst_36 = arith.constant dense<0.000000e+00> : vector<256x4xf32>
    %42 = tpu.matmul %39, %41, %cst_36 {dimension_numbers = #tpu.dot_dimension_numbers<[1], [0], [0], [1], [0, 0, 1, 1], [], []>} : vector<256x12xf32>, vector<12x4xf32>, vector<256x4xf32> -> vector<256x4xf32>
    %43 = arith.addf %31, %42 : vector<256x4xf32>
    %c0_37 = arith.constant 0 : index
    %c0_38 = arith.constant 0 : index
    %44 = vector.load %arg4[%c0_37, %c0_38] : memref<1x4xf32, #tpu.memory_space<vmem>>, vector<1x4xf32>
    %45 = vector.broadcast %44 : vector<1x4xf32> to vector<256x4xf32>
    %46 = arith.addf %43, %45 : vector<256x4xf32>
    %cst_39 = arith.constant 2.000000e-01 : f32
    %47 = vector.broadcast %cst_39 : f32 to vector<256x4xf32>
    %48 = arith.mulf %47, %46 : vector<256x4xf32>
    %49 = arith.maximumf %46, %48 : vector<256x4xf32>
    %cst_40 = arith.constant dense<0.000000e+00> : vector<4xf32>
    %50 = vector.multi_reduction <add>, %49, %cst_40 [0] : vector<256x4xf32> to vector<4xf32>
    %51 = vector.shape_cast %50 : vector<4xf32> to vector<1x4xf32>
    %cst_41 = arith.constant 3.906250e-03 : f32
    %52 = vector.broadcast %cst_41 : f32 to vector<1x4xf32>
    %53 = arith.mulf %51, %52 : vector<1x4xf32>
    %54 = arith.mulf %49, %49 : vector<256x4xf32>
    %cst_42 = arith.constant dense<0.000000e+00> : vector<4xf32>
    %55 = vector.multi_reduction <add>, %54, %cst_42 [0] : vector<256x4xf32> to vector<4xf32>
    %56 = vector.shape_cast %55 : vector<4xf32> to vector<1x4xf32>
    %cst_43 = arith.constant 3.906250e-03 : f32
    %57 = vector.broadcast %cst_43 : f32 to vector<1x4xf32>
    %58 = arith.mulf %56, %57 : vector<1x4xf32>
    %59 = arith.mulf %53, %53 : vector<1x4xf32>
    %60 = arith.subf %58, %59 : vector<1x4xf32>
    %cst_44 = arith.constant 0.000000e+00 : f32
    %61 = vector.broadcast %cst_44 : f32 to vector<1x4xf32>
    %62 = arith.maximumf %60, %61 : vector<1x4xf32>
    %63 = math.sqrt %62 : vector<1x4xf32>
    %64 = tpu.concatenate %53, %63 in 1 : vector<1x4xf32>, vector<1x4xf32> -> vector<1x8xf32>
    %65 = vector.broadcast %53 : vector<1x4xf32> to vector<256x4xf32>
    %66 = arith.subf %49, %65 : vector<256x4xf32>
    %cst_45 = arith.constant 9.99999974E-6 : f32
    %67 = vector.broadcast %cst_45 : f32 to vector<1x4xf32>
    %68 = arith.addf %62, %67 : vector<1x4xf32>
    %69 = math.rsqrt %68 : vector<1x4xf32>
    %70 = vector.broadcast %69 : vector<1x4xf32> to vector<256x4xf32>
    %71 = arith.mulf %66, %70 : vector<256x4xf32>
    %72 = vector.shape_cast %71 : vector<256x4xf32> to vector<16x16x4xf32>
    %c1_46 = arith.constant 1 : index
    %c1_47 = arith.constant 1 : index
    %c0_48 = arith.constant 0 : index
    %73 = vector.load %arg12[%c1_46, %c1_47, %c0_48] : memref<18x18x4xf32, #tpu.memory_space<vmem>>, vector<16x16x4xf32>
    tpu.vector_store %arg12[%c1_46, %c1_47, %c0_48], %72 {strides = array<i32>} : memref<18x18x4xf32, #tpu.memory_space<vmem>>, vector<16x16x4xf32>,
    %c0_49 = arith.constant 0 : index
    %c0_50 = arith.constant 0 : index
    %c0_51 = arith.constant 0 : index
    %74 = vector.load %arg12[%c0_49, %c0_50, %c0_51] : memref<18x18x4xf32, #tpu.memory_space<vmem>>, vector<16x18x4xf32>
    %75 = vector.extract_strided_slice %74 {offsets = [0, 0, 0], sizes = [16, 16, 4], strides = [1, 1, 1]} : vector<16x18x4xf32> to vector<16x16x4xf32>
    %76 = vector.shape_cast %75 : vector<16x16x4xf32> to vector<256x4xf32>
    %77 = vector.extract_strided_slice %74 {offsets = [0, 1, 0], sizes = [16, 16, 4], strides = [1, 1, 1]} : vector<16x18x4xf32> to vector<16x16x4xf32>
    %78 = vector.shape_cast %77 : vector<16x16x4xf32> to vector<256x4xf32>
    %79 = vector.extract_strided_slice %74 {offsets = [0, 2, 0], sizes = [16, 16, 4], strides = [1, 1, 1]} : vector<16x18x4xf32> to vector<16x16x4xf32>
    %80 = vector.shape_cast %79 : vector<16x16x4xf32> to vector<256x4xf32>
    %81 = tpu.concatenate %76, %78, %80 in 1 : vector<256x4xf32>, vector<256x4xf32>, vector<256x4xf32> -> vector<256x12xf32>
    %c0_52 = arith.constant 0 : index
    %c0_53 = arith.constant 0 : index
    %c0_54 = arith.constant 0 : index
    %82 = vector.load %arg3[%c0_52, %c0_53, %c0_54] : memref<3x12x8xf32, #tpu.memory_space<vmem>>, vector<1x12x8xf32>
    %83 = vector.shape_cast %82 : vector<1x12x8xf32> to vector<12x8xf32>
    %cst_55 = arith.constant dense<0.000000e+00> : vector<256x8xf32>
    %84 = tpu.matmul %81, %83, %cst_55 {dimension_numbers = #tpu.dot_dimension_numbers<[1], [0], [0], [1], [0, 0, 1, 1], [], []>} : vector<256x12xf32>, vector<12x8xf32>, vector<256x8xf32> -> vector<256x8xf32>
    %c1_56 = arith.constant 1 : index
    %c0_57 = arith.constant 0 : index
    %c0_58 = arith.constant 0 : index
    %85 = vector.load %arg12[%c1_56, %c0_57, %c0_58] : memref<18x18x4xf32, #tpu.memory_space<vmem>>, vector<16x18x4xf32>
    %86 = vector.extract_strided_slice %85 {offsets = [0, 0, 0], sizes = [16, 16, 4], strides = [1, 1, 1]} : vector<16x18x4xf32> to vector<16x16x4xf32>
    %87 = vector.shape_cast %86 : vector<16x16x4xf32> to vector<256x4xf32>
    %88 = vector.extract_strided_slice %85 {offsets = [0, 1, 0], sizes = [16, 16, 4], strides = [1, 1, 1]} : vector<16x18x4xf32> to vector<16x16x4xf32>
    %89 = vector.shape_cast %88 : vector<16x16x4xf32> to vector<256x4xf32>
    %90 = vector.extract_strided_slice %85 {offsets = [0, 2, 0], sizes = [16, 16, 4], strides = [1, 1, 1]} : vector<16x18x4xf32> to vector<16x16x4xf32>
    %91 = vector.shape_cast %90 : vector<16x16x4xf32> to vector<256x4xf32>
    %92 = tpu.concatenate %87, %89, %91 in 1 : vector<256x4xf32>, vector<256x4xf32>, vector<256x4xf32> -> vector<256x12xf32>
    %c1_59 = arith.constant 1 : index
    %c0_60 = arith.constant 0 : index
    %c0_61 = arith.constant 0 : index
    %93 = vector.load %arg3[%c1_59, %c0_60, %c0_61] : memref<3x12x8xf32, #tpu.memory_space<vmem>>, vector<1x12x8xf32>
    %94 = vector.shape_cast %93 : vector<1x12x8xf32> to vector<12x8xf32>
    %cst_62 = arith.constant dense<0.000000e+00> : vector<256x8xf32>
    %95 = tpu.matmul %92, %94, %cst_62 {dimension_numbers = #tpu.dot_dimension_numbers<[1], [0], [0], [1], [0, 0, 1, 1], [], []>} : vector<256x12xf32>, vector<12x8xf32>, vector<256x8xf32> -> vector<256x8xf32>
    %96 = arith.addf %84, %95 : vector<256x8xf32>
    %c2_63 = arith.constant 2 : index
    %c0_64 = arith.constant 0 : index
    %c0_65 = arith.constant 0 : index
    %97 = vector.load %arg12[%c2_63, %c0_64, %c0_65] : memref<18x18x4xf32, #tpu.memory_space<vmem>>, vector<16x18x4xf32>
    %98 = vector.extract_strided_slice %97 {offsets = [0, 0, 0], sizes = [16, 16, 4], strides = [1, 1, 1]} : vector<16x18x4xf32> to vector<16x16x4xf32>
    %99 = vector.shape_cast %98 : vector<16x16x4xf32> to vector<256x4xf32>
    %100 = vector.extract_strided_slice %97 {offsets = [0, 1, 0], sizes = [16, 16, 4], strides = [1, 1, 1]} : vector<16x18x4xf32> to vector<16x16x4xf32>
    %101 = vector.shape_cast %100 : vector<16x16x4xf32> to vector<256x4xf32>
    %102 = vector.extract_strided_slice %97 {offsets = [0, 2, 0], sizes = [16, 16, 4], strides = [1, 1, 1]} : vector<16x18x4xf32> to vector<16x16x4xf32>
    %103 = vector.shape_cast %102 : vector<16x16x4xf32> to vector<256x4xf32>
    %104 = tpu.concatenate %99, %101, %103 in 1 : vector<256x4xf32>, vector<256x4xf32>, vector<256x4xf32> -> vector<256x12xf32>
    %c2_66 = arith.constant 2 : index
    %c0_67 = arith.constant 0 : index
    %c0_68 = arith.constant 0 : index
    %105 = vector.load %arg3[%c2_66, %c0_67, %c0_68] : memref<3x12x8xf32, #tpu.memory_space<vmem>>, vector<1x12x8xf32>
    %106 = vector.shape_cast %105 : vector<1x12x8xf32> to vector<12x8xf32>
    %cst_69 = arith.constant dense<0.000000e+00> : vector<256x8xf32>
    %107 = tpu.matmul %104, %106, %cst_69 {dimension_numbers = #tpu.dot_dimension_numbers<[1], [0], [0], [1], [0, 0, 1, 1], [], []>} : vector<256x12xf32>, vector<12x8xf32>, vector<256x8xf32> -> vector<256x8xf32>
    %108 = arith.addf %96, %107 : vector<256x8xf32>
    %109 = vector.shape_cast %108 : vector<256x8xf32> to vector<8x2x16x8xf32>
    %cst_70 = arith.constant dense<0.000000e+00> : vector<8x16x8xf32>
    %110 = vector.multi_reduction <add>, %109, %cst_70 [1] : vector<8x2x16x8xf32> to vector<8x16x8xf32>
    %111 = vector.shape_cast %110 : vector<8x16x8xf32> to vector<8x8x2x8xf32>
    %cst_71 = arith.constant dense<0.000000e+00> : vector<8x8x8xf32>
    %112 = vector.multi_reduction <add>, %111, %cst_71 [2] : vector<8x8x2x8xf32> to vector<8x8x8xf32>
    %cst_72 = arith.constant 2.500000e-01 : f32
    %113 = vector.broadcast %cst_72 : f32 to vector<8x8x8xf32>
    %114 = arith.mulf %112, %113 : vector<8x8x8xf32>
    %115 = vector.shape_cast %114 : vector<8x8x8xf32> to vector<64x8xf32>
    %c0_73 = arith.constant 0 : index
    %c0_74 = arith.constant 0 : index
    %116 = vector.load %arg5[%c0_73, %c0_74] : memref<1x8xf32, #tpu.memory_space<vmem>>, vector<1x8xf32>
    %117 = vector.broadcast %116 : vector<1x8xf32> to vector<64x8xf32>
    %118 = arith.addf %115, %117 : vector<64x8xf32>
    %cst_75 = arith.constant 2.000000e-01 : f32
    %119 = vector.broadcast %cst_75 : f32 to vector<64x8xf32>
    %120 = arith.mulf %119, %118 : vector<64x8xf32>
    %121 = arith.maximumf %118, %120 : vector<64x8xf32>
    %cst_76 = arith.constant dense<0.000000e+00> : vector<8xf32>
    %122 = vector.multi_reduction <add>, %121, %cst_76 [0] : vector<64x8xf32> to vector<8xf32>
    %123 = vector.shape_cast %122 : vector<8xf32> to vector<1x8xf32>
    %cst_77 = arith.constant 1.562500e-02 : f32
    %124 = vector.broadcast %cst_77 : f32 to vector<1x8xf32>
    %125 = arith.mulf %123, %124 : vector<1x8xf32>
    %126 = arith.mulf %121, %121 : vector<64x8xf32>
    %cst_78 = arith.constant dense<0.000000e+00> : vector<8xf32>
    %127 = vector.multi_reduction <add>, %126, %cst_78 [0] : vector<64x8xf32> to vector<8xf32>
    %128 = vector.shape_cast %127 : vector<8xf32> to vector<1x8xf32>
    %cst_79 = arith.constant 1.562500e-02 : f32
    %129 = vector.broadcast %cst_79 : f32 to vector<1x8xf32>
    %130 = arith.mulf %128, %129 : vector<1x8xf32>
    %131 = arith.mulf %125, %125 : vector<1x8xf32>
    %132 = arith.subf %130, %131 : vector<1x8xf32>
    %cst_80 = arith.constant 0.000000e+00 : f32
    %133 = vector.broadcast %cst_80 : f32 to vector<1x8xf32>
    %134 = arith.maximumf %132, %133 : vector<1x8xf32>
    %135 = math.sqrt %134 : vector<1x8xf32>
    %136 = tpu.concatenate %125, %135 in 1 : vector<1x8xf32>, vector<1x8xf32> -> vector<1x16xf32>
    %137 = vector.broadcast %125 : vector<1x8xf32> to vector<64x8xf32>
    %138 = arith.subf %121, %137 : vector<64x8xf32>
    %cst_81 = arith.constant 9.99999974E-6 : f32
    %139 = vector.broadcast %cst_81 : f32 to vector<1x8xf32>
    %140 = arith.addf %134, %139 : vector<1x8xf32>
    %141 = math.rsqrt %140 : vector<1x8xf32>
    %142 = vector.broadcast %141 : vector<1x8xf32> to vector<64x8xf32>
    %143 = arith.mulf %138, %142 : vector<64x8xf32>
    %c0_82 = arith.constant 0 : index
    %c0_83 = arith.constant 0 : index
    %c0_84 = arith.constant 0 : index
    %144 = vector.load %arg10[%c0_82, %c0_83, %c0_84] : memref<1x64x8xf32, #tpu.memory_space<vmem>>, vector<1x64x8xf32>
    %145 = vector.shape_cast %144 : vector<1x64x8xf32> to vector<64x8xf32>
    %146 = vector.shape_cast %143 : vector<64x8xf32> to vector<1x64x8xf32>
    tpu.vector_store %arg10[%c0_82, %c0_83, %c0_84], %146 {strides = array<i32>} : memref<1x64x8xf32, #tpu.memory_space<vmem>>, vector<1x64x8xf32>,
    %c0_85 = arith.constant 0 : index
    %c0_86 = arith.constant 0 : index
    %147 = vector.load %arg6[%c0_85, %c0_86] : memref<8x32xf32, #tpu.memory_space<vmem>>, vector<8x32xf32>
    %cst_87 = arith.constant dense<0.000000e+00> : vector<1x32xf32>
    %148 = tpu.matmul %64, %147, %cst_87 {dimension_numbers = #tpu.dot_dimension_numbers<[1], [0], [0], [1], [0, 0, 1, 1], [], []>} : vector<1x8xf32>, vector<8x32xf32>, vector<1x32xf32> -> vector<1x32xf32>
    %c0_88 = arith.constant 0 : index
    %c0_89 = arith.constant 0 : index
    %149 = vector.load %arg7[%c0_88, %c0_89] : memref<1x32xf32, #tpu.memory_space<vmem>>, vector<1x32xf32>
    %150 = arith.addf %148, %149 : vector<1x32xf32>
    %c0_90 = arith.constant 0 : index
    %c0_91 = arith.constant 0 : index
    %151 = vector.load %arg8[%c0_90, %c0_91] : memref<16x32xf32, #tpu.memory_space<vmem>>, vector<16x32xf32>
    %cst_92 = arith.constant dense<0.000000e+00> : vector<1x32xf32>
    %152 = tpu.matmul %136, %151, %cst_92 {dimension_numbers = #tpu.dot_dimension_numbers<[1], [0], [0], [1], [0, 0, 1, 1], [], []>} : vector<1x16xf32>, vector<16x32xf32>, vector<1x32xf32> -> vector<1x32xf32>
    %c0_93 = arith.constant 0 : index
    %c0_94 = arith.constant 0 : index
    %153 = vector.load %arg9[%c0_93, %c0_94] : memref<1x32xf32, #tpu.memory_space<vmem>>, vector<1x32xf32>
    %154 = arith.addf %152, %153 : vector<1x32xf32>
    %155 = tpu.concatenate %150, %154 in 1 : vector<1x32xf32>, vector<1x32xf32> -> vector<1x64xf32>
    %c0_95 = arith.constant 0 : index
    %c0_96 = arith.constant 0 : index
    %c0_97 = arith.constant 0 : index
    %156 = vector.load %arg11[%c0_95, %c0_96, %c0_97] : memref<1x1x64xf32, #tpu.memory_space<vmem>>, vector<1x1x64xf32>
    %157 = vector.shape_cast %156 : vector<1x1x64xf32> to vector<1x64xf32>
    %158 = vector.shape_cast %155 : vector<1x64xf32> to vector<1x1x64xf32>
    tpu.vector_store %arg11[%c0_95, %c0_96, %c0_97], %158 {strides = array<i32>} : memref<1x1x64xf32, #tpu.memory_space<vmem>>, vector<1x1x64xf32>,
    return
  }
  func.func @transform_0(%arg0: i32) -> (i32, i32, i32, i32) {
    %c0_i32 = arith.constant 0 : i32
    %c0_i32_0 = arith.constant 0 : i32
    %c0_i32_1 = arith.constant 0 : i32
    %c0_i32_2 = arith.constant 0 : i32
    return %arg0, %c0_i32, %c0_i32_0, %c0_i32_1 : i32, i32, i32, i32
  }
  func.func @transform_1(%arg0: i32) -> (i32, i32, i32) {
    %c0_i32 = arith.constant 0 : i32
    %c0_i32_0 = arith.constant 0 : i32
    %c0_i32_1 = arith.constant 0 : i32
    %c0_i32_2 = arith.constant 0 : i32
    return %c0_i32, %c0_i32_0, %c0_i32_1 : i32, i32, i32
  }
  func.func @transform_2(%arg0: i32) -> (i32, i32, i32) {
    %c0_i32 = arith.constant 0 : i32
    %c0_i32_0 = arith.constant 0 : i32
    %c0_i32_1 = arith.constant 0 : i32
    %c0_i32_2 = arith.constant 0 : i32
    return %c0_i32, %c0_i32_0, %c0_i32_1 : i32, i32, i32
  }
  func.func @transform_3(%arg0: i32) -> (i32, i32) {
    %c0_i32 = arith.constant 0 : i32
    %c0_i32_0 = arith.constant 0 : i32
    %c0_i32_1 = arith.constant 0 : i32
    return %c0_i32, %c0_i32_0 : i32, i32
  }
  func.func @transform_4(%arg0: i32) -> (i32, i32) {
    %c0_i32 = arith.constant 0 : i32
    %c0_i32_0 = arith.constant 0 : i32
    %c0_i32_1 = arith.constant 0 : i32
    return %c0_i32, %c0_i32_0 : i32, i32
  }
  func.func @transform_5(%arg0: i32) -> (i32, i32) {
    %c0_i32 = arith.constant 0 : i32
    %c0_i32_0 = arith.constant 0 : i32
    %c0_i32_1 = arith.constant 0 : i32
    return %c0_i32, %c0_i32_0 : i32, i32
  }
  func.func @transform_6(%arg0: i32) -> (i32, i32) {
    %c0_i32 = arith.constant 0 : i32
    %c0_i32_0 = arith.constant 0 : i32
    %c0_i32_1 = arith.constant 0 : i32
    return %c0_i32, %c0_i32_0 : i32, i32
  }
  func.func @transform_7(%arg0: i32) -> (i32, i32) {
    %c0_i32 = arith.constant 0 : i32
    %c0_i32_0 = arith.constant 0 : i32
    %c0_i32_1 = arith.constant 0 : i32
    return %c0_i32, %c0_i32_0 : i32, i32
  }
  func.func @transform_8(%arg0: i32) -> (i32, i32) {
    %c0_i32 = arith.constant 0 : i32
    %c0_i32_0 = arith.constant 0 : i32
    %c0_i32_1 = arith.constant 0 : i32
    return %c0_i32, %c0_i32_0 : i32, i32
  }
  func.func @transform_9(%arg0: i32) -> (i32, i32, i32) {
    %c0_i32 = arith.constant 0 : i32
    %c0_i32_0 = arith.constant 0 : i32
    %c0_i32_1 = arith.constant 0 : i32
    return %arg0, %c0_i32, %c0_i32_0 : i32, i32, i32
  }
  func.func @transform_10(%arg0: i32) -> (i32, i32, i32) {
    %c0_i32 = arith.constant 0 : i32
    %c0_i32_0 = arith.constant 0 : i32
    %c0_i32_1 = arith.constant 0 : i32
    return %arg0, %c0_i32, %c0_i32_0 : i32, i32, i32
  }
}

</mosaic_0001>

<bundles_post_ra>
// kernel: tpu_custom_call.1
= control target key start
LH: loop header
LB: loop body
LE: loop exit
PB: predicated region body
PF: predicated region fallthrough
CT: control target
= control target key end

     0   :  { %16 = vsyncpa [#allocation4], 0  ;;  %s14117_s0 = inlined_call_operand.vmem [shape: f32[2,16,16,4], index: 0, kind: input, shape index: {}]   ;;  %s14118_s1 = inlined_call_operand.vmem [shape: f32[3,12,4], index: 1, kind: input, shape index: {}]   ;;  %s14119_s2 = inlined_call_operand.vmem [shape: f32[3,12,8], index: 2, kind: input, shape index: {}]   ;;  %s14120_s3 = inlined_call_operand.vmem [shape: f32[1,4], index: 3, kind: input, shape index: {}]   ;;  %s14121_s4 = inlined_call_operand.vmem [shape: f32[1,8], index: 4, kind: input, shape index: {}]   ;;  %s14122_s5 = inlined_call_operand.vmem [shape: f32[8,32], index: 5, kind: input, shape index: {}]   ;;  %s14123_s6 = inlined_call_operand.vmem [shape: f32[1,32], index: 6, kind: input, shape index: {}]   ;;  %s14124_s7 = inlined_call_operand.vmem [shape: f32[16,32], index: 7, kind: input, shape index: {}]   ;;  %s14125_s8 = inlined_call_operand.vmem [shape: f32[1,32], index: 8, kind: input, shape index: {}]   ;;  %s14126_s9 = inlined_call_operand.vmem [shape: f32[2,64,8], index: 9, kind: output, shape index: {0}]   ;;  %s14127_s10 = inlined_call_operand.hbm [shape: f32[2,1,64], index: 10, kind: output, shape index: {1}]  }
   0x1   :  { %18 = vsyncpa [#allocation4 + $0x1], 0  ;;  %s9337_s13 = smov 0   ;;  %s9339_s14 = smov 0  }
   0x2   :  { %s9341_s15 = smov 0   ;;  %s9343_s16 = smov 0  }
   0x3 LB: > { %s9358_s17 = sadd.s32 4294967295, %s9271_s16   ;;  %s8168_s18 = sadd.s32 4294967294, %s9271_s16   ;;  %s9271_s16 = sphi %s9343_s16, %s14726_s16   ;;  %s9267_s15 = sphi %s9341_s15, %s14725_s15   ;;  %s9263_s14 = sphi %s9339_s14, %s14724_s14   ;;  %s9259_s13 = sphi %s9337_s13, %s14723_s13  }
   0x4   : > { %s9362_s19 = sadd.s32 1, %s9271_s16   ;;  %s251_s20 = sadd.s32 1, %s9267_s15 }
   0x5   : > { %s248_s21 = ssub.s32 %s9271_s16, %s9362_s19  ;;  %p261_p0 = scmp.ne.s32.totalorder %s9267_s15, %s9263_s14 }
   0x6   : > { %p249_p1 = scmp.eq.s32.totalorder %s248_s21, 0  ;;  %p262_p2 = scmp.eq.s32.totalorder %s9358_s17, 1 }
   0x7   : > { %p267_p3 = scmp.ne.s32.totalorder %s9263_s14, %s9259_s13  ;;  %p268_p4 = scmp.eq.s32.totalorder %s8168_s18, 1 }
   0x8   : > { %s9373_s22 = scalar_select %p249_p1, %s9267_s15, %s251_s20  }
   0x9   : > { %p9375_p5 = por %p262_p2, %p261_p0  ;;  %p9379_p6 = por %p268_p4, %p267_p3 }
   0xa   : > { %p8171_p7 = scmp.ge.s32.totalorder %s9271_s16, 1  ;;  %p318_p8 = scmp.lt.s32.totalorder %s9271_s16, 3 }
   0xc   : > { %p319_p9 = pnand %p8171_p7, %p318_p8 }
   0xe   : > { %322 = sbr.rel (%p319_p9) target bundleno = 2197 (0x895), region = 56 }
  0x15   : > { %p360_p10 = scmp.lt.s32.totalorder %s9358_s17, 1  ;;  %vm370_vm0 = vcmask 31744   ;;  %vm380_vm1 = vcmask 24576   ;;  %v14128_v0 = vmov 0.0   ;;  %vm373_vm2 = vcmask 25600   ;;  %v8176_v7 = vld [vmem:[%s14118_s1 + $0x10] sm:$0xff] }
  0x16   : > { %381 = vst.msk [vmem:[#allocation2 + $0x18] sm:$0x1] %vm380_vm1, %v14128_v0  ;;  %382 = vst.msk [vmem:[#allocation2 + $0x30] sm:$0x1] %vm380_vm1, %v14128_v0  ;;  %v8177_v8 = vld [vmem:[%s14118_s1 + $0x18] sm:$0xf] }
  0x17   : > { %371 = vst.msk [vmem:[#allocation2] sm:$0xff] %vm370_vm0, %v14128_v0  ;;  %372 = vst.msk [vmem:[#allocation2 + $0x8] sm:$0xff] %vm370_vm0, %v14128_v0  ;;  %s9461_s25 = scalar_select %p360_p10, %s9358_s17, 1  ;;  %vm1606_vm3 = vcmask 1043456   ;;  %v8924_v24 = vpack.c.bf16 %v8177_v8, %v8176_v7  ;;  %vm654_vm4 = vcmask 1045504   ;;  %vm573_vm5 = vcmask 1046528  }
  0x18   : > { %376 = vst.msk [vmem:[#allocation2 + $0x198] sm:$0xff] %vm370_vm0, %v14128_v0  ;;  %377 = vst.msk [vmem:[#allocation2 + $0x1a0] sm:$0xff] %vm370_vm0, %v14128_v0  ;;  %vm9274_vm6 = vmmov 1   ;;  %s9275_s20 = smov 8   ;;  %s9276_s21 = smov 4   ;;  %vm959_vm8 = vcmask 64512  }
  0x19   : > { %383 = vst.msk [vmem:[#allocation2 + $0x48] sm:$0x1] %vm380_vm1, %v14128_v0  ;;  %384 = vst.msk [vmem:[#allocation2 + $0x60] sm:$0x1] %vm380_vm1, %v14128_v0  ;;  %s8389_s26 = sshll.u32 %s9461_s25, 8  ;;  %vm1509_vm9 = vcmask 97280  }
  0x1a   : > { %385 = vst.msk [vmem:[#allocation2 + $0x78] sm:$0x1] %vm380_vm1, %v14128_v0  ;;  %386 = vst.msk [vmem:[#allocation2 + $0x90] sm:$0x1] %vm380_vm1, %v14128_v0  ;;  %s9467_s29 = scalar_lea.vmem %s14117_s0, %s8389_s26  ;;  %vm9277_vm10 = vmmov 0   ;;  %vm6367_vm13 = vcmask 58368  }
  0x1b   : > { %387 = vst.msk [vmem:[#allocation2 + $0xa8] sm:$0x1] %vm380_vm1, %v14128_v0  ;;  %388 = vst.msk [vmem:[#allocation2 + $0xc0] sm:$0x1] %vm380_vm1, %v14128_v0  ;;  %v413_v1 = vld [vmem:[%s9467_s29] sm:$0xff]  ;;  %v414_v2 = vld [vmem:[%s9467_s29 + $0x8] sm:$0xff] }
  0x1c   : > { %389 = vst.msk [vmem:[#allocation2 + $0xd8] sm:$0x1] %vm380_vm1, %v14128_v0  ;;  %390 = vst.msk [vmem:[#allocation2 + $0xf0] sm:$0x1] %vm380_vm1, %v14128_v0  ;;  %v415_v3 = vld [vmem:[%s9467_s29 + $0x10] sm:$0xff]  ;;  %v416_v4 = vld [vmem:[%s9467_s29 + $0x18] sm:$0xff] }
  0x1d   : > { %391 = vst.msk [vmem:[#allocation2 + $0x108] sm:$0x1] %vm380_vm1, %v14128_v0  ;;  %392 = vst.msk [vmem:[#allocation2 + $0x120] sm:$0x1] %vm380_vm1, %v14128_v0  ;;  %v417_v5 = vld [vmem:[%s9467_s29 + $0x20] sm:$0xff]  ;;  %v418_v6 = vld [vmem:[%s9467_s29 + $0x28] sm:$0xff] }
  0x1e   : > { %393 = vst.msk [vmem:[#allocation2 + $0x138] sm:$0x1] %vm380_vm1, %v14128_v0  ;;  %394 = vst.msk [vmem:[#allocation2 + $0x150] sm:$0x1] %vm380_vm1, %v14128_v0  ;;  %v419_v9 = vld [vmem:[%s9467_s29 + $0x30] sm:$0xff]  ;;  %v420_v10 = vld [vmem:[%s9467_s29 + $0x38] sm:$0xff] }
  0x1f   : > { %395 = vst.msk [vmem:[#allocation2 + $0x168] sm:$0x1] %vm380_vm1, %v14128_v0  ;;  %396 = vst.msk [vmem:[#allocation2 + $0x180] sm:$0x1] %vm380_vm1, %v14128_v0  ;;  %v421_v11 = vld [vmem:[%s9467_s29 + $0x40] sm:$0xff]  ;;  %v422_v12 = vld [vmem:[%s9467_s29 + $0x48] sm:$0xff] }
  0x20   : > { %397 = vst.msk [vmem:[#allocation2 + $0x29] sm:$0x1] %vm380_vm1, %v14128_v0  ;;  %398 = vst.msk [vmem:[#allocation2 + $0x41] sm:$0x1] %vm380_vm1, %v14128_v0  ;;  %v423_v13 = vld [vmem:[%s9467_s29 + $0x50] sm:$0xff]  ;;  %v424_v14 = vld [vmem:[%s9467_s29 + $0x58] sm:$0xff] }
  0x21   : > { %399 = vst.msk [vmem:[#allocation2 + $0x59] sm:$0x1] %vm380_vm1, %v14128_v0  ;;  %400 = vst.msk [vmem:[#allocation2 + $0x71] sm:$0x1] %vm380_vm1, %v14128_v0  ;;  %v425_v15 = vld [vmem:[%s9467_s29 + $0x60] sm:$0xff]  ;;  %v426_v16 = vld [vmem:[%s9467_s29 + $0x68] sm:$0xff] }
  0x22   : > { %401 = vst.msk [vmem:[#allocation2 + $0x89] sm:$0x1] %vm380_vm1, %v14128_v0  ;;  %402 = vst.msk [vmem:[#allocation2 + $0xa1] sm:$0x1] %vm380_vm1, %v14128_v0  ;;  %v427_v17 = vld [vmem:[%s9467_s29 + $0x70] sm:$0xff]  ;;  %v428_v18 = vld [vmem:[%s9467_s29 + $0x78] sm:$0xff] }
  0x23   : > { %403 = vst.msk [vmem:[#allocation2 + $0xb9] sm:$0x1] %vm380_vm1, %v14128_v0  ;;  %404 = vst.msk [vmem:[#allocation2 + $0xd1] sm:$0x1] %vm380_vm1, %v14128_v0  ;;  %v429_v19 = vld [vmem:[%s9467_s29 + $0x80] sm:$0xff]  ;;  %v430_v20 = vld [vmem:[%s9467_s29 + $0x88] sm:$0xff] }
  0x24   : > { %405 = vst.msk [vmem:[#allocation2 + $0xe9] sm:$0x1] %vm380_vm1, %v14128_v0  ;;  %406 = vst.msk [vmem:[#allocation2 + $0x101] sm:$0x1] %vm380_vm1, %v14128_v0  ;;  %v431_v21 = vld [vmem:[%s9467_s29 + $0x90] sm:$0xff]  ;;  %v432_v22 = vld [vmem:[%s9467_s29 + $0x98] sm:$0xff] }
  0x25   : > { %407 = vst.msk [vmem:[#allocation2 + $0x119] sm:$0x1] %vm380_vm1, %v14128_v0  ;;  %408 = vst.msk [vmem:[#allocation2 + $0x131] sm:$0x1] %vm380_vm1, %v14128_v0  ;;  %v433_v23 = vld [vmem:[%s9467_s29 + $0xa0] sm:$0xff]  ;;  %v434_v25 = vld [vmem:[%s9467_s29 + $0xa8] sm:$0xff] }
  0x26   : > { %409 = vst.msk [vmem:[#allocation2 + $0x149] sm:$0x1] %vm380_vm1, %v14128_v0  ;;  %410 = vst.msk [vmem:[#allocation2 + $0x161] sm:$0x1] %vm380_vm1, %v14128_v0  ;;  %v435_v26 = vld [vmem:[%s9467_s29 + $0xb0] sm:$0xff]  ;;  %v436_v27 = vld [vmem:[%s9467_s29 + $0xb8] sm:$0xff] }
  0x27   : > { %411 = vst.msk [vmem:[#allocation2 + $0x179] sm:$0x1] %vm380_vm1, %v14128_v0  ;;  %412 = vst.msk [vmem:[#allocation2 + $0x191] sm:$0x1] %vm380_vm1, %v14128_v0  ;;  %v437_v61 = vld [vmem:[%s9467_s29 + $0xc0] sm:$0xff]  ;;  %v438_v62 = vld [vmem:[%s9467_s29 + $0xc8] sm:$0xff] }
  0x28   : > { %445 = vst.msk [vmem:[#allocation2 + $0x19] sm:$0xff] %vm370_vm0, %v413_v1  ;;  %446 = vst.msk [vmem:[#allocation2 + $0x21] sm:$0xff] %vm370_vm0, %v414_v2  ;;  %v439_v63 = vld [vmem:[%s9467_s29 + $0xd0] sm:$0xff]  ;;  %v440_v1 = vld [vmem:[%s9467_s29 + $0xd8] sm:$0xff]  ;;  %vm7144_vm14 = vcmask 1041409   ;;  %vm7147_vm15 = vcmask 1042434  }
  0x29   : > { %447 = vst.msk [vmem:[#allocation2 + $0x31] sm:$0xff] %vm370_vm0, %v415_v3  ;;  %448 = vst.msk [vmem:[#allocation2 + $0x39] sm:$0xff] %vm370_vm0, %v416_v4  ;;  %v441_v2 = vld [vmem:[%s9467_s29 + $0xe0] sm:$0xff]  ;;  %v442_v4 = vld [vmem:[%s9467_s29 + $0xe8] sm:$0xff]  ;;  %vm7153_vm1 = vcmask 1044484   ;;  %s9280_s28 = smov 32  }
  0x2a   : > { %374 = vst.msk [vmem:[#allocation2 + $0x10] sm:$0x3] %vm373_vm2, %v14128_v0  ;;  %378 = vst.msk [vmem:[#allocation2 + $0x1a8] sm:$0x3] %vm373_vm2, %v14128_v0  ;;  %vm7156_vm2 = vcmask 1045509   ;;  %s8386_s12 = sshll.u32 %s9358_s17, 4 }
  0x2b   : > { %449 = vst.msk [vmem:[#allocation2 + $0x49] sm:$0xff] %vm370_vm0, %v417_v5  ;;  %450 = vst.msk [vmem:[#allocation2 + $0x51] sm:$0xff] %vm370_vm0, %v418_v6  ;;  %v443_v5 = vld [vmem:[%s9467_s29 + $0xf0] sm:$0xff]  ;;  %s14075_s26 = scalar_lea.hbm %s14127_s10, %s8386_s12 }
  0x2c   : > { %451 = vst.msk [vmem:[#allocation2 + $0x61] sm:$0xff] %vm370_vm0, %v419_v9  ;;  %452 = vst.msk [vmem:[#allocation2 + $0x69] sm:$0xff] %vm370_vm0, %v420_v10 }
  0x2d   : > { %453 = vst.msk [vmem:[#allocation2 + $0x79] sm:$0xff] %vm370_vm0, %v421_v11  ;;  %454 = vst.msk [vmem:[#allocation2 + $0x81] sm:$0xff] %vm370_vm0, %v422_v12  ;;  %v444_v11 = vld [vmem:[%s9467_s29 + $0xf8] sm:$0xff]  ;;  %s358_s29 = sand.u32 1, %s9263_s14  }
  0x2e   : > { %455 = vst.msk [vmem:[#allocation2 + $0x91] sm:$0xff] %vm370_vm0, %v423_v13  ;;  %456 = vst.msk [vmem:[#allocation2 + $0x99] sm:$0xff] %vm370_vm0, %v424_v14  ;;  %s8073_s17 = scalar_lea.sflag [#allocation4], %s358_s29 }
  0x2f   : > { %457 = vst.msk [vmem:[#allocation2 + $0xa9] sm:$0xff] %vm370_vm0, %v425_v15  ;;  %458 = vst.msk [vmem:[#allocation2 + $0xb1] sm:$0xff] %vm370_vm0, %v426_v16  ;;  %v9522_v28 = vld [vmem:[#allocation2 + $0x18] sm:$0xff]  ;;  %v9524_v29 = vld [vmem:[#allocation2 + $0x20] sm:$0xff] }
  0x30   : > { %459 = vst.msk [vmem:[#allocation2 + $0xc1] sm:$0xff] %vm370_vm0, %v427_v17  ;;  %460 = vst.msk [vmem:[#allocation2 + $0xc9] sm:$0xff] %vm370_vm0, %v428_v18  ;;  %v996_v30 = vld [vmem:[#allocation2 + $0x28] sm:$0x3]  ;;  %v1170_v31 = vrot.slane %v9522_v28, 2  ;;  %v9531_v32 = vrot.slane %v9524_v29, 2 }
  0x31   : > { %461 = vst.msk [vmem:[#allocation2 + $0xd9] sm:$0xff] %vm370_vm0, %v429_v19  ;;  %462 = vst.msk [vmem:[#allocation2 + $0xe1] sm:$0xff] %vm370_vm0, %v430_v20  ;;  %v1090_v33 = vrot.slane %v9522_v28, 1  ;;  %v9535_v34 = vrot.slane %v9524_v29, 1  ;;  %v9537_v35 = vld [vmem:[#allocation2 + $0x38] sm:$0xff]  ;;  %v1173_v37 = vrot.slane %v996_v30, 2 }
  0x32   : > { %463 = vst.msk [vmem:[#allocation2 + $0xf1] sm:$0xff] %vm370_vm0, %v431_v21  ;;  %464 = vst.msk [vmem:[#allocation2 + $0xf9] sm:$0xff] %vm370_vm0, %v432_v22  ;;  %v1093_v38 = vrot.slane %v996_v30, 1  ;;  %v999_v39 = vld [vmem:[#allocation2 + $0x40] sm:$0x3]  ;;  %v9544_v40 = vld [vmem:[#allocation2 + $0x30] sm:$0xff]  ;;  %v9550_v41 = vsel %vm654_vm4, %v1170_v31, %v9531_v32 }
  0x33   : > { %465 = vst.msk [vmem:[#allocation2 + $0x109] sm:$0xff] %vm370_vm0, %v433_v23  ;;  %466 = vst.msk [vmem:[#allocation2 + $0x111] sm:$0xff] %vm370_vm0, %v434_v25  ;;  %v9554_v42 = vsel %vm573_vm5, %v1090_v33, %v9535_v34  ;;  %1346 = vrot.lane.b32.xlu1 %v9550_v41, %s9275_s20  ;;  %v9563_v43 = vrot.slane %v9537_v35, 1  ;;  %v1174_v44 = vsel %vm654_vm4, %v9531_v32, %v1173_v37  ;;  %v1098_v46 = vrot.slane %v999_v39, 1  ;;  %v9582_v53 = vld [vmem:[#allocation2 + $0x50] sm:$0xff]  ;;  %v9584_v55 = vld [vmem:[#allocation2 + $0x48] sm:$0xff] }
  0x34   : > { %467 = vst.msk [vmem:[#allocation2 + $0x121] sm:$0xff] %vm370_vm0, %v435_v26  ;;  %468 = vst.msk [vmem:[#allocation2 + $0x129] sm:$0xff] %vm370_vm0, %v436_v27  ;;  %1250 = vrot.lane.b32.xlu0 %v9554_v42, %s9276_s21  ;;  %v1094_v45 = vsel %vm573_vm5, %v9535_v34, %v1093_v38  ;;  %v1095_v47 = vrot.slane %v9544_v40, 1  ;;  %v9573_v48 = vrot.slane %v9537_v35, 2  ;;  %v1178_v51 = vrot.slane %v999_v39, 2  ;;  %v9624_v10 = vld [vmem:[#allocation2 + $0x68] sm:$0xff] }
  0x35   : > { %vm9540_vm7 = vmpackc.low %vm1606_vm3, %vm9274_vm6  ;;  %v1099_v49 = vsel %vm573_vm5, %v9563_v43, %v1098_v46  ;;  %v1175_v52 = vrot.slane %v9544_v40, 2  ;;  %v1002_v54 = vld [vmem:[#allocation2 + $0x58] sm:$0x3]  ;;  %v9590_v56 = vrot.slane %v9582_v53, 1  ;;  %v1100_v60 = vrot.slane %v9584_v55, 1  ;;  %469 = vst.msk [vmem:[#allocation2 + $0x139] sm:$0xff] %vm370_vm0, %v437_v61 }
  0x36   : > { %8926 = vmatprep.subr.msk.bf16.mxu0 %vm9540_vm7, %v8924_v24  ;;  %v9579_v50 = vsel %vm573_vm5, %v1095_v47, %v9563_v43  ;;  %v1179_v57 = vsel %vm654_vm4, %v9573_v48, %v1178_v51  ;;  %v1103_v59 = vrot.slane %v1002_v54, 1  ;;  %470 = vst.msk [vmem:[#allocation2 + $0x141] sm:$0xff] %vm370_vm0, %v438_v62  ;;  %v9610_v3 = vrot.slane %v9582_v53, 2  ;;  %471 = vst.msk [vmem:[#allocation2 + $0x151] sm:$0xff] %vm370_vm0, %v439_v63  ;;  %v1005_v12 = vld [vmem:[#allocation2 + $0x70] sm:$0x3] }
  0x37   : > { %8929 = vmatpush3.bf16.msk.msra.mxu0 %vm9540_vm7, %v8924_v24  ;;  %1348 = vrot.lane.b32.xlu1 %v1174_v44, %s9275_s20  ;;  %v9596_v58 = vsel %vm654_vm4, %v1175_v52, %v9573_v48  ;;  %472 = vst.msk [vmem:[#allocation2 + $0x159] sm:$0xff] %vm370_vm0, %v440_v1  ;;  %473 = vst.msk [vmem:[#allocation2 + $0x169] sm:$0xff] %vm370_vm0, %v441_v2  ;;  %v9621_v7 = vsel %vm573_vm5, %v1100_v60, %v9590_v56  ;;  %v1183_v8 = vrot.slane %v1002_v54, 2  ;;  %v9629_v13 = vld [vmem:[#allocation2 + $0x60] sm:$0xff]  ;;  %v1008_v25 = vld [vmem:[#allocation2 + $0x88] sm:$0x3] }
  0x38   : > { %1252 = vrot.lane.b32.xlu0 %v1094_v45, %s9276_s21  ;;  %v1104_v6 = vsel %vm573_vm5, %v9590_v56, %v1103_v59  ;;  %v1180_v9 = vrot.slane %v9584_v55, 2  ;;  %474 = vst.msk [vmem:[#allocation2 + $0x171] sm:$0xff] %vm370_vm0, %v442_v4  ;;  %475 = vst.msk [vmem:[#allocation2 + $0x181] sm:$0xff] %vm370_vm0, %v443_v5  ;;  %v9636_v14 = vrot.slane %v9624_v10, 1  ;;  %v1108_v17 = vrot.slane %v1005_v12, 1  ;;  %v9658_v24 = vld [vmem:[#allocation2 + $0x80] sm:$0xff] }
  0x39   : > { %476 = vst.msk [vmem:[#allocation2 + $0x189] sm:$0xff] %vm370_vm0, %v444_v11  ;;  %v1184_v15 = vsel %vm654_vm4, %v9610_v3, %v1183_v8  ;;  %v1105_v18 = vrot.slane %v9629_v13, 1  ;;  %v9649_v19 = vrot.slane %v9624_v10, 2  ;;  %v1188_v22 = vrot.slane %v1005_v12, 2  ;;  %v9660_v26 = vld [vmem:[#allocation2 + $0x78] sm:$0xff]  ;;  %v9690_v51 = vld [vmem:[#allocation2 + $0x90] sm:$0xff] }
  0x3a   : > { %v9642_v16 = vsel %vm654_vm4, %v1180_v9, %v9610_v3  ;;  %v1109_v20 = vsel %vm573_vm5, %v9636_v14, %v1108_v17  ;;  %v1185_v23 = vrot.slane %v9629_v13, 2  ;;  %v9666_v27 = vrot.slane %v9658_v24, 1  ;;  %v9688_v47 = vld [vmem:[#allocation2 + $0x98] sm:$0xff]  ;;  %v9718_v4 = vld [vmem:[#allocation2 + $0xb0] sm:$0xff] }
  0x3b   : > { %1256 = vrot.lane.b32.xlu1 %v1099_v49, %s9276_s21  ;;  %v9655_v21 = vsel %vm573_vm5, %v1105_v18, %v9636_v14  ;;  %v1189_v30 = vsel %vm654_vm4, %v9649_v19, %v1188_v22  ;;  %v1113_v33 = vrot.slane %v1008_v25, 1  ;;  %v1110_v37 = vrot.slane %v9660_v26, 1  ;;  %v1011_v49 = vld [vmem:[#allocation2 + $0xa0] sm:$0x3]  ;;  %v1014_v5 = vld [vmem:[#allocation2 + $0xb8] sm:$0x3] }
  0x3c   : > { %1254 = vrot.lane.b32.xlu0 %v9579_v50, %s9276_s21  ;;  %v9672_v31 = vsel %vm654_vm4, %v1185_v23, %v9649_v19  ;;  %v9679_v38 = vrot.slane %v9658_v24, 2  ;;  %v1193_v45 = vrot.slane %v1008_v25, 2  ;;  %v1190_v46 = vrot.slane %v9660_v26, 2  ;;  %v9748_v25 = vld [vmem:[#allocation2 + $0xc8] sm:$0xff] }
  0x3d   : > { %v1114_v39 = vsel %vm573_vm5, %v9666_v27, %v1113_v33  ;;  %v9685_v44 = vsel %vm573_vm5, %v1110_v37, %v9666_v27  ;;  %v9696_v52 = vrot.slane %v9688_v47, 1  ;;  %v1118_v59 = vrot.slane %v1011_v49, 1  ;;  %v9750_v33 = vld [vmem:[#allocation2 + $0xc0] sm:$0xff] }
  0x3e   : > { %v1194_v54 = vsel %vm654_vm4, %v9679_v38, %v1193_v45  ;;  %v1115_v60 = vrot.slane %v9690_v51, 1  ;;  %v9709_v61 = vrot.slane %v9688_v47, 2  ;;  %v1198_v1 = vrot.slane %v1011_v49, 2 }
  0x3f   : > { %1352 = vrot.lane.b32.xlu1 %v1179_v57, %s9275_s20  ;;  %v9702_v57 = vsel %vm654_vm4, %v1190_v46, %v9679_v38  ;;  %v1119_v62 = vsel %vm573_vm5, %v9696_v52, %v1118_v59  ;;  %v1195_v2 = vrot.slane %v9690_v51, 2  ;;  %v9726_v8 = vrot.slane %v9718_v4, 1 }
  0x40   : > { %1350 = vrot.lane.b32.xlu0 %v9596_v58, %s9275_s20  ;;  %v9715_v63 = vsel %vm573_vm5, %v1115_v60, %v9696_v52  ;;  %v1199_v9 = vsel %vm654_vm4, %v9709_v61, %v1198_v1  ;;  %v1123_v12 = vrot.slane %v1014_v5, 1  ;;  %v9739_v17 = vrot.slane %v9718_v4, 2 }
  0x41   : > { %v9732_v11 = vsel %vm654_vm4, %v1195_v2, %v9709_v61  ;;  %v1203_v22 = vrot.slane %v1014_v5, 2  ;;  %v9756_v37 = vrot.slane %v9748_v25, 1  ;;  %v1125_v49 = vrot.slane %v9750_v33, 1  ;;  %v9778_v2 = vld [vmem:[#allocation2 + $0xe0] sm:$0xff]  ;;  %v1020_v5 = vld [vmem:[#allocation2 + $0xe8] sm:$0x3] }
  0x42   : > { %14315 = vst [vmem:[#allocation6_spill] sm:$0xff] %v9739_v17  ;;  %v1124_v18 = vsel %vm573_vm5, %v9726_v8, %v1123_v12  ;;  %v1205_v1 = vrot.slane %v9750_v33, 2  ;;  %v9786_v12 = vrot.slane %v9778_v2, 1  ;;  %vm7159_vm3 = vcmask 1046534  }
  0x43   : > { %1260 = vrot.lane.b32.xlu1 %v1104_v6, %s9276_s21  ;;  %v9720_v6 = vld [vmem:[#allocation2 + $0xa8] sm:$0xff]  ;;  %14317 = vst [vmem:[#allocation8_spill] sm:$0xff] %v9756_v37  ;;  %v9775_v60 = vsel %vm573_vm5, %v1125_v49, %v9756_v37  ;;  %v1213_v49 = vrot.slane %v1020_v5, 2 }
  0x44   : > { %1258 = vrot.lane.b32.xlu0 %v9621_v7, %s9276_s21  ;;  %v1200_v23 = vrot.slane %v9720_v6, 2  ;;  %14320 = vst [vmem:[#allocation11_spill] sm:$0xff] %v9775_v60  ;;  %14322 = vst [vmem:[#allocation13_spill] sm:$0xff] %v9786_v12 }
  0x46   : > { %v9762_v45 = vsel %vm654_vm4, %v1200_v23, %v9739_v17 }
  0x47   : > { %1356 = vrot.lane.b32.xlu1 %v1184_v15, %s9275_s20  ;;  %v1120_v15 = vrot.slane %v9720_v6, 1  ;;  %14318 = vst [vmem:[#allocation9_spill] sm:$0xff] %v9762_v45 }
  0x48   : > { %1354 = vrot.lane.b32.xlu0 %v9642_v16, %s9275_s20 }
  0x4b   : > { %1264 = vrot.lane.b32.xlu1 %v1109_v20, %s9276_s21  ;;  %v9745_v20 = vsel %vm573_vm5, %v1120_v15, %v9726_v8 }
  0x4c   : > { %1262 = vrot.lane.b32.xlu0 %v9655_v21, %s9276_s21  ;;  %14316 = vst [vmem:[#allocation7_spill] sm:$0xff] %v9745_v20 }
  0x4f   : > { %1360 = vrot.lane.b32.xlu1 %v1189_v30, %s9275_s20  ;;  %v1017_v30 = vld [vmem:[#allocation2 + $0xd0] sm:$0x3] }
  0x50   : > { %1358 = vrot.lane.b32.xlu0 %v9672_v31, %s9275_s20  ;;  %v1128_v46 = vrot.slane %v1017_v30, 1 }
  0x52   : > { %v1129_v59 = vsel %vm573_vm5, %v9756_v37, %v1128_v46 }
  0x53   : > { %1268 = vrot.lane.b32.xlu1 %v1114_v39, %s9276_s21  ;;  %v1204_v39 = vsel %vm654_vm4, %v9739_v17, %v1203_v22  ;;  %v1133_v22 = vrot.slane %v1020_v5, 1  ;;  %v10020_v17 = vld [vmem:[#allocation2 + $0x8] sm:$0xff] }
  0x54   : > { %1266 = vrot.lane.b32.xlu0 %v9685_v44, %s9276_s21 }
  0x57   : > { %1364 = vrot.lane.b32.xlu1 %v1194_v54, %s9275_s20  ;;  %v9769_v54 = vrot.slane %v9748_v25, 2 }
  0x58   : > { %1362 = vrot.lane.b32.xlu0 %v9702_v57, %s9275_s20 }
  0x59   : > { %14319 = vst [vmem:[#allocation10_spill] sm:$0xff] %v9769_v54 }
  0x5b   : > { %1272 = vrot.lane.b32.xlu1 %v1119_v62, %s9276_s21  ;;  %v1208_v62 = vrot.slane %v1017_v30, 2  ;;  %v9799_v30 = vrot.slane %v9778_v2, 2 }
  0x5c   : > { %1270 = vrot.lane.b32.xlu0 %v9715_v63, %s9276_s21 }
  0x5d   : > { %v1209_v15 = vsel %vm654_vm4, %v9769_v54, %v1208_v62  ;;  %14324 = vst [vmem:[#allocation15_spill] sm:$0xff] %v9799_v30  ;;  %v9808_v62 = vld [vmem:[#allocation2 + $0xf8] sm:$0xff] }
  0x5e   : > { %14326 = vst [vmem:[#allocation17_spill] sm:$0xff] %v9808_v62  ;;  %v9816_v0 = vrot.slane %v9808_v62, 1 }
  0x5f   : > { %1368 = vrot.lane.b32.xlu1 %v1199_v9, %s9275_s20  ;;  %v9780_v9 = vld [vmem:[#allocation2 + $0xd8] sm:$0xff] }
  0x60   : > { %1366 = vrot.lane.b32.xlu0 %v9732_v11, %s9275_s20  ;;  %14321 = vst [vmem:[#allocation12_spill] sm:$0xff] %v9780_v9  ;;  %v1130_v23 = vrot.slane %v9780_v9, 1  ;;  %14328 = vst [vmem:[#allocation19_spill] sm:$0xff] %v9816_v0 }
  0x62   : > { %v9805_v46 = vsel %vm573_vm5, %v1130_v23, %v9786_v12 }
  0x63   : > { %1276 = vrot.lane.b32.xlu1 %v1124_v18, %s9276_s21  ;;  %v9792_v18 = vsel %vm654_vm4, %v1205_v1, %v9769_v54  ;;  %14325 = vst [vmem:[#allocation16_spill] sm:$0xff] %v9805_v46  ;;  %v1023_v1 = vld [vmem:[#allocation2 + $0x100] sm:$0x3]  ;;  %v1026_v54 = vld [vmem:[#allocation2 + $0x118] sm:$0x3] }
  0x64   : > { %1274 = vrot.lane.b32.xlu0 %v9745_v20, %s9276_s21  ;;  %14323 = vst [vmem:[#allocation14_spill] sm:$0xff] %v9792_v18  ;;  %v1138_v23 = vrot.slane %v1023_v1, 1 }
  0x67   : > { %1372 = vrot.lane.b32.xlu1 %v1204_v39, %s9275_s20  ;;  %v1134_v39 = vsel %vm573_vm5, %v9786_v12, %v1133_v22  ;;  %v1214_v22 = vsel %vm654_vm4, %v9799_v30, %v1213_v49 }
  0x68   : > { %1370 = vrot.lane.b32.xlu0 %v9762_v45, %s9275_s20 }
  0x6b   : > { %1280 = vrot.lane.b32.xlu1 %v1129_v59, %s9276_s21  ;;  %v1210_v59 = vrot.slane %v9780_v9, 2  ;;  %v479_v9 = vld [vmem:[#allocation2 + $0x10] sm:$0x3] }
  0x6c   : > { %1278 = vrot.lane.b32.xlu0 %v9775_v60, %s9276_s21  ;;  %v9868_v60 = vld [vmem:[#allocation2 + $0x128] sm:$0xff] }
  0x6d   : > { %v9822_v5 = vsel %vm654_vm4, %v1210_v59, %v9799_v30  ;;  %v1218_v59 = vrot.slane %v1023_v1, 2  ;;  %14338 = vst [vmem:[#allocation29_spill] sm:$0xff] %v9868_v60 }
  0x6e   : > { %14329 = vst [vmem:[#allocation20_spill] sm:$0xff] %v9822_v5 }
  0x6f   : > { %1376 = vrot.lane.b32.xlu1 %v1209_v15, %s9275_s20  ;;  %v9810_v15 = vld [vmem:[#allocation2 + $0xf0] sm:$0xff] }
  0x70   : > { %1374 = vrot.lane.b32.xlu0 %v9792_v18, %s9275_s20  ;;  %14327 = vst [vmem:[#allocation18_spill] sm:$0xff] %v9810_v15  ;;  %v1135_v12 = vrot.slane %v9810_v15, 1  ;;  %v1215_v30 = vrot.slane %v9810_v15, 2  ;;  %v9838_v18 = vld [vmem:[#allocation2 + $0x110] sm:$0xff] }
  0x71   : > { %14332 = vst [vmem:[#allocation23_spill] sm:$0xff] %v9838_v18  ;;  %v1029_v15 = vld [vmem:[#allocation2 + $0x130] sm:$0x3] }
  0x72   : > { %v9835_v49 = vsel %vm573_vm5, %v1135_v12, %v9816_v0 }
  0x73   : > { %1284 = vrot.lane.b32.xlu1 %v1134_v39, %s9276_s21  ;;  %v9829_v39 = vrot.slane %v9808_v62, 2  ;;  %14331 = vst [vmem:[#allocation22_spill] sm:$0xff] %v9835_v49 }
  0x74   : > { %1282 = vrot.lane.b32.xlu0 %v9805_v46, %s9276_s21  ;;  %v1139_v46 = vsel %vm573_vm5, %v9816_v0, %v1138_v23  ;;  %v1143_v23 = vrot.slane %v1026_v54, 1 }
  0x75   : > { %14330 = vst [vmem:[#allocation21_spill] sm:$0xff] %v9829_v39  ;;  %v1219_v12 = vsel %vm654_vm4, %v9829_v39, %v1218_v59  ;;  %v9852_v1 = vsel %vm654_vm4, %v1215_v30, %v9829_v39  ;;  %v1223_v30 = vrot.slane %v1026_v54, 2 }
  0x76   : > { %14335 = vst [vmem:[#allocation26_spill] sm:$0xff] %v9852_v1 }
  0x77   : > { %1380 = vrot.lane.b32.xlu1 %v1214_v22, %s9275_s20  ;;  %v9840_v22 = vld [vmem:[#allocation2 + $0x108] sm:$0xff] }
  0x78   : > { %1378 = vrot.lane.b32.xlu0 %v9822_v5, %s9275_s20  ;;  %14333 = vst [vmem:[#allocation24_spill] sm:$0xff] %v9840_v22  ;;  %v9846_v5 = vrot.slane %v9838_v18, 1  ;;  %v1140_v0 = vrot.slane %v9840_v22, 1  ;;  %v1220_v39 = vrot.slane %v9840_v22, 2  ;;  %v9898_v22 = vld [vmem:[#allocation2 + $0x140] sm:$0xff] }
  0x79   : > { %14344 = vst [vmem:[#allocation35_spill] sm:$0xff] %v9898_v22 }
  0x7a   : > { %14334 = vst [vmem:[#allocation25_spill] sm:$0xff] %v9846_v5  ;;  %v9865_v59 = vsel %vm573_vm5, %v1140_v0, %v9846_v5 }
  0x7b   : > { %1288 = vrot.lane.b32.xlu1 %v1139_v46, %s9276_s21  ;;  %v9859_v46 = vrot.slane %v9838_v18, 2  ;;  %14337 = vst [vmem:[#allocation28_spill] sm:$0xff] %v9865_v59  ;;  %v1032_v18 = vld [vmem:[#allocation2 + $0x148] sm:$0x3] }
  0x7c   : > { %1286 = vrot.lane.b32.xlu0 %v9835_v49, %s9276_s21  ;;  %v1144_v49 = vsel %vm573_vm5, %v9846_v5, %v1143_v23  ;;  %v1148_v23 = vrot.slane %v1029_v15, 1 }
  0x7d   : > { %14336 = vst [vmem:[#allocation27_spill] sm:$0xff] %v9859_v46  ;;  %v1224_v0 = vsel %vm654_vm4, %v9859_v46, %v1223_v30  ;;  %v9882_v54 = vsel %vm654_vm4, %v1220_v39, %v9859_v46  ;;  %v1228_v39 = vrot.slane %v1029_v15, 2 }
  0x7e   : > { %14341 = vst [vmem:[#allocation32_spill] sm:$0xff] %v9882_v54 }
  0x7f   : > { %1384 = vrot.lane.b32.xlu1 %v1219_v12, %s9275_s20  ;;  %v9870_v12 = vld [vmem:[#allocation2 + $0x120] sm:$0xff] }
  0x80   : > { %1382 = vrot.lane.b32.xlu0 %v9852_v1, %s9275_s20  ;;  %14339 = vst [vmem:[#allocation30_spill] sm:$0xff] %v9870_v12  ;;  %v9876_v1 = vrot.slane %v9868_v60, 1  ;;  %v1145_v5 = vrot.slane %v9870_v12, 1  ;;  %v1225_v46 = vrot.slane %v9870_v12, 2  ;;  %v9928_v12 = vld [vmem:[#allocation2 + $0x158] sm:$0xff] }
  0x81   : > { %14350 = vst [vmem:[#allocation41_spill] sm:$0xff] %v9928_v12 }
  0x82   : > { %14340 = vst [vmem:[#allocation31_spill] sm:$0xff] %v9876_v1  ;;  %v9895_v30 = vsel %vm573_vm5, %v1145_v5, %v9876_v1 }
  0x83   : > { %1292 = vrot.lane.b32.xlu1 %v1144_v49, %s9276_s21  ;;  %v9889_v49 = vrot.slane %v9868_v60, 2  ;;  %14343 = vst [vmem:[#allocation34_spill] sm:$0xff] %v9895_v30  ;;  %v1035_v60 = vld [vmem:[#allocation2 + $0x160] sm:$0x3] }
  0x84   : > { %1290 = vrot.lane.b32.xlu0 %v9865_v59, %s9276_s21  ;;  %v1149_v59 = vsel %vm573_vm5, %v9876_v1, %v1148_v23  ;;  %v1153_v23 = vrot.slane %v1032_v18, 1 }
  0x85   : > { %14342 = vst [vmem:[#allocation33_spill] sm:$0xff] %v9889_v49  ;;  %v1229_v5 = vsel %vm654_vm4, %v9889_v49, %v1228_v39  ;;  %v9912_v15 = vsel %vm654_vm4, %v1225_v46, %v9889_v49  ;;  %v1233_v46 = vrot.slane %v1032_v18, 2 }
  0x86   : > { %14347 = vst [vmem:[#allocation38_spill] sm:$0xff] %v9912_v15 }
  0x87   : > { %1388 = vrot.lane.b32.xlu1 %v1224_v0, %s9275_s20  ;;  %v9900_v0 = vld [vmem:[#allocation2 + $0x138] sm:$0xff] }
  0x88   : > { %1386 = vrot.lane.b32.xlu0 %v9882_v54, %s9275_s20  ;;  %14345 = vst [vmem:[#allocation36_spill] sm:$0xff] %v9900_v0  ;;  %v9906_v54 = vrot.slane %v9898_v22, 1  ;;  %v1150_v1 = vrot.slane %v9900_v0, 1  ;;  %v1230_v49 = vrot.slane %v9900_v0, 2  ;;  %v9958_v0 = vld [vmem:[#allocation2 + $0x170] sm:$0xff] }
  0x89   : > { %14356 = vst [vmem:[#allocation47_spill] sm:$0xff] %v9958_v0 }
  0x8a   : > { %14346 = vst [vmem:[#allocation37_spill] sm:$0xff] %v9906_v54  ;;  %v9925_v39 = vsel %vm573_vm5, %v1150_v1, %v9906_v54 }
  0x8b   : > { %1296 = vrot.lane.b32.xlu1 %v1149_v59, %s9276_s21  ;;  %v9919_v59 = vrot.slane %v9898_v22, 2  ;;  %14349 = vst [vmem:[#allocation40_spill] sm:$0xff] %v9925_v39  ;;  %v1038_v22 = vld [vmem:[#allocation2 + $0x178] sm:$0x3] }
  0x8c   : > { %1294 = vrot.lane.b32.xlu0 %v9895_v30, %s9276_s21  ;;  %v1154_v30 = vsel %vm573_vm5, %v9906_v54, %v1153_v23  ;;  %v1158_v23 = vrot.slane %v1035_v60, 1 }
  0x8d   : > { %14348 = vst [vmem:[#allocation39_spill] sm:$0xff] %v9919_v59  ;;  %v1234_v1 = vsel %vm654_vm4, %v9919_v59, %v1233_v46  ;;  %v9942_v18 = vsel %vm654_vm4, %v1230_v49, %v9919_v59  ;;  %v1238_v49 = vrot.slane %v1035_v60, 2 }
  0x8e   : > { %14353 = vst [vmem:[#allocation44_spill] sm:$0xff] %v9942_v18 }
  0x8f   : > { %1392 = vrot.lane.b32.xlu1 %v1229_v5, %s9275_s20  ;;  %v9930_v5 = vld [vmem:[#allocation2 + $0x150] sm:$0xff] }
  0x90   : > { %1390 = vrot.lane.b32.xlu0 %v9912_v15, %s9275_s20  ;;  %14351 = vst [vmem:[#allocation42_spill] sm:$0xff] %v9930_v5  ;;  %v9936_v15 = vrot.slane %v9928_v12, 1  ;;  %v1155_v54 = vrot.slane %v9930_v5, 1  ;;  %v1235_v59 = vrot.slane %v9930_v5, 2  ;;  %v9988_v5 = vld [vmem:[#allocation2 + $0x188] sm:$0xff] }
  0x92   : > { %14352 = vst [vmem:[#allocation43_spill] sm:$0xff] %v9936_v15  ;;  %v9955_v46 = vsel %vm573_vm5, %v1155_v54, %v9936_v15 }
  0x93   : > { %1300 = vrot.lane.b32.xlu1 %v1154_v30, %s9276_s21  ;;  %v9949_v30 = vrot.slane %v9928_v12, 2  ;;  %14355 = vst [vmem:[#allocation46_spill] sm:$0xff] %v9955_v46  ;;  %v1041_v12 = vld [vmem:[#allocation2 + $0x190] sm:$0x3] }
  0x94   : > { %1298 = vrot.lane.b32.xlu0 %v9925_v39, %s9276_s21  ;;  %v1159_v39 = vsel %vm573_vm5, %v9936_v15, %v1158_v23  ;;  %v1163_v23 = vrot.slane %v1038_v22, 1  ;;  %v1248_v37 = vrot.slane %v1041_v12, 2 }
  0x95   : > { %14354 = vst [vmem:[#allocation45_spill] sm:$0xff] %v9949_v30  ;;  %v1239_v54 = vsel %vm654_vm4, %v9949_v30, %v1238_v49  ;;  %v9972_v60 = vsel %vm654_vm4, %v1235_v59, %v9949_v30  ;;  %v1243_v59 = vrot.slane %v1038_v22, 2 }
  0x96   : > { %14359 = vst [vmem:[#allocation50_spill] sm:$0xff] %v9972_v60 }
  0x97   : > { %1396 = vrot.lane.b32.xlu1 %v1234_v1, %s9275_s20  ;;  %v9960_v1 = vld [vmem:[#allocation2 + $0x168] sm:$0xff] }
  0x98   : > { %1394 = vrot.lane.b32.xlu0 %v9942_v18, %s9275_s20  ;;  %14357 = vst [vmem:[#allocation48_spill] sm:$0xff] %v9960_v1  ;;  %v9966_v18 = vrot.slane %v9958_v0, 1  ;;  %v1160_v15 = vrot.slane %v9960_v1, 1  ;;  %v1240_v30 = vrot.slane %v9960_v1, 2 }
  0x9a   : > { %14358 = vst [vmem:[#allocation49_spill] sm:$0xff] %v9966_v18  ;;  %v9985_v49 = vsel %vm573_vm5, %v1160_v15, %v9966_v18 }
  0x9b   : > { %1304 = vrot.lane.b32.xlu1 %v1159_v39, %s9276_s21  ;;  %v9979_v39 = vrot.slane %v9958_v0, 2  ;;  %14361 = vst [vmem:[#allocation52_spill] sm:$0xff] %v9985_v49 }
  0x9c   : > { %1302 = vrot.lane.b32.xlu0 %v9955_v46, %s9276_s21  ;;  %v1164_v46 = vsel %vm573_vm5, %v9966_v18, %v1163_v23  ;;  %v1166_v23 = vrot.slane %v9988_v5, 1  ;;  %v1168_v18 = vrot.slane %v1041_v12, 1 }
  0x9d   : > { %14360 = vst [vmem:[#allocation51_spill] sm:$0xff] %v9979_v39  ;;  %v1244_v15 = vsel %vm654_vm4, %v9979_v39, %v1243_v59  ;;  %v10000_v22 = vsel %vm654_vm4, %v1240_v30, %v9979_v39  ;;  %v993_v59 = vld [vmem:[%s14118_s1 + $0x8] sm:$0xf]  ;;  %v1246_v39 = vrot.slane %v9988_v5, 2 }
  0x9e   : > { %14362 = vst [vmem:[#allocation53_spill] sm:$0xff] %v10000_v22 }
  0x9f   : > { %1400 = vrot.lane.b32.xlu1 %v1239_v54, %s9275_s20  ;;  %v9990_v54 = vld [vmem:[#allocation2 + $0x180] sm:$0xff] }
  0xa0   : > { %1398 = vrot.lane.b32.xlu0 %v9972_v60, %s9275_s20  ;;  %v1165_v60 = vrot.slane %v9990_v54, 1  ;;  %v1245_v45 = vrot.slane %v9990_v54, 2 }
  0xa3   : > { %1308 = vrot.lane.b32.xlu1 %v1164_v46, %s9276_s21 }
  0xa4   : > { %1306 = vrot.lane.b32.xlu0 %v9985_v49, %s9276_s21  ;;  %v992_v49 = vld [vmem:[%s14118_s1] sm:$0xff] }
  0xa5   : > { %v1347_v1 = vpop.permute.xlu1 %1346  ;;  %v8930_v62 = vpack.c.bf16 %v993_v59, %v992_v49  ;;  %v1247_v49 = vsel %vm654_vm4, %v1245_v45, %v1246_v39 }
  0xa6   : > { %v1251_v0 = vpop.permute.xlu0 %1250 }
  0xa7   : > { %v1442_v46 = vsel %vm370_vm0, %v9522_v28, %v1251_v0  ;;  %1404 = vrot.lane.b32.xlu1 %v1244_v15, %s9275_s20  ;;  %v1169_v28 = vsel %vm573_vm5, %v1166_v23, %v1168_v18  ;;  %v1167_v0 = vsel %vm573_vm5, %v1165_v60, %v1166_v23  ;;  %8932 = vmatprep.subr.msk.bf16.mxu0 %vm9540_vm7, %v8930_v62  ;;  %v575_v18 = vrot.slane %v10020_v17, 1 }
  0xa8   : > { %1402 = vrot.lane.b32.xlu0 %v10000_v22, %s9275_s20  ;;  %v1474_v30 = vsel %vm959_vm8, %v1442_v46, %v1347_v1  ;;  %v10022_v22 = vld [vmem:[#allocation2] sm:$0xff]  ;;  %v1249_v60 = vsel %vm654_vm4, %v1246_v39, %v1248_v37  ;;  %v577_v23 = vrot.slane %v479_v9, 1 }
  0xa9   : > { %8604 = vmatprep.mubr.msk.f32.mxu0 %vm1509_vm9, %v1474_v30  ;;  %v1349_v15 = vpop.permute.xlu1 %1348  ;;  %v574_v46 = vrot.slane %v10022_v22, 1  ;;  %v655_v45 = vrot.slane %v10022_v22, 2 }
  0xaa   : > { %v1253_v20 = vpop.permute.xlu0 %1252 }
  0xab   : > { %v1443_v1 = vsel %vm370_vm0, %v9524_v29, %v1253_v20  ;;  %1312 = vrot.lane.b32.xlu1 %v1169_v28, %s9276_s21  ;;  %v656_v29 = vrot.slane %v10020_v17, 2  ;;  %v578_v20 = vsel %vm573_vm5, %v575_v18, %v577_v23  ;;  %v576_v37 = vsel %vm573_vm5, %v574_v46, %v575_v18 }
  0xac   : > { %1310 = vrot.lane.b32.xlu0 %v1167_v0, %s9276_s21  ;;  %v1475_v12 = vsel %vm959_vm8, %v1443_v1, %v1349_v15  ;;  %v658_v28 = vrot.slane %v479_v9, 2  ;;  %v482_v1 = vld [vmem:[#allocation2 + $0x28] sm:$0x3] }
  0xad   : > { %8605 = vmatmul.mubr.msk.f32.vlgmr.msra.gmra.mrb[0].mxu0 %vm1509_vm9, %v1475_v12  ;;  %v1257_v59 = vpop.permute.xlu1 %1256  ;;  %v582_v18 = vrot.slane %v482_v1, 1  ;;  %v663_v46 = vrot.slane %v482_v1, 2 }
  0xae   : > { %v1255_v30 = vpop.permute.xlu0 %1254  ;;  %8935 = vmatpush3.bf16.msk.msra.mxu0 %vm9540_vm7, %v8930_v62  ;;  %v1445_v39 = vsel %vm370_vm0, %v9537_v35, %v1257_v59  ;;  %v659_v9 = vsel %vm654_vm4, %v656_v29, %v658_v28  ;;  %v657_v35 = vsel %vm654_vm4, %v655_v45, %v656_v29 }
  0xaf   : > { %1408 = vrot.lane.b32.xlu1 %v1249_v60, %s9275_s20  ;;  %v1444_v0 = vsel %vm370_vm0, %v9544_v40, %v1255_v30  ;;  %v583_v23 = vsel %vm573_vm5, %v9535_v34, %v582_v18  ;;  %v664_v34 = vsel %vm654_vm4, %v9531_v32, %v663_v46 }
  0xb0   : > { %1406 = vrot.lane.b32.xlu0 %v1247_v49, %s9275_s20 }
  0xb1   : > { %v1353_v62 = vpop.permute.xlu1 %1352 }
  0xb2   : > { %v1351_v15 = vpop.permute.xlu0 %1350  ;;  %v1477_v12 = vsel %vm959_vm8, %v1445_v39, %v1353_v62 }
  0xb3   : > { %v1476_v60 = vsel %vm959_vm8, %v1444_v0, %v1351_v15  ;;  %737 = vrot.lane.b32.xlu1 %v578_v20, %s9276_s21 }
  0xb4   : > { %735 = vrot.lane.b32.xlu0 %v576_v37, %s9276_s21  ;;  %8607 = vmatprep.mubr.msk.f32.mxu0 %vm1509_vm9, %v1476_v60  ;;  %v485_v37 = vld [vmem:[#allocation2 + $0x40] sm:$0x3] }
  0xb5   : > { %8608 = vmatmul.mubr.msk.f32.gmra.mrb[2].mxu0 %vm1509_vm9, %v1477_v12  ;;  %v1261_v40 = vpop.permute.xlu1 %1260  ;;  %v668_v62 = vrot.slane %v485_v37, 2  ;;  %v488_v12 = vld [vmem:[#allocation2 + $0x58] sm:$0x3] }
  0xb6   : > { %v1259_v49 = vpop.permute.xlu0 %1258  ;;  %v1447_v59 = vsel %vm370_vm0, %v9582_v53, %v1261_v40  ;;  %v587_v53 = vrot.slane %v485_v37, 1  ;;  %v673_v18 = vrot.slane %v488_v12, 2 }
  0xb7   : > { %833 = vrot.lane.b32.xlu1 %v659_v9, %s9275_s20  ;;  %v1446_v30 = vsel %vm370_vm0, %v9584_v55, %v1259_v49 }
  0xb8   : > { %831 = vrot.lane.b32.xlu0 %v657_v35, %s9275_s20  ;;  %v588_v0 = vsel %vm573_vm5, %v9563_v43, %v587_v53  ;;  %v592_v43 = vrot.slane %v488_v12, 1 }
  0xb9   : > { %v1357_v29 = vpop.permute.xlu1 %1356 }
  0xba   : > { %v1355_v20 = vpop.permute.xlu0 %1354  ;;  %v1479_v28 = vsel %vm959_vm8, %v1447_v59, %v1357_v29  ;;  %v593_v35 = vsel %vm573_vm5, %v9590_v56, %v592_v43  ;;  %v674_v56 = vsel %vm654_vm4, %v9610_v3, %v673_v18 }
  0xbb   : > { %v1478_v45 = vsel %vm959_vm8, %v1446_v30, %v1355_v20  ;;  %741 = vrot.lane.b32.xlu1 %v583_v23, %s9276_s21  ;;  %v491_v23 = vld [vmem:[#allocation2 + $0x70] sm:$0x3] }
  0xbc   : > { %8610 = vmatprep.mubr.msk.f32.mxu0 %vm1509_vm9, %v1478_v45  ;;  %739 = vrot.lane.b32.xlu0 %v9554_v42, %s9276_s21  ;;  %v678_v29 = vrot.slane %v491_v23, 2 }
  0xbd   : > { %8611 = vmatmul.mubr.msk.f32.gmra.mrb[4].mxu0 %vm1509_vm9, %v1479_v28  ;;  %v1265_v55 = vpop.permute.xlu1 %1264  ;;  %v494_v28 = vld [vmem:[#allocation2 + $0x88] sm:$0x3] }
  0xbe   : > { %v1263_v39 = vpop.permute.xlu0 %1262  ;;  %v1449_v42 = vsel %vm370_vm0, %v9624_v10, %v1265_v55  ;;  %v683_v55 = vrot.slane %v494_v28, 2 }
  0xbf   : > { %837 = vrot.lane.b32.xlu1 %v664_v34, %s9275_s20  ;;  %v1448_v15 = vsel %vm370_vm0, %v9629_v13, %v1263_v39 }
  0xc0   : > { %835 = vrot.lane.b32.xlu0 %v9550_v41, %s9275_s20  ;;  %v669_v41 = vsel %vm654_vm4, %v9573_v48, %v668_v62  ;;  %v497_v62 = vld [vmem:[#allocation2 + $0xa0] sm:$0x3] }
  0xc1   : > { %v1361_v1 = vpop.permute.xlu1 %1360 }
  0xc2   : > { %v1359_v32 = vpop.permute.xlu0 %1358  ;;  %v1481_v60 = vsel %vm959_vm8, %v1449_v42, %v1361_v1 }
  0xc3   : > { %v1480_v9 = vsel %vm959_vm8, %v1448_v15, %v1359_v32  ;;  %745 = vrot.lane.b32.xlu1 %v588_v0, %s9276_s21  ;;  %v688_v32 = vrot.slane %v497_v62, 2 }
  0xc4   : > { %8613 = vmatprep.mubr.msk.f32.mxu0 %vm1509_vm9, %v1480_v9  ;;  %743 = vrot.lane.b32.xlu0 %v9579_v50, %s9276_s21  ;;  %v500_v9 = vld [vmem:[#allocation2 + $0xb8] sm:$0x3] }
  0xc5   : > { %8614 = vmatmul.mubr.msk.f32.gmra.mrb[6].mxu0 %vm1509_vm9, %v1481_v60  ;;  %v1269_v10 = vpop.permute.xlu1 %1268 }
  0xc6   : > { %v1267_v13 = vpop.permute.xlu0 %1266  ;;  %v1451_v50 = vsel %vm370_vm0, %v9658_v24, %v1269_v10 }
  0xc7   : > { %841 = vrot.lane.b32.xlu1 %v669_v41, %s9275_s20  ;;  %v1450_v40 = vsel %vm370_vm0, %v9660_v26, %v1267_v13  ;;  %v693_v13 = vrot.slane %v500_v9, 2 }
  0xc8   : > { %839 = vrot.lane.b32.xlu0 %v9596_v58, %s9275_s20  ;;  %v597_v58 = vrot.slane %v491_v23, 1 }
  0xc9   : > { %v1365_v49 = vpop.permute.xlu1 %1364 }
  0xca   : > { %v1363_v48 = vpop.permute.xlu0 %1362  ;;  %v1483_v46 = vsel %vm959_vm8, %v1451_v50, %v1365_v49  ;;  %v598_v30 = vsel %vm573_vm5, %v9636_v14, %v597_v58  ;;  %v679_v14 = vsel %vm654_vm4, %v9649_v19, %v678_v29  ;;  %v14367_v58 = vld [vmem:[#allocation8_spill] sm:$0xff] }
  0xcb   : > { %v1482_v59 = vsel %vm959_vm8, %v1450_v40, %v1363_v48  ;;  %749 = vrot.lane.b32.xlu1 %v593_v35, %s9276_s21  ;;  %v14363_v35 = vld [vmem:[#allocation12_spill] sm:$0xff]  ;;  %v503_v40 = vld [vmem:[#allocation2 + $0xd0] sm:$0x3] }
  0xcc   : > { %8616 = vmatprep.mubr.msk.f32.mxu0 %vm1509_vm9, %v1482_v59  ;;  %747 = vrot.lane.b32.xlu0 %v9621_v7, %s9276_s21  ;;  %v617_v23 = vrot.slane %v503_v40, 1 }
  0xcd   : > { %8617 = vmatmul.mubr.msk.f32.gmra.mrb[8].mxu0 %vm1509_vm9, %v1483_v46  ;;  %v1273_v24 = vpop.permute.xlu1 %1272 }
  0xce   : > { %v1271_v26 = vpop.permute.xlu0 %1270  ;;  %v1453_v7 = vsel %vm370_vm0, %v9688_v47, %v1273_v24  ;;  %v618_v24 = vsel %vm573_vm5, %v14367_v58, %v617_v23 }
  0xcf   : > { %845 = vrot.lane.b32.xlu1 %v674_v56, %s9275_s20  ;;  %v1452_v20 = vsel %vm370_vm0, %v9690_v51, %v1271_v26  ;;  %v14366_v56 = vld [vmem:[#allocation9_spill] sm:$0xff]  ;;  %v698_v26 = vrot.slane %v503_v40, 2 }
  0xd0   : > { %843 = vrot.lane.b32.xlu0 %v9642_v16, %s9275_s20  ;;  %v602_v16 = vrot.slane %v494_v28, 1  ;;  %v506_v28 = vld [vmem:[#allocation2 + $0xe8] sm:$0x3] }
  0xd1   : > { %v1369_v37 = vpop.permute.xlu1 %1368 }
  0xd2   : > { %v1367_v3 = vpop.permute.xlu0 %1366  ;;  %v1485_v45 = vsel %vm959_vm8, %v1453_v7, %v1369_v37  ;;  %v603_v53 = vsel %vm573_vm5, %v9666_v27, %v602_v16  ;;  %v684_v27 = vsel %vm654_vm4, %v9679_v38, %v683_v55  ;;  %v14369_v7 = vld [vmem:[#allocation18_spill] sm:$0xff] }
  0xd3   : > { %v1484_v34 = vsel %vm959_vm8, %v1452_v20, %v1367_v3  ;;  %753 = vrot.lane.b32.xlu1 %v598_v30, %s9276_s21  ;;  %v14368_v30 = vld [vmem:[#allocation17_spill] sm:$0xff]  ;;  %v14371_v16 = vld [vmem:[#allocation10_spill] sm:$0xff] }
  0xd4   : > { %8619 = vmatprep.mubr.msk.f32.mxu0 %vm1509_vm9, %v1484_v34  ;;  %751 = vrot.lane.b32.xlu0 %v9655_v21, %s9276_s21 }
  0xd5   : > { %8620 = vmatmul.mubr.msk.f32.gmra.mrb[10].mxu0 %vm1509_vm9, %v1485_v45  ;;  %v1277_v47 = vpop.permute.xlu1 %1276 }
  0xd6   : > { %v1275_v51 = vpop.permute.xlu0 %1274  ;;  %v1455_v21 = vsel %vm370_vm0, %v9718_v4, %v1277_v47  ;;  %v699_v47 = vsel %vm654_vm4, %v14371_v16, %v698_v26 }
  0xd7   : > { %849 = vrot.lane.b32.xlu1 %v679_v14, %s9275_s20  ;;  %v1454_v39 = vsel %vm370_vm0, %v9720_v6, %v1275_v51  ;;  %v14370_v14 = vld [vmem:[#allocation11_spill] sm:$0xff]  ;;  %v622_v51 = vrot.slane %v506_v28, 1 }
  0xd8   : > { %847 = vrot.lane.b32.xlu0 %v9672_v31, %s9275_s20  ;;  %v607_v31 = vrot.slane %v497_v62, 1  ;;  %v14374_v62 = vld [vmem:[#allocation23_spill] sm:$0xff] }
  0xd9   : > { %v1373_v0 = vpop.permute.xlu1 %1372 }
  0xda   : > { %v1371_v19 = vpop.permute.xlu0 %1370  ;;  %v1487_v42 = vsel %vm959_vm8, %v1455_v21, %v1373_v0  ;;  %v608_v1 = vsel %vm573_vm5, %v9696_v52, %v607_v31  ;;  %v689_v52 = vsel %vm654_vm4, %v9709_v61, %v688_v32  ;;  %v14372_v21 = vld [vmem:[#allocation14_spill] sm:$0xff] }
  0xdb   : > { %v1486_v15 = vsel %vm959_vm8, %v1454_v39, %v1371_v19  ;;  %757 = vrot.lane.b32.xlu1 %v603_v53, %s9276_s21  ;;  %v14373_v39 = vld [vmem:[#allocation13_spill] sm:$0xff]  ;;  %v703_v19 = vrot.slane %v506_v28, 2 }
  0xdc   : > { %8622 = vmatprep.mubr.msk.f32.mxu0 %vm1509_vm9, %v1486_v15  ;;  %755 = vrot.lane.b32.xlu0 %v9685_v44, %s9276_s21  ;;  %v623_v0 = vsel %vm573_vm5, %v14373_v39, %v622_v51  ;;  %v14375_v15 = vld [vmem:[#allocation24_spill] sm:$0xff] }
  0xdd   : > { %8623 = vmatmul.mubr.msk.f32.gmra.mrb[12].mxu0 %vm1509_vm9, %v1487_v42  ;;  %v1281_v4 = vpop.permute.xlu1 %1280 }
  0xde   : > { %v1279_v6 = vpop.permute.xlu0 %1278  ;;  %v1457_v44 = vsel %vm370_vm0, %v9748_v25, %v1281_v4 }
  0xdf   : > { %853 = vrot.lane.b32.xlu1 %v684_v27, %s9275_s20  ;;  %v1456_v12 = vsel %vm370_vm0, %v9750_v33, %v1279_v6  ;;  %v509_v6 = vld [vmem:[#allocation2 + $0x100] sm:$0x3] }
  0xe0   : > { %851 = vrot.lane.b32.xlu0 %v9702_v57, %s9275_s20  ;;  %v612_v57 = vrot.slane %v500_v9, 1 }
  0xe1   : > { %v1377_v60 = vpop.permute.xlu1 %1376 }
  0xe2   : > { %v1375_v38 = vpop.permute.xlu0 %1374  ;;  %v1489_v41 = vsel %vm959_vm8, %v1457_v44, %v1377_v60  ;;  %v613_v10 = vsel %vm573_vm5, %v9726_v8, %v612_v57  ;;  %v14364_v8 = vld [vmem:[#allocation7_spill] sm:$0xff]  ;;  %v14376_v44 = vld [vmem:[#allocation16_spill] sm:$0xff] }
  0xe3   : > { %v1488_v43 = vsel %vm959_vm8, %v1456_v12, %v1375_v38  ;;  %761 = vrot.lane.b32.xlu1 %v608_v1, %s9276_s21  ;;  %v14377_v12 = vld [vmem:[#allocation15_spill] sm:$0xff]  ;;  %v627_v38 = vrot.slane %v509_v6, 1 }
  0xe4   : > { %8625 = vmatprep.mubr.msk.f32.mxu0 %vm1509_vm9, %v1488_v43  ;;  %759 = vrot.lane.b32.xlu0 %v9715_v63, %s9276_s21  ;;  %v704_v60 = vsel %vm654_vm4, %v14377_v12, %v703_v19  ;;  %v14378_v43 = vld [vmem:[#allocation20_spill] sm:$0xff] }
  0xe5   : > { %8626 = vmatmul.mubr.msk.f32.gmra.mrb[14].mxu0 %vm1509_vm9, %v1489_v41  ;;  %v1285_v25 = vpop.permute.xlu1 %1284 }
  0xe6   : > { %v1283_v33 = vpop.permute.xlu0 %1282  ;;  %v1459_v63 = vsel %vm370_vm0, %v9778_v2, %v1285_v25  ;;  %v708_v25 = vrot.slane %v509_v6, 2 }
  0xe7   : > { %857 = vrot.lane.b32.xlu1 %v689_v52, %s9275_s20  ;;  %v1458_v18 = vsel %vm370_vm0, %v14363_v35, %v1283_v33  ;;  %v14379_v52 = vld [vmem:[#allocation19_spill] sm:$0xff]  ;;  %v14380_v33 = vld [vmem:[#allocation29_spill] sm:$0xff] }
  0xe8   : > { %855 = vrot.lane.b32.xlu0 %v9732_v11, %s9275_s20  ;;  %v14365_v11 = vld [vmem:[#allocation6_spill] sm:$0xff]  ;;  %v628_v57 = vsel %vm573_vm5, %v14379_v52, %v627_v38 }
  0xe9   : > { %v1381_v50 = vpop.permute.xlu1 %1380  ;;  %v694_v2 = vsel %vm654_vm4, %v14365_v11, %v693_v13  ;;  %v14381_v13 = vld [vmem:[#allocation30_spill] sm:$0xff] }
  0xea   : > { %v1379_v61 = vpop.permute.xlu0 %1378  ;;  %v1491_v49 = vsel %vm959_vm8, %v1459_v63, %v1381_v50  ;;  %v512_v50 = vld [vmem:[#allocation2 + $0x118] sm:$0x3] }
  0xeb   : > { %v1490_v48 = vsel %vm959_vm8, %v1458_v18, %v1379_v61  ;;  %765 = vrot.lane.b32.xlu1 %v613_v10, %s9276_s21  ;;  %v632_v11 = vrot.slane %v512_v50, 1  ;;  %v713_v58 = vrot.slane %v512_v50, 2 }
  0xec   : > { %8628 = vmatprep.mubr.msk.f32.mxu0 %vm1509_vm9, %v1490_v48  ;;  %763 = vrot.lane.b32.xlu0 %v14364_v8, %s9276_s21  ;;  %v14383_v48 = vld [vmem:[#allocation21_spill] sm:$0xff] }
  0xed   : > { %8629 = vmatmul.mubr.msk.f32.gmra.mrb[16].mxu0 %vm1509_vm9, %v1491_v49  ;;  %v1289_v46 = vpop.permute.xlu1 %1288  ;;  %v14382_v49 = vld [vmem:[#allocation22_spill] sm:$0xff]  ;;  %v709_v8 = vsel %vm654_vm4, %v14383_v48, %v708_v25 }
  0xee   : > { %v1287_v59 = vpop.permute.xlu0 %1286  ;;  %v1461_v29 = vsel %vm370_vm0, %v14368_v30, %v1289_v46  ;;  %v14384_v46 = vld [vmem:[#allocation26_spill] sm:$0xff]  ;;  %v14387_v30 = vld [vmem:[#allocation36_spill] sm:$0xff] }
  0xef   : > { %861 = vrot.lane.b32.xlu1 %v694_v2, %s9275_s20  ;;  %v1460_v20 = vsel %vm370_vm0, %v14369_v7, %v1287_v59  ;;  %v14385_v59 = vld [vmem:[#allocation25_spill] sm:$0xff] }
  0xf0   : > { %859 = vrot.lane.b32.xlu0 %v14366_v56, %s9275_s20  ;;  %v633_v56 = vsel %vm573_vm5, %v14385_v59, %v632_v11 }
  0xf1   : > { %v1385_v37 = vpop.permute.xlu1 %1384 }
  0xf2   : > { %v1383_v3 = vpop.permute.xlu0 %1382  ;;  %v1493_v45 = vsel %vm959_vm8, %v1461_v29, %v1385_v37  ;;  %v515_v37 = vld [vmem:[#allocation2 + $0x130] sm:$0x3] }
  0xf3   : > { %v1492_v34 = vsel %vm959_vm8, %v1460_v20, %v1383_v3  ;;  %769 = vrot.lane.b32.xlu1 %v618_v24, %s9276_s21  ;;  %v14386_v24 = vld [vmem:[#allocation35_spill] sm:$0xff]  ;;  %v637_v16 = vrot.slane %v515_v37, 1  ;;  %v718_v39 = vrot.slane %v515_v37, 2 }
  0xf4   : > { %8631 = vmatprep.mubr.msk.f32.mxu0 %vm1509_vm9, %v1492_v34  ;;  %767 = vrot.lane.b32.xlu0 %v14370_v14, %s9276_s21  ;;  %v14389_v34 = vld [vmem:[#allocation27_spill] sm:$0xff] }
  0xf5   : > { %8632 = vmatmul.mubr.msk.f32.gmra.mrb[18].mxu0 %vm1509_vm9, %v1493_v45  ;;  %v1293_v53 = vpop.permute.xlu1 %1292  ;;  %v14388_v45 = vld [vmem:[#allocation28_spill] sm:$0xff]  ;;  %v714_v14 = vsel %vm654_vm4, %v14389_v34, %v713_v58 }
  0xf6   : > { %v1291_v55 = vpop.permute.xlu0 %1290  ;;  %v1463_v42 = vsel %vm370_vm0, %v14374_v62, %v1293_v53  ;;  %v14390_v53 = vld [vmem:[#allocation32_spill] sm:$0xff]  ;;  %v14393_v62 = vld [vmem:[#allocation42_spill] sm:$0xff] }
  0xf7   : > { %865 = vrot.lane.b32.xlu1 %v699_v47, %s9275_s20  ;;  %v1462_v27 = vsel %vm370_vm0, %v14375_v15, %v1291_v55  ;;  %v14391_v55 = vld [vmem:[#allocation31_spill] sm:$0xff]  ;;  %v8245_v34 = vld [vmem:[%s14118_s1 + $0x28] sm:$0xf] }
  0xf8   : > { %863 = vrot.lane.b32.xlu0 %v14372_v21, %s9275_s20  ;;  %v638_v21 = vsel %vm573_vm5, %v14391_v55, %v637_v16  ;;  %v14406_v16 = vld [vmem:[#allocation50_spill] sm:$0xff] }
  0xf9   : > { %v1389_v31 = vpop.permute.xlu1 %1388 }
  0xfa   : > { %v1387_v4 = vpop.permute.xlu0 %1386  ;;  %v1495_v1 = vsel %vm959_vm8, %v1463_v42, %v1389_v31  ;;  %v518_v31 = vld [vmem:[#allocation2 + $0x148] sm:$0x3] }
  0xfb   : > { %v1494_v32 = vsel %vm959_vm8, %v1462_v27, %v1387_v4  ;;  %773 = vrot.lane.b32.xlu1 %v623_v0, %s9276_s21  ;;  %v14392_v0 = vld [vmem:[#allocation41_spill] sm:$0xff]  ;;  %v642_v12 = vrot.slane %v518_v31, 1  ;;  %v723_v52 = vrot.slane %v518_v31, 2 }
  0xfc   : > { %8634 = vmatprep.mubr.msk.f32.mxu0 %vm1509_vm9, %v1494_v32  ;;  %771 = vrot.lane.b32.xlu0 %v14376_v44, %s9276_s21  ;;  %v14395_v32 = vld [vmem:[#allocation33_spill] sm:$0xff] }
  0xfd   : > { %8635 = vmatmul.mubr.msk.f32.gmra.mrb[20].mxu0 %vm1509_vm9, %v1495_v1  ;;  %v1297_v9 = vpop.permute.xlu1 %1296  ;;  %v14394_v1 = vld [vmem:[#allocation34_spill] sm:$0xff]  ;;  %v719_v44 = vsel %vm654_vm4, %v14395_v32, %v718_v39 }
  0xfe   : > { %v1295_v41 = vpop.permute.xlu0 %1294  ;;  %v1465_v10 = vsel %vm370_vm0, %v14380_v33, %v1297_v9  ;;  %v14396_v9 = vld [vmem:[#allocation38_spill] sm:$0xff]  ;;  %v14399_v33 = vld [vmem:[#allocation48_spill] sm:$0xff] }
  0xff   : > { %869 = vrot.lane.b32.xlu1 %v704_v60, %s9275_s20  ;;  %v1464_v63 = vsel %vm370_vm0, %v14381_v13, %v1295_v41  ;;  %v14397_v41 = vld [vmem:[#allocation37_spill] sm:$0xff] }
 0x100   : > { %867 = vrot.lane.b32.xlu0 %v14378_v43, %s9275_s20  ;;  %v643_v43 = vsel %vm573_vm5, %v14397_v41, %v642_v12  ;;  %v14410_v12 = vmov 0.0  }
 0x101   : > { %v1393_v35 = vpop.permute.xlu1 %1392 }
 0x102   : > { %v1391_v18 = vpop.permute.xlu0 %1390  ;;  %v1497_v61 = vsel %vm959_vm8, %v1465_v10, %v1393_v35  ;;  %v521_v35 = vld [vmem:[#allocation2 + $0x160] sm:$0x3] }
 0x103   : > { %v1496_v40 = vsel %vm959_vm8, %v1464_v63, %v1391_v18  ;;  %777 = vrot.lane.b32.xlu1 %v628_v57, %s9276_s21  ;;  %v14398_v57 = vld [vmem:[#allocation47_spill] sm:$0xff]  ;;  %v647_v48 = vrot.slane %v521_v35, 1  ;;  %v728_v59 = vrot.slane %v521_v35, 2 }
 0x104   : > { %8637 = vmatprep.mubr.msk.f32.mxu0 %vm1509_vm9, %v1496_v40  ;;  %775 = vrot.lane.b32.xlu0 %v14382_v49, %s9276_s21  ;;  %v14401_v40 = vld [vmem:[#allocation39_spill] sm:$0xff] }
 0x105   : > { %8638 = vmatmul.mubr.msk.f32.gmra.mrb[22].mxu0 %vm1509_vm9, %v1497_v61  ;;  %v1301_v2 = vpop.permute.xlu1 %1300  ;;  %v14400_v61 = vld [vmem:[#allocation40_spill] sm:$0xff]  ;;  %v724_v49 = vsel %vm654_vm4, %v14401_v40, %v723_v52 }
 0x106   : > { %v1299_v23 = vpop.permute.xlu0 %1298  ;;  %v1467_v26 = vsel %vm370_vm0, %v14386_v24, %v1301_v2  ;;  %v14402_v2 = vld [vmem:[#allocation44_spill] sm:$0xff] }
 0x107   : > { %873 = vrot.lane.b32.xlu1 %v709_v8, %s9275_s20  ;;  %v1466_v29 = vsel %vm370_vm0, %v14387_v30, %v1299_v23  ;;  %v14403_v23 = vld [vmem:[#allocation43_spill] sm:$0xff]  ;;  %v524_v30 = vld [vmem:[#allocation2 + $0x178] sm:$0x3] }
 0x108   : > { %871 = vrot.lane.b32.xlu0 %v14384_v46, %s9275_s20  ;;  %v648_v46 = vsel %vm573_vm5, %v14403_v23, %v647_v48 }
 0x109   : > { %v1397_v7 = vpop.permute.xlu1 %1396 }
 0x10a   : > { %v1395_v20 = vpop.permute.xlu0 %1394  ;;  %v1499_v3 = vsel %vm959_vm8, %v1467_v26, %v1397_v7 }
 0x10b   : > { %v1498_v28 = vsel %vm959_vm8, %v1466_v29, %v1395_v20  ;;  %781 = vrot.lane.b32.xlu1 %v633_v56, %s9276_s21  ;;  %v14404_v20 = vld [vmem:[#allocation46_spill] sm:$0xff] }
 0x10c   : > { %8640 = vmatprep.mubr.msk.f32.mxu0 %vm1509_vm9, %v1498_v28  ;;  %779 = vrot.lane.b32.xlu0 %v14388_v45, %s9276_s21  ;;  %v8244_v45 = vld [vmem:[%s14118_s1 + $0x20] sm:$0xff] }
 0x10d   : > { %8641 = vmatmul.mubr.msk.f32.gmra.mrb[24].mxu0 %vm1509_vm9, %v1499_v3  ;;  %v1305_v47 = vpop.permute.xlu1 %1304 }
 0x10e   : > { %v1303_v51 = vpop.permute.xlu0 %1302  ;;  %v1469_v19 = vsel %vm370_vm0, %v14392_v0, %v1305_v47  ;;  %v14407_v47 = vld [vmem:[#allocation49_spill] sm:$0xff] }
 0x10f   : > { %877 = vrot.lane.b32.xlu1 %v714_v14, %s9275_s20  ;;  %v1468_v42 = vsel %vm370_vm0, %v14393_v62, %v1303_v51  ;;  %v8936_v14 = vpack.c.bf16 %v8245_v34, %v8244_v45  ;;  %v2162_v62 = vld [vmem:[#allocation2 + $0x40] sm:$0x3] }
 0x110   : > { %875 = vrot.lane.b32.xlu0 %v14390_v53, %s9275_s20  ;;  %v733_v53 = vrot.slane %v524_v30, 2  ;;  %v2339_v41 = vrot.slane %v2162_v62, 2  ;;  %v10376_v45 = vld [vmem:[#allocation2 + $0x60] sm:$0xff] }
 0x111   : > { %v1401_v15 = vpop.permute.xlu1 %1400  ;;  %8938 = vmatprep.subr.msk.bf16.mxu0 %vm9540_vm7, %v8936_v14 }
 0x112   : > { %v1399_v27 = vpop.permute.xlu0 %1398  ;;  %v1501_v4 = vsel %vm959_vm8, %v1469_v19, %v1401_v15  ;;  %v10322_v19 = vld [vmem:[#allocation2 + $0x38] sm:$0xff] }
 0x113   : > { %v1500_v6 = vsel %vm959_vm8, %v1468_v42, %v1399_v27  ;;  %785 = vrot.lane.b32.xlu1 %v638_v21, %s9276_s21  ;;  %v10328_v27 = vld [vmem:[#allocation2 + $0x30] sm:$0xff] }
 0x114   : > { %8643 = vmatprep.mubr.msk.f32.mxu0 %vm1509_vm9, %v1500_v6  ;;  %783 = vrot.lane.b32.xlu0 %v14394_v1, %s9276_s21  ;;  %v2259_v6 = vrot.slane %v2162_v62, 1  ;;  %v2256_v32 = vrot.slane %v10328_v27, 1 }
 0x115   : > { %8644 = vmatmul.mubr.msk.f32.gmra.mrb[26].mxu0 %vm1509_vm9, %v1501_v4  ;;  %v1309_v60 = vpop.permute.xlu1 %1308  ;;  %v2257_v4 = vrot.slane %v10322_v19, 1 }
 0x116   : > { %v1307_v38 = vpop.permute.xlu0 %1306  ;;  %v1471_v25 = vsel %vm370_vm0, %v14398_v57, %v1309_v60  ;;  %v14411_v60 = vld [vmem:[#allocation53_spill] sm:$0xff] }
 0x117   : > { %881 = vrot.lane.b32.xlu1 %v719_v44, %s9275_s20  ;;  %v1470_v10 = vsel %vm370_vm0, %v14399_v33, %v1307_v38  ;;  %v2260_v38 = vsel %vm573_vm5, %v2257_v4, %v2259_v6  ;;  %v2336_v33 = vrot.slane %v10328_v27, 2  ;;  %v2171_v6 = vld [vmem:[#allocation2 + $0x88] sm:$0x3] }
 0x118   : > { %879 = vrot.lane.b32.xlu0 %v14396_v9, %s9275_s20  ;;  %v2337_v9 = vrot.slane %v10322_v19, 2 }
 0x119   : > { %v1405_v13 = vpop.permute.xlu1 %1404 }
 0x11a   : > { %v1403_v63 = vpop.permute.xlu0 %1402  ;;  %v1503_v18 = vsel %vm959_vm8, %v1471_v25, %v1405_v13  ;;  %v2258_v25 = vsel %vm573_vm5, %v2256_v32, %v2257_v4  ;;  %v2165_v13 = vld [vmem:[#allocation2 + $0x58] sm:$0x3]  ;;  %v10394_v4 = vld [vmem:[#allocation2 + $0x80] sm:$0xff] }
 0x11b   : > { %v1502_v50 = vsel %vm959_vm8, %v1470_v10, %v1403_v63  ;;  %789 = vrot.lane.b32.xlu1 %v643_v43, %s9276_s21  ;;  %v9146_v43 = vld [vmem:[#allocation2 + $0x20] sm:$0xff]  ;;  %v10350_v10 = vld [vmem:[#allocation2 + $0x50] sm:$0xff]  ;;  %v9147_v63 = vld [vmem:[#allocation2 + $0x18] sm:$0xff] }
 0x11c   : > { %8646 = vmatprep.mubr.msk.f32.mxu0 %vm1509_vm9, %v1502_v50  ;;  %787 = vrot.lane.b32.xlu0 %v14400_v61, %s9276_s21  ;;  %v10354_v61 = vld [vmem:[#allocation2 + $0x48] sm:$0xff]  ;;  %v2262_v48 = vrot.slane %v10350_v10, 1 }
 0x11d   : > { %8647 = vmatmul.mubr.msk.f32.gmra.mrb[28].mxu0 %vm1509_vm9, %v1503_v18  ;;  %v1313_v8 = vpop.permute.xlu1 %1312  ;;  %v2261_v23 = vrot.slane %v10354_v61, 1 }
 0x11e   : > { %v1311_v11 = vpop.permute.xlu0 %1310  ;;  %v1473_v56 = vsel %vm370_vm0, %v9988_v5, %v1313_v8  ;;  %v14405_v5 = vld [vmem:[#allocation45_spill] sm:$0xff]  ;;  %v2264_v8 = vrot.slane %v2165_v13, 1 }
 0x11f   : > { %885 = vrot.lane.b32.xlu1 %v724_v49, %s9275_s20  ;;  %v1472_v58 = vsel %vm370_vm0, %v9990_v54, %v1311_v11  ;;  %v729_v37 = vsel %vm654_vm4, %v14405_v5, %v728_v59  ;;  %v652_v54 = vrot.slane %v524_v30, 1  ;;  %v2340_v49 = vsel %vm654_vm4, %v2337_v9, %v2339_v41  ;;  %v2168_v5 = vld [vmem:[#allocation2 + $0x70] sm:$0x3] }
 0x120   : > { %883 = vrot.lane.b32.xlu0 %v14402_v2, %s9275_s20  ;;  %v2338_v2 = vsel %vm654_vm4, %v2336_v33, %v2337_v9  ;;  %v2265_v59 = vsel %vm573_vm5, %v2262_v48, %v2264_v8  ;;  %v2349_v62 = vrot.slane %v2168_v5, 2 }
 0x121   : > { %v1409_v24 = vpop.permute.xlu1 %1408  ;;  %v653_v51 = vsel %vm573_vm5, %v14407_v47, %v652_v54  ;;  %v2269_v47 = vrot.slane %v2168_v5, 1 }
 0x122   : > { %v1407_v26 = vpop.permute.xlu0 %1406  ;;  %v1505_v29 = vsel %vm959_vm8, %v1473_v56, %v1409_v24  ;;  %v2342_v56 = vrot.slane %v10350_v10, 2  ;;  %v9148_v24 = vld [vmem:[#allocation2 + $0x38] sm:$0xff] }
 0x123   : > { %v1504_v7 = vsel %vm959_vm8, %v1472_v58, %v1407_v26  ;;  %793 = vrot.lane.b32.xlu1 %v648_v46, %s9276_s21  ;;  %v2344_v58 = vrot.slane %v2165_v13, 2 }
 0x124   : > { %8649 = vmatprep.mubr.msk.f32.mxu0 %vm1509_vm9, %v1504_v7  ;;  %791 = vrot.lane.b32.xlu0 %v14404_v20, %s9276_s21  ;;  %v2341_v7 = vrot.slane %v10354_v61, 2  ;;  %v10372_v20 = vld [vmem:[#allocation2 + $0x68] sm:$0xff] }
 0x125   : > { %8650 = vmatmul.mubr.msk.f32.gmra.mrb[30].mxu0 %vm1509_vm9, %v1505_v29  ;;  %v738_v3 = vpop.permute.xlu1 %737  ;;  %v2263_v29 = vsel %vm573_vm5, %v2261_v23, %v2262_v48  ;;  %v9153_v23 = vld [vmem:[#allocation2 + $0x60] sm:$0xff] }
 0x126   : > { %v736_v28 = vpop.permute.xlu0 %735  ;;  %v928_v55 = vsel %vm370_vm0, %v10020_v17, %v738_v3  ;;  %v14408_v17 = vld [vmem:[#allocation52_spill] sm:$0xff] }
 0x127   : > { %889 = vrot.lane.b32.xlu1 %v729_v37, %s9275_s20  ;;  %v927_v21 = vsel %vm370_vm0, %v10022_v22, %v736_v28  ;;  %v14409_v22 = vld [vmem:[#allocation51_spill] sm:$0xff]  ;;  %v9149_v37 = vld [vmem:[#allocation2 + $0x30] sm:$0xff] }
 0x128   : > { %887 = vrot.lane.b32.xlu0 %v14406_v16, %s9275_s20  ;;  %v734_v31 = vsel %vm654_vm4, %v14409_v22, %v733_v53  ;;  %v2267_v16 = vrot.slane %v10372_v20, 1  ;;  %v2343_v53 = vsel %vm654_vm4, %v2341_v7, %v2342_v56 }
 0x129   : > { %v834_v39 = vpop.permute.xlu1 %833 }
 0x12a   : > { %v832_v0 = vpop.permute.xlu0 %831  ;;  %v961_v42 = vsel %vm959_vm8, %v928_v55, %v834_v39  ;;  %v2266_v55 = vrot.slane %v10376_v45, 1  ;;  %v2270_v39 = vsel %vm573_vm5, %v2267_v16, %v2269_v47 }
 0x12b   : > { %v960_v15 = vsel %vm959_vm8, %v927_v21, %v832_v0  ;;  %797 = vrot.lane.b32.xlu1 %v653_v51, %s9276_s21  ;;  %v2347_v0 = vrot.slane %v10372_v20, 2 }
 0x12c   : > { %8656 = vmatprep.mubr.msk.f32.mxu0 %vm1509_vm9, %v960_v15  ;;  %795 = vrot.lane.b32.xlu0 %v14408_v17, %s9276_s21  ;;  %v2268_v22 = vsel %vm573_vm5, %v2266_v55, %v2267_v16  ;;  %v10438_v55 = vld [vmem:[#allocation2 + $0xb0] sm:$0xff] }
 0x12d   : > { %8657 = vmatmul.mubr.msk.f32.vlgmr.msra.gmra.mrb[0].mxu0 %vm1509_vm9, %v961_v42  ;;  %v742_v1 = vpop.permute.xlu1 %741  ;;  %v9150_v42 = vld [vmem:[#allocation2 + $0x50] sm:$0xff]  ;;  %v2350_v41 = vsel %vm654_vm4, %v2347_v0, %v2349_v62 }
 0x12e   : > { %8941 = vmatpush3.bf16.msk.msra.mxu0 %vm9540_vm7, %v8936_v14  ;;  %v740_v44 = vpop.permute.xlu0 %739  ;;  %v930_v52 = vsel %vm370_vm0, %v9146_v43, %v742_v1  ;;  %v2345_v14 = vsel %vm654_vm4, %v2342_v56, %v2344_v58  ;;  %v9151_v1 = vld [vmem:[#allocation2 + $0x48] sm:$0xff]  ;;  %v2272_v43 = vrot.slane %v10394_v4, 1  ;;  %v10420_v58 = vld [vmem:[#allocation2 + $0x90] sm:$0xff] }
 0x12f   : > { %8912 = vmatprep.subr.mxu0 %v14410_v12  ;;  %893 = vrot.lane.b32.xlu1 %v734_v31, %s9275_s20  ;;  %v929_v35 = vsel %vm370_vm0, %v9147_v63, %v740_v44  ;;  %v2346_v31 = vrot.slane %v10376_v45, 2 }
 0x130   : > { %891 = vrot.lane.b32.xlu0 %v14411_v60, %s9275_s20 }
 0x131   : > { %v838_v57 = vpop.permute.xlu1 %837 }
 0x132   : > { %v963_v18 = vsel %vm959_vm8, %v930_v52, %v838_v57  ;;  %v836_v50 = vpop.permute.xlu0 %835  ;;  %v2274_v52 = vrot.slane %v2171_v6, 1 }
 0x133   : > { %v962_v40 = vsel %vm959_vm8, %v929_v35, %v836_v50  ;;  %2418 = vrot.lane.b32.xlu1 %v2260_v38, %s9276_s21  ;;  %v10398_v38 = vld [vmem:[#allocation2 + $0x78] sm:$0xff]  ;;  %v2352_v35 = vrot.slane %v10394_v4, 2  ;;  %v9152_v50 = vld [vmem:[#allocation2 + $0x68] sm:$0xff] }
 0x134   : > { %2416 = vrot.lane.b32.xlu0 %v2258_v25, %s9276_s21  ;;  %8659 = vmatprep.mubr.msk.f32.mxu0 %vm1509_vm9, %v962_v40  ;;  %v2348_v25 = vsel %vm654_vm4, %v2346_v31, %v2347_v0  ;;  %v2271_v33 = vrot.slane %v10398_v38, 1  ;;  %v2275_v63 = vsel %vm573_vm5, %v2272_v43, %v2274_v52  ;;  %v2351_v8 = vrot.slane %v10398_v38, 2  ;;  %v9156_v52 = vld [vmem:[#allocation2 + $0x98] sm:$0xff] }
 0x135   : > { %8660 = vmatmul.mubr.msk.f32.gmra.mrb[2].mxu0 %vm1509_vm9, %v963_v18  ;;  %v746_v11 = vpop.permute.xlu1 %745  ;;  %v2354_v18 = vrot.slane %v2171_v6, 2  ;;  %v2282_v31 = vrot.slane %v10438_v55, 1 }
 0x136   : > { %v744_v46 = vpop.permute.xlu0 %743  ;;  %v932_v26 = vsel %vm370_vm0, %v9148_v24, %v746_v11  ;;  %v2273_v48 = vsel %vm573_vm5, %v2271_v33, %v2272_v43  ;;  %v10416_v11 = vld [vmem:[#allocation2 + $0x98] sm:$0xff]  ;;  %v2353_v5 = vsel %vm654_vm4, %v2351_v8, %v2352_v35 }
 0x137   : > { %2514 = vrot.lane.b32.xlu1 %v2340_v49, %s9275_s20  ;;  %v931_v54 = vsel %vm370_vm0, %v9149_v37, %v744_v46  ;;  %v2276_v37 = vrot.slane %v10420_v58, 1 }
 0x138   : > { %2512 = vrot.lane.b32.xlu0 %v2338_v2, %s9275_s20  ;;  %v2174_v2 = vld [vmem:[#allocation2 + $0xa0] sm:$0x3] }
 0x139   : > { %v842_v30 = vpop.permute.xlu1 %841 }
 0x13a   : > { %v965_v3 = vsel %vm959_vm8, %v932_v26, %v842_v30  ;;  %v840_v28 = vpop.permute.xlu0 %839  ;;  %v2355_v26 = vsel %vm654_vm4, %v2352_v35, %v2354_v18  ;;  %v2277_v30 = vrot.slane %v10416_v11, 1  ;;  %v2180_v35 = vld [vmem:[#allocation2 + $0xd0] sm:$0x3] }
 0x13b   : > { %v964_v34 = vsel %vm959_vm8, %v931_v54, %v840_v28  ;;  %2422 = vrot.lane.b32.xlu1 %v2265_v59, %s9276_s21  ;;  %v2357_v28 = vrot.slane %v10416_v11, 2  ;;  %v9157_v18 = vld [vmem:[#allocation2 + $0x90] sm:$0xff] }
 0x13c   : > { %2420 = vrot.lane.b32.xlu0 %v2263_v29, %s9276_s21  ;;  %8662 = vmatprep.mubr.msk.f32.mxu0 %vm1509_vm9, %v964_v34  ;;  %v2279_v29 = vrot.slane %v2174_v2, 1  ;;  %v2359_v34 = vrot.slane %v2174_v2, 2 }
 0x13d   : > { %8663 = vmatmul.mubr.msk.f32.gmra.mrb[4].mxu0 %vm1509_vm9, %v965_v3  ;;  %v750_v51 = vpop.permute.xlu1 %749 }
 0x13e   : > { %v748_v21 = vpop.permute.xlu0 %747  ;;  %v934_v15 = vsel %vm370_vm0, %v9150_v42, %v750_v51  ;;  %v2280_v3 = vsel %vm573_vm5, %v2277_v30, %v2279_v29  ;;  %v2278_v51 = vsel %vm573_vm5, %v2276_v37, %v2277_v30 }
 0x13f   : > { %2518 = vrot.lane.b32.xlu1 %v2345_v14, %s9275_s20  ;;  %v933_v32 = vsel %vm370_vm0, %v9151_v1, %v748_v21  ;;  %v9154_v14 = vld [vmem:[#allocation2 + $0x80] sm:$0xff]  ;;  %v2177_v21 = vld [vmem:[#allocation2 + $0xb8] sm:$0x3] }
 0x140   : > { %2516 = vrot.lane.b32.xlu0 %v2343_v53, %s9275_s20  ;;  %v2356_v53 = vrot.slane %v10420_v58, 2  ;;  %v2284_v6 = vrot.slane %v2177_v21, 1  ;;  %v2364_v43 = vrot.slane %v2177_v21, 2  ;;  %v10486_v21 = vld [vmem:[#allocation2 + $0xd8] sm:$0xff] }
 0x141   : > { %v846_v17 = vpop.permute.xlu1 %845 }
 0x142   : > { %v967_v44 = vsel %vm959_vm8, %v934_v15, %v846_v17  ;;  %v844_v60 = vpop.permute.xlu0 %843  ;;  %v10442_v15 = vld [vmem:[#allocation2 + $0xa8] sm:$0xff] }
 0x143   : > { %v966_v9 = vsel %vm959_vm8, %v933_v32, %v844_v60  ;;  %2426 = vrot.lane.b32.xlu1 %v2270_v39, %s9276_s21  ;;  %v9155_v39 = vld [vmem:[#allocation2 + $0x78] sm:$0xff]  ;;  %v2358_v32 = vsel %vm654_vm4, %v2356_v53, %v2357_v28 }
 0x144   : > { %2424 = vrot.lane.b32.xlu0 %v2268_v22, %s9276_s21  ;;  %8665 = vmatprep.mubr.msk.f32.mxu0 %vm1509_vm9, %v966_v9  ;;  %v2360_v22 = vsel %vm654_vm4, %v2357_v28, %v2359_v34  ;;  %v2285_v9 = vsel %vm573_vm5, %v2282_v31, %v2284_v6  ;;  %v10482_v34 = vld [vmem:[#allocation2 + $0xe0] sm:$0xff] }
 0x145   : > { %8666 = vmatmul.mubr.msk.f32.gmra.mrb[6].mxu0 %vm1509_vm9, %v967_v44  ;;  %v754_v57 = vpop.permute.xlu1 %753  ;;  %v2281_v44 = vrot.slane %v10442_v15, 1 }
 0x146   : > { %v752_v13 = vpop.permute.xlu0 %751  ;;  %v936_v40 = vsel %vm370_vm0, %v9152_v50, %v754_v57 }
 0x147   : > { %2522 = vrot.lane.b32.xlu1 %v2350_v41, %s9275_s20  ;;  %v935_v46 = vsel %vm370_vm0, %v9153_v23, %v752_v13  ;;  %v2362_v41 = vrot.slane %v10438_v55, 2  ;;  %v2283_v33 = vsel %vm573_vm5, %v2281_v44, %v2282_v31  ;;  %v2361_v13 = vrot.slane %v10442_v15, 2 }
 0x148   : > { %2520 = vrot.lane.b32.xlu0 %v2348_v25, %s9275_s20  ;;  %v2291_v31 = vrot.slane %v10486_v21, 1 }
 0x149   : > { %v850_v49 = vpop.permute.xlu1 %849  ;;  %v2365_v2 = vsel %vm654_vm4, %v2362_v41, %v2364_v43 }
 0x14a   : > { %v969_v59 = vsel %vm959_vm8, %v936_v40, %v850_v49  ;;  %v848_v56 = vpop.permute.xlu0 %847 }
 0x14b   : > { %v968_v24 = vsel %vm959_vm8, %v935_v46, %v848_v56  ;;  %2430 = vrot.lane.b32.xlu1 %v2275_v63, %s9276_s21  ;;  %v10460_v63 = vld [vmem:[#allocation2 + $0xc8] sm:$0xff]  ;;  %v2289_v46 = vrot.slane %v2180_v35, 1  ;;  %v2363_v56 = vsel %vm654_vm4, %v2361_v13, %v2362_v41 }
 0x14c   : > { %2428 = vrot.lane.b32.xlu0 %v2273_v48, %s9276_s21  ;;  %8668 = vmatprep.mubr.msk.f32.mxu0 %vm1509_vm9, %v968_v24  ;;  %v10464_v48 = vld [vmem:[#allocation2 + $0xc0] sm:$0xff]  ;;  %v2287_v23 = vrot.slane %v10460_v63, 1  ;;  %v2367_v29 = vrot.slane %v10460_v63, 2 }
 0x14d   : > { %8669 = vmatmul.mubr.msk.f32.gmra.mrb[8].mxu0 %vm1509_vm9, %v969_v59  ;;  %v758_v7 = vpop.permute.xlu1 %757  ;;  %v2286_v24 = vrot.slane %v10464_v48, 1  ;;  %v2366_v28 = vrot.slane %v10464_v48, 2 }
 0x14e   : > { %v756_v54 = vpop.permute.xlu0 %755  ;;  %v938_v16 = vsel %vm370_vm0, %v9154_v14, %v758_v7  ;;  %v2290_v30 = vsel %vm573_vm5, %v2287_v23, %v2289_v46  ;;  %v2369_v7 = vrot.slane %v2180_v35, 2  ;;  %v2183_v14 = vld [vmem:[#allocation2 + $0xe8] sm:$0x3] }
 0x14f   : > { %2526 = vrot.lane.b32.xlu1 %v2355_v26, %s9275_s20  ;;  %v937_v0 = vsel %vm370_vm0, %v9155_v39, %v756_v54  ;;  %v2374_v44 = vrot.slane %v2183_v14, 2 }
 0x150   : > { %2524 = vrot.lane.b32.xlu0 %v2353_v5, %s9275_s20  ;;  %v9158_v5 = vld [vmem:[#allocation2 + $0xb0] sm:$0xff] }
 0x151   : > { %v854_v47 = vpop.permute.xlu1 %853 }
 0x152   : > { %v971_v62 = vsel %vm959_vm8, %v938_v16, %v854_v47  ;;  %v852_v42 = vpop.permute.xlu0 %851  ;;  %v9159_v16 = vld [vmem:[#allocation2 + $0xa8] sm:$0xff] }
 0x153   : > { %v970_v17 = vsel %vm959_vm8, %v937_v0, %v852_v42  ;;  %2434 = vrot.lane.b32.xlu1 %v2280_v3, %s9276_s21  ;;  %v2288_v3 = vsel %vm573_vm5, %v2286_v24, %v2287_v23  ;;  %v2370_v0 = vsel %vm654_vm4, %v2367_v29, %v2369_v7  ;;  %v2294_v42 = vrot.slane %v2183_v14, 1  ;;  %v9163_v14 = vld [vmem:[#allocation2 + $0xd8] sm:$0xff] }
 0x154   : > { %2432 = vrot.lane.b32.xlu0 %v2278_v51, %s9276_s21  ;;  %8671 = vmatprep.mubr.msk.f32.mxu0 %vm1509_vm9, %v970_v17 }
 0x155   : > { %8672 = vmatmul.mubr.msk.f32.gmra.mrb[10].mxu0 %vm1509_vm9, %v971_v62  ;;  %v762_v1 = vpop.permute.xlu1 %761  ;;  %v2292_v62 = vrot.slane %v10482_v34, 1 }
 0x156   : > { %v760_v60 = vpop.permute.xlu0 %759  ;;  %v940_v57 = vsel %vm370_vm0, %v9156_v52, %v762_v1  ;;  %v2371_v52 = vrot.slane %v10486_v21, 2 }
 0x157   : > { %2530 = vrot.lane.b32.xlu1 %v2360_v22, %s9275_s20  ;;  %v939_v50 = vsel %vm370_vm0, %v9157_v18, %v760_v60  ;;  %v2368_v22 = vsel %vm654_vm4, %v2366_v28, %v2367_v29  ;;  %v2295_v1 = vsel %vm573_vm5, %v2292_v62, %v2294_v42  ;;  %v9160_v60 = vld [vmem:[#allocation2 + $0xc8] sm:$0xff]  ;;  %v2293_v43 = vsel %vm573_vm5, %v2291_v31, %v2292_v62  ;;  %v9162_v29 = vld [vmem:[#allocation2 + $0xe0] sm:$0xff]  ;;  %v2189_v28 = vld [vmem:[#allocation2 + $0x118] sm:$0x3] }
 0x158   : > { %2528 = vrot.lane.b32.xlu0 %v2358_v32, %s9275_s20  ;;  %v2372_v32 = vrot.slane %v10482_v34, 2  ;;  %v2304_v42 = vrot.slane %v2189_v28, 1 }
 0x159   : > { %v858_v25 = vpop.permute.xlu1 %857 }
 0x15a   : > { %v973_v40 = vsel %vm959_vm8, %v940_v57, %v858_v25  ;;  %v856_v49 = vpop.permute.xlu0 %855  ;;  %v10504_v57 = vld [vmem:[#allocation2 + $0xf8] sm:$0xff]  ;;  %v2186_v25 = vld [vmem:[#allocation2 + $0x100] sm:$0x3]  ;;  %v2373_v46 = vsel %vm654_vm4, %v2371_v52, %v2372_v32 }
 0x15b   : > { %v972_v8 = vsel %vm959_vm8, %v939_v50, %v856_v49  ;;  %2438 = vrot.lane.b32.xlu1 %v2285_v9, %s9276_s21  ;;  %v10508_v50 = vld [vmem:[#allocation2 + $0xf0] sm:$0xff]  ;;  %v2375_v49 = vsel %vm654_vm4, %v2372_v32, %v2374_v44  ;;  %v2384_v44 = vrot.slane %v2189_v28, 2 }
 0x15c   : > { %2436 = vrot.lane.b32.xlu0 %v2283_v33, %s9276_s21  ;;  %8674 = vmatprep.mubr.msk.f32.mxu0 %vm1509_vm9, %v972_v8  ;;  %v9161_v33 = vld [vmem:[#allocation2 + $0xc0] sm:$0xff]  ;;  %v2297_v8 = vrot.slane %v10504_v57, 1 }
 0x15d   : > { %8675 = vmatmul.mubr.msk.f32.gmra.mrb[12].mxu0 %vm1509_vm9, %v973_v40  ;;  %v766_v59 = vpop.permute.xlu1 %765 }
 0x15e   : > { %v764_v26 = vpop.permute.xlu0 %763  ;;  %v942_v37 = vsel %vm370_vm0, %v9158_v5, %v766_v59  ;;  %v2296_v59 = vrot.slane %v10508_v50, 1 }
 0x15f   : > { %2534 = vrot.lane.b32.xlu1 %v2365_v2, %s9275_s20  ;;  %v941_v47 = vsel %vm370_vm0, %v9159_v16, %v764_v26  ;;  %v2299_v2 = vrot.slane %v2186_v25, 1  ;;  %v2377_v26 = vrot.slane %v10504_v57, 2 }
 0x160   : > { %2532 = vrot.lane.b32.xlu0 %v2363_v56, %s9275_s20 }
 0x161   : > { %v862_v54 = vpop.permute.xlu1 %861  ;;  %v2300_v24 = vsel %vm573_vm5, %v2297_v8, %v2299_v2 }
 0x162   : > { %v975_v51 = vsel %vm959_vm8, %v942_v37, %v862_v54  ;;  %v860_v53 = vpop.permute.xlu0 %859  ;;  %v2298_v37 = vsel %vm573_vm5, %v2296_v59, %v2297_v8  ;;  %v2376_v54 = vrot.slane %v10508_v50, 2 }
 0x163   : > { %v974_v39 = vsel %vm959_vm8, %v941_v47, %v860_v53  ;;  %2442 = vrot.lane.b32.xlu1 %v2290_v30, %s9276_s21  ;;  %v2379_v30 = vrot.slane %v2186_v25, 2  ;;  %v10530_v53 = vld [vmem:[#allocation2 + $0x108] sm:$0xff] }
 0x164   : > { %2440 = vrot.lane.b32.xlu0 %v2288_v3, %s9276_s21  ;;  %8677 = vmatprep.mubr.msk.f32.mxu0 %vm1509_vm9, %v974_v39  ;;  %v10526_v3 = vld [vmem:[#allocation2 + $0x110] sm:$0xff]  ;;  %v2301_v31 = vrot.slane %v10530_v53, 1  ;;  %v2381_v52 = vrot.slane %v10530_v53, 2  ;;  %v10548_v25 = vld [vmem:[#allocation2 + $0x128] sm:$0xff] }
 0x165   : > { %8678 = vmatmul.mubr.msk.f32.gmra.mrb[14].mxu0 %vm1509_vm9, %v975_v51  ;;  %v770_v17 = vpop.permute.xlu1 %769  ;;  %v2302_v62 = vrot.slane %v10526_v3, 1  ;;  %v2382_v32 = vrot.slane %v10526_v3, 2 }
 0x166   : > { %v768_v6 = vpop.permute.xlu0 %767  ;;  %v944_v9 = vsel %vm370_vm0, %v9160_v60, %v770_v17  ;;  %v9164_v60 = vld [vmem:[#allocation2 + $0xf8] sm:$0xff] }
 0x167   : > { %2538 = vrot.lane.b32.xlu1 %v2370_v0, %s9275_s20  ;;  %v943_v13 = vsel %vm370_vm0, %v9161_v33, %v768_v6  ;;  %v2380_v0 = vsel %vm654_vm4, %v2377_v26, %v2379_v30  ;;  %v2192_v33 = vld [vmem:[#allocation2 + $0x130] sm:$0x3]  ;;  %v2385_v2 = vsel %vm654_vm4, %v2382_v32, %v2384_v44 }
 0x168   : > { %2536 = vrot.lane.b32.xlu0 %v2368_v22, %s9275_s20  ;;  %v2378_v22 = vsel %vm654_vm4, %v2376_v54, %v2377_v26 }
 0x169   : > { %v866_v41 = vpop.permute.xlu1 %865 }
 0x16a   : > { %v977_v35 = vsel %vm959_vm8, %v944_v9, %v866_v41  ;;  %v864_v18 = vpop.permute.xlu0 %863 }
 0x16b   : > { %v976_v40 = vsel %vm959_vm8, %v943_v13, %v864_v18  ;;  %2446 = vrot.lane.b32.xlu1 %v2295_v1, %s9276_s21  ;;  %v2305_v1 = vsel %vm573_vm5, %v2302_v62, %v2304_v42  ;;  %v9165_v13 = vld [vmem:[#allocation2 + $0xf0] sm:$0xff]  ;;  %v10574_v42 = vld [vmem:[#allocation2 + $0x138] sm:$0xff] }
 0x16c   : > { %2444 = vrot.lane.b32.xlu0 %v2293_v43, %s9276_s21  ;;  %8680 = vmatprep.mubr.msk.f32.mxu0 %vm1509_vm9, %v976_v40  ;;  %v2303_v43 = vsel %vm573_vm5, %v2301_v31, %v2302_v62  ;;  %v2311_v44 = vrot.slane %v10574_v42, 1 }
 0x16d   : > { %8681 = vmatmul.mubr.msk.f32.gmra.mrb[16].mxu0 %vm1509_vm9, %v977_v35  ;;  %v774_v23 = vpop.permute.xlu1 %773 }
 0x16e   : > { %v772_v56 = vpop.permute.xlu0 %771  ;;  %v946_v7 = vsel %vm370_vm0, %v9162_v29, %v774_v23  ;;  %v2307_v23 = vrot.slane %v10548_v25, 1  ;;  %v2387_v29 = vrot.slane %v10548_v25, 2 }
 0x16f   : > { %2542 = vrot.lane.b32.xlu1 %v2375_v49, %s9275_s20  ;;  %v945_v16 = vsel %vm370_vm0, %v9163_v14, %v772_v56  ;;  %v10552_v49 = vld [vmem:[#allocation2 + $0x120] sm:$0xff]  ;;  %v2383_v56 = vsel %vm654_vm4, %v2381_v52, %v2382_v32  ;;  %v9168_v52 = vld [vmem:[#allocation2 + $0x128] sm:$0xff] }
 0x170   : > { %2540 = vrot.lane.b32.xlu0 %v2373_v46, %s9275_s20  ;;  %v2309_v46 = vrot.slane %v2192_v33, 1  ;;  %v2386_v14 = vrot.slane %v10552_v49, 2 }
 0x171   : > { %v870_v5 = vpop.permute.xlu1 %869 }
 0x172   : > { %v979_v47 = vsel %vm959_vm8, %v946_v7, %v870_v5  ;;  %v868_v51 = vpop.permute.xlu0 %867  ;;  %v2310_v30 = vsel %vm573_vm5, %v2307_v23, %v2309_v46  ;;  %v2389_v7 = vrot.slane %v2192_v33, 2  ;;  %v9166_v5 = vld [vmem:[#allocation2 + $0x110] sm:$0xff]  ;;  %v2388_v32 = vsel %vm654_vm4, %v2386_v14, %v2387_v29 }
 0x173   : > { %v978_v39 = vsel %vm959_vm8, %v945_v16, %v868_v51  ;;  %2450 = vrot.lane.b32.xlu1 %v2300_v24, %s9276_s21  ;;  %v2306_v24 = vrot.slane %v10552_v49, 1  ;;  %v10570_v16 = vld [vmem:[#allocation2 + $0x140] sm:$0xff]  ;;  %v9167_v51 = vld [vmem:[#allocation2 + $0x108] sm:$0xff] }
 0x174   : > { %2448 = vrot.lane.b32.xlu0 %v2298_v37, %s9276_s21  ;;  %8683 = vmatprep.mubr.msk.f32.mxu0 %vm1509_vm9, %v978_v39  ;;  %v2312_v31 = vrot.slane %v10570_v16, 1 }
 0x175   : > { %8684 = vmatmul.mubr.msk.f32.gmra.mrb[18].mxu0 %vm1509_vm9, %v979_v47  ;;  %v778_v17 = vpop.permute.xlu1 %777  ;;  %v2308_v28 = vsel %vm573_vm5, %v2306_v24, %v2307_v23  ;;  %v2195_v47 = vld [vmem:[#allocation2 + $0x148] sm:$0x3] }
 0x176   : > { %v776_v6 = vpop.permute.xlu0 %775  ;;  %v948_v9 = vsel %vm370_vm0, %v9164_v60, %v778_v17 }
 0x177   : > { %2546 = vrot.lane.b32.xlu1 %v2380_v0, %s9275_s20  ;;  %v947_v35 = vsel %vm370_vm0, %v9165_v13, %v776_v6  ;;  %v2314_v6 = vrot.slane %v2195_v47, 1 }
 0x178   : > { %2544 = vrot.lane.b32.xlu0 %v2378_v22, %s9275_s20  ;;  %v2390_v22 = vsel %vm654_vm4, %v2387_v29, %v2389_v7 }
 0x179   : > { %v874_v41 = vpop.permute.xlu1 %873 }
 0x17a   : > { %v981_v18 = vsel %vm959_vm8, %v948_v9, %v874_v41  ;;  %v872_v40 = vpop.permute.xlu0 %871  ;;  %v2315_v9 = vsel %vm573_vm5, %v2312_v31, %v2314_v6  ;;  %v2392_v41 = vrot.slane %v10570_v16, 2  ;;  %v9171_v6 = vld [vmem:[#allocation2 + $0x138] sm:$0xff] }
 0x17b   : > { %v980_v8 = vsel %vm959_vm8, %v947_v35, %v872_v40  ;;  %2454 = vrot.lane.b32.xlu1 %v2305_v1, %s9276_s21  ;;  %v2313_v35 = vsel %vm573_vm5, %v2311_v44, %v2312_v31  ;;  %v10592_v40 = vld [vmem:[#allocation2 + $0x158] sm:$0xff] }
 0x17c   : > { %2452 = vrot.lane.b32.xlu0 %v2303_v43, %s9276_s21  ;;  %8686 = vmatprep.mubr.msk.f32.mxu0 %vm1509_vm9, %v980_v8  ;;  %v2394_v43 = vrot.slane %v2195_v47, 2  ;;  %v2198_v8 = vld [vmem:[#allocation2 + $0x160] sm:$0x3]  ;;  %v2397_v14 = vrot.slane %v10592_v40, 2  ;;  %v2201_v31 = vld [vmem:[#allocation2 + $0x178] sm:$0x3] }
 0x17d   : > { %8687 = vmatmul.mubr.msk.f32.gmra.mrb[20].mxu0 %vm1509_vm9, %v981_v18  ;;  %v782_v59 = vpop.permute.xlu1 %781  ;;  %v2391_v18 = vrot.slane %v10574_v42, 2  ;;  %v2319_v29 = vrot.slane %v2198_v8, 1  ;;  %v2399_v47 = vrot.slane %v2198_v8, 2 }
 0x17e   : > { %v780_v26 = vpop.permute.xlu0 %779  ;;  %v950_v37 = vsel %vm370_vm0, %v9166_v5, %v782_v59 }
 0x17f   : > { %2550 = vrot.lane.b32.xlu1 %v2385_v2, %s9275_s20  ;;  %v949_v39 = vsel %vm370_vm0, %v9167_v51, %v780_v26  ;;  %v9169_v2 = vld [vmem:[#allocation2 + $0x120] sm:$0xff]  ;;  %v2395_v26 = vsel %vm654_vm4, %v2392_v41, %v2394_v43  ;;  %v2393_v5 = vsel %vm654_vm4, %v2391_v18, %v2392_v41  ;;  %v2400_v41 = vsel %vm654_vm4, %v2397_v14, %v2399_v47 }
 0x180   : > { %2548 = vrot.lane.b32.xlu0 %v2383_v56, %s9275_s20  ;;  %v10596_v56 = vld [vmem:[#allocation2 + $0x150] sm:$0xff]  ;;  %v9170_v51 = vld [vmem:[#allocation2 + $0x140] sm:$0xff] }
 0x181   : > { %v878_v54 = vpop.permute.xlu1 %877 }
 0x182   : > { %v983_v0 = vsel %vm959_vm8, %v950_v37, %v878_v54  ;;  %v876_v62 = vpop.permute.xlu0 %875  ;;  %v2316_v37 = vrot.slane %v10596_v56, 1 }
 0x183   : > { %v982_v17 = vsel %vm959_vm8, %v949_v39, %v876_v62  ;;  %2458 = vrot.lane.b32.xlu1 %v2310_v30, %s9276_s21  ;;  %v2317_v30 = vrot.slane %v10592_v40, 1 }
 0x184   : > { %2456 = vrot.lane.b32.xlu0 %v2308_v28, %s9276_s21  ;;  %8689 = vmatprep.mubr.msk.f32.mxu0 %vm1509_vm9, %v982_v17  ;;  %v2396_v17 = vrot.slane %v10596_v56, 2 }
 0x185   : > { %8690 = vmatmul.mubr.msk.f32.gmra.mrb[22].mxu0 %vm1509_vm9, %v983_v0  ;;  %v786_v1 = vpop.permute.xlu1 %785  ;;  %v2320_v28 = vsel %vm573_vm5, %v2317_v30, %v2319_v29  ;;  %v2318_v62 = vsel %vm573_vm5, %v2316_v37, %v2317_v30  ;;  %v10636_v29 = vld [vmem:[#allocation2 + $0x188] sm:$0xff] }
 0x186   : > { %v784_v60 = vpop.permute.xlu0 %783  ;;  %v952_v33 = vsel %vm370_vm0, %v9168_v52, %v786_v1  ;;  %v2324_v52 = vrot.slane %v2201_v31, 1 }
 0x187   : > { %2554 = vrot.lane.b32.xlu1 %v2390_v22, %s9275_s20  ;;  %v951_v23 = vsel %vm370_vm0, %v9169_v2, %v784_v60  ;;  %v10614_v22 = vld [vmem:[#allocation2 + $0x170] sm:$0xff]  ;;  %v10618_v60 = vld [vmem:[#allocation2 + $0x168] sm:$0xff] }
 0x188   : > { %2552 = vrot.lane.b32.xlu0 %v2388_v32, %s9275_s20  ;;  %v2322_v43 = vrot.slane %v10614_v22, 1  ;;  %v2402_v2 = vrot.slane %v10614_v22, 2  ;;  %v2401_v30 = vrot.slane %v10618_v60, 2 }
 0x189   : > { %v882_v13 = vpop.permute.xlu1 %881 }
 0x18a   : > { %v985_v46 = vsel %vm959_vm8, %v952_v33, %v882_v13  ;;  %v880_v59 = vpop.permute.xlu0 %879  ;;  %v2398_v13 = vsel %vm654_vm4, %v2396_v17, %v2397_v14  ;;  %v2325_v8 = vsel %vm573_vm5, %v2322_v43, %v2324_v52  ;;  %v10640_v14 = vld [vmem:[#allocation2 + $0x180] sm:$0xff]  ;;  %v2403_v17 = vsel %vm654_vm4, %v2401_v30, %v2402_v2 }
 0x18b   : > { %v984_v24 = vsel %vm959_vm8, %v951_v23, %v880_v59  ;;  %2462 = vrot.lane.b32.xlu1 %v2315_v9, %s9276_s21  ;;  %v2404_v23 = vrot.slane %v2201_v31, 2  ;;  %v2326_v31 = vrot.slane %v10640_v14, 1 }
 0x18c   : > { %2460 = vrot.lane.b32.xlu0 %v2313_v35, %s9276_s21  ;;  %8692 = vmatprep.mubr.msk.f32.mxu0 %vm1509_vm9, %v984_v24  ;;  %v2321_v35 = vrot.slane %v10618_v60, 1 }
 0x18d   : > { %8693 = vmatmul.mubr.msk.f32.gmra.mrb[24].mxu0 %vm1509_vm9, %v985_v46  ;;  %v790_v7 = vpop.permute.xlu1 %789  ;;  %v9172_v46 = vld [vmem:[#allocation2 + $0x158] sm:$0xff] }
 0x18e   : > { %v788_v54 = vpop.permute.xlu0 %787  ;;  %v954_v39 = vsel %vm370_vm0, %v9170_v51, %v790_v7  ;;  %v2204_v7 = vld [vmem:[#allocation2 + $0x190] sm:$0x3]  ;;  %v2405_v51 = vsel %vm654_vm4, %v2402_v2, %v2404_v23 }
 0x18f   : > { %2558 = vrot.lane.b32.xlu1 %v2395_v26, %s9275_s20  ;;  %v953_v1 = vsel %vm370_vm0, %v9171_v6, %v788_v54  ;;  %v2323_v26 = vsel %vm573_vm5, %v2321_v35, %v2322_v43  ;;  %v2207_v35 = vld [vmem:[#allocation2 + $0x1a8] sm:$0x3] }
 0x190   : > { %2556 = vrot.lane.b32.xlu0 %v2393_v5, %s9275_s20  ;;  %v9173_v5 = vld [vmem:[#allocation2 + $0x150] sm:$0xff]  ;;  %v2334_v30 = vrot.slane %v2207_v35, 1 }
 0x191   : > { %v886_v0 = vpop.permute.xlu1 %885 }
 0x192   : > { %v987_v32 = vsel %vm959_vm8, %v954_v39, %v886_v0  ;;  %v884_v44 = vpop.permute.xlu0 %883  ;;  %v2327_v39 = vrot.slane %v10636_v29, 1  ;;  %v2329_v0 = vrot.slane %v2204_v7, 1 }
 0x193   : > { %v986_v9 = vsel %vm959_vm8, %v953_v1, %v884_v44  ;;  %2466 = vrot.lane.b32.xlu1 %v2320_v28, %s9276_s21  ;;  %v2409_v44 = vrot.slane %v2204_v7, 2 }
 0x194   : > { %2464 = vrot.lane.b32.xlu0 %v2318_v62, %s9276_s21  ;;  %8695 = vmatprep.mubr.msk.f32.mxu0 %vm1509_vm9, %v986_v9  ;;  %v2330_v1 = vsel %vm573_vm5, %v2327_v39, %v2329_v0  ;;  %v9174_v9 = vld [vmem:[#allocation2 + $0x170] sm:$0xff]  ;;  %v2328_v52 = vsel %vm573_vm5, %v2326_v31, %v2327_v39 }
 0x195   : > { %8696 = vmatmul.mubr.msk.f32.gmra.mrb[26].mxu0 %vm1509_vm9, %v987_v32  ;;  %v794_v33 = vpop.permute.xlu1 %793  ;;  %v2407_v32 = vrot.slane %v10636_v29, 2 }
 0x196   : > { %v792_v18 = vpop.permute.xlu0 %791  ;;  %v956_v59 = vsel %vm370_vm0, %v9172_v46, %v794_v33  ;;  %v2406_v33 = vrot.slane %v10640_v14, 2  ;;  %v10662_v46 = vld [vmem:[#allocation2 + $0x198] sm:$0xff] }
 0x197   : > { %2562 = vrot.lane.b32.xlu1 %v2400_v41, %s9275_s20  ;;  %v955_v37 = vsel %vm370_vm0, %v9173_v5, %v792_v18  ;;  %v9175_v18 = vld [vmem:[#allocation2 + $0x168] sm:$0xff] }
 0x198   : > { %2560 = vrot.lane.b32.xlu0 %v2398_v13, %s9275_s20  ;;  %v10658_v13 = vld [vmem:[#allocation2 + $0x1a0] sm:$0xff]  ;;  %v2408_v5 = vsel %vm654_vm4, %v2406_v33, %v2407_v32 }
 0x199   : > { %v890_v24 = vpop.permute.xlu1 %889 }
 0x19a   : > { %v989_v54 = vsel %vm959_vm8, %v956_v59, %v890_v24  ;;  %v888_v28 = vpop.permute.xlu0 %887  ;;  %v2410_v24 = vsel %vm654_vm4, %v2407_v32, %v2409_v44 }
 0x19b   : > { %v988_v47 = vsel %vm959_vm8, %v955_v37, %v888_v28  ;;  %2470 = vrot.lane.b32.xlu1 %v2325_v8, %s9276_s21  ;;  %v2331_v37 = vrot.slane %v10662_v46, 1 }
 0x19c   : > { %2468 = vrot.lane.b32.xlu0 %v2323_v26, %s9276_s21  ;;  %8698 = vmatprep.mubr.msk.f32.mxu0 %vm1509_vm9, %v988_v47  ;;  %v2332_v26 = vrot.slane %v10658_v13, 1  ;;  %v2412_v47 = vrot.slane %v10658_v13, 2 }
 0x19d   : > { %8699 = vmatmul.mubr.msk.f32.gmra.mrb[28].mxu0 %vm1509_vm9, %v989_v54  ;;  %v798_v62 = vpop.permute.xlu1 %797 }
 0x19e   : > { %v796_v6 = vpop.permute.xlu0 %795  ;;  %v958_v41 = vsel %vm370_vm0, %v9174_v9, %v798_v62  ;;  %v2335_v28 = vsel %vm573_vm5, %v2332_v26, %v2334_v30  ;;  %v2333_v62 = vsel %vm573_vm5, %v2331_v37, %v2332_v26 }
 0x19f   : > { %2566 = vrot.lane.b32.xlu1 %v2405_v51, %s9275_s20  ;;  %v957_v8 = vsel %vm370_vm0, %v9175_v18, %v796_v6  ;;  %v2414_v51 = vrot.slane %v2207_v35, 2 }
 0x1a0   : > { %2564 = vrot.lane.b32.xlu0 %v2403_v17, %s9275_s20  ;;  %v2411_v17 = vrot.slane %v10662_v46, 2 }
 0x1a1   : > { %v894_v43 = vpop.permute.xlu1 %893 }
 0x1a2   : > { %v991_v2 = vsel %vm959_vm8, %v958_v41, %v894_v43  ;;  %v892_v23 = vpop.permute.xlu0 %891  ;;  %v2413_v9 = vsel %vm654_vm4, %v2411_v17, %v2412_v47 }
 0x1a3   : > { %v990_v59 = vsel %vm959_vm8, %v957_v8, %v892_v23  ;;  %2474 = vrot.lane.b32.xlu1 %v2330_v1, %s9276_s21 }
 0x1a4   : > { %2472 = vrot.lane.b32.xlu0 %v2328_v52, %s9276_s21  ;;  %8701 = vmatprep.mubr.msk.f32.mxu0 %vm1509_vm9, %v990_v59 }
 0x1a5   : > { %8702 = vmatmul.mubr.msk.f32.gmra.mrb[30].mxu0 %vm1509_vm9, %v991_v2  ;;  %v2419_v7 = vpop.permute.xlu1 %2418 }
 0x1a6   : > { %v2417_v54 = vpop.permute.xlu0 %2416  ;;  %v2609_v39 = vsel %vm370_vm0, %v10322_v19, %v2419_v7  ;;  %v2415_v19 = vsel %vm654_vm4, %v2412_v47, %v2414_v51 }
 0x1a7   : > { %2570 = vrot.lane.b32.xlu1 %v2410_v24, %s9275_s20  ;;  %v2608_v31 = vsel %vm370_vm0, %v10328_v27, %v2417_v54 }
 0x1a8   : > { %2568 = vrot.lane.b32.xlu0 %v2408_v5, %s9275_s20 }
 0x1a9   : > { %v2515_v0 = vpop.permute.xlu1 %2514 }
 0x1aa   : > { %v2641_v6 = vsel %vm959_vm8, %v2609_v39, %v2515_v0  ;;  %v2513_v1 = vpop.permute.xlu0 %2512 }
 0x1ab   : > { %v2640_v32 = vsel %vm959_vm8, %v2608_v31, %v2513_v1  ;;  %2478 = vrot.lane.b32.xlu1 %v2335_v28, %s9276_s21 }
 0x1ac   : > { %2476 = vrot.lane.b32.xlu0 %v2333_v62, %s9276_s21  ;;  %8708 = vmatprep.mubr.msk.f32.mxu0 %vm1509_vm9, %v2640_v32 }
 0x1ad   : > { %8709 = vmatmul.mubr.msk.f32.vlgmr.msra.gmra.mrb[0].mxu0 %vm1509_vm9, %v2641_v6  ;;  %v2423_v44 = vpop.permute.xlu1 %2422 }
 0x1ae   : > { %v2421_v41 = vpop.permute.xlu0 %2420  ;;  %v2611_v27 = vsel %vm370_vm0, %v10350_v10, %v2423_v44 }
 0x1af   : > { %2574 = vrot.lane.b32.xlu1 %v2415_v19, %s9275_s20  ;;  %v2610_v52 = vsel %vm370_vm0, %v10354_v61, %v2421_v41 }
 0x1b0   : > { %2572 = vrot.lane.b32.xlu0 %v2413_v9, %s9275_s20 }
 0x1b1   : > { %v2519_v43 = vpop.permute.xlu1 %2518 }
 0x1b2   : > { %v2643_v33 = vsel %vm959_vm8, %v2611_v27, %v2519_v43  ;;  %v2517_v35 = vpop.permute.xlu0 %2516 }
 0x1b3   : > { %v2642_v18 = vsel %vm959_vm8, %v2610_v52, %v2517_v35 }
 0x1b4   : > { %8711 = vmatprep.mubr.msk.f32.mxu0 %vm1509_vm9, %v2642_v18 }
 0x1b5   : > { %8712 = vmatmul.mubr.msk.f32.gmra.mrb[2].mxu0 %vm1509_vm9, %v2643_v33  ;;  %v2427_v8 = vpop.permute.xlu1 %2426 }
 0x1b6   : > { %v2425_v2 = vpop.permute.xlu0 %2424  ;;  %v2613_v23 = vsel %vm370_vm0, %v10372_v20, %v2427_v8 }
 0x1b7   : > { %v2612_v10 = vsel %vm370_vm0, %v10376_v45, %v2425_v2 }
 0x1b9   : > { %v2523_v59 = vpop.permute.xlu1 %2522 }
 0x1ba   : > { %v2645_v61 = vsel %vm959_vm8, %v2613_v23, %v2523_v59  ;;  %v2521_v24 = vpop.permute.xlu0 %2520 }
 0x1bb   : > { %v2644_v26 = vsel %vm959_vm8, %v2612_v10, %v2521_v24 }
 0x1bc   : > { %8714 = vmatprep.mubr.msk.f32.mxu0 %vm1509_vm9, %v2644_v26 }
 0x1bd   : > { %8715 = vmatmul.mubr.msk.f32.gmra.mrb[4].mxu0 %vm1509_vm9, %v2645_v61  ;;  %v2431_v30 = vpop.permute.xlu1 %2430 }
 0x1be   : > { %v2429_v7 = vpop.permute.xlu0 %2428  ;;  %v2615_v5 = vsel %vm370_vm0, %v10394_v4, %v2431_v30 }
 0x1bf   : > { %v2614_v20 = vsel %vm370_vm0, %v10398_v38, %v2429_v7 }
 0x1c1   : > { %v2527_v37 = vpop.permute.xlu1 %2526 }
 0x1c2   : > { %v2647_v45 = vsel %vm959_vm8, %v2615_v5, %v2527_v37  ;;  %v2525_v54 = vpop.permute.xlu0 %2524 }
 0x1c3   : > { %v2646_v28 = vsel %vm959_vm8, %v2614_v20, %v2525_v54 }
 0x1c4   : > { %8717 = vmatprep.mubr.msk.f32.mxu0 %vm1509_vm9, %v2646_v28 }
 0x1c5   : > { %8718 = vmatmul.mubr.msk.f32.gmra.mrb[6].mxu0 %vm1509_vm9, %v2647_v45  ;;  %v2435_v47 = vpop.permute.xlu1 %2434 }
 0x1c6   : > { %v2433_v51 = vpop.permute.xlu0 %2432  ;;  %v2617_v39 = vsel %vm370_vm0, %v10416_v11, %v2435_v47 }
 0x1c7   : > { %v2616_v4 = vsel %vm370_vm0, %v10420_v58, %v2433_v51 }
 0x1c9   : > { %v2531_v0 = vpop.permute.xlu1 %2530 }
 0x1ca   : > { %v2649_v38 = vsel %vm959_vm8, %v2617_v39, %v2531_v0  ;;  %v2529_v62 = vpop.permute.xlu0 %2528 }
 0x1cb   : > { %v2648_v17 = vsel %vm959_vm8, %v2616_v4, %v2529_v62 }
 0x1cc   : > { %8720 = vmatprep.mubr.msk.f32.mxu0 %vm1509_vm9, %v2648_v17 }
 0x1cd   : > { %8721 = vmatmul.mubr.msk.f32.gmra.mrb[8].mxu0 %vm1509_vm9, %v2649_v38  ;;  %v2439_v31 = vpop.permute.xlu1 %2438 }
 0x1ce   : > { %v2437_v6 = vpop.permute.xlu0 %2436  ;;  %v2619_v1 = vsel %vm370_vm0, %v10438_v55, %v2439_v31 }
 0x1cf   : > { %v2618_v11 = vsel %vm370_vm0, %v10442_v15, %v2437_v6 }
 0x1d1   : > { %v2535_v32 = vpop.permute.xlu1 %2534 }
 0x1d2   : > { %v2651_v58 = vsel %vm959_vm8, %v2619_v1, %v2535_v32  ;;  %v2533_v19 = vpop.permute.xlu0 %2532 }
 0x1d3   : > { %v2650_v44 = vsel %vm959_vm8, %v2618_v11, %v2533_v19 }
 0x1d4   : > { %8723 = vmatprep.mubr.msk.f32.mxu0 %vm1509_vm9, %v2650_v44 }
 0x1d5   : > { %8724 = vmatmul.mubr.msk.f32.gmra.mrb[10].mxu0 %vm1509_vm9, %v2651_v58  ;;  %v2443_v9 = vpop.permute.xlu1 %2442 }
 0x1d6   : > { %v2441_v41 = vpop.permute.xlu0 %2440  ;;  %v2621_v27 = vsel %vm370_vm0, %v10460_v63, %v2443_v9 }
 0x1d7   : > { %v2620_v55 = vsel %vm370_vm0, %v10464_v48, %v2441_v41 }
 0x1d9   : > { %v2539_v43 = vpop.permute.xlu1 %2538 }
 0x1da   : > { %v2653_v15 = vsel %vm959_vm8, %v2621_v27, %v2539_v43  ;;  %v2537_v52 = vpop.permute.xlu0 %2536 }
 0x1db   : > { %v2652_v33 = vsel %vm959_vm8, %v2620_v55, %v2537_v52 }
 0x1dc   : > { %8726 = vmatprep.mubr.msk.f32.mxu0 %vm1509_vm9, %v2652_v33 }
 0x1dd   : > { %8727 = vmatmul.mubr.msk.f32.gmra.mrb[12].mxu0 %vm1509_vm9, %v2653_v15  ;;  %v2447_v35 = vpop.permute.xlu1 %2446 }
 0x1de   : > { %v2445_v18 = vpop.permute.xlu0 %2444  ;;  %v2623_v8 = vsel %vm370_vm0, %v10482_v34, %v2447_v35 }
 0x1df   : > { %v2622_v63 = vsel %vm370_vm0, %v10486_v21, %v2445_v18 }
 0x1e1   : > { %v2543_v2 = vpop.permute.xlu1 %2542 }
 0x1e2   : > { %v2655_v48 = vsel %vm959_vm8, %v2623_v8, %v2543_v2  ;;  %v2541_v23 = vpop.permute.xlu0 %2540 }
 0x1e3   : > { %v2654_v59 = vsel %vm959_vm8, %v2622_v63, %v2541_v23 }
 0x1e4   : > { %8729 = vmatprep.mubr.msk.f32.mxu0 %vm1509_vm9, %v2654_v59 }
 0x1e5   : > { %8730 = vmatmul.mubr.msk.f32.gmra.mrb[14].mxu0 %vm1509_vm9, %v2655_v48  ;;  %v2451_v10 = vpop.permute.xlu1 %2450 }
 0x1e6   : > { %v2449_v61 = vpop.permute.xlu0 %2448  ;;  %v2625_v24 = vsel %vm370_vm0, %v10504_v57, %v2451_v10 }
 0x1e7   : > { %v2624_v34 = vsel %vm370_vm0, %v10508_v50, %v2449_v61 }
 0x1e9   : > { %v2547_v26 = vpop.permute.xlu1 %2546 }
 0x1ea   : > { %v2657_v21 = vsel %vm959_vm8, %v2625_v24, %v2547_v26  ;;  %v2545_v30 = vpop.permute.xlu0 %2544 }
 0x1eb   : > { %v2656_v7 = vsel %vm959_vm8, %v2624_v34, %v2545_v30 }
 0x1ec   : > { %8732 = vmatprep.mubr.msk.f32.mxu0 %vm1509_vm9, %v2656_v7 }
 0x1ed   : > { %8733 = vmatmul.mubr.msk.f32.gmra.mrb[16].mxu0 %vm1509_vm9, %v2657_v21  ;;  %v2455_v5 = vpop.permute.xlu1 %2454 }
 0x1ee   : > { %v2453_v37 = vpop.permute.xlu0 %2452  ;;  %v2627_v20 = vsel %vm370_vm0, %v10526_v3, %v2455_v5 }
 0x1ef   : > { %v2626_v57 = vsel %vm370_vm0, %v10530_v53, %v2453_v37 }
 0x1f1   : > { %v2551_v45 = vpop.permute.xlu1 %2550 }
 0x1f2   : > { %v2659_v50 = vsel %vm959_vm8, %v2627_v20, %v2551_v45  ;;  %v2549_v54 = vpop.permute.xlu0 %2548 }
 0x1f3   : > { %v2658_v28 = vsel %vm959_vm8, %v2626_v57, %v2549_v54 }
 0x1f4   : > { %8735 = vmatprep.mubr.msk.f32.mxu0 %vm1509_vm9, %v2658_v28 }
 0x1f5   : > { %8736 = vmatmul.mubr.msk.f32.gmra.mrb[18].mxu0 %vm1509_vm9, %v2659_v50  ;;  %v2459_v47 = vpop.permute.xlu1 %2458 }
 0x1f6   : > { %v2457_v51 = vpop.permute.xlu0 %2456  ;;  %v2629_v39 = vsel %vm370_vm0, %v10548_v25, %v2459_v47 }
 0x1f7   : > { %v2628_v3 = vsel %vm370_vm0, %v10552_v49, %v2457_v51 }
 0x1f9   : > { %v2555_v0 = vpop.permute.xlu1 %2554 }
 0x1fa   : > { %v2661_v53 = vsel %vm959_vm8, %v2629_v39, %v2555_v0  ;;  %v2553_v4 = vpop.permute.xlu0 %2552 }
 0x1fb   : > { %v2660_v38 = vsel %vm959_vm8, %v2628_v3, %v2553_v4 }
 0x1fc   : > { %8738 = vmatprep.mubr.msk.f32.mxu0 %vm1509_vm9, %v2660_v38 }
 0x1fd   : > { %8739 = vmatmul.mubr.msk.f32.gmra.mrb[20].mxu0 %vm1509_vm9, %v2661_v53  ;;  %v2463_v62 = vpop.permute.xlu1 %2462 }
 0x1fe   : > { %v2461_v17 = vpop.permute.xlu0 %2460  ;;  %v2631_v31 = vsel %vm370_vm0, %v10570_v16, %v2463_v62 }
 0x1ff   : > { %v2630_v25 = vsel %vm370_vm0, %v10574_v42, %v2461_v17 }
 0x201   : > { %v2559_v6 = vpop.permute.xlu1 %2558 }
 0x202   : > { %v2663_v49 = vsel %vm959_vm8, %v2631_v31, %v2559_v6  ;;  %v2557_v1 = vpop.permute.xlu0 %2556 }
 0x203   : > { %v2662_v32 = vsel %vm959_vm8, %v2630_v25, %v2557_v1 }
 0x204   : > { %8741 = vmatprep.mubr.msk.f32.mxu0 %vm1509_vm9, %v2662_v32 }
 0x205   : > { %8742 = vmatmul.mubr.msk.f32.gmra.mrb[22].mxu0 %vm1509_vm9, %v2663_v49  ;;  %v2467_v11 = vpop.permute.xlu1 %2466 }
 0x206   : > { %v2465_v58 = vpop.permute.xlu0 %2464  ;;  %v2633_v19 = vsel %vm370_vm0, %v10592_v40, %v2467_v11 }
 0x207   : > { %v2632_v16 = vsel %vm370_vm0, %v10596_v56, %v2465_v58 }
 0x209   : > { %v2563_v44 = vpop.permute.xlu1 %2562 }
 0x20a   : > { %v2665_v42 = vsel %vm959_vm8, %v2633_v19, %v2563_v44  ;;  %v2561_v9 = vpop.permute.xlu0 %2560 }
 0x20b   : > { %v2664_v41 = vsel %vm959_vm8, %v2632_v16, %v2561_v9 }
 0x20c   : > { %8744 = vmatprep.mubr.msk.f32.mxu0 %vm1509_vm9, %v2664_v41 }
 0x20d   : > { %8745 = vmatmul.mubr.msk.f32.gmra.mrb[24].mxu0 %vm1509_vm9, %v2665_v42  ;;  %v2471_v27 = vpop.permute.xlu1 %2470 }
 0x20e   : > { %v2469_v43 = vpop.permute.xlu0 %2468  ;;  %v2635_v55 = vsel %vm370_vm0, %v10614_v22, %v2471_v27 }
 0x20f   : > { %v2634_v40 = vsel %vm370_vm0, %v10618_v60, %v2469_v43 }
 0x211   : > { %v2567_v15 = vpop.permute.xlu1 %2566 }
 0x212   : > { %v2667_v56 = vsel %vm959_vm8, %v2635_v55, %v2567_v15  ;;  %v2565_v52 = vpop.permute.xlu0 %2564 }
 0x213   : > { %v2666_v33 = vsel %vm959_vm8, %v2634_v40, %v2565_v52 }
 0x214   : > { %8747 = vmatprep.mubr.msk.f32.mxu0 %vm1509_vm9, %v2666_v33 }
 0x215   : > { %8748 = vmatmul.mubr.msk.f32.gmra.mrb[26].mxu0 %vm1509_vm9, %v2667_v56  ;;  %v2475_v35 = vpop.permute.xlu1 %2474 }
 0x216   : > { %v2473_v18 = vpop.permute.xlu0 %2472  ;;  %v2637_v8 = vsel %vm370_vm0, %v10636_v29, %v2475_v35 }
 0x217   : > { %v2636_v22 = vsel %vm370_vm0, %v10640_v14, %v2473_v18 }
 0x219   : > { %v2571_v2 = vpop.permute.xlu1 %2570 }
 0x21a   : > { %v2669_v60 = vsel %vm959_vm8, %v2637_v8, %v2571_v2  ;;  %v2569_v63 = vpop.permute.xlu0 %2568 }
 0x21b   : > { %v2668_v48 = vsel %vm959_vm8, %v2636_v22, %v2569_v63 }
 0x21c   : > { %8750 = vmatprep.mubr.msk.f32.mxu0 %vm1509_vm9, %v2668_v48 }
 0x21d   : > { %8751 = vmatmul.mubr.msk.f32.gmra.mrb[28].mxu0 %vm1509_vm9, %v2669_v60  ;;  %v2479_v23 = vpop.permute.xlu1 %2478 }
 0x21e   : > { %v2477_v59 = vpop.permute.xlu0 %2476  ;;  %v2639_v10 = vsel %vm370_vm0, %v10658_v13, %v2479_v23  ;;  %v10816_v13 = vld [vmem:[%s14120_s3] ss:$0 sm:$0xff] }
 0x21f   : > { %v2638_v29 = vsel %vm370_vm0, %v10662_v46, %v2477_v59 }
 0x221   : > { %v2575_v61 = vpop.permute.xlu1 %2574 }
 0x222   : > { %v2671_v14 = vsel %vm959_vm8, %v2639_v10, %v2575_v61  ;;  %v2573_v24 = vpop.permute.xlu0 %2572 }
 0x223   : > { %v2670_v26 = vsel %vm959_vm8, %v2638_v29, %v2573_v24 }
 0x224   : > { %8753 = vmatprep.mubr.msk.f32.mxu0 %vm1509_vm9, %v2670_v26 }
 0x225   : > { %8754 = vmatmul.mubr.msk.f32.gmra.mrb[30].mxu0 %vm1509_vm9, %v2671_v14 }
 0x280   : > { %v8710_v34 = vpop.f32.mrb[0].mxu0 }
 0x281   : > { %v2840_v21 = vpop.f32.mrb[1].mxu0  ;;  %v3039_v46 = vadd.f32 %v8710_v34, %v10816_v13  ;;  %v3419_v34 = vld [vmem:[#allocation2] sm:$0xff] }
 0x282   : > { %v3038_v5 = vadd.f32 %v10816_v13, %v2840_v21  ;;  %v3420_v21 = vld [vmem:[#allocation2 + $0x8] sm:$0xff] }
 0x283   : > { %v3071_v45 = vmul.f32 0.2, %v3039_v46 }
 0x284   : > { %v3070_v50 = vmul.f32 0.2, %v3038_v5 }
 0x285   : > { %v10821_v28 = vmax.f32 %v3039_v46, %v3071_v45 }
 0x286   : > { %v10823_v47 = vmax.f32 %v3038_v5, %v3070_v50  ;;  %v3516_v50 = vrot.slane %v3420_v21, 1 }
 0x287   : > { %v3205_v53 = vmul.f32 %v10821_v28, %v10821_v28  ;;  %v3135_v31 = vsel %vm370_vm0, %v10821_v28, 0.0 }
 0x288   : > { %v8713_v30 = vpop.f32.mrb[2].mxu0  ;;  %v3204_v38 = vmul.f32 %v10823_v47, %v10823_v47  ;;  %v3134_v6 = vsel %vm370_vm0, %v10823_v47, 0.0 }
 0x289   : > { %v2850_v7 = vpop.f32.mrb[3].mxu0  ;;  %v3041_v51 = vadd.f32 %v8713_v30, %v10816_v13  ;;  %v3237_v32 = vsel %vm370_vm0, %v3205_v53, 0.0  ;;  %v3136_v16 = vadd.f32 %v3135_v31, %v3134_v6  ;;  %v3421_v31 = vld [vmem:[#allocation2 + $0x10] sm:$0x3] }
 0x28a   : > { %v3040_v37 = vadd.f32 %v10816_v13, %v2850_v7  ;;  %v3236_v11 = vsel %vm370_vm0, %v3204_v38, 0.0 }
 0x28b   : > { %v3073_v62 = vmul.f32 0.2, %v3041_v51  ;;  %v3238_v43 = vadd.f32 %v3237_v32, %v3236_v11 }
 0x28c   : > { %v3072_v54 = vmul.f32 0.2, %v3040_v37 }
 0x28d   : > { %v10843_v58 = vmax.f32 %v3041_v51, %v3073_v62 }
 0x28e   : > { %v10827_v0 = vmax.f32 %v3040_v37, %v3072_v54  ;;  %v3515_v37 = vrot.slane %v3419_v34, 1 }
 0x28f   : > { %v3207_v56 = vmul.f32 %v10843_v58, %v10843_v58  ;;  %v3139_v18 = vsel %vm370_vm0, %v10843_v58, 0.0 }
 0x290   : > { %v8716_v20 = vpop.f32.mrb[4].mxu0  ;;  %v3206_v25 = vmul.f32 %v10827_v0, %v10827_v0  ;;  %v3137_v19 = vsel %vm370_vm0, %v10827_v0, 0.0 }
 0x291   : > { %v2860_v57 = vpop.f32.mrb[5].mxu0  ;;  %v3043_v49 = vadd.f32 %v8716_v20, %v10816_v13  ;;  %v3138_v55 = vadd.f32 %v3137_v19, %v3136_v16  ;;  %v3241_v48 = vsel %vm370_vm0, %v3207_v56, 0.0  ;;  %v3595_v19 = vrot.slane %v3419_v34, 2 }
 0x292   : > { %v3042_v39 = vadd.f32 %v10816_v13, %v2860_v57  ;;  %v3239_v42 = vsel %vm370_vm0, %v3206_v25, 0.0  ;;  %v3596_v16 = vrot.slane %v3420_v21, 2 }
 0x293   : > { %v3075_v9 = vmul.f32 0.2, %v3043_v49  ;;  %v3240_v35 = vadd.f32 %v3239_v42, %v3238_v43  ;;  %v3140_v60 = vadd.f32 %v3139_v18, %v3138_v55  ;;  %v3598_v43 = vrot.slane %v3421_v31, 2 }
 0x294   : > { %v3074_v17 = vmul.f32 0.2, %v3042_v39  ;;  %v3597_v56 = vsel %vm654_vm4, %v3595_v19, %v3596_v16 }
 0x295   : > { %v10858_v8 = vmax.f32 %v3043_v49, %v3075_v9  ;;  %v3242_v61 = vadd.f32 %v3241_v48, %v3240_v35  ;;  %v3599_v18 = vsel %vm654_vm4, %v3596_v16, %v3598_v43 }
 0x296   : > { %v10847_v44 = vmax.f32 %v3042_v39, %v3074_v17 }
 0x297   : > { %v3209_v14 = vmul.f32 %v10858_v8, %v10858_v8  ;;  %v3143_v30 = vsel %vm370_vm0, %v10858_v8, 0.0 }
 0x298   : > { %v8719_v3 = vpop.f32.mrb[6].mxu0  ;;  %v3208_v52 = vmul.f32 %v10847_v44, %v10847_v44  ;;  %v3141_v2 = vsel %vm370_vm0, %v10847_v44, 0.0 }
 0x299   : > { %v2870_v4 = vpop.f32.mrb[7].mxu0  ;;  %v3045_v15 = vadd.f32 %v8719_v3, %v10816_v13  ;;  %v3142_v10 = vadd.f32 %v3141_v2, %v3140_v60  ;;  %v3245_v39 = vsel %vm370_vm0, %v3209_v14, 0.0 }
 0x29a   : > { %v3044_v1 = vadd.f32 %v10816_v13, %v2870_v4  ;;  %v3243_v23 = vsel %vm370_vm0, %v3208_v52, 0.0  ;;  %v3517_v4 = vsel %vm573_vm5, %v3515_v37, %v3516_v50 }
 0x29b   : > { %v3077_v63 = vmul.f32 0.2, %v3045_v15  ;;  %v3244_v7 = vadd.f32 %v3243_v23, %v3242_v61  ;;  %v3144_v54 = vadd.f32 %v3143_v30, %v3142_v10  ;;  %3675 = vrot.lane.b32.xlu0 %v3517_v4, %s9276_s21 }
 0x29c   : > { %v3076_v41 = vmul.f32 0.2, %v3044_v1 }
 0x29d   : > { %v10873_v46 = vmax.f32 %v3045_v15, %v3077_v63  ;;  %v3246_v17 = vadd.f32 %v3245_v39, %v3244_v7 }
 0x29e   : > { %v10862_v22 = vmax.f32 %v3044_v1, %v3076_v41  ;;  %v3518_v1 = vrot.slane %v3421_v31, 1 }
 0x29f   : > { %v3211_v38 = vmul.f32 %v10873_v46, %v10873_v46  ;;  %v3147_v6 = vsel %vm370_vm0, %v10873_v46, 0.0  ;;  %3771 = vrot.lane.b32.xlu0 %v3597_v56, %s9275_s20 }
 0x2a0   : > { %v8722_v27 = vpop.f32.mrb[8].mxu0  ;;  %v3210_v24 = vmul.f32 %v10862_v22, %v10862_v22  ;;  %v3145_v20 = vsel %vm370_vm0, %v10862_v22, 0.0 }
 0x2a1   : > { %v2880_v40 = vpop.f32.mrb[9].mxu0  ;;  %v3047_v29 = vadd.f32 %v8722_v27, %v10816_v13  ;;  %v3146_v62 = vadd.f32 %v3145_v20, %v3144_v54  ;;  %v3519_v27 = vsel %vm573_vm5, %v3516_v50, %v3518_v1  ;;  %v3249_v55 = vsel %vm370_vm0, %v3211_v38, 0.0 }
 0x2a2   : > { %v3046_v33 = vadd.f32 %v10816_v13, %v2880_v40  ;;  %v3247_v3 = vsel %vm370_vm0, %v3210_v24, 0.0  ;;  %3677 = vrot.lane.b32.xlu1 %v3519_v27, %s9276_s21 }
 0x2a3   : > { %v3079_v51 = vmul.f32 0.2, %v3047_v29  ;;  %v3248_v32 = vadd.f32 %v3247_v3, %v3246_v17  ;;  %v3148_v15 = vadd.f32 %v3147_v6, %v3146_v62 }
 0x2a4   : > { %v3078_v59 = vmul.f32 0.2, %v3046_v33 }
 0x2a5   : > { %v10891_v11 = vmax.f32 %v3047_v29, %v3079_v51  ;;  %v3250_v60 = vadd.f32 %v3249_v55, %v3248_v32 }
 0x2a6   : > { %v10877_v45 = vmax.f32 %v3046_v33, %v3078_v59  ;;  %3773 = vrot.lane.b32.xlu1 %v3599_v18, %s9275_s20 }
 0x2a7   : > { %v3213_v63 = vmul.f32 %v10891_v11, %v10891_v11  ;;  %v3151_v61 = vsel %vm370_vm0, %v10891_v11, 0.0 }
 0x2a8   : > { %v8725_v26 = vpop.f32.mrb[10].mxu0  ;;  %v3212_v25 = vmul.f32 %v10877_v45, %v10877_v45  ;;  %v3149_v42 = vsel %vm370_vm0, %v10877_v45, 0.0 }
 0x2a9   : > { %v2890_v5 = vpop.f32.mrb[11].mxu0  ;;  %v3049_v49 = vadd.f32 %v8725_v26, %v10816_v13  ;;  %v3150_v2 = vadd.f32 %v3149_v42, %v3148_v15  ;;  %v3253_v34 = vsel %vm370_vm0, %v3213_v63, 0.0 }
 0x2aa   : > { %v3048_v57 = vadd.f32 %v10816_v13, %v2890_v5  ;;  %v3251_v52 = vsel %vm370_vm0, %v3212_v25, 0.0 }
 0x2ab   : > { %v3081_v33 = vmul.f32 0.2, %v3049_v49  ;;  %v3252_v10 = vadd.f32 %v3251_v52, %v3250_v60  ;;  %v3152_v26 = vadd.f32 %v3151_v61, %v3150_v2 }
 0x2ac   : > { %v3080_v53 = vmul.f32 0.2, %v3048_v57 }
 0x2ad   : > { %v10913_v29 = vmax.f32 %v3049_v49, %v3081_v33  ;;  %v3254_v37 = vadd.f32 %v3253_v34, %v3252_v10 }
 0x2ae   : > { %v10895_v9 = vmax.f32 %v3048_v57, %v3080_v53 }
 0x2af   : > { %v3215_v57 = vmul.f32 %v10913_v29, %v10913_v29  ;;  %v3155_v3 = vsel %vm370_vm0, %v10913_v29, 0.0 }
 0x2b0   : > { %v8728_v41 = vpop.f32.mrb[12].mxu0  ;;  %v3214_v48 = vmul.f32 %v10895_v9, %v10895_v9  ;;  %v3153_v14 = vsel %vm370_vm0, %v10895_v9, 0.0 }
 0x2b1   : > { %v2900_v40 = vpop.f32.mrb[13].mxu0  ;;  %v3051_v23 = vadd.f32 %v8728_v41, %v10816_v13  ;;  %v3154_v5 = vadd.f32 %v3153_v14, %v3152_v26  ;;  %v3257_v17 = vsel %vm370_vm0, %v3215_v57, 0.0 }
 0x2b2   : > { %v3050_v35 = vadd.f32 %v10816_v13, %v2900_v40  ;;  %v3255_v21 = vsel %vm370_vm0, %v3214_v48, 0.0 }
 0x2b3   : > { %v3083_v30 = vmul.f32 0.2, %v3051_v23  ;;  %v3256_v39 = vadd.f32 %v3255_v21, %v3254_v37  ;;  %v3156_v62 = vadd.f32 %v3155_v3, %v3154_v5 }
 0x2b4   : > { %v3082_v59 = vmul.f32 0.2, %v3050_v35 }
 0x2b5   : > { %v10929_v53 = vmax.f32 %v3051_v23, %v3083_v30  ;;  %v3258_v1 = vadd.f32 %v3257_v17, %v3256_v39 }
 0x2b6   : > { %v10917_v24 = vmax.f32 %v3050_v35, %v3082_v59 }
 0x2b7   : > { %v3217_v32 = vmul.f32 %v10929_v53, %v10929_v53  ;;  %v3159_v43 = vsel %vm370_vm0, %v10929_v53, 0.0 }
 0x2b8   : > { %v8731_v7 = vpop.f32.mrb[14].mxu0  ;;  %v3216_v50 = vmul.f32 %v10917_v24, %v10917_v24  ;;  %v3157_v4 = vsel %vm370_vm0, %v10917_v24, 0.0 }
 0x2b9   : > { %v2910_v20 = vpop.f32.mrb[15].mxu0  ;;  %v3053_v54 = vadd.f32 %v8731_v7, %v10816_v13  ;;  %v3158_v49 = vadd.f32 %v3157_v4, %v3156_v62  ;;  %v3261_v52 = vsel %vm370_vm0, %v3217_v32, 0.0 }
 0x2ba   : > { %v3052_v51 = vadd.f32 %v10816_v13, %v2910_v20  ;;  %v3259_v31 = vsel %vm370_vm0, %v3216_v50, 0.0 }
 0x2bb   : > { %v3085_v6 = vmul.f32 0.2, %v3053_v54  ;;  %v3260_v42 = vadd.f32 %v3259_v31, %v3258_v1  ;;  %v3160_v56 = vadd.f32 %v3159_v43, %v3158_v49 }
 0x2bc   : > { %v3084_v38 = vmul.f32 0.2, %v3052_v51 }
 0x2bd   : > { %v10944_v55 = vmax.f32 %v3053_v54, %v3085_v6  ;;  %v3262_v60 = vadd.f32 %v3261_v52, %v3260_v42 }
 0x2be   : > { %v10935_v25 = vmax.f32 %v3052_v51, %v3084_v38 }
 0x2bf   : > { %v3219_v63 = vmul.f32 %v10944_v55, %v10944_v55  ;;  %v3163_v59 = vsel %vm370_vm0, %v10944_v55, 0.0 }
 0x2c0   : > { %v3218_v19 = vmul.f32 %v10935_v25, %v10935_v25  ;;  %v8734_v16 = vpop.f32.mrb[16].mxu0  ;;  %v3161_v15 = vsel %vm370_vm0, %v10935_v25, 0.0 }
 0x2c1   : > { %v3055_v41 = vadd.f32 %v8734_v16, %v10816_v13  ;;  %v2920_v27 = vpop.f32.mrb[17].mxu0  ;;  %v3162_v2 = vadd.f32 %v3161_v15, %v3160_v56  ;;  %v3265_v7 = vsel %vm370_vm0, %v3219_v63, 0.0 }
 0x2c2   : > { %v3054_v40 = vadd.f32 %v10816_v13, %v2920_v27  ;;  %v3263_v33 = vsel %vm370_vm0, %v3218_v19, 0.0 }
 0x2c3   : > { %v3087_v35 = vmul.f32 0.2, %v3055_v41  ;;  %v3264_v23 = vadd.f32 %v3263_v33, %v3262_v60  ;;  %v3164_v34 = vadd.f32 %v3163_v59, %v3162_v2 }
 0x2c4   : > { %v3086_v18 = vmul.f32 0.2, %v3054_v40 }
 0x2c5   : > { %v10957_v10 = vmax.f32 %v3055_v41, %v3087_v35  ;;  %v3266_v57 = vadd.f32 %v3265_v7, %v3264_v23 }
 0x2c6   : > { %v10953_v48 = vmax.f32 %v3054_v40, %v3086_v18 }
 0x2c7   : > { %v3221_v54 = vmul.f32 %v10957_v10, %v10957_v10  ;;  %v3167_v4 = vsel %vm370_vm0, %v10957_v10, 0.0 }
 0x2c8   : > { %v3165_v61 = vsel %vm370_vm0, %v10953_v48, 0.0  ;;  %v3220_v14 = vmul.f32 %v10953_v48, %v10953_v48  ;;  %v8737_v26 = vpop.f32.mrb[18].mxu0 }
 0x2c9   : > { %v3057_v21 = vadd.f32 %v8737_v26, %v10816_v13  ;;  %v2930_v30 = vpop.f32.mrb[19].mxu0  ;;  %v3166_v20 = vadd.f32 %v3165_v61, %v3164_v34  ;;  %v3269_v17 = vsel %vm370_vm0, %v3221_v54, 0.0 }
 0x2ca   : > { %v3267_v5 = vsel %vm370_vm0, %v3220_v14, 0.0  ;;  %v3056_v37 = vadd.f32 %v10816_v13, %v2930_v30 }
 0x2cb   : > { %v3089_v50 = vmul.f32 0.2, %v3057_v21  ;;  %v3268_v39 = vadd.f32 %v3267_v5, %v3266_v57  ;;  %v3168_v62 = vadd.f32 %v3167_v4, %v3166_v20 }
 0x2cc   : > { %v3088_v51 = vmul.f32 0.2, %v3056_v37 }
 0x2cd   : > { %v10969_v3 = vmax.f32 %v3057_v21, %v3089_v50  ;;  %v3270_v19 = vadd.f32 %v3269_v17, %v3268_v39 }
 0x2ce   : > { %v10973_v38 = vmax.f32 %v3056_v37, %v3088_v51 }
 0x2cf   : > { %v3223_v31 = vmul.f32 %v10969_v3, %v10969_v3  ;;  %v3171_v41 = vsel %vm370_vm0, %v10969_v3, 0.0 }
 0x2d0   : > { %v3169_v6 = vsel %vm370_vm0, %v10973_v38, 0.0  ;;  %v3222_v49 = vmul.f32 %v10973_v38, %v10973_v38  ;;  %v8740_v1 = vpop.f32.mrb[20].mxu0 }
 0x2d1   : > { %v3170_v32 = vadd.f32 %v3169_v6, %v3168_v62  ;;  %v3059_v16 = vadd.f32 %v8740_v1, %v10816_v13  ;;  %v2940_v42 = vpop.f32.mrb[21].mxu0  ;;  %v3273_v52 = vsel %vm370_vm0, %v3223_v31, 0.0 }
 0x2d2   : > { %v3271_v27 = vsel %vm370_vm0, %v3222_v49, 0.0  ;;  %v3058_v43 = vadd.f32 %v10816_v13, %v2940_v42 }
 0x2d3   : > { %v3272_v15 = vadd.f32 %v3271_v27, %v3270_v19  ;;  %v3091_v40 = vmul.f32 0.2, %v3059_v16  ;;  %v3172_v56 = vadd.f32 %v3171_v41, %v3170_v32 }
 0x2d4   : > { %v3090_v33 = vmul.f32 0.2, %v3058_v43 }
 0x2d5   : > { %v10988_v35 = vmax.f32 %v3059_v16, %v3091_v40  ;;  %v3274_v18 = vadd.f32 %v3273_v52, %v3272_v15 }
 0x2d6   : > { %v10990_v2 = vmax.f32 %v3058_v43, %v3090_v33 }
 0x2d7   : > { %v3225_v60 = vmul.f32 %v10988_v35, %v10988_v35  ;;  %v3175_v34 = vsel %vm370_vm0, %v10988_v35, 0.0 }
 0x2d8   : > { %v3173_v63 = vsel %vm370_vm0, %v10990_v2, 0.0  ;;  %v3224_v23 = vmul.f32 %v10990_v2, %v10990_v2  ;;  %v8743_v59 = vpop.f32.mrb[22].mxu0 }
 0x2d9   : > { %v3174_v61 = vadd.f32 %v3173_v63, %v3172_v56  ;;  %v3061_v14 = vadd.f32 %v8743_v59, %v10816_v13  ;;  %v2950_v26 = vpop.f32.mrb[23].mxu0  ;;  %v3277_v20 = vsel %vm370_vm0, %v3225_v60, 0.0 }
 0x2da   : > { %v3275_v21 = vsel %vm370_vm0, %v3224_v23, 0.0  ;;  %v3060_v30 = vadd.f32 %v10816_v13, %v2950_v26 }
 0x2db   : > { %v3276_v7 = vadd.f32 %v3275_v21, %v3274_v18  ;;  %v3093_v5 = vmul.f32 0.2, %v3061_v14  ;;  %v3176_v37 = vadd.f32 %v3175_v34, %v3174_v61 }
 0x2dc   : > { %v3092_v57 = vmul.f32 0.2, %v3060_v30 }
 0x2dd   : > { %v11004_v50 = vmax.f32 %v3061_v14, %v3093_v5  ;;  %v3278_v54 = vadd.f32 %v3277_v20, %v3276_v7 }
 0x2de   : > { %v11006_v51 = vmax.f32 %v3060_v30, %v3092_v57 }
 0x2df   : > { %v3227_v39 = vmul.f32 %v11004_v50, %v11004_v50  ;;  %v3179_v1 = vsel %vm370_vm0, %v11004_v50, 0.0 }
 0x2e0   : > { %v3177_v4 = vsel %vm370_vm0, %v11006_v51, 0.0  ;;  %v3226_v62 = vmul.f32 %v11006_v51, %v11006_v51  ;;  %v8746_v17 = vpop.f32.mrb[24].mxu0 }
 0x2e1   : > { %v3178_v31 = vadd.f32 %v3177_v4, %v3176_v37  ;;  %v3063_v6 = vadd.f32 %v8746_v17, %v10816_v13  ;;  %v2960_v49 = vpop.f32.mrb[25].mxu0  ;;  %v3281_v27 = vsel %vm370_vm0, %v3227_v39, 0.0 }
 0x2e2   : > { %v3279_v32 = vsel %vm370_vm0, %v3226_v62, 0.0  ;;  %v3062_v19 = vadd.f32 %v10816_v13, %v2960_v49 }
 0x2e3   : > { %v3280_v16 = vadd.f32 %v3279_v32, %v3278_v54  ;;  %v3095_v42 = vmul.f32 0.2, %v3063_v6  ;;  %v3180_v41 = vadd.f32 %v3179_v1, %v3178_v31 }
 0x2e4   : > { %v3094_v43 = vmul.f32 0.2, %v3062_v19 }
 0x2e5   : > { %v11020_v15 = vmax.f32 %v3063_v6, %v3095_v42  ;;  %v3282_v40 = vadd.f32 %v3281_v27, %v3280_v16 }
 0x2e6   : > { %v11022_v56 = vmax.f32 %v3062_v19, %v3094_v43 }
 0x2e7   : > { %v3229_v52 = vmul.f32 %v11020_v15, %v11020_v15  ;;  %v3183_v61 = vsel %vm370_vm0, %v11020_v15, 0.0 }
 0x2e8   : > { %v3181_v33 = vsel %vm370_vm0, %v11022_v56, 0.0  ;;  %v3228_v18 = vmul.f32 %v11022_v56, %v11022_v56  ;;  %v8749_v60 = vpop.f32.mrb[26].mxu0 }
 0x2e9   : > { %v3182_v63 = vadd.f32 %v3181_v33, %v3180_v41  ;;  %v3065_v23 = vadd.f32 %v8749_v60, %v10816_v13  ;;  %v2970_v59 = vpop.f32.mrb[27].mxu0  ;;  %v3285_v7 = vsel %vm370_vm0, %v3229_v52, 0.0 }
 0x2ea   : > { %v3283_v14 = vsel %vm370_vm0, %v3228_v18, 0.0  ;;  %v3064_v26 = vadd.f32 %v10816_v13, %v2970_v59 }
 0x2eb   : > { %v3284_v34 = vadd.f32 %v3283_v14, %v3282_v40  ;;  %v3097_v21 = vmul.f32 0.2, %v3065_v23  ;;  %v3184_v30 = vadd.f32 %v3183_v61, %v3182_v63 }
 0x2ec   : > { %v3096_v5 = vmul.f32 0.2, %v3064_v26 }
 0x2ed   : > { %v11036_v37 = vmax.f32 %v3065_v23, %v3097_v21  ;;  %v3286_v20 = vadd.f32 %v3285_v7, %v3284_v34 }
 0x2ee   : > { %v11038_v57 = vmax.f32 %v3064_v26, %v3096_v5 }
 0x2ef   : > { %v3231_v54 = vmul.f32 %v11036_v37, %v11036_v37  ;;  %v3187_v49 = vsel %vm370_vm0, %v11036_v37, 0.0 }
 0x2f0   : > { %v3185_v39 = vsel %vm370_vm0, %v11038_v57, 0.0  ;;  %v3230_v4 = vmul.f32 %v11038_v57, %v11038_v57  ;;  %v8752_v62 = vpop.f32.mrb[28].mxu0 }
 0x2f1   : > { %v3186_v17 = vadd.f32 %v3185_v39, %v3184_v30  ;;  %v3067_v31 = vadd.f32 %v8752_v62, %v10816_v13  ;;  %v2980_v6 = vpop.f32.mrb[29].mxu0  ;;  %v3289_v41 = vsel %vm370_vm0, %v3231_v54, 0.0 }
 0x2f2   : > { %v3287_v1 = vsel %vm370_vm0, %v3230_v4, 0.0  ;;  %v3066_v32 = vadd.f32 %v10816_v13, %v2980_v6 }
 0x2f3   : > { %v3288_v19 = vadd.f32 %v3287_v1, %v3286_v20  ;;  %v3099_v16 = vmul.f32 0.2, %v3067_v31  ;;  %v3188_v42 = vadd.f32 %v3187_v49, %v3186_v17 }
 0x2f4   : > { %v3098_v27 = vmul.f32 0.2, %v3066_v32 }
 0x2f5   : > { %v11052_v43 = vmax.f32 %v3067_v31, %v3099_v16  ;;  %v3290_v40 = vadd.f32 %v3289_v41, %v3288_v19 }
 0x2f6   : > { %v11054_v52 = vmax.f32 %v3066_v32, %v3098_v27 }
 0x2f7   : > { %v3233_v33 = vmul.f32 %v11052_v43, %v11052_v43  ;;  %v3191_v14 = vsel %vm370_vm0, %v11052_v43, 0.0 }
 0x2f8   : > { %v3189_v18 = vsel %vm370_vm0, %v11054_v52, 0.0  ;;  %v3232_v60 = vmul.f32 %v11054_v52, %v11054_v52  ;;  %v8755_v63 = vpop.f32.mrb[30].mxu0 }
 0x2f9   : > { %v3190_v23 = vadd.f32 %v3189_v18, %v3188_v42  ;;  %v3069_v59 = vadd.f32 %v8755_v63, %v10816_v13  ;;  %v2990_v61 = vpop.f32.mrb[31].mxu0  ;;  %v3293_v5 = vsel %vm370_vm0, %v3233_v33, 0.0 }
 0x2fa   : > { %v3291_v26 = vsel %vm370_vm0, %v3232_v60, 0.0  ;;  %v3068_v34 = vadd.f32 %v10816_v13, %v2990_v61 }
 0x2fb   : > { %v3292_v21 = vadd.f32 %v3291_v26, %v3290_v40  ;;  %v3101_v30 = vmul.f32 0.2, %v3069_v59  ;;  %v3192_v7 = vadd.f32 %v3191_v14, %v3190_v23 }
 0x2fc   : > { %v3100_v20 = vmul.f32 0.2, %v3068_v34 }
 0x2fd   : > { %v11068_v54 = vmax.f32 %v3069_v59, %v3101_v30  ;;  %v3294_v39 = vadd.f32 %v3293_v5, %v3292_v21 }
 0x2fe   : > { %v11070_v4 = vmax.f32 %v3068_v34, %v3100_v20 }
 0x2ff   : > { %v3235_v62 = vmul.f32 %v11068_v54, %v11068_v54  ;;  %v3195_v6 = vsel %vm370_vm0, %v11068_v54, 0.0 }
 0x300   : > { %v3193_v17 = vsel %vm370_vm0, %v11070_v4, 0.0  ;;  %v3234_v13 = vmul.f32 %v11070_v4, %v11070_v4 }
 0x301   : > { %v3194_v31 = vadd.f32 %v3193_v17, %v3192_v7  ;;  %v3297_v19 = vsel %vm370_vm0, %v3235_v62, 0.0 }
 0x302   : > { %v3295_v49 = vsel %vm370_vm0, %v3234_v13, 0.0 }
 0x303   : > { %v3196_v1 = vadd.f32 %v3195_v6, %v3194_v31  ;;  %v3296_v32 = vadd.f32 %v3295_v49, %v3294_v39 }
 0x305   : > { %v3197_v16 = vrot.slane %v3196_v1, 4  ;;  %v3298_v42 = vadd.f32 %v3297_v19, %v3296_v32 }
 0x307   : > { %v3198_v41 = vadd.f32 %v3197_v16, %v3196_v1  ;;  %v3299_v27 = vrot.slane %v3298_v42, 4 }
 0x309   : > { %v3199_v40 = vrot.slane %v3198_v41, 2  ;;  %v3300_v33 = vadd.f32 %v3299_v27, %v3298_v42 }
 0x30b   : > { %v3200_v18 = vadd.f32 %v3199_v40, %v3198_v41  ;;  %v3301_v60 = vrot.slane %v3300_v33, 2 }
 0x30d   : > { %v3201_v63 = vrot.slane %v3200_v18, 1  ;;  %v3302_v23 = vadd.f32 %v3301_v60, %v3300_v33 }
 0x30f   : > { %v3202_v59 = vadd.f32 %v3201_v63, %v3200_v18  ;;  %v3303_v61 = vrot.slane %v3302_v23, 1 }
 0x311   : > { %v11082_v14 = vmul.f32 0.00390625, %v3202_v59  ;;  %v3304_v26 = vadd.f32 %v3303_v61, %v3302_v23 }
 0x313   : > { %14412 = vst [vmem:[#allocation12_spill] sm:$0xff] %v11082_v14  ;;  %v3305_v34 = vmul.f32 0.00390625, %v3304_v26  ;;  %v3306_v21 = vmul.f32 %v11082_v14, %v11082_v14  ;;  %v3351_v20 = vsub.f32 %v11070_v4, %v11082_v14  ;;  %v3321_v39 = vsub.f32 %v10823_v47, %v11082_v14 }
 0x314   : > { %v3322_v62 = vsub.f32 %v10821_v28, %v11082_v14  ;;  %v3323_v17 = vsub.f32 %v10827_v0, %v11082_v14  ;;  %v3324_v13 = vsub.f32 %v10843_v58, %v11082_v14  ;;  %v3325_v31 = vsub.f32 %v10847_v44, %v11082_v14 }
 0x315   : > { %v3307_v30 = vsub.f32 %v3305_v34, %v3306_v21  ;;  %v3326_v6 = vsub.f32 %v10858_v8, %v11082_v14  ;;  %v3327_v4 = vsub.f32 %v10862_v22, %v11082_v14  ;;  %v3328_v47 = vsub.f32 %v10873_v46, %v11082_v14  ;;  %v8280_v21 = vld [vmem:[%s14119_s2 + $0x10] sm:$0xff] }
 0x316   : > { %v3329_v28 = vsub.f32 %v10877_v45, %v11082_v14  ;;  %v3330_v0 = vsub.f32 %v10891_v11, %v11082_v14  ;;  %v3331_v58 = vsub.f32 %v10895_v9, %v11082_v14  ;;  %v3332_v44 = vsub.f32 %v10913_v29, %v11082_v14 }
 0x317   : > { %v11086_v7 = vmax.f32 %v3307_v30, 0.0  ;;  %v3333_v8 = vsub.f32 %v10917_v24, %v11082_v14  ;;  %v3334_v22 = vsub.f32 %v10929_v53, %v11082_v14  ;;  %v3335_v46 = vsub.f32 %v10935_v25, %v11082_v14  ;;  %v8281_v30 = vld [vmem:[%s14119_s2 + $0x18] sm:$0xf] }
 0x318   : > { %v3336_v45 = vsub.f32 %v10944_v55, %v11082_v14  ;;  %v3337_v11 = vsub.f32 %v10953_v48, %v11082_v14  ;;  %v3338_v9 = vsub.f32 %v10957_v10, %v11082_v14  ;;  %v3339_v29 = vsub.f32 %v10973_v38, %v11082_v14 }
 0x319   : > { %14413 = vst [vmem:[#allocation7_spill] sm:$0xff] %v11086_v7  ;;  %v3353_v5 = vadd.f32 1e-05, %v11086_v7  ;;  %v3340_v24 = vsub.f32 %v10969_v3, %v11082_v14  ;;  %v3341_v53 = vsub.f32 %v10990_v2, %v11082_v14  ;;  %v3342_v25 = vsub.f32 %v10988_v35, %v11082_v14 }
 0x31a   : > { %v3343_v55 = vsub.f32 %v11006_v51, %v11082_v14  ;;  %v3344_v48 = vsub.f32 %v11004_v50, %v11082_v14  ;;  %v3345_v10 = vsub.f32 %v11022_v56, %v11082_v14  ;;  %v3346_v38 = vsub.f32 %v11020_v15, %v11082_v14 }
 0x31b   : > { %9138 = vrsqrt.f32 %v3353_v5  ;;  %v3347_v3 = vsub.f32 %v11038_v57, %v11082_v14  ;;  %v3348_v2 = vsub.f32 %v11036_v37, %v11082_v14  ;;  %v3349_v35 = vsub.f32 %v11054_v52, %v11082_v14 }
 0x31c   : > { %v3350_v51 = vsub.f32 %v11052_v43, %v11082_v14  ;;  %v3352_v50 = vsub.f32 %v11068_v54, %v11082_v14 }
 0x325   : > { %v9139_v49 = vpop.eup %9138 }
 0x326   : > { %v3385_v56 = vmul.f32 %v9139_v49, %v3351_v20  ;;  %v3355_v1 = vmul.f32 %v9139_v49, %v3321_v39  ;;  %v3356_v32 = vmul.f32 %v9139_v49, %v3322_v62  ;;  %v3357_v15 = vmul.f32 %v9139_v49, %v3323_v17 }
 0x327   : > { %v3358_v19 = vmul.f32 %v9139_v49, %v3324_v13  ;;  %v3359_v16 = vmul.f32 %v9139_v49, %v3325_v31  ;;  %v3360_v57 = vmul.f32 %v9139_v49, %v3326_v6  ;;  %v3361_v42 = vmul.f32 %v9139_v49, %v3327_v4 }
 0x328   : > { %3417 = vst.msk [vmem:[#allocation2 + $0x181] sm:$0xff] %vm370_vm0, %v3385_v56  ;;  %v3362_v37 = vmul.f32 %v9139_v49, %v3328_v47  ;;  %v3363_v41 = vmul.f32 %v9139_v49, %v3329_v28  ;;  %v3364_v27 = vmul.f32 %v9139_v49, %v3330_v0  ;;  %v3365_v52 = vmul.f32 %v9139_v49, %v3331_v58 }
 0x329   : > { %3387 = vst.msk [vmem:[#allocation2 + $0x19] sm:$0xff] %vm370_vm0, %v3355_v1  ;;  %3388 = vst.msk [vmem:[#allocation2 + $0x21] sm:$0xff] %vm370_vm0, %v3356_v32  ;;  %v3366_v43 = vmul.f32 %v9139_v49, %v3332_v44  ;;  %v3367_v54 = vmul.f32 %v9139_v49, %v3333_v8  ;;  %v3368_v40 = vmul.f32 %v9139_v49, %v3334_v22 }
 0x32a   : > { %3389 = vst.msk [vmem:[#allocation2 + $0x31] sm:$0xff] %vm370_vm0, %v3357_v15  ;;  %v3369_v33 = vmul.f32 %v9139_v49, %v3335_v46  ;;  %3390 = vst.msk [vmem:[#allocation2 + $0x39] sm:$0xff] %vm370_vm0, %v3358_v19  ;;  %v3370_v18 = vmul.f32 %v9139_v49, %v3336_v45  ;;  %v3371_v60 = vmul.f32 %v9139_v49, %v3337_v11 }
 0x32b   : > { %3391 = vst.msk [vmem:[#allocation2 + $0x49] sm:$0xff] %vm370_vm0, %v3359_v16  ;;  %3392 = vst.msk [vmem:[#allocation2 + $0x51] sm:$0xff] %vm370_vm0, %v3360_v57  ;;  %v3372_v63 = vmul.f32 %v9139_v49, %v3338_v9  ;;  %v3373_v23 = vmul.f32 %v9139_v49, %v3339_v29  ;;  %v3374_v59 = vmul.f32 %v9139_v49, %v3340_v24 }
 0x32c   : > { %3393 = vst.msk [vmem:[#allocation2 + $0x61] sm:$0xff] %vm370_vm0, %v3361_v42  ;;  %3394 = vst.msk [vmem:[#allocation2 + $0x69] sm:$0xff] %vm370_vm0, %v3362_v37  ;;  %v3375_v61 = vmul.f32 %v9139_v49, %v3341_v53  ;;  %v3376_v26 = vmul.f32 %v9139_v49, %v3342_v25  ;;  %v3377_v34 = vmul.f32 %v9139_v49, %v3343_v55 }
 0x32d   : > { %3395 = vst.msk [vmem:[#allocation2 + $0x79] sm:$0xff] %vm370_vm0, %v3363_v41  ;;  %3396 = vst.msk [vmem:[#allocation2 + $0x81] sm:$0xff] %vm370_vm0, %v3364_v27  ;;  %v3378_v5 = vmul.f32 %v9139_v49, %v3344_v48  ;;  %v3379_v20 = vmul.f32 %v9139_v49, %v3345_v10  ;;  %v3380_v39 = vmul.f32 %v9139_v49, %v3346_v38 }
 0x32e   : > { %3397 = vst.msk [vmem:[#allocation2 + $0x91] sm:$0xff] %vm370_vm0, %v3365_v52  ;;  %3398 = vst.msk [vmem:[#allocation2 + $0x99] sm:$0xff] %vm370_vm0, %v3366_v43  ;;  %v3381_v62 = vmul.f32 %v9139_v49, %v3347_v3  ;;  %v3382_v17 = vmul.f32 %v9139_v49, %v3348_v2  ;;  %v3383_v13 = vmul.f32 %v9139_v49, %v3349_v35 }
 0x32f   : > { %3399 = vst.msk [vmem:[#allocation2 + $0xa9] sm:$0xff] %vm370_vm0, %v3367_v54  ;;  %3400 = vst.msk [vmem:[#allocation2 + $0xb1] sm:$0xff] %vm370_vm0, %v3368_v40  ;;  %v3384_v31 = vmul.f32 %v9139_v49, %v3350_v51  ;;  %v3386_v6 = vmul.f32 %v9139_v49, %v3352_v50  ;;  %v8942_v4 = vpack.c.bf16 %v8281_v30, %v8280_v21 }
 0x330   : > { %3401 = vst.msk [vmem:[#allocation2 + $0xc1] sm:$0xff] %vm370_vm0, %v3369_v33  ;;  %3402 = vst.msk [vmem:[#allocation2 + $0xc9] sm:$0xff] %vm370_vm0, %v3370_v18  ;;  %v11191_v47 = vld [vmem:[#allocation2 + $0x20] sm:$0xff]  ;;  %v3935_v28 = vld [vmem:[#allocation2 + $0x28] sm:$0x3] }
 0x331   : > { %3403 = vst.msk [vmem:[#allocation2 + $0xd9] sm:$0xff] %vm370_vm0, %v3371_v60  ;;  %3404 = vst.msk [vmem:[#allocation2 + $0xe1] sm:$0xff] %vm370_vm0, %v3372_v63  ;;  %v11193_v0 = vld [vmem:[#allocation2 + $0x18] sm:$0xff]  ;;  %v11196_v58 = vrot.slane %v11191_v47, 1  ;;  %v4032_v44 = vrot.slane %v3935_v28, 1  ;;  %8944 = vmatprep.subr.msk.bf16.mxu1 %vm9540_vm7, %v8942_v4  ;;  %v11202_v22 = vrot.slane %v11191_v47, 2 }
 0x332   : > { %3405 = vst.msk [vmem:[#allocation2 + $0xf1] sm:$0xff] %vm370_vm0, %v3373_v23  ;;  %3406 = vst.msk [vmem:[#allocation2 + $0xf9] sm:$0xff] %vm370_vm0, %v3374_v59  ;;  %v4029_v8 = vrot.slane %v11193_v0, 1  ;;  %8947 = vmatpush3.bf16.msk.msra.mxu1 %vm9540_vm7, %v8942_v4  ;;  %v4112_v11 = vrot.slane %v3935_v28, 2  ;;  %v4109_v9 = vrot.slane %v11193_v0, 2  ;;  %v11213_v29 = vld [vmem:[#allocation2 + $0x38] sm:$0xff] }
 0x333   : > { %3407 = vst.msk [vmem:[#allocation2 + $0x109] sm:$0xff] %vm370_vm0, %v3375_v61  ;;  %3408 = vst.msk [vmem:[#allocation2 + $0x111] sm:$0xff] %vm370_vm0, %v3376_v26  ;;  %v4033_v46 = vsel %vm573_vm5, %v11196_v58, %v4032_v44  ;;  %v3938_v24 = vld [vmem:[#allocation2 + $0x40] sm:$0x3]  ;;  %v11218_v53 = vld [vmem:[#allocation2 + $0x30] sm:$0xff]  ;;  %v11221_v25 = vrot.slane %v11213_v29, 1 }
 0x334   : > { %3409 = vst.msk [vmem:[#allocation2 + $0x121] sm:$0xff] %vm370_vm0, %v3377_v34  ;;  %3410 = vst.msk [vmem:[#allocation2 + $0x129] sm:$0xff] %vm370_vm0, %v3378_v5  ;;  %v11210_v45 = vsel %vm573_vm5, %v4029_v8, %v11196_v58  ;;  %4191 = vrot.lane.b32.xlu1 %v4033_v46, %s9276_s21  ;;  %v4113_v55 = vsel %vm654_vm4, %v11202_v22, %v4112_v11  ;;  %v11227_v48 = vsel %vm654_vm4, %v4109_v9, %v11202_v22  ;;  %v11243_v50 = vld [vmem:[#allocation2 + $0x50] sm:$0xff]  ;;  %v3941_v56 = vld [vmem:[#allocation2 + $0x58] sm:$0x3] }
 0x335   : > { %3411 = vst.msk [vmem:[#allocation2 + $0x139] sm:$0xff] %vm370_vm0, %v3379_v20  ;;  %3412 = vst.msk [vmem:[#allocation2 + $0x141] sm:$0xff] %vm370_vm0, %v3380_v39  ;;  %4189 = vrot.lane.b32.xlu0 %v11210_v45, %s9276_s21  ;;  %v4037_v10 = vrot.slane %v3938_v24, 1  ;;  %v4034_v38 = vrot.slane %v11218_v53, 1  ;;  %v11234_v3 = vrot.slane %v11213_v29, 2  ;;  %v4117_v35 = vrot.slane %v3938_v24, 2 }
 0x336   : > { %3413 = vst.msk [vmem:[#allocation2 + $0x151] sm:$0xff] %vm370_vm0, %v3381_v62  ;;  %3414 = vst.msk [vmem:[#allocation2 + $0x159] sm:$0xff] %vm370_vm0, %v3382_v17  ;;  %v4114_v51 = vrot.slane %v11218_v53, 2  ;;  %v11248_v1 = vld [vmem:[#allocation2 + $0x48] sm:$0xff]  ;;  %v11251_v32 = vrot.slane %v11243_v50, 1  ;;  %v4042_v16 = vrot.slane %v3941_v56, 1 }
 0x337   : > { %3415 = vst.msk [vmem:[#allocation2 + $0x169] sm:$0xff] %vm370_vm0, %v3383_v13  ;;  %3416 = vst.msk [vmem:[#allocation2 + $0x171] sm:$0xff] %vm370_vm0, %v3384_v31  ;;  %v4038_v49 = vsel %vm573_vm5, %v11221_v25, %v4037_v10  ;;  %v11240_v2 = vsel %vm573_vm5, %v4034_v38, %v11221_v25  ;;  %v4118_v15 = vsel %vm654_vm4, %v11234_v3, %v4117_v35  ;;  %v4039_v57 = vrot.slane %v11248_v1, 1  ;;  %v11273_v43 = vld [vmem:[#allocation2 + $0x68] sm:$0xff]  ;;  %v3944_v54 = vld [vmem:[#allocation2 + $0x70] sm:$0x3] }
 0x338   : > { %3418 = vst.msk [vmem:[#allocation2 + $0x189] sm:$0xff] %vm370_vm0, %v3386_v6  ;;  %4287 = vrot.lane.b32.xlu1 %v4113_v55, %s9275_s20  ;;  %v11257_v19 = vsel %vm654_vm4, %v4114_v51, %v11234_v3  ;;  %v11264_v42 = vrot.slane %v11243_v50, 2  ;;  %v4043_v37 = vsel %vm573_vm5, %v11251_v32, %v4042_v16  ;;  %v4122_v27 = vrot.slane %v3941_v56, 2  ;;  %v11278_v40 = vld [vmem:[#allocation2 + $0x60] sm:$0xff]  ;;  %v3947_v5 = vld [vmem:[#allocation2 + $0x88] sm:$0x3] }
 0x339   : > { %4285 = vrot.lane.b32.xlu0 %v11227_v48, %s9275_s20  ;;  %v11270_v41 = vsel %vm573_vm5, %v4039_v57, %v11251_v32  ;;  %v4119_v52 = vrot.slane %v11248_v1, 2  ;;  %v11281_v33 = vrot.slane %v11273_v43, 1  ;;  %v4047_v63 = vrot.slane %v3944_v54, 1  ;;  %v11303_v30 = vld [vmem:[#allocation2 + $0x80] sm:$0xff]  ;;  %v11308_v20 = vld [vmem:[#allocation2 + $0x78] sm:$0xff]  ;;  %v11338_v9 = vld [vmem:[#allocation2 + $0x90] sm:$0xff] }
 0x33a   : > { %v4123_v18 = vsel %vm654_vm4, %v11264_v42, %v4122_v27  ;;  %v4044_v23 = vrot.slane %v11278_v40, 1  ;;  %v11294_v59 = vrot.slane %v11273_v43, 2  ;;  %v4127_v34 = vrot.slane %v3944_v54, 2  ;;  %v11333_v46 = vld [vmem:[#allocation2 + $0x98] sm:$0xff]  ;;  %v3950_v11 = vld [vmem:[#allocation2 + $0xa0] sm:$0x3] }
 0x33b   : > { %v11287_v60 = vsel %vm654_vm4, %v4119_v52, %v11264_v42  ;;  %v4048_v61 = vsel %vm573_vm5, %v11281_v33, %v4047_v63  ;;  %v4124_v21 = vrot.slane %v11278_v40, 2  ;;  %v11311_v39 = vrot.slane %v11303_v30, 1  ;;  %v11363_v57 = vld [vmem:[#allocation2 + $0xb0] sm:$0xff]  ;;  %v11368_v27 = vld [vmem:[#allocation2 + $0xa8] sm:$0xff]  ;;  %v11453_v14 = vld [vmem:[#allocation2 + $0xf8] sm:$0xff] }
 0x33c   : > { %4195 = vrot.lane.b32.xlu1 %v4038_v49, %s9276_s21  ;;  %v11300_v26 = vsel %vm573_vm5, %v4044_v23, %v11281_v33  ;;  %v4128_v62 = vsel %vm654_vm4, %v11294_v59, %v4127_v34  ;;  %v4052_v13 = vrot.slane %v3947_v5, 1  ;;  %v4049_v31 = vrot.slane %v11308_v20, 1  ;;  %14423 = vst [vmem:[#allocation23_spill] sm:$0xff] %v11453_v14  ;;  %v11458_v12 = vld [vmem:[#allocation2 + $0xf0] sm:$0xff] }
 0x33d   : > { %4193 = vrot.lane.b32.xlu0 %v11240_v2, %s9276_s21  ;;  %v11317_v17 = vsel %vm654_vm4, %v4124_v21, %v11294_v59  ;;  %v11324_v6 = vrot.slane %v11303_v30, 2  ;;  %v4132_v44 = vrot.slane %v3947_v5, 2  ;;  %v4129_v8 = vrot.slane %v11308_v20, 2  ;;  %14424 = vst [vmem:[#allocation24_spill] sm:$0xff] %v11458_v12 }
 0x33e   : > { %v4053_v4 = vsel %vm573_vm5, %v11311_v39, %v4052_v13  ;;  %v11330_v28 = vsel %vm573_vm5, %v4049_v31, %v11311_v39  ;;  %v11341_v24 = vrot.slane %v11333_v46, 1  ;;  %v4057_v38 = vrot.slane %v3950_v11, 1  ;;  %v11393_v13 = vld [vmem:[#allocation2 + $0xc8] sm:$0xff]  ;;  %v3956_v31 = vld [vmem:[#allocation2 + $0xd0] sm:$0x3] }
 0x33f   : > { %v4133_v55 = vsel %vm654_vm4, %v11324_v6, %v4132_v44  ;;  %v11347_v10 = vsel %vm654_vm4, %v4129_v8, %v11324_v6  ;;  %v4054_v49 = vrot.slane %v11338_v9, 1  ;;  %v11354_v35 = vrot.slane %v11333_v46, 2 }
 0x340   : > { %4291 = vrot.lane.b32.xlu1 %v4118_v15, %s9275_s20  ;;  %v4058_v51 = vsel %vm573_vm5, %v11341_v24, %v4057_v38  ;;  %v4137_v15 = vrot.slane %v3950_v11, 2  ;;  %v4134_v16 = vrot.slane %v11338_v9, 2  ;;  %v11371_v52 = vrot.slane %v11363_v57, 1 }
 0x341   : > { %4289 = vrot.lane.b32.xlu0 %v11257_v19, %s9275_s20  ;;  %v11360_v56 = vsel %vm573_vm5, %v4054_v49, %v11341_v24  ;;  %v4059_v23 = vrot.slane %v11368_v27, 1  ;;  %v11401_v44 = vrot.slane %v11393_v13, 1  ;;  %v11414_v49 = vrot.slane %v11393_v13, 2 }
 0x342   : > { %v4138_v54 = vsel %vm654_vm4, %v11354_v35, %v4137_v15  ;;  %v11461_v7 = vrot.slane %v11453_v14, 1 }
 0x343   : > { %v11390_v21 = vsel %vm573_vm5, %v4059_v23, %v11371_v52  ;;  %14414 = vst [vmem:[#allocation6_spill] sm:$0xff] %v11401_v44  ;;  %14415 = vst [vmem:[#allocation9_spill] sm:$0xff] %v11414_v49  ;;  %v11428_v23 = vld [vmem:[#allocation2 + $0xd8] sm:$0xff] }
 0x344   : > { %4199 = vrot.lane.b32.xlu1 %v4043_v37, %s9276_s21  ;;  %v3953_v37 = vld [vmem:[#allocation2 + $0xb8] sm:$0x3]  ;;  %14418 = vst [vmem:[#allocation18_spill] sm:$0xff] %v11428_v23  ;;  %14425 = vst [vmem:[#allocation16_spill] sm:$0xff] %v11461_v7 }
 0x345   : > { %4197 = vrot.lane.b32.xlu0 %v11270_v41, %s9276_s21  ;;  %v4062_v63 = vrot.slane %v3953_v37, 1  ;;  %v4142_v5 = vrot.slane %v3953_v37, 2 }
 0x347   : > { %v4063_v34 = vsel %vm573_vm5, %v11371_v52, %v4062_v63  ;;  %v3959_v63 = vld [vmem:[#allocation2 + $0xe8] sm:$0x3] }
 0x348   : > { %4295 = vrot.lane.b32.xlu1 %v4123_v18, %s9275_s20  ;;  %v11377_v18 = vsel %vm654_vm4, %v4134_v16, %v11354_v35  ;;  %v4147_v16 = vrot.slane %v3956_v31, 2 }
 0x349   : > { %4293 = vrot.lane.b32.xlu0 %v11287_v60, %s9275_s20 }
 0x34c   : > { %4203 = vrot.lane.b32.xlu1 %v4048_v61, %s9276_s21  ;;  %v11384_v61 = vrot.slane %v11363_v57, 2 }
 0x34d   : > { %4201 = vrot.lane.b32.xlu0 %v11300_v26, %s9276_s21 }
 0x34e   : > { %v4143_v8 = vsel %vm654_vm4, %v11384_v61, %v4142_v5  ;;  %v4148_v5 = vsel %vm654_vm4, %v11414_v49, %v4147_v16  ;;  %v4152_v16 = vrot.slane %v3959_v63, 2 }
 0x350   : > { %4299 = vrot.lane.b32.xlu1 %v4128_v62, %s9275_s20  ;;  %v4139_v62 = vrot.slane %v11368_v27, 2 }
 0x351   : > { %4297 = vrot.lane.b32.xlu0 %v11317_v17, %s9275_s20 }
 0x352   : > { %v11407_v11 = vsel %vm654_vm4, %v4139_v62, %v11384_v61 }
 0x354   : > { %4207 = vrot.lane.b32.xlu1 %v4053_v4, %s9276_s21  ;;  %v11398_v4 = vld [vmem:[#allocation2 + $0xc0] sm:$0xff] }
 0x355   : > { %4205 = vrot.lane.b32.xlu0 %v11330_v28, %s9276_s21  ;;  %v4064_v38 = vrot.slane %v11398_v4, 1  ;;  %v4144_v37 = vrot.slane %v11398_v4, 2 }
 0x357   : > { %v11420_v15 = vsel %vm573_vm5, %v4064_v38, %v11401_v44  ;;  %v11437_v62 = vsel %vm654_vm4, %v4144_v37, %v11414_v49  ;;  %v4149_v37 = vrot.slane %v11428_v23, 2  ;;  %v11605_v49 = vpop.permute.xlu0 %3675 }
 0x358   : > { %4303 = vrot.lane.b32.xlu1 %v4133_v55, %s9275_s20  ;;  %v4067_v55 = vrot.slane %v3956_v31, 1  ;;  %14416 = vst [vmem:[#allocation8_spill] sm:$0xff] %v11420_v15  ;;  %14420 = vst [vmem:[#allocation10_spill] sm:$0xff] %v11437_v62  ;;  %v4072_v31 = vrot.slane %v3959_v63, 1 }
 0x359   : > { %4301 = vrot.lane.b32.xlu0 %v11347_v10, %s9275_s20  ;;  %14454 = vst [vmem:[#allocation45_spill] sm:$0xff] %v11605_v49 }
 0x35c   : > { %4211 = vrot.lane.b32.xlu1 %v4058_v51, %s9276_s21  ;;  %v4068_v51 = vsel %vm573_vm5, %v11401_v44, %v4067_v55 }
 0x35d   : > { %4209 = vrot.lane.b32.xlu0 %v11360_v56, %s9276_s21 }
 0x360   : > { %4307 = vrot.lane.b32.xlu1 %v4138_v54, %s9275_s20  ;;  %v11423_v54 = vld [vmem:[#allocation2 + $0xe0] sm:$0xff] }
 0x361   : > { %4305 = vrot.lane.b32.xlu0 %v11377_v18, %s9275_s20  ;;  %14417 = vst [vmem:[#allocation17_spill] sm:$0xff] %v11423_v54  ;;  %v11444_v55 = vrot.slane %v11423_v54, 2 }
 0x363   : > { %14421 = vst [vmem:[#allocation14_spill] sm:$0xff] %v11444_v55  ;;  %v11467_v63 = vsel %vm654_vm4, %v4149_v37, %v11444_v55 }
 0x364   : > { %4215 = vrot.lane.b32.xlu1 %v4063_v34, %s9276_s21  ;;  %v11431_v34 = vrot.slane %v11423_v54, 1  ;;  %14426 = vst [vmem:[#allocation15_spill] sm:$0xff] %v11467_v63 }
 0x365   : > { %4213 = vrot.lane.b32.xlu0 %v11390_v21, %s9276_s21 }
 0x366   : > { %14419 = vst [vmem:[#allocation11_spill] sm:$0xff] %v11431_v34  ;;  %v4073_v38 = vsel %vm573_vm5, %v11431_v34, %v4072_v31  ;;  %v4153_v31 = vsel %vm654_vm4, %v11444_v55, %v4152_v16  ;;  %v4154_v55 = vrot.slane %v11458_v12, 2 }
 0x368   : > { %4311 = vrot.lane.b32.xlu1 %v4143_v8, %s9275_s20  ;;  %v4069_v8 = vrot.slane %v11428_v23, 1 }
 0x369   : > { %4309 = vrot.lane.b32.xlu0 %v11407_v11, %s9275_s20 }
 0x36c   : > { %4219 = vrot.lane.b32.xlu1 %v4068_v51, %s9276_s21  ;;  %v11450_v51 = vsel %vm573_vm5, %v4069_v8, %v11431_v34  ;;  %v4074_v34 = vrot.slane %v11458_v12, 1  ;;  %v11513_v12 = vld [vmem:[#allocation2 + $0x128] sm:$0xff] }
 0x36d   : > { %4217 = vrot.lane.b32.xlu0 %v11420_v15, %s9276_s21  ;;  %14422 = vst [vmem:[#allocation13_spill] sm:$0xff] %v11450_v51  ;;  %14435 = vst [vmem:[#allocation35_spill] sm:$0xff] %v11513_v12 }
 0x36e   : > { %v11480_v16 = vsel %vm573_vm5, %v4074_v34, %v11461_v7 }
 0x36f   : > { %14428 = vst [vmem:[#allocation19_spill] sm:$0xff] %v11480_v16 }
 0x370   : > { %4315 = vrot.lane.b32.xlu1 %v4148_v5, %s9275_s20  ;;  %v3962_v5 = vld [vmem:[#allocation2 + $0x100] sm:$0x3] }
 0x371   : > { %4313 = vrot.lane.b32.xlu0 %v11437_v62, %s9275_s20  ;;  %v4077_v8 = vrot.slane %v3962_v5, 1  ;;  %v4157_v37 = vrot.slane %v3962_v5, 2  ;;  %v11483_v62 = vld [vmem:[#allocation2 + $0x110] sm:$0xff] }
 0x372   : > { %14429 = vst [vmem:[#allocation29_spill] sm:$0xff] %v11483_v62 }
 0x374   : > { %4223 = vrot.lane.b32.xlu1 %v4073_v38, %s9276_s21  ;;  %v11474_v38 = vrot.slane %v11453_v14, 2  ;;  %v11491_v14 = vrot.slane %v11483_v62, 1 }
 0x375   : > { %4221 = vrot.lane.b32.xlu0 %v11450_v51, %s9276_s21  ;;  %v4078_v51 = vsel %vm573_vm5, %v11461_v7, %v4077_v8 }
 0x376   : > { %14427 = vst [vmem:[#allocation20_spill] sm:$0xff] %v11474_v38  ;;  %14431 = vst [vmem:[#allocation22_spill] sm:$0xff] %v11491_v14  ;;  %v4158_v34 = vsel %vm654_vm4, %v11474_v38, %v4157_v37  ;;  %v11497_v5 = vsel %vm654_vm4, %v4154_v55, %v11474_v38 }
 0x377   : > { %14432 = vst [vmem:[#allocation21_spill] sm:$0xff] %v11497_v5 }
 0x378   : > { %4319 = vrot.lane.b32.xlu1 %v4153_v31, %s9275_s20  ;;  %v3965_v31 = vld [vmem:[#allocation2 + $0x118] sm:$0x3] }
 0x379   : > { %4317 = vrot.lane.b32.xlu0 %v11467_v63, %s9275_s20  ;;  %v11488_v63 = vld [vmem:[#allocation2 + $0x108] sm:$0xff]  ;;  %v4082_v8 = vrot.slane %v3965_v31, 1  ;;  %v4162_v55 = vrot.slane %v3965_v31, 2 }
 0x37a   : > { %14430 = vst [vmem:[#allocation30_spill] sm:$0xff] %v11488_v63  ;;  %v4079_v7 = vrot.slane %v11488_v63, 1  ;;  %v4159_v38 = vrot.slane %v11488_v63, 2  ;;  %v11543_v63 = vld [vmem:[#allocation2 + $0x140] sm:$0xff] }
 0x37b   : > { %14441 = vst [vmem:[#allocation41_spill] sm:$0xff] %v11543_v63 }
 0x37c   : > { %4227 = vrot.lane.b32.xlu1 %v4078_v51, %s9276_s21  ;;  %v11504_v51 = vrot.slane %v11483_v62, 2  ;;  %v11510_v37 = vsel %vm573_vm5, %v4079_v7, %v11491_v14  ;;  %v11521_v62 = vrot.slane %v11513_v12, 1 }
 0x37d   : > { %4225 = vrot.lane.b32.xlu0 %v11480_v16, %s9276_s21  ;;  %v4083_v16 = vsel %vm573_vm5, %v11491_v14, %v4082_v8  ;;  %14434 = vst [vmem:[#allocation25_spill] sm:$0xff] %v11510_v37 }
 0x37e   : > { %14433 = vst [vmem:[#allocation26_spill] sm:$0xff] %v11504_v51  ;;  %14437 = vst [vmem:[#allocation28_spill] sm:$0xff] %v11521_v62  ;;  %v4163_v7 = vsel %vm654_vm4, %v11504_v51, %v4162_v55  ;;  %v11527_v31 = vsel %vm654_vm4, %v4159_v38, %v11504_v51 }
 0x37f   : > { %14438 = vst [vmem:[#allocation27_spill] sm:$0xff] %v11527_v31 }
 0x380   : > { %4323 = vrot.lane.b32.xlu1 %v4158_v34, %s9275_s20  ;;  %v3968_v34 = vld [vmem:[#allocation2 + $0x130] sm:$0x3] }
 0x381   : > { %4321 = vrot.lane.b32.xlu0 %v11497_v5, %s9275_s20  ;;  %v11518_v5 = vld [vmem:[#allocation2 + $0x120] sm:$0xff]  ;;  %v4087_v8 = vrot.slane %v3968_v34, 1  ;;  %v4167_v38 = vrot.slane %v3968_v34, 2 }
 0x382   : > { %14436 = vst [vmem:[#allocation36_spill] sm:$0xff] %v11518_v5  ;;  %v4084_v14 = vrot.slane %v11518_v5, 1  ;;  %v4164_v51 = vrot.slane %v11518_v5, 2  ;;  %v11573_v5 = vld [vmem:[#allocation2 + $0x158] sm:$0xff] }
 0x383   : > { %14447 = vst [vmem:[#allocation47_spill] sm:$0xff] %v11573_v5 }
 0x384   : > { %4231 = vrot.lane.b32.xlu1 %v4083_v16, %s9276_s21  ;;  %v11534_v16 = vrot.slane %v11513_v12, 2  ;;  %v11540_v55 = vsel %vm573_vm5, %v4084_v14, %v11521_v62  ;;  %v11551_v12 = vrot.slane %v11543_v63, 1 }
 0x385   : > { %4229 = vrot.lane.b32.xlu0 %v11510_v37, %s9276_s21  ;;  %v4088_v37 = vsel %vm573_vm5, %v11521_v62, %v4087_v8  ;;  %14440 = vst [vmem:[#allocation31_spill] sm:$0xff] %v11540_v55 }
 0x386   : > { %14439 = vst [vmem:[#allocation32_spill] sm:$0xff] %v11534_v16  ;;  %14443 = vst [vmem:[#allocation34_spill] sm:$0xff] %v11551_v12  ;;  %v4168_v14 = vsel %vm654_vm4, %v11534_v16, %v4167_v38  ;;  %v11557_v34 = vsel %vm654_vm4, %v4164_v51, %v11534_v16 }
 0x387   : > { %14444 = vst [vmem:[#allocation33_spill] sm:$0xff] %v11557_v34 }
 0x388   : > { %4327 = vrot.lane.b32.xlu1 %v4163_v7, %s9275_s20  ;;  %v3971_v7 = vld [vmem:[#allocation2 + $0x148] sm:$0x3] }
 0x389   : > { %4325 = vrot.lane.b32.xlu0 %v11527_v31, %s9275_s20  ;;  %v11548_v31 = vld [vmem:[#allocation2 + $0x138] sm:$0xff]  ;;  %v4092_v8 = vrot.slane %v3971_v7, 1  ;;  %v4172_v51 = vrot.slane %v3971_v7, 2 }
 0x38a   : > { %14442 = vst [vmem:[#allocation42_spill] sm:$0xff] %v11548_v31  ;;  %v4089_v62 = vrot.slane %v11548_v31, 1  ;;  %v4169_v16 = vrot.slane %v11548_v31, 2  ;;  %v11603_v31 = vld [vmem:[#allocation2 + $0x170] sm:$0xff] }
 0x38b   : > { %14453 = vst [vmem:[#allocation46_spill] sm:$0xff] %v11603_v31 }
 0x38c   : > { %4235 = vrot.lane.b32.xlu1 %v4088_v37, %s9276_s21  ;;  %v11564_v37 = vrot.slane %v11543_v63, 2  ;;  %v11570_v38 = vsel %vm573_vm5, %v4089_v62, %v11551_v12  ;;  %v11581_v63 = vrot.slane %v11573_v5, 1 }
 0x38d   : > { %4233 = vrot.lane.b32.xlu0 %v11540_v55, %s9276_s21  ;;  %v4093_v55 = vsel %vm573_vm5, %v11551_v12, %v4092_v8  ;;  %14446 = vst [vmem:[#allocation37_spill] sm:$0xff] %v11570_v38 }
 0x38e   : > { %14445 = vst [vmem:[#allocation38_spill] sm:$0xff] %v11564_v37  ;;  %14449 = vst [vmem:[#allocation40_spill] sm:$0xff] %v11581_v63  ;;  %v4173_v62 = vsel %vm654_vm4, %v11564_v37, %v4172_v51  ;;  %v11587_v7 = vsel %vm654_vm4, %v4169_v16, %v11564_v37 }
 0x38f   : > { %14450 = vst [vmem:[#allocation39_spill] sm:$0xff] %v11587_v7 }
 0x390   : > { %4331 = vrot.lane.b32.xlu1 %v4168_v14, %s9275_s20  ;;  %v3974_v14 = vld [vmem:[#allocation2 + $0x160] sm:$0x3] }
 0x391   : > { %4329 = vrot.lane.b32.xlu0 %v11557_v34, %s9275_s20  ;;  %v11578_v34 = vld [vmem:[#allocation2 + $0x150] sm:$0xff]  ;;  %v4097_v8 = vrot.slane %v3974_v14, 1  ;;  %v4177_v16 = vrot.slane %v3974_v14, 2 }
 0x392   : > { %14448 = vst [vmem:[#allocation48_spill] sm:$0xff] %v11578_v34  ;;  %v4094_v12 = vrot.slane %v11578_v34, 1  ;;  %v4174_v37 = vrot.slane %v11578_v34, 2  ;;  %v11632_v34 = vrot.slane %v11603_v31, 2 }
 0x394   : > { %4239 = vrot.lane.b32.xlu1 %v4093_v55, %s9276_s21  ;;  %v11594_v55 = vrot.slane %v11573_v5, 2  ;;  %v11600_v51 = vsel %vm573_vm5, %v4094_v12, %v11581_v63  ;;  %v11615_v12 = vrot.slane %v11603_v31, 1  ;;  %14461 = vst [vmem:[#allocation55_spill] sm:$0xff] %v11632_v34  ;;  %v11641_v5 = vld [vmem:[#allocation2 + $0x188] sm:$0xff] }
 0x395   : > { %4237 = vrot.lane.b32.xlu0 %v11570_v38, %s9276_s21  ;;  %v4098_v38 = vsel %vm573_vm5, %v11581_v63, %v4097_v8  ;;  %14452 = vst [vmem:[#allocation43_spill] sm:$0xff] %v11600_v51  ;;  %v11612_v8 = vld [vmem:[#allocation2 + $0x168] sm:$0xff]  ;;  %14463 = vst [vmem:[#allocation57_spill] sm:$0xff] %v11641_v5  ;;  %v4185_v44 = vrot.slane %v11641_v5, 2 }
 0x396   : > { %14451 = vst [vmem:[#allocation44_spill] sm:$0xff] %v11594_v55  ;;  %14456 = vst [vmem:[#allocation49_spill] sm:$0xff] %v11612_v8  ;;  %v4178_v14 = vsel %vm654_vm4, %v11594_v55, %v4177_v16  ;;  %v11621_v63 = vsel %vm654_vm4, %v4174_v37, %v11594_v55 }
 0x397   : > { %14457 = vst [vmem:[#allocation52_spill] sm:$0xff] %v11615_v12  ;;  %14458 = vst [vmem:[#allocation51_spill] sm:$0xff] %v11621_v63 }
 0x398   : > { %4335 = vrot.lane.b32.xlu1 %v4173_v62, %s9275_s20  ;;  %v11607_v62 = vpop.permute.xlu1 %3677 }
 0x399   : > { %4333 = vrot.lane.b32.xlu0 %v11587_v7, %s9275_s20  ;;  %14455 = vst [vmem:[#allocation50_spill] sm:$0xff] %v11607_v62  ;;  %v3977_v7 = vld [vmem:[#allocation2 + $0x178] sm:$0x3]  ;;  %v4099_v62 = vrot.slane %v11612_v8, 1 }
 0x39a   : > { %v4102_v49 = vrot.slane %v3977_v7, 1  ;;  %v4182_v55 = vrot.slane %v3977_v7, 2  ;;  %v3931_v7 = vld [vmem:[%s14119_s2] sm:$0xff] }
 0x39b   : > { %v11638_v37 = vsel %vm573_vm5, %v4099_v62, %v11615_v12  ;;  %v3932_v62 = vld [vmem:[%s14119_s2 + $0x8] sm:$0xf] }
 0x39c   : > { %4243 = vrot.lane.b32.xlu1 %v4098_v38, %s9276_s21  ;;  %v11627_v38 = vpop.permute.xlu0 %3771  ;;  %v4103_v16 = vsel %vm573_vm5, %v11615_v12, %v4102_v49  ;;  %14462 = vst [vmem:[#allocation56_spill] sm:$0xff] %v11638_v37  ;;  %v4105_v49 = vrot.slane %v11641_v5, 1 }
 0x39d   : > { %4241 = vrot.lane.b32.xlu0 %v11600_v51, %s9276_s21  ;;  %14459 = vst [vmem:[#allocation53_spill] sm:$0xff] %v11627_v38  ;;  %v11629_v51 = vpop.permute.xlu1 %3773 }
 0x39e   : > { %14460 = vst [vmem:[#allocation54_spill] sm:$0xff] %v11629_v51  ;;  %v11646_v51 = vld [vmem:[#allocation2 + $0x180] sm:$0xff] }
 0x39f   : > { %v4104_v12 = vrot.slane %v11646_v51, 1 }
 0x3a0   : > { %4339 = vrot.lane.b32.xlu1 %v4178_v14, %s9275_s20  ;;  %v4179_v14 = vrot.slane %v11612_v8, 2  ;;  %v8948_v8 = vpack.c.bf16 %v3932_v62, %v3931_v7  ;;  %v4184_v7 = vrot.slane %v11646_v51, 2 }
 0x3a1   : > { %4337 = vrot.lane.b32.xlu0 %v11621_v63, %s9275_s20  ;;  %v3980_v63 = vld [vmem:[#allocation2 + $0x190] sm:$0x3] }
 0x3a2   : > { %v4107_v15 = vrot.slane %v3980_v63, 1  ;;  %8950 = vmatprep.subr.msk.bf16.mxu1 %vm9540_vm7, %v8948_v8  ;;  %v4187_v54 = vrot.slane %v3980_v63, 2 }
 0x3a4   : > { %4247 = vrot.lane.b32.xlu1 %v4103_v16, %s9276_s21  ;;  %v4183_v16 = vsel %vm654_vm4, %v11632_v34, %v4182_v55 }
 0x3a5   : > { %4245 = vrot.lane.b32.xlu0 %v11638_v37, %s9276_s21  ;;  %v11659_v37 = vsel %vm654_vm4, %v4179_v14, %v11632_v34 }
 0x3a6   : > { %v4192_v38 = vpop.permute.xlu1 %4191  ;;  %14464 = vst [vmem:[#allocation58_spill] sm:$0xff] %v11659_v37 }
 0x3a7   : > { %v4190_v31 = vpop.permute.xlu0 %4189  ;;  %v4382_v55 = vsel %vm370_vm0, %v11191_v47, %v4192_v38  ;;  %v3424_v47 = vld [vmem:[#allocation2 + $0x28] sm:$0x3] }
 0x3a8   : > { %4343 = vrot.lane.b32.xlu1 %v4183_v16, %s9275_s20  ;;  %v4381_v14 = vsel %vm370_vm0, %v11193_v0, %v4190_v31  ;;  %v4108_v16 = vsel %vm573_vm5, %v4105_v49, %v4107_v15  ;;  %v4188_v31 = vsel %vm654_vm4, %v4185_v44, %v4187_v54  ;;  %v3523_v15 = vrot.slane %v3424_v47, 1 }
 0x3a9   : > { %4341 = vrot.lane.b32.xlu0 %v11659_v37, %s9275_s20  ;;  %v4106_v37 = vsel %vm573_vm5, %v4104_v12, %v4105_v49  ;;  %v3427_v49 = vld [vmem:[#allocation2 + $0x40] sm:$0x3] }
 0x3aa   : > { %v4288_v34 = vpop.permute.xlu1 %4287 }
 0x3ab   : > { %v4286_v23 = vpop.permute.xlu0 %4285  ;;  %v4414_v62 = vsel %vm959_vm8, %v4382_v55, %v4288_v34  ;;  %v4186_v34 = vsel %vm654_vm4, %v4184_v7, %v4185_v44 }
 0x3ac   : > { %v4413_v5 = vsel %vm959_vm8, %v4381_v14, %v4286_v23  ;;  %4251 = vrot.lane.b32.xlu1 %v4108_v16, %s9276_s21  ;;  %v3528_v14 = vrot.slane %v3427_v49, 1 }
 0x3ad   : > { %4249 = vrot.lane.b32.xlu0 %v4106_v37, %s9276_s21  ;;  %8760 = vmatprep.mubr.msk.f32.mxu1 %vm1509_vm9, %v4413_v5  ;;  %v3524_v37 = vsel %vm573_vm5, %v11196_v58, %v3523_v15 }
 0x3ae   : > { %8761 = vmatmul.mubr.msk.f32.vlgmr.msra.gmra.mrb[0].mxu1 %vm1509_vm9, %v4414_v62  ;;  %v4196_v0 = vpop.permute.xlu1 %4195 }
 0x3af   : > { %v4194_v63 = vpop.permute.xlu0 %4193  ;;  %8953 = vmatpush3.bf16.msk.msra.mxu1 %vm9540_vm7, %v8948_v8  ;;  %v4384_v23 = vsel %vm370_vm0, %v11213_v29, %v4196_v0  ;;  %v3603_v8 = vrot.slane %v3424_v47, 2  ;;  %v3608_v0 = vrot.slane %v3427_v49, 2 }
 0x3b0   : > { %4347 = vrot.lane.b32.xlu1 %v4188_v31, %s9275_s20  ;;  %v4383_v5 = vsel %vm370_vm0, %v11218_v53, %v4194_v63 }
 0x3b1   : > { %4345 = vrot.lane.b32.xlu0 %v4186_v34, %s9275_s20  ;;  %v3604_v55 = vsel %vm654_vm4, %v11202_v22, %v3603_v8  ;;  %v3529_v22 = vsel %vm573_vm5, %v11221_v25, %v3528_v14  ;;  %v3609_v63 = vsel %vm654_vm4, %v11234_v3, %v3608_v0 }
 0x3b2   : > { %v4292_v12 = vpop.permute.xlu1 %4291 }
 0x3b3   : > { %v4290_v38 = vpop.permute.xlu0 %4289  ;;  %v4416_v54 = vsel %vm959_vm8, %v4384_v23, %v4292_v12 }
 0x3b4   : > { %v4415_v44 = vsel %vm959_vm8, %v4383_v5, %v4290_v38  ;;  %3681 = vrot.lane.b32.xlu1 %v3524_v37, %s9276_s21 }
 0x3b5   : > { %3679 = vrot.lane.b32.xlu0 %v11210_v45, %s9276_s21  ;;  %8763 = vmatprep.mubr.msk.f32.mxu1 %vm1509_vm9, %v4415_v44 }
 0x3b6   : > { %8764 = vmatmul.mubr.msk.f32.gmra.mrb[2].mxu1 %vm1509_vm9, %v4416_v54  ;;  %v4200_v29 = vpop.permute.xlu1 %4199 }
 0x3b7   : > { %v4198_v53 = vpop.permute.xlu0 %4197  ;;  %v4386_v58 = vsel %vm370_vm0, %v11243_v50, %v4200_v29 }
 0x3b8   : > { %3777 = vrot.lane.b32.xlu1 %v3604_v55, %s9275_s20  ;;  %v4385_v45 = vsel %vm370_vm0, %v11248_v1, %v4198_v53 }
 0x3b9   : > { %3775 = vrot.lane.b32.xlu0 %v11227_v48, %s9275_s20  ;;  %v3430_v48 = vld [vmem:[#allocation2 + $0x58] sm:$0x3] }
 0x3ba   : > { %v4296_v7 = vpop.permute.xlu1 %4295  ;;  %v3533_v31 = vrot.slane %v3430_v48, 1  ;;  %v3613_v12 = vrot.slane %v3430_v48, 2 }
 0x3bb   : > { %v4294_v62 = vpop.permute.xlu0 %4293  ;;  %v4418_v16 = vsel %vm959_vm8, %v4386_v58, %v4296_v7 }
 0x3bc   : > { %v4417_v47 = vsel %vm959_vm8, %v4385_v45, %v4294_v62  ;;  %3685 = vrot.lane.b32.xlu1 %v3529_v22, %s9276_s21  ;;  %v3534_v3 = vsel %vm573_vm5, %v11251_v32, %v3533_v31  ;;  %v3614_v38 = vsel %vm654_vm4, %v11264_v42, %v3613_v12 }
 0x3bd   : > { %3683 = vrot.lane.b32.xlu0 %v11240_v2, %s9276_s21  ;;  %8766 = vmatprep.mubr.msk.f32.mxu1 %vm1509_vm9, %v4417_v47 }
 0x3be   : > { %8767 = vmatmul.mubr.msk.f32.gmra.mrb[4].mxu1 %vm1509_vm9, %v4418_v16  ;;  %v4204_v50 = vpop.permute.xlu1 %4203 }
 0x3bf   : > { %v4202_v1 = vpop.permute.xlu0 %4201  ;;  %v4388_v25 = vsel %vm370_vm0, %v11273_v43, %v4204_v50 }
 0x3c0   : > { %3781 = vrot.lane.b32.xlu1 %v3609_v63, %s9275_s20  ;;  %v4387_v2 = vsel %vm370_vm0, %v11278_v40, %v4202_v1 }
 0x3c1   : > { %3779 = vrot.lane.b32.xlu0 %v11257_v19, %s9275_s20  ;;  %v3433_v19 = vld [vmem:[#allocation2 + $0x70] sm:$0x3] }
 0x3c2   : > { %v4300_v34 = vpop.permute.xlu1 %4299  ;;  %v3538_v54 = vrot.slane %v3433_v19, 1  ;;  %v3618_v29 = vrot.slane %v3433_v19, 2 }
 0x3c3   : > { %v4298_v15 = vpop.permute.xlu0 %4297  ;;  %v4420_v23 = vsel %vm959_vm8, %v4388_v25, %v4300_v34 }
 0x3c4   : > { %v4419_v5 = vsel %vm959_vm8, %v4387_v2, %v4298_v15  ;;  %3689 = vrot.lane.b32.xlu1 %v3534_v3, %s9276_s21  ;;  %v3539_v42 = vsel %vm573_vm5, %v11281_v33, %v3538_v54  ;;  %v3619_v53 = vsel %vm654_vm4, %v11294_v59, %v3618_v29 }
 0x3c5   : > { %3687 = vrot.lane.b32.xlu0 %v11270_v41, %s9276_s21  ;;  %8769 = vmatprep.mubr.msk.f32.mxu1 %vm1509_vm9, %v4419_v5 }
 0x3c6   : > { %8770 = vmatmul.mubr.msk.f32.gmra.mrb[6].mxu1 %vm1509_vm9, %v4420_v23  ;;  %v4208_v43 = vpop.permute.xlu1 %4207 }
 0x3c7   : > { %v4206_v40 = vpop.permute.xlu0 %4205  ;;  %v4390_v32 = vsel %vm370_vm0, %v11303_v30, %v4208_v43 }
 0x3c8   : > { %3785 = vrot.lane.b32.xlu1 %v3614_v38, %s9275_s20  ;;  %v4389_v41 = vsel %vm370_vm0, %v11308_v20, %v4206_v40 }
 0x3c9   : > { %3783 = vrot.lane.b32.xlu0 %v11287_v60, %s9275_s20  ;;  %v3436_v60 = vld [vmem:[#allocation2 + $0x88] sm:$0x3] }
 0x3ca   : > { %v4304_v44 = vpop.permute.xlu1 %4303  ;;  %v3543_v55 = vrot.slane %v3436_v60, 1  ;;  %v3623_v62 = vrot.slane %v3436_v60, 2  ;;  %v14470_v60 = vld [vmem:[#allocation10_spill] sm:$0xff] }
 0x3cb   : > { %v4302_v37 = vpop.permute.xlu0 %4301  ;;  %v4422_v8 = vsel %vm959_vm8, %v4390_v32, %v4304_v44  ;;  %v14467_v32 = vld [vmem:[#allocation6_spill] sm:$0xff]  ;;  %v3448_v44 = vld [vmem:[#allocation2 + $0xe8] sm:$0x3] }
 0x3cc   : > { %v4421_v49 = vsel %vm959_vm8, %v4389_v41, %v4302_v37  ;;  %3693 = vrot.lane.b32.xlu1 %v3539_v42, %s9276_s21  ;;  %v3544_v59 = vsel %vm573_vm5, %v11311_v39, %v3543_v55  ;;  %v3624_v16 = vsel %vm654_vm4, %v11324_v6, %v3623_v62  ;;  %v3563_v29 = vrot.slane %v3448_v44, 1  ;;  %v14474_v62 = vld [vmem:[#allocation13_spill] sm:$0xff] }
 0x3cd   : > { %3691 = vrot.lane.b32.xlu0 %v11300_v26, %s9276_s21  ;;  %8772 = vmatprep.mubr.msk.f32.mxu1 %vm1509_vm9, %v4421_v49  ;;  %v14469_v49 = vld [vmem:[#allocation9_spill] sm:$0xff] }
 0x3ce   : > { %8773 = vmatmul.mubr.msk.f32.gmra.mrb[8].mxu1 %vm1509_vm9, %v4422_v8  ;;  %v4212_v30 = vpop.permute.xlu1 %4211 }
 0x3cf   : > { %v4210_v20 = vpop.permute.xlu0 %4209  ;;  %v4392_v33 = vsel %vm370_vm0, %v11333_v46, %v4212_v30  ;;  %v14471_v30 = vld [vmem:[#allocation23_spill] sm:$0xff] }
 0x3d0   : > { %3789 = vrot.lane.b32.xlu1 %v3619_v53, %s9275_s20  ;;  %v4391_v26 = vsel %vm370_vm0, %v11338_v9, %v4210_v20  ;;  %v14472_v53 = vld [vmem:[#allocation24_spill] sm:$0xff] }
 0x3d1   : > { %3787 = vrot.lane.b32.xlu0 %v11317_v17, %s9275_s20  ;;  %v3439_v17 = vld [vmem:[#allocation2 + $0xa0] sm:$0x3] }
 0x3d2   : > { %v4308_v14 = vpop.permute.xlu1 %4307  ;;  %v3548_v47 = vrot.slane %v3439_v17, 1  ;;  %v3628_v1 = vrot.slane %v3439_v17, 2  ;;  %v3451_v17 = vld [vmem:[#allocation2 + $0x100] sm:$0x3] }
 0x3d3   : > { %v4306_v58 = vpop.permute.xlu0 %4305  ;;  %v4424_v45 = vsel %vm959_vm8, %v4392_v33, %v4308_v14 }
 0x3d4   : > { %v4423_v7 = vsel %vm959_vm8, %v4391_v26, %v4306_v58  ;;  %3697 = vrot.lane.b32.xlu1 %v3544_v59, %s9276_s21  ;;  %v3549_v6 = vsel %vm573_vm5, %v11341_v24, %v3548_v47  ;;  %v3629_v63 = vsel %vm654_vm4, %v11354_v35, %v3628_v1  ;;  %v3643_v59 = vrot.slane %v3448_v44, 2 }
 0x3d5   : > { %3695 = vrot.lane.b32.xlu0 %v11330_v28, %s9276_s21  ;;  %8775 = vmatprep.mubr.msk.f32.mxu1 %vm1509_vm9, %v4423_v7 }
 0x3d6   : > { %8776 = vmatmul.mubr.msk.f32.gmra.mrb[10].mxu1 %vm1509_vm9, %v4424_v45  ;;  %v4216_v46 = vpop.permute.xlu1 %4215  ;;  %v14473_v45 = vld [vmem:[#allocation11_spill] sm:$0xff] }
 0x3d7   : > { %v4214_v9 = vpop.permute.xlu0 %4213  ;;  %v4394_v39 = vsel %vm370_vm0, %v11363_v57, %v4216_v46  ;;  %v3564_v7 = vsel %vm573_vm5, %v14473_v45, %v3563_v29 }
 0x3d8   : > { %3793 = vrot.lane.b32.xlu1 %v3624_v16, %s9275_s20  ;;  %v4393_v28 = vsel %vm370_vm0, %v11368_v27, %v4214_v9  ;;  %v14475_v16 = vld [vmem:[#allocation14_spill] sm:$0xff] }
 0x3d9   : > { %3791 = vrot.lane.b32.xlu0 %v11347_v10, %s9275_s20  ;;  %v3442_v10 = vld [vmem:[#allocation2 + $0xb8] sm:$0x3]  ;;  %v3644_v47 = vsel %vm654_vm4, %v14475_v16, %v3643_v59  ;;  %v14493_v59 = vld [vmem:[#allocation32_spill] sm:$0xff] }
 0x3da   : > { %v4312_v22 = vpop.permute.xlu1 %4311  ;;  %v3553_v31 = vrot.slane %v3442_v10, 1  ;;  %v3633_v23 = vrot.slane %v3442_v10, 2 }
 0x3db   : > { %v4310_v0 = vpop.permute.xlu0 %4309  ;;  %v4426_v48 = vsel %vm959_vm8, %v4394_v39, %v4312_v22  ;;  %v3568_v39 = vrot.slane %v3451_v17, 1  ;;  %v14477_v22 = vld [vmem:[#allocation29_spill] sm:$0xff] }
 0x3dc   : > { %v4425_v50 = vsel %vm959_vm8, %v4393_v28, %v4310_v0  ;;  %3701 = vrot.lane.b32.xlu1 %v3549_v6, %s9276_s21  ;;  %v3554_v35 = vsel %vm573_vm5, %v11371_v52, %v3553_v31  ;;  %v3634_v5 = vsel %vm654_vm4, %v11384_v61, %v3633_v23  ;;  %v14465_v52 = vld [vmem:[#allocation17_spill] sm:$0xff]  ;;  %v14476_v28 = vld [vmem:[#allocation15_spill] sm:$0xff]  ;;  %v3648_v31 = vrot.slane %v3451_v17, 2 }
 0x3dd   : > { %3699 = vrot.lane.b32.xlu0 %v11360_v56, %s9276_s21  ;;  %8778 = vmatprep.mubr.msk.f32.mxu1 %vm1509_vm9, %v4425_v50  ;;  %v14482_v23 = vld [vmem:[#allocation21_spill] sm:$0xff] }
 0x3de   : > { %8779 = vmatmul.mubr.msk.f32.gmra.mrb[12].mxu1 %vm1509_vm9, %v4426_v48  ;;  %v4220_v57 = vpop.permute.xlu1 %4219  ;;  %v14478_v48 = vld [vmem:[#allocation30_spill] sm:$0xff] }
 0x3df   : > { %v4218_v27 = vpop.permute.xlu0 %4217  ;;  %v4396_v24 = vsel %vm370_vm0, %v11393_v13, %v4220_v57 }
 0x3e0   : > { %3797 = vrot.lane.b32.xlu1 %v3629_v63, %s9275_s20  ;;  %v4395_v56 = vsel %vm370_vm0, %v11398_v4, %v4218_v27  ;;  %v14479_v27 = vld [vmem:[#allocation16_spill] sm:$0xff] }
 0x3e1   : > { %3795 = vrot.lane.b32.xlu0 %v11377_v18, %s9275_s20  ;;  %v3445_v18 = vld [vmem:[#allocation2 + $0xd0] sm:$0x3]  ;;  %v3569_v63 = vsel %vm573_vm5, %v14479_v27, %v3568_v39 }
 0x3e2   : > { %v4316_v25 = vpop.permute.xlu1 %4315  ;;  %v3558_v3 = vrot.slane %v3445_v18, 1  ;;  %v3638_v41 = vrot.slane %v3445_v18, 2  ;;  %v14483_v18 = vld [vmem:[#allocation35_spill] sm:$0xff] }
 0x3e3   : > { %v4314_v2 = vpop.permute.xlu0 %4313  ;;  %v4428_v34 = vsel %vm959_vm8, %v4396_v24, %v4316_v25  ;;  %v14480_v24 = vld [vmem:[#allocation19_spill] sm:$0xff] }
 0x3e4   : > { %v4427_v15 = vsel %vm959_vm8, %v4395_v56, %v4314_v2  ;;  %3705 = vrot.lane.b32.xlu1 %v3554_v35, %s9276_s21  ;;  %v3559_v61 = vsel %vm573_vm5, %v14467_v32, %v3558_v3  ;;  %v3639_v42 = vsel %vm654_vm4, %v14469_v49, %v3638_v41  ;;  %v3454_v56 = vld [vmem:[#allocation2 + $0x118] sm:$0x3] }
 0x3e5   : > { %3703 = vrot.lane.b32.xlu0 %v11390_v21, %s9276_s21  ;;  %8781 = vmatprep.mubr.msk.f32.mxu1 %vm1509_vm9, %v4427_v15  ;;  %v14466_v21 = vld [vmem:[#allocation18_spill] sm:$0xff]  ;;  %v3573_v35 = vrot.slane %v3454_v56, 1 }
 0x3e6   : > { %8782 = vmatmul.mubr.msk.f32.gmra.mrb[14].mxu1 %vm1509_vm9, %v4428_v34  ;;  %v4224_v13 = vpop.permute.xlu1 %4223  ;;  %v14481_v34 = vld [vmem:[#allocation20_spill] sm:$0xff]  ;;  %v14487_v41 = vld [vmem:[#allocation26_spill] sm:$0xff] }
 0x3e7   : > { %v4222_v4 = vpop.permute.xlu0 %4221  ;;  %v4398_v12 = vsel %vm370_vm0, %v14465_v52, %v4224_v13  ;;  %v3649_v15 = vsel %vm654_vm4, %v14481_v34, %v3648_v31  ;;  %v14499_v31 = vld [vmem:[#allocation38_spill] sm:$0xff] }
 0x3e8   : > { %3801 = vrot.lane.b32.xlu1 %v3634_v5, %s9275_s20  ;;  %v4397_v19 = vsel %vm370_vm0, %v14466_v21, %v4222_v4  ;;  %v14484_v4 = vld [vmem:[#allocation36_spill] sm:$0xff] }
 0x3e9   : > { %3799 = vrot.lane.b32.xlu0 %v11407_v11, %s9275_s20  ;;  %v14468_v11 = vld [vmem:[#allocation8_spill] sm:$0xff] }
 0x3ea   : > { %v4320_v43 = vpop.permute.xlu1 %4319 }
 0x3eb   : > { %v4318_v40 = vpop.permute.xlu0 %4317  ;;  %v4430_v38 = vsel %vm959_vm8, %v4398_v12, %v4320_v43 }
 0x3ec   : > { %v4429_v54 = vsel %vm959_vm8, %v4397_v19, %v4318_v40  ;;  %3709 = vrot.lane.b32.xlu1 %v3559_v61, %s9276_s21  ;;  %v14485_v19 = vld [vmem:[#allocation22_spill] sm:$0xff]  ;;  %v3653_v40 = vrot.slane %v3454_v56, 2 }
 0x3ed   : > { %3707 = vrot.lane.b32.xlu0 %v14468_v11, %s9276_s21  ;;  %8784 = vmatprep.mubr.msk.f32.mxu1 %vm1509_vm9, %v4429_v54  ;;  %v3574_v43 = vsel %vm573_vm5, %v14485_v19, %v3573_v35  ;;  %v3457_v54 = vld [vmem:[#allocation2 + $0x130] sm:$0x3] }
 0x3ee   : > { %8785 = vmatmul.mubr.msk.f32.gmra.mrb[16].mxu1 %vm1509_vm9, %v4430_v38  ;;  %v4228_v37 = vpop.permute.xlu1 %4227  ;;  %v14486_v38 = vld [vmem:[#allocation25_spill] sm:$0xff]  ;;  %v3654_v11 = vsel %vm654_vm4, %v14487_v41, %v3653_v40  ;;  %v3578_v44 = vrot.slane %v3457_v54, 1  ;;  %v14505_v40 = vld [vmem:[#allocation44_spill] sm:$0xff] }
 0x3ef   : > { %v4226_v8 = vpop.permute.xlu0 %4225  ;;  %v4400_v20 = vsel %vm370_vm0, %v14471_v30, %v4228_v37  ;;  %v14488_v37 = vld [vmem:[#allocation27_spill] sm:$0xff]  ;;  %v8349_v41 = vld [vmem:[%s14119_s2 + $0x28] sm:$0xf] }
 0x3f0   : > { %3805 = vrot.lane.b32.xlu1 %v3639_v42, %s9275_s20  ;;  %v4399_v55 = vsel %vm370_vm0, %v14472_v53, %v4226_v8  ;;  %v14489_v8 = vld [vmem:[#allocation41_spill] sm:$0xff]  ;;  %v14490_v42 = vld [vmem:[#allocation42_spill] sm:$0xff] }
 0x3f1   : > { %3803 = vrot.lane.b32.xlu0 %v14470_v60, %s9275_s20 }
 0x3f2   : > { %v4324_v33 = vpop.permute.xlu1 %4323 }
 0x3f3   : > { %v4322_v26 = vpop.permute.xlu0 %4321  ;;  %v4432_v14 = vsel %vm959_vm8, %v4400_v20, %v4324_v33 }
 0x3f4   : > { %v4431_v58 = vsel %vm959_vm8, %v4399_v55, %v4322_v26  ;;  %3713 = vrot.lane.b32.xlu1 %v3564_v7, %s9276_s21  ;;  %v14491_v55 = vld [vmem:[#allocation28_spill] sm:$0xff]  ;;  %v3658_v26 = vrot.slane %v3457_v54, 2 }
 0x3f5   : > { %3711 = vrot.lane.b32.xlu0 %v14474_v62, %s9276_s21  ;;  %8787 = vmatprep.mubr.msk.f32.mxu1 %vm1509_vm9, %v4431_v58  ;;  %v3579_v33 = vsel %vm573_vm5, %v14491_v55, %v3578_v44  ;;  %v3460_v58 = vld [vmem:[#allocation2 + $0x148] sm:$0x3]  ;;  %v9176_v44 = vld [vmem:[#allocation2] sm:$0xff] }
 0x3f6   : > { %8788 = vmatmul.mubr.msk.f32.gmra.mrb[18].mxu1 %vm1509_vm9, %v4432_v14  ;;  %v4232_v46 = vpop.permute.xlu1 %4231  ;;  %v14492_v14 = vld [vmem:[#allocation31_spill] sm:$0xff]  ;;  %v3659_v62 = vsel %vm654_vm4, %v14493_v59, %v3658_v26  ;;  %v3583_v17 = vrot.slane %v3460_v58, 1  ;;  %v14509_v55 = vld [vmem:[#allocation52_spill] sm:$0xff]  ;;  %v14511_v59 = vld [vmem:[#allocation50_spill] sm:$0xff] }
 0x3f7   : > { %v4230_v9 = vpop.permute.xlu0 %4229  ;;  %v4402_v0 = vsel %vm370_vm0, %v14477_v22, %v4232_v46  ;;  %v14494_v46 = vld [vmem:[#allocation33_spill] sm:$0xff] }
 0x3f8   : > { %3809 = vrot.lane.b32.xlu1 %v3644_v47, %s9275_s20  ;;  %v4401_v50 = vsel %vm370_vm0, %v14478_v48, %v4230_v9  ;;  %v14495_v9 = vld [vmem:[#allocation47_spill] sm:$0xff]  ;;  %v14496_v47 = vld [vmem:[#allocation48_spill] sm:$0xff] }
 0x3f9   : > { %3807 = vrot.lane.b32.xlu0 %v14476_v28, %s9275_s20 }
 0x3fa   : > { %v4328_v6 = vpop.permute.xlu1 %4327 }
 0x3fb   : > { %v4326_v1 = vpop.permute.xlu0 %4325  ;;  %v4434_v10 = vsel %vm959_vm8, %v4402_v0, %v4328_v6 }
 0x3fc   : > { %v4433_v57 = vsel %vm959_vm8, %v4401_v50, %v4326_v1  ;;  %3717 = vrot.lane.b32.xlu1 %v3569_v63, %s9276_s21  ;;  %v14497_v50 = vld [vmem:[#allocation34_spill] sm:$0xff]  ;;  %v3663_v1 = vrot.slane %v3460_v58, 2  ;;  %v5098_v58 = vld [vmem:[#allocation2 + $0x40] sm:$0x3] }
 0x3fd   : > { %3715 = vrot.lane.b32.xlu0 %v14480_v24, %s9276_s21  ;;  %8790 = vmatprep.mubr.msk.f32.mxu1 %vm1509_vm9, %v4433_v57  ;;  %v3584_v6 = vsel %vm573_vm5, %v14497_v50, %v3583_v17  ;;  %v3463_v57 = vld [vmem:[#allocation2 + $0x160] sm:$0x3]  ;;  %v14512_v17 = vld [vmem:[#allocation53_spill] sm:$0xff]  ;;  %v14515_v50 = vld [vmem:[#allocation54_spill] sm:$0xff] }
 0x3fe   : > { %8791 = vmatmul.mubr.msk.f32.gmra.mrb[20].mxu1 %vm1509_vm9, %v4434_v10  ;;  %v4236_v25 = vpop.permute.xlu1 %4235  ;;  %v14498_v10 = vld [vmem:[#allocation37_spill] sm:$0xff]  ;;  %v3664_v24 = vsel %vm654_vm4, %v14499_v31, %v3663_v1  ;;  %v3588_v56 = vrot.slane %v3463_v57, 1 }
 0x3ff   : > { %v4234_v2 = vpop.permute.xlu0 %4233  ;;  %v4404_v13 = vsel %vm370_vm0, %v14483_v18, %v4236_v25  ;;  %v14500_v25 = vld [vmem:[#allocation39_spill] sm:$0xff] }
 0x400   : > { %3813 = vrot.lane.b32.xlu1 %v3649_v15, %s9275_s20  ;;  %v4403_v5 = vsel %vm370_vm0, %v14484_v4, %v4234_v2  ;;  %v14501_v2 = vld [vmem:[#allocation46_spill] sm:$0xff]  ;;  %v14502_v15 = vld [vmem:[#allocation49_spill] sm:$0xff] }
 0x401   : > { %3811 = vrot.lane.b32.xlu0 %v14482_v23, %s9275_s20 }
 0x402   : > { %v4332_v3 = vpop.permute.xlu1 %4331 }
 0x403   : > { %v4330_v52 = vpop.permute.xlu0 %4329  ;;  %v4436_v12 = vsel %vm959_vm8, %v4404_v13, %v4332_v3 }
 0x404   : > { %v4435_v21 = vsel %vm959_vm8, %v4403_v5, %v4330_v52  ;;  %3721 = vrot.lane.b32.xlu1 %v3574_v43, %s9276_s21  ;;  %v14503_v5 = vld [vmem:[#allocation40_spill] sm:$0xff]  ;;  %v3668_v52 = vrot.slane %v3463_v57, 2 }
 0x405   : > { %3719 = vrot.lane.b32.xlu0 %v14486_v38, %s9276_s21  ;;  %8793 = vmatprep.mubr.msk.f32.mxu1 %vm1509_vm9, %v4435_v21  ;;  %v3589_v3 = vsel %vm573_vm5, %v14503_v5, %v3588_v56  ;;  %v3466_v21 = vld [vmem:[#allocation2 + $0x178] sm:$0x3] }
 0x406   : > { %8794 = vmatmul.mubr.msk.f32.gmra.mrb[22].mxu1 %vm1509_vm9, %v4436_v12  ;;  %v4240_v32 = vpop.permute.xlu1 %4239  ;;  %v14504_v12 = vld [vmem:[#allocation43_spill] sm:$0xff]  ;;  %v3669_v38 = vsel %vm654_vm4, %v14505_v40, %v3668_v52  ;;  %v3593_v54 = vrot.slane %v3466_v21, 1  ;;  %v3673_v26 = vrot.slane %v3466_v21, 2 }
 0x407   : > { %v4238_v61 = vpop.permute.xlu0 %4237  ;;  %v4406_v49 = vsel %vm370_vm0, %v14489_v8, %v4240_v32  ;;  %v14506_v32 = vld [vmem:[#allocation51_spill] sm:$0xff] }
 0x408   : > { %3817 = vrot.lane.b32.xlu1 %v3654_v11, %s9275_s20  ;;  %v4405_v29 = vsel %vm370_vm0, %v14490_v42, %v4238_v61  ;;  %v8348_v61 = vld [vmem:[%s14119_s2 + $0x20] sm:$0xff] }
 0x409   : > { %3815 = vrot.lane.b32.xlu0 %v14488_v37, %s9275_s20  ;;  %v8954_v11 = vpack.c.bf16 %v8349_v41, %v8348_v61  ;;  %v14507_v37 = vld [vmem:[#allocation45_spill] sm:$0xff] }
 0x40a   : > { %v4336_v60 = vpop.permute.xlu1 %4335  ;;  %v3867_v8 = vsel %vm370_vm0, %v9176_v44, %v14507_v37 }
 0x40b   : > { %v4334_v30 = vpop.permute.xlu0 %4333  ;;  %v4438_v20 = vsel %vm959_vm8, %v4406_v49, %v4336_v60  ;;  %v14508_v49 = vld [vmem:[#allocation57_spill] sm:$0xff]  ;;  %8956 = vmatprep.subr.msk.bf16.mxu1 %vm9540_vm7, %v8954_v11 }
 0x40c   : > { %v4437_v53 = vsel %vm959_vm8, %v4405_v29, %v4334_v30  ;;  %3725 = vrot.lane.b32.xlu1 %v3579_v33, %s9276_s21  ;;  %v3594_v33 = vsel %vm573_vm5, %v14509_v55, %v3593_v54 }
 0x40d   : > { %3723 = vrot.lane.b32.xlu0 %v14492_v14, %s9276_s21  ;;  %8796 = vmatprep.mubr.msk.f32.mxu1 %vm1509_vm9, %v4437_v53  ;;  %v11955_v14 = vld [vmem:[#allocation2 + $0x38] sm:$0xff] }
 0x40e   : > { %8797 = vmatmul.mubr.msk.f32.gmra.mrb[24].mxu1 %vm1509_vm9, %v4438_v20  ;;  %v4244_v45 = vpop.permute.xlu1 %4243  ;;  %v5273_v1 = vrot.slane %v11955_v14, 2 }
 0x40f   : > { %v4242_v7 = vpop.permute.xlu0 %4241  ;;  %v4408_v16 = vsel %vm370_vm0, %v14495_v9, %v4244_v45  ;;  %v11962_v45 = vld [vmem:[#allocation2 + $0x30] sm:$0xff] }
 0x410   : > { %3821 = vrot.lane.b32.xlu1 %v3659_v62, %s9275_s20  ;;  %v4407_v39 = vsel %vm370_vm0, %v14496_v47, %v4242_v7  ;;  %v9177_v7 = vld [vmem:[#allocation2 + $0x8] sm:$0xff]  ;;  %v5193_v47 = vrot.slane %v11955_v14, 1 }
 0x411   : > { %3819 = vrot.lane.b32.xlu0 %v14494_v46, %s9275_s20  ;;  %v3868_v62 = vsel %vm370_vm0, %v9177_v7, %v14511_v59  ;;  %v3899_v46 = vsel %vm959_vm8, %v3867_v8, %v14512_v17  ;;  %v9182_v7 = vld [vmem:[#allocation2 + $0x50] sm:$0xff] }
 0x412   : > { %v4340_v28 = vpop.permute.xlu1 %4339 }
 0x413   : > { %v4338_v22 = vpop.permute.xlu0 %4337  ;;  %v4440_v0 = vsel %vm959_vm8, %v4408_v16, %v4340_v28  ;;  %v14513_v28 = vld [vmem:[#allocation55_spill] sm:$0xff] }
 0x414   : > { %v4439_v48 = vsel %vm959_vm8, %v4407_v39, %v4338_v22  ;;  %3729 = vrot.lane.b32.xlu1 %v3584_v6, %s9276_s21  ;;  %v5195_v39 = vrot.slane %v5098_v58, 1  ;;  %v3674_v22 = vsel %vm654_vm4, %v14513_v28, %v3673_v26  ;;  %v3900_v6 = vsel %vm959_vm8, %v3868_v62, %v14515_v50  ;;  %v9183_v62 = vld [vmem:[#allocation2 + $0x48] sm:$0xff] }
 0x415   : > { %3727 = vrot.lane.b32.xlu0 %v14498_v10, %s9276_s21  ;;  %8799 = vmatprep.mubr.msk.f32.mxu1 %vm1509_vm9, %v4439_v48  ;;  %v14514_v48 = vld [vmem:[#allocation58_spill] sm:$0xff]  ;;  %v9178_v10 = vld [vmem:[#allocation2 + $0x20] sm:$0xff]  ;;  %v5107_v50 = vld [vmem:[#allocation2 + $0x88] sm:$0x3] }
 0x416   : > { %8800 = vmatmul.mubr.msk.f32.gmra.mrb[26].mxu1 %vm1509_vm9, %v4440_v0  ;;  %v4248_v27 = vpop.permute.xlu1 %4247  ;;  %v5192_v0 = vrot.slane %v11962_v45, 1  ;;  %v5196_v56 = vsel %vm573_vm5, %v5193_v47, %v5195_v39 }
 0x417   : > { %v4246_v63 = vpop.permute.xlu0 %4245  ;;  %v4410_v34 = vsel %vm370_vm0, %v14501_v2, %v4248_v27  ;;  %v9179_v27 = vld [vmem:[#allocation2 + $0x18] sm:$0xff] }
 0x418   : > { %3825 = vrot.lane.b32.xlu1 %v3664_v24, %s9275_s20  ;;  %v4409_v35 = vsel %vm370_vm0, %v14502_v15, %v4246_v63  ;;  %v5194_v15 = vsel %vm573_vm5, %v5192_v0, %v5193_v47 }
 0x419   : > { %3823 = vrot.lane.b32.xlu0 %v14500_v25, %s9275_s20  ;;  %v5275_v25 = vrot.slane %v5098_v58, 2 }
 0x41a   : > { %v4344_v23 = vpop.permute.xlu1 %4343 }
 0x41b   : > { %v4342_v18 = vpop.permute.xlu0 %4341  ;;  %v4442_v13 = vsel %vm959_vm8, %v4410_v34, %v4344_v23  ;;  %v11989_v23 = vld [vmem:[#allocation2 + $0x50] sm:$0xff]  ;;  %v5276_v52 = vsel %vm654_vm4, %v5273_v1, %v5275_v25  ;;  %v9184_v25 = vld [vmem:[#allocation2 + $0x68] sm:$0xff] }
 0x41c   : > { %v4441_v4 = vsel %vm959_vm8, %v4409_v35, %v4342_v18  ;;  %3733 = vrot.lane.b32.xlu1 %v3589_v3, %s9276_s21  ;;  %v5272_v35 = vrot.slane %v11962_v45, 2  ;;  %v5101_v18 = vld [vmem:[#allocation2 + $0x58] sm:$0x3]  ;;  %v5198_v3 = vrot.slane %v11989_v23, 1 }
 0x41d   : > { %3731 = vrot.lane.b32.xlu0 %v14504_v12, %s9276_s21  ;;  %8802 = vmatprep.mubr.msk.f32.mxu1 %vm1509_vm9, %v4441_v4  ;;  %v5200_v12 = vrot.slane %v5101_v18, 1  ;;  %v5280_v41 = vrot.slane %v5101_v18, 2 }
 0x41e   : > { %8803 = vmatmul.mubr.msk.f32.gmra.mrb[28].mxu1 %vm1509_vm9, %v4442_v13  ;;  %v4252_v19 = vpop.permute.xlu1 %4251  ;;  %v11995_v13 = vld [vmem:[#allocation2 + $0x48] sm:$0xff]  ;;  %v5274_v36 = vsel %vm654_vm4, %v5272_v35, %v5273_v1 }
 0x41f   : > { %v4250_v43 = vpop.permute.xlu0 %4249  ;;  %v4412_v42 = vsel %vm370_vm0, %v14508_v49, %v4252_v19  ;;  %v5197_v21 = vrot.slane %v11995_v13, 1  ;;  %v5278_v19 = vrot.slane %v11989_v23, 2  ;;  %v5201_v8 = vsel %vm573_vm5, %v5198_v3, %v5200_v12 }
 0x420   : > { %3829 = vrot.lane.b32.xlu1 %v3669_v38, %s9275_s20  ;;  %v4411_v29 = vsel %vm370_vm0, %v11646_v51, %v4250_v43  ;;  %v14510_v51 = vld [vmem:[#allocation56_spill] sm:$0xff]  ;;  %v9180_v43 = vld [vmem:[#allocation2 + $0x38] sm:$0xff]  ;;  %v9181_v38 = vld [vmem:[#allocation2 + $0x30] sm:$0xff] }
 0x421   : > { %3827 = vrot.lane.b32.xlu0 %v14506_v32, %s9275_s20  ;;  %v5199_v49 = vsel %vm573_vm5, %v5197_v21, %v5198_v3  ;;  %v12057_v21 = vld [vmem:[#allocation2 + $0x98] sm:$0xff] }
 0x422   : > { %v4348_v60 = vpop.permute.xlu1 %4347 }
 0x423   : > { %v4346_v30 = vpop.permute.xlu0 %4345  ;;  %v4444_v20 = vsel %vm959_vm8, %v4412_v42, %v4348_v60  ;;  %v12013_v42 = vld [vmem:[#allocation2 + $0x68] sm:$0xff]  ;;  %v12017_v60 = vld [vmem:[#allocation2 + $0x60] sm:$0xff] }
 0x424   : > { %v4443_v53 = vsel %vm959_vm8, %v4411_v29, %v4346_v30  ;;  %3737 = vrot.lane.b32.xlu1 %v3594_v33, %s9276_s21  ;;  %v5104_v29 = vld [vmem:[#allocation2 + $0x70] sm:$0x3]  ;;  %v5281_v33 = vsel %vm654_vm4, %v5278_v19, %v5280_v41  ;;  %v5202_v58 = vrot.slane %v12017_v60, 1  ;;  %v5282_v0 = vrot.slane %v12017_v60, 2 }
 0x425   : > { %3735 = vrot.lane.b32.xlu0 %v14510_v51, %s9276_s21  ;;  %8805 = vmatprep.mubr.msk.f32.mxu1 %vm1509_vm9, %v4443_v53  ;;  %v5203_v53 = vrot.slane %v12013_v42, 1  ;;  %v5205_v55 = vrot.slane %v5104_v29, 1  ;;  %v5283_v51 = vrot.slane %v12013_v42, 2  ;;  %v5285_v47 = vrot.slane %v5104_v29, 2 }
 0x426   : > { %8806 = vmatmul.mubr.msk.f32.gmra.mrb[30].mxu1 %vm1509_vm9, %v4444_v20  ;;  %v3682_v9 = vpop.permute.xlu1 %3681 }
 0x427   : > { %v3680_v16 = vpop.permute.xlu0 %3679  ;;  %8812 = vmatprep.mubr.msk.f32.mxu1 %vm1509_vm9, %v3899_v46  ;;  %v3870_v57 = vsel %vm370_vm0, %v9178_v10, %v3682_v9 }
 0x428   : > { %3833 = vrot.lane.b32.xlu1 %v3674_v22, %s9275_s20  ;;  %v3869_v63 = vsel %vm370_vm0, %v9179_v27, %v3680_v16  ;;  %v5206_v16 = vsel %vm573_vm5, %v5203_v53, %v5205_v55  ;;  %v5204_v22 = vsel %vm573_vm5, %v5202_v58, %v5203_v53  ;;  %v5286_v27 = vsel %vm654_vm4, %v5283_v51, %v5285_v47 }
 0x429   : > { %3831 = vrot.lane.b32.xlu0 %v14514_v48, %s9275_s20  ;;  %v12035_v48 = vld [vmem:[#allocation2 + $0x80] sm:$0xff] }
 0x42a   : > { %8813 = vmatmul.mubr.msk.f32.vlgmr.msra.gmra.mrb[0].mxu1 %vm1509_vm9, %v3900_v6  ;;  %v3778_v31 = vpop.permute.xlu1 %3777  ;;  %v12039_v6 = vld [vmem:[#allocation2 + $0x78] sm:$0xff] }
 0x42b   : > { %v3776_v24 = vpop.permute.xlu0 %3775  ;;  %v3902_v2 = vsel %vm959_vm8, %v3870_v57, %v3778_v31  ;;  %8959 = vmatpush3.bf16.msk.msra.mxu1 %vm9540_vm7, %v8954_v11  ;;  %v5277_v11 = vrot.slane %v11995_v13, 2  ;;  %v5208_v57 = vrot.slane %v12035_v48, 1  ;;  %v5210_v31 = vrot.slane %v5107_v50, 1 }
 0x42c   : > { %v3901_v34 = vsel %vm959_vm8, %v3869_v63, %v3776_v24  ;;  %5354 = vrot.lane.b32.xlu1 %v5196_v56, %s9276_s21  ;;  %v5284_v63 = vsel %vm654_vm4, %v5282_v0, %v5283_v51  ;;  %v5207_v24 = vrot.slane %v12039_v6, 1  ;;  %v5288_v56 = vrot.slane %v12035_v48, 2  ;;  %v9188_v0 = vld [vmem:[#allocation2 + $0x98] sm:$0xff] }
 0x42d   : > { %5352 = vrot.lane.b32.xlu0 %v5194_v15, %s9276_s21  ;;  %8815 = vmatprep.mubr.msk.f32.mxu1 %vm1509_vm9, %v3901_v34  ;;  %v5279_v26 = vsel %vm654_vm4, %v5277_v11, %v5278_v19  ;;  %v9185_v34 = vld [vmem:[#allocation2 + $0x60] sm:$0xff]  ;;  %vm7985_vm7 = vcmask 130048  }
 0x42e   : > { %8816 = vmatmul.mubr.msk.f32.gmra.mrb[2].mxu1 %vm1509_vm9, %v3902_v2  ;;  %v3686_v4 = vpop.permute.xlu1 %3685  ;;  %v5209_v12 = vsel %vm573_vm5, %v5207_v24, %v5208_v57  ;;  %v5110_v19 = vld [vmem:[#allocation2 + $0xa0] sm:$0x3] }
 0x42f   : > { %v3684_v5 = vpop.permute.xlu0 %3683  ;;  %v3872_v40 = vsel %vm370_vm0, %v9180_v43, %v3686_v4  ;;  %v5290_v4 = vrot.slane %v5107_v50, 2  ;;  %v12061_v43 = vld [vmem:[#allocation2 + $0x90] sm:$0xff]  ;;  %v5295_v55 = vrot.slane %v5110_v19, 2 }
 0x430   : > { %5450 = vrot.lane.b32.xlu1 %v5276_v52, %s9275_s20  ;;  %v3871_v54 = vsel %vm370_vm0, %v9181_v38, %v3684_v5  ;;  %v5287_v5 = vrot.slane %v12039_v6, 2  ;;  %v5212_v11 = vrot.slane %v12061_v43, 1  ;;  %v5292_v51 = vrot.slane %v12061_v43, 2 }
 0x431   : > { %5448 = vrot.lane.b32.xlu0 %v5274_v36, %s9275_s20  ;;  %v5211_v36 = vsel %vm573_vm5, %v5208_v57, %v5210_v31 }
 0x432   : > { %v3782_v32 = vpop.permute.xlu1 %3781  ;;  %v5289_v41 = vsel %vm654_vm4, %v5287_v5, %v5288_v56 }
 0x433   : > { %v3780_v61 = vpop.permute.xlu0 %3779  ;;  %v3904_v44 = vsel %vm959_vm8, %v3872_v40, %v3782_v32  ;;  %v5215_v32 = vrot.slane %v5110_v19, 1 }
 0x434   : > { %v3903_v37 = vsel %vm959_vm8, %v3871_v54, %v3780_v61  ;;  %5358 = vrot.lane.b32.xlu1 %v5201_v8, %s9276_s21  ;;  %v5213_v54 = vrot.slane %v12057_v21, 1  ;;  %v5291_v61 = vsel %vm654_vm4, %v5288_v56, %v5290_v4 }
 0x435   : > { %5356 = vrot.lane.b32.xlu0 %v5199_v49, %s9276_s21  ;;  %8818 = vmatprep.mubr.msk.f32.mxu1 %vm1509_vm9, %v3903_v37  ;;  %v9186_v37 = vld [vmem:[#allocation2 + $0x80] sm:$0xff]  ;;  %v9187_v49 = vld [vmem:[#allocation2 + $0x78] sm:$0xff] }
 0x436   : > { %8819 = vmatmul.mubr.msk.f32.gmra.mrb[4].mxu1 %vm1509_vm9, %v3904_v44  ;;  %v3690_v30 = vpop.permute.xlu1 %3689  ;;  %v5293_v44 = vrot.slane %v12057_v21, 2  ;;  %v5216_v53 = vsel %vm573_vm5, %v5213_v54, %v5215_v32  ;;  %v5214_v58 = vsel %vm573_vm5, %v5212_v11, %v5213_v54  ;;  %v9191_v54 = vld [vmem:[#allocation2 + $0xa8] sm:$0xff] }
 0x437   : > { %v3688_v20 = vpop.permute.xlu0 %3687  ;;  %v3874_v59 = vsel %vm370_vm0, %v9182_v7, %v3690_v30  ;;  %v12079_v7 = vld [vmem:[#allocation2 + $0xb0] sm:$0xff] }
 0x438   : > { %5454 = vrot.lane.b32.xlu1 %v5281_v33, %s9275_s20  ;;  %v3873_v17 = vsel %vm370_vm0, %v9183_v62, %v3688_v20  ;;  %v12083_v62 = vld [vmem:[#allocation2 + $0xa8] sm:$0xff]  ;;  %v5294_v47 = vsel %vm654_vm4, %v5292_v51, %v5293_v44 }
 0x439   : > { %5452 = vrot.lane.b32.xlu0 %v5279_v26, %s9275_s20  ;;  %v5297_v31 = vrot.slane %v12083_v62, 2 }
 0x43a   : > { %v3786_v46 = vpop.permute.xlu1 %3785 }
 0x43b   : > { %v3784_v9 = vpop.permute.xlu0 %3783  ;;  %v3906_v39 = vsel %vm959_vm8, %v3874_v59, %v3786_v46  ;;  %v5113_v59 = vld [vmem:[#allocation2 + $0xb8] sm:$0x3] }
 0x43c   : > { %v3905_v28 = vsel %vm959_vm8, %v3873_v17, %v3784_v9  ;;  %5362 = vrot.lane.b32.xlu1 %v5206_v16, %s9276_s21  ;;  %v5218_v9 = vrot.slane %v12079_v7, 1  ;;  %v5296_v16 = vsel %vm654_vm4, %v5293_v44, %v5295_v55 }
 0x43d   : > { %5360 = vrot.lane.b32.xlu0 %v5204_v22, %s9276_s21  ;;  %8821 = vmatprep.mubr.msk.f32.mxu1 %vm1509_vm9, %v3905_v28  ;;  %v5217_v28 = vrot.slane %v12083_v62, 1  ;;  %v5298_v22 = vrot.slane %v12079_v7, 2 }
 0x43e   : > { %8822 = vmatmul.mubr.msk.f32.gmra.mrb[6].mxu1 %vm1509_vm9, %v3906_v39  ;;  %v3694_v1 = vpop.permute.xlu1 %3693  ;;  %v5220_v39 = vrot.slane %v5113_v59, 1 }
 0x43f   : > { %v3692_v10 = vpop.permute.xlu0 %3691  ;;  %v3876_v2 = vsel %vm370_vm0, %v9184_v25, %v3694_v1  ;;  %v9189_v1 = vld [vmem:[#allocation2 + $0x90] sm:$0xff] }
 0x440   : > { %5458 = vrot.lane.b32.xlu1 %v5286_v27, %s9275_s20  ;;  %v3875_v15 = vsel %vm370_vm0, %v9185_v34, %v3692_v10  ;;  %v5221_v25 = vsel %vm573_vm5, %v5218_v9, %v5220_v39  ;;  %v12101_v34 = vld [vmem:[#allocation2 + $0xc8] sm:$0xff] }
 0x441   : > { %5456 = vrot.lane.b32.xlu0 %v5284_v63, %s9275_s20  ;;  %v5300_v63 = vrot.slane %v5113_v59, 2  ;;  %v5223_v5 = vrot.slane %v12101_v34, 1  ;;  %v5303_v19 = vrot.slane %v12101_v34, 2 }
 0x442   : > { %v3790_v35 = vpop.permute.xlu1 %3789 }
 0x443   : > { %v3788_v18 = vpop.permute.xlu0 %3787  ;;  %v3908_v3 = vsel %vm959_vm8, %v3876_v2, %v3790_v35  ;;  %v5219_v2 = vsel %vm573_vm5, %v5217_v28, %v5218_v9  ;;  %v12105_v35 = vld [vmem:[#allocation2 + $0xc0] sm:$0xff]  ;;  %v9192_v9 = vld [vmem:[#allocation2 + $0xc8] sm:$0xff] }
 0x444   : > { %v3907_v52 = vsel %vm959_vm8, %v3875_v15, %v3788_v18  ;;  %5366 = vrot.lane.b32.xlu1 %v5211_v36, %s9276_s21  ;;  %v5116_v15 = vld [vmem:[#allocation2 + $0xd0] sm:$0x3]  ;;  %v5299_v36 = vsel %vm654_vm4, %v5297_v31, %v5298_v22  ;;  %v5122_v31 = vld [vmem:[#allocation2 + $0x100] sm:$0x3] }
 0x445   : > { %5364 = vrot.lane.b32.xlu0 %v5209_v12, %s9276_s21  ;;  %8824 = vmatprep.mubr.msk.f32.mxu1 %vm1509_vm9, %v3907_v52  ;;  %v5301_v52 = vsel %vm654_vm4, %v5298_v22, %v5300_v63  ;;  %v5222_v12 = vrot.slane %v12105_v35, 1  ;;  %v5305_v44 = vrot.slane %v5116_v15, 2  ;;  %v12145_v63 = vld [vmem:[#allocation2 + $0xf8] sm:$0xff] }
 0x446   : > { %8825 = vmatmul.mubr.msk.f32.gmra.mrb[8].mxu1 %vm1509_vm9, %v3908_v3  ;;  %v3698_v40 = vpop.permute.xlu1 %3697  ;;  %v5225_v3 = vrot.slane %v5116_v15, 1  ;;  %v5235_v15 = vrot.slane %v5122_v31, 1 }
 0x447   : > { %v3696_v38 = vpop.permute.xlu0 %3695  ;;  %v3878_v8 = vsel %vm370_vm0, %v9186_v37, %v3698_v40  ;;  %v9190_v40 = vld [vmem:[#allocation2 + $0xb0] sm:$0xff] }
 0x448   : > { %5462 = vrot.lane.b32.xlu1 %v5291_v61, %s9275_s20  ;;  %v3877_v29 = vsel %vm370_vm0, %v9187_v49, %v3696_v38  ;;  %v5226_v11 = vsel %vm573_vm5, %v5223_v5, %v5225_v3  ;;  %v5224_v49 = vsel %vm573_vm5, %v5222_v12, %v5223_v5  ;;  %v5313_v3 = vrot.slane %v12145_v63, 2  ;;  %v9195_v12 = vld [vmem:[#allocation2 + $0xd8] sm:$0xff] }
 0x449   : > { %5460 = vrot.lane.b32.xlu0 %v5289_v41, %s9275_s20 }
 0x44a   : > { %v3794_v30 = vpop.permute.xlu1 %3793 }
 0x44b   : > { %v3792_v20 = vpop.permute.xlu0 %3791  ;;  %v3910_v33 = vsel %vm959_vm8, %v3878_v8, %v3794_v30  ;;  %v12123_v30 = vld [vmem:[#allocation2 + $0xe0] sm:$0xff] }
 0x44c   : > { %v3909_v26 = vsel %vm959_vm8, %v3877_v29, %v3792_v20  ;;  %5370 = vrot.lane.b32.xlu1 %v5216_v53, %s9276_s21  ;;  %v5302_v29 = vrot.slane %v12105_v35, 2  ;;  %v5119_v20 = vld [vmem:[#allocation2 + $0xe8] sm:$0x3]  ;;  %v12127_v53 = vld [vmem:[#allocation2 + $0xd8] sm:$0xff] }
 0x44d   : > { %5368 = vrot.lane.b32.xlu0 %v5214_v58, %s9276_s21  ;;  %8827 = vmatprep.mubr.msk.f32.mxu1 %vm1509_vm9, %v3909_v26  ;;  %v5228_v26 = vrot.slane %v12123_v30, 1  ;;  %v5306_v58 = vsel %vm654_vm4, %v5303_v19, %v5305_v44  ;;  %v5230_v59 = vrot.slane %v5119_v20, 1 }
 0x44e   : > { %8828 = vmatmul.mubr.msk.f32.gmra.mrb[10].mxu1 %vm1509_vm9, %v3910_v33  ;;  %v3702_v17 = vpop.permute.xlu1 %3701  ;;  %v5304_v51 = vsel %vm654_vm4, %v5302_v29, %v5303_v19 }
 0x44f   : > { %v3700_v46 = vpop.permute.xlu0 %3699  ;;  %v3880_v50 = vsel %vm370_vm0, %v9188_v0, %v3702_v17  ;;  %v5227_v17 = vrot.slane %v12127_v53, 1  ;;  %v5310_v0 = vrot.slane %v5119_v20, 2 }
 0x450   : > { %5466 = vrot.lane.b32.xlu1 %v5296_v16, %s9275_s20  ;;  %v3879_v10 = vsel %vm370_vm0, %v9189_v1, %v3700_v46  ;;  %v5308_v46 = vrot.slane %v12123_v30, 2 }
 0x451   : > { %5464 = vrot.lane.b32.xlu0 %v5294_v47, %s9275_s20  ;;  %v9193_v47 = vld [vmem:[#allocation2 + $0xc0] sm:$0xff] }
 0x452   : > { %v3798_v57 = vpop.permute.xlu1 %3797 }
 0x453   : > { %v3796_v27 = vpop.permute.xlu0 %3795  ;;  %v3912_v24 = vsel %vm959_vm8, %v3880_v50, %v3798_v57  ;;  %v5307_v50 = vrot.slane %v12127_v53, 2  ;;  %v5231_v57 = vsel %vm573_vm5, %v5228_v26, %v5230_v59 }
 0x454   : > { %v3911_v56 = vsel %vm959_vm8, %v3879_v10, %v3796_v27  ;;  %5374 = vrot.lane.b32.xlu1 %v5221_v25, %s9276_s21  ;;  %v5229_v27 = vsel %vm573_vm5, %v5227_v17, %v5228_v26  ;;  %v9196_v17 = vld [vmem:[#allocation2 + $0xf8] sm:$0xff] }
 0x455   : > { %5372 = vrot.lane.b32.xlu0 %v5219_v2, %s9276_s21  ;;  %8830 = vmatprep.mubr.msk.f32.mxu1 %vm1509_vm9, %v3911_v56  ;;  %v5233_v2 = vrot.slane %v12145_v63, 1 }
 0x456   : > { %8831 = vmatmul.mubr.msk.f32.gmra.mrb[12].mxu1 %vm1509_vm9, %v3912_v24  ;;  %v3706_v18 = vpop.permute.xlu1 %3705  ;;  %v12149_v24 = vld [vmem:[#allocation2 + $0xf0] sm:$0xff] }
 0x457   : > { %v3704_v4 = vpop.permute.xlu0 %3703  ;;  %v3882_v38 = vsel %vm370_vm0, %v9190_v40, %v3706_v18  ;;  %v5311_v18 = vsel %vm654_vm4, %v5308_v46, %v5310_v0  ;;  %v5232_v5 = vrot.slane %v12149_v24, 1  ;;  %v5312_v44 = vrot.slane %v12149_v24, 2 }
 0x458   : > { %5470 = vrot.lane.b32.xlu1 %v5301_v52, %s9275_s20  ;;  %v3881_v32 = vsel %vm370_vm0, %v9191_v54, %v3704_v4  ;;  %v5309_v4 = vsel %vm654_vm4, %v5307_v50, %v5308_v46  ;;  %v9194_v52 = vld [vmem:[#allocation2 + $0xe0] sm:$0xff]  ;;  %v5236_v54 = vsel %vm573_vm5, %v5233_v2, %v5235_v15 }
 0x459   : > { %5468 = vrot.lane.b32.xlu0 %v5299_v36, %s9275_s20  ;;  %v5314_v26 = vsel %vm654_vm4, %v5312_v44, %v5313_v3 }
 0x45a   : > { %v3802_v61 = vpop.permute.xlu1 %3801 }
 0x45b   : > { %v3800_v41 = vpop.permute.xlu0 %3799  ;;  %v3914_v37 = vsel %vm959_vm8, %v3882_v38, %v3802_v61 }
 0x45c   : > { %v3913_v8 = vsel %vm959_vm8, %v3881_v32, %v3800_v41  ;;  %5378 = vrot.lane.b32.xlu1 %v5226_v11, %s9276_s21  ;;  %v5315_v32 = vrot.slane %v5122_v31, 2  ;;  %v5234_v11 = vsel %vm573_vm5, %v5232_v5, %v5233_v2  ;;  %v12193_v31 = vld [vmem:[#allocation2 + $0x120] sm:$0xff] }
 0x45d   : > { %5376 = vrot.lane.b32.xlu0 %v5224_v49, %s9276_s21  ;;  %8833 = vmatprep.mubr.msk.f32.mxu1 %vm1509_vm9, %v3913_v8  ;;  %v5125_v8 = vld [vmem:[#allocation2 + $0x118] sm:$0x3]  ;;  %v12171_v49 = vld [vmem:[#allocation2 + $0x108] sm:$0xff]  ;;  %v5242_v5 = vrot.slane %v12193_v31, 1  ;;  %v5322_v44 = vrot.slane %v12193_v31, 2 }
 0x45e   : > { %8834 = vmatmul.mubr.msk.f32.gmra.mrb[14].mxu1 %vm1509_vm9, %v3914_v37  ;;  %v3710_v55 = vpop.permute.xlu1 %3709  ;;  %v12167_v37 = vld [vmem:[#allocation2 + $0x110] sm:$0xff] }
 0x45f   : > { %v3708_v33 = vpop.permute.xlu0 %3707  ;;  %v3884_v16 = vsel %vm370_vm0, %v9192_v9, %v3710_v55  ;;  %v5238_v55 = vrot.slane %v12167_v37, 1  ;;  %v5318_v59 = vrot.slane %v12167_v37, 2  ;;  %v9197_v9 = vld [vmem:[#allocation2 + $0xf0] sm:$0xff] }
 0x460   : > { %5474 = vrot.lane.b32.xlu1 %v5306_v58, %s9275_s20  ;;  %v3883_v39 = vsel %vm370_vm0, %v9193_v47, %v3708_v33  ;;  %v5316_v33 = vsel %vm654_vm4, %v5313_v3, %v5315_v32  ;;  %v5240_v58 = vrot.slane %v5125_v8, 1 }
 0x461   : > { %5472 = vrot.lane.b32.xlu0 %v5304_v51, %s9275_s20  ;;  %v5237_v51 = vrot.slane %v12171_v49, 1 }
 0x462   : > { %v3806_v28 = vpop.permute.xlu1 %3805 }
 0x463   : > { %v3804_v22 = vpop.permute.xlu0 %3803  ;;  %v3916_v1 = vsel %vm959_vm8, %v3884_v16, %v3806_v28  ;;  %v5320_v28 = vrot.slane %v5125_v8, 2  ;;  %v12211_v8 = vld [vmem:[#allocation2 + $0x140] sm:$0xff] }
 0x464   : > { %v3915_v10 = vsel %vm959_vm8, %v3883_v39, %v3804_v22  ;;  %5382 = vrot.lane.b32.xlu1 %v5231_v57, %s9276_s21  ;;  %v5317_v22 = vrot.slane %v12171_v49, 2  ;;  %v12189_v57 = vld [vmem:[#allocation2 + $0x128] sm:$0xff] }
 0x465   : > { %5380 = vrot.lane.b32.xlu0 %v5229_v27, %s9276_s21  ;;  %8836 = vmatprep.mubr.msk.f32.mxu1 %vm1509_vm9, %v3915_v10  ;;  %v5239_v10 = vsel %vm573_vm5, %v5237_v51, %v5238_v55  ;;  %v5128_v27 = vld [vmem:[#allocation2 + $0x130] sm:$0x3]  ;;  %v5243_v2 = vrot.slane %v12189_v57, 1  ;;  %v5323_v3 = vrot.slane %v12189_v57, 2 }
 0x466   : > { %8837 = vmatmul.mubr.msk.f32.gmra.mrb[16].mxu1 %vm1509_vm9, %v3916_v1  ;;  %v3714_v56 = vpop.permute.xlu1 %3713  ;;  %v5241_v1 = vsel %vm573_vm5, %v5238_v55, %v5240_v58  ;;  %v5245_v15 = vrot.slane %v5128_v27, 1  ;;  %v5325_v32 = vrot.slane %v5128_v27, 2 }
 0x467   : > { %v3712_v25 = vpop.permute.xlu0 %3711  ;;  %v3886_v36 = vsel %vm370_vm0, %v9194_v52, %v3714_v56  ;;  %v9198_v52 = vld [vmem:[#allocation2 + $0x110] sm:$0xff]  ;;  %v5324_v51 = vsel %vm654_vm4, %v5322_v44, %v5323_v3 }
 0x468   : > { %5478 = vrot.lane.b32.xlu1 %v5311_v18, %s9275_s20  ;;  %v3885_v19 = vsel %vm370_vm0, %v9195_v12, %v3712_v25  ;;  %v5321_v18 = vsel %vm654_vm4, %v5318_v59, %v5320_v28  ;;  %v9199_v12 = vld [vmem:[#allocation2 + $0x108] sm:$0xff]  ;;  %v5326_v58 = vsel %vm654_vm4, %v5323_v3, %v5325_v32 }
 0x469   : > { %5476 = vrot.lane.b32.xlu0 %v5309_v4, %s9275_s20  ;;  %v5319_v4 = vsel %vm654_vm4, %v5317_v22, %v5318_v59 }
 0x46a   : > { %v3810_v40 = vpop.permute.xlu1 %3809 }
 0x46b   : > { %v3808_v38 = vpop.permute.xlu0 %3807  ;;  %v3918_v61 = vsel %vm959_vm8, %v3886_v36, %v3810_v40 }
 0x46c   : > { %v3917_v41 = vsel %vm959_vm8, %v3885_v19, %v3808_v38  ;;  %5386 = vrot.lane.b32.xlu1 %v5236_v54, %s9276_s21  ;;  %v5246_v54 = vsel %vm573_vm5, %v5243_v2, %v5245_v15  ;;  %v12237_v15 = vld [vmem:[#allocation2 + $0x150] sm:$0xff] }
 0x46d   : > { %5384 = vrot.lane.b32.xlu0 %v5234_v11, %s9276_s21  ;;  %8839 = vmatprep.mubr.msk.f32.mxu1 %vm1509_vm9, %v3917_v41  ;;  %v5244_v11 = vsel %vm573_vm5, %v5242_v5, %v5243_v2  ;;  %v5134_v2 = vld [vmem:[#allocation2 + $0x160] sm:$0x3] }
 0x46e   : > { %8840 = vmatmul.mubr.msk.f32.gmra.mrb[18].mxu1 %vm1509_vm9, %v3918_v61  ;;  %v3718_v29 = vpop.permute.xlu1 %3717  ;;  %v5255_v3 = vrot.slane %v5134_v2, 1  ;;  %v5335_v44 = vrot.slane %v5134_v2, 2 }
 0x46f   : > { %v3716_v20 = vpop.permute.xlu0 %3715  ;;  %v3888_v46 = vsel %vm370_vm0, %v9196_v17, %v3718_v29  ;;  %v5131_v29 = vld [vmem:[#allocation2 + $0x148] sm:$0x3] }
 0x470   : > { %5482 = vrot.lane.b32.xlu1 %v5316_v33, %s9275_s20  ;;  %v3887_v16 = vsel %vm370_vm0, %v9197_v9, %v3716_v20  ;;  %v12215_v20 = vld [vmem:[#allocation2 + $0x138] sm:$0xff]  ;;  %v5250_v59 = vrot.slane %v5131_v29, 1  ;;  %v9200_v9 = vld [vmem:[#allocation2 + $0x128] sm:$0xff] }
 0x471   : > { %5480 = vrot.lane.b32.xlu0 %v5314_v26, %s9275_s20  ;;  %v5248_v26 = vrot.slane %v12211_v8, 1  ;;  %v5247_v17 = vrot.slane %v12215_v20, 1 }
 0x472   : > { %v3814_v47 = vpop.permute.xlu1 %3813 }
 0x473   : > { %v3812_v39 = vpop.permute.xlu0 %3811  ;;  %v3920_v0 = vsel %vm959_vm8, %v3888_v46, %v3814_v47  ;;  %v5328_v46 = vrot.slane %v12211_v8, 2  ;;  %v9201_v47 = vld [vmem:[#allocation2 + $0x120] sm:$0xff]  ;;  %v5251_v27 = vsel %vm573_vm5, %v5248_v26, %v5250_v59  ;;  %v12259_v59 = vld [vmem:[#allocation2 + $0x168] sm:$0xff] }
 0x474   : > { %v3919_v50 = vsel %vm959_vm8, %v3887_v16, %v3812_v39  ;;  %5390 = vrot.lane.b32.xlu1 %v5241_v1, %s9276_s21 }
 0x475   : > { %5388 = vrot.lane.b32.xlu0 %v5239_v10, %s9276_s21  ;;  %8842 = vmatprep.mubr.msk.f32.mxu1 %vm1509_vm9, %v3919_v50  ;;  %v5327_v50 = vrot.slane %v12215_v20, 2 }
 0x476   : > { %8843 = vmatmul.mubr.msk.f32.gmra.mrb[20].mxu1 %vm1509_vm9, %v3920_v0  ;;  %v3722_v56 = vpop.permute.xlu1 %3721  ;;  %v5330_v0 = vrot.slane %v5131_v29, 2 }
 0x477   : > { %v3720_v25 = vpop.permute.xlu0 %3719  ;;  %v3890_v36 = vsel %vm370_vm0, %v9198_v52, %v3722_v56  ;;  %v5249_v56 = vsel %vm573_vm5, %v5247_v17, %v5248_v26  ;;  %v5332_v26 = vrot.slane %v12237_v15, 2 }
 0x478   : > { %5486 = vrot.lane.b32.xlu1 %v5321_v18, %s9275_s20  ;;  %v3889_v19 = vsel %vm370_vm0, %v9199_v12, %v3720_v25  ;;  %v12233_v25 = vld [vmem:[#allocation2 + $0x158] sm:$0xff]  ;;  %v5331_v52 = vsel %vm654_vm4, %v5328_v46, %v5330_v0  ;;  %v5252_v12 = vrot.slane %v12237_v15, 1 }
 0x479   : > { %5484 = vrot.lane.b32.xlu0 %v5319_v4, %s9275_s20  ;;  %v5253_v5 = vrot.slane %v12233_v25, 1  ;;  %v9204_v0 = vld [vmem:[#allocation2 + $0x158] sm:$0xff] }
 0x47a   : > { %v3818_v40 = vpop.permute.xlu1 %3817 }
 0x47b   : > { %v3816_v38 = vpop.permute.xlu0 %3815  ;;  %v3922_v61 = vsel %vm959_vm8, %v3890_v36, %v3818_v40  ;;  %v5329_v36 = vsel %vm654_vm4, %v5327_v50, %v5328_v46  ;;  %v9202_v40 = vld [vmem:[#allocation2 + $0x140] sm:$0xff] }
 0x47c   : > { %v3921_v41 = vsel %vm959_vm8, %v3889_v19, %v3816_v38  ;;  %5394 = vrot.lane.b32.xlu1 %v5246_v54, %s9276_s21  ;;  %v5333_v19 = vrot.slane %v12233_v25, 2  ;;  %v9203_v54 = vld [vmem:[#allocation2 + $0x138] sm:$0xff] }
 0x47d   : > { %5392 = vrot.lane.b32.xlu0 %v5244_v11, %s9276_s21  ;;  %8845 = vmatprep.mubr.msk.f32.mxu1 %vm1509_vm9, %v3921_v41  ;;  %v5256_v11 = vsel %vm573_vm5, %v5253_v5, %v5255_v3 }
 0x47e   : > { %8846 = vmatmul.mubr.msk.f32.gmra.mrb[22].mxu1 %vm1509_vm9, %v3922_v61  ;;  %v3726_v55 = vpop.permute.xlu1 %3725 }
 0x47f   : > { %v3724_v33 = vpop.permute.xlu0 %3723  ;;  %v3892_v16 = vsel %vm370_vm0, %v9200_v9, %v3726_v55 }
 0x480   : > { %5490 = vrot.lane.b32.xlu1 %v5326_v58, %s9275_s20  ;;  %v3891_v39 = vsel %vm370_vm0, %v9201_v47, %v3724_v33  ;;  %v5254_v33 = vsel %vm573_vm5, %v5252_v12, %v5253_v5  ;;  %v12255_v58 = vld [vmem:[#allocation2 + $0x170] sm:$0xff]  ;;  %v5334_v47 = vsel %vm654_vm4, %v5332_v26, %v5333_v19 }
 0x481   : > { %5488 = vrot.lane.b32.xlu0 %v5324_v51, %s9275_s20  ;;  %v5137_v51 = vld [vmem:[#allocation2 + $0x178] sm:$0x3]  ;;  %v5258_v9 = vrot.slane %v12255_v58, 1  ;;  %v5140_v12 = vld [vmem:[#allocation2 + $0x190] sm:$0x3] }
 0x482   : > { %v3822_v28 = vpop.permute.xlu1 %3821  ;;  %v5340_v2 = vrot.slane %v5137_v51, 2  ;;  %v9206_v26 = vld [vmem:[#allocation2 + $0x170] sm:$0xff] }
 0x483   : > { %v3820_v22 = vpop.permute.xlu0 %3819  ;;  %v3924_v1 = vsel %vm959_vm8, %v3892_v16, %v3822_v28  ;;  %v5336_v16 = vsel %vm654_vm4, %v5333_v19, %v5335_v44  ;;  %v5257_v28 = vrot.slane %v12259_v59, 1  ;;  %v12281_v19 = vld [vmem:[#allocation2 + $0x180] sm:$0xff] }
 0x484   : > { %v3923_v10 = vsel %vm959_vm8, %v3891_v39, %v3820_v22  ;;  %5398 = vrot.lane.b32.xlu1 %v5251_v27, %s9276_s21  ;;  %v5260_v39 = vrot.slane %v5137_v51, 1  ;;  %v5338_v22 = vrot.slane %v12255_v58, 2  ;;  %v14516_v44 = vld [vmem:[#allocation7_spill] sm:$0xff] }
 0x485   : > { %5396 = vrot.lane.b32.xlu0 %v5249_v56, %s9276_s21  ;;  %8848 = vmatprep.mubr.msk.f32.mxu1 %vm1509_vm9, %v3923_v10  ;;  %9140 = vrsqrt.f32 %v14516_v44  ;;  %vm3311_vm11 = vcmp.eq.f32.partialorder %v14516_v44, inf  ;;  %vm3313_vm12 = vcmp.eq.f32.partialorder %v14516_v44, 0.0 }
 0x486   : > { %8849 = vmatmul.mubr.msk.f32.gmra.mrb[24].mxu1 %vm1509_vm9, %v3924_v1  ;;  %v3730_v18 = vpop.permute.xlu1 %3729  ;;  %v9205_v1 = vld [vmem:[#allocation2 + $0x150] sm:$0xff]  ;;  %v5261_v3 = vsel %vm573_vm5, %v5258_v9, %v5260_v39  ;;  %v5345_v39 = vrot.slane %v5140_v12, 2 }
 0x487   : > { %v3728_v4 = vpop.permute.xlu0 %3727  ;;  %v3894_v38 = vsel %vm370_vm0, %v9202_v40, %v3730_v18  ;;  %v5337_v18 = vrot.slane %v12259_v59, 2 }
 0x488   : > { %5494 = vrot.lane.b32.xlu1 %v5331_v52, %s9275_s20  ;;  %v3893_v32 = vsel %vm370_vm0, %v9203_v54, %v3728_v4  ;;  %v5259_v52 = vsel %vm573_vm5, %v5257_v28, %v5258_v9  ;;  %v12298_v28 = vld [vmem:[#allocation2 + $0x198] sm:$0xff] }
 0x489   : > { %5492 = vrot.lane.b32.xlu0 %v5329_v36, %s9275_s20  ;;  %v12277_v36 = vld [vmem:[#allocation2 + $0x188] sm:$0xff] }
 0x48a   : > { %v3826_v61 = vpop.permute.xlu1 %3825  ;;  %v5263_v54 = vrot.slane %v12277_v36, 1 }
 0x48b   : > { %v3824_v41 = vpop.permute.xlu0 %3823  ;;  %v3926_v29 = vsel %vm959_vm8, %v3894_v38, %v3826_v61  ;;  %v5341_v61 = vsel %vm654_vm4, %v5338_v22, %v5340_v2 }
 0x48c   : > { %v3925_v55 = vsel %vm959_vm8, %v3893_v32, %v3824_v41  ;;  %5402 = vrot.lane.b32.xlu1 %v5256_v11, %s9276_s21  ;;  %v5265_v32 = vrot.slane %v5140_v12, 1  ;;  %v5339_v41 = vsel %vm654_vm4, %v5337_v18, %v5338_v22  ;;  %v5262_v11 = vrot.slane %v12281_v19, 1 }
 0x48d   : > { %5400 = vrot.lane.b32.xlu0 %v5254_v33, %s9276_s21  ;;  %8851 = vmatprep.mubr.msk.f32.mxu1 %vm1509_vm9, %v3925_v55  ;;  %v12293_v55 = vld [vmem:[#allocation2 + $0x1a0] sm:$0xff]  ;;  %v5143_v33 = vld [vmem:[#allocation2 + $0x1a8] sm:$0x3] }
 0x48e   : > { %8852 = vmatmul.mubr.msk.f32.gmra.mrb[26].mxu1 %vm1509_vm9, %v3926_v29  ;;  %v3734_v17 = vpop.permute.xlu1 %3733  ;;  %v5343_v29 = vrot.slane %v12277_v36, 2 }
 0x48f   : > { %v3732_v46 = vpop.permute.xlu0 %3731  ;;  %v3896_v50 = vsel %vm370_vm0, %v9204_v0, %v3734_v17  ;;  %v9207_v17 = vld [vmem:[#allocation2 + $0x168] sm:$0xff]  ;;  %v9141_v12 = vpop.eup %9140 }
 0x490   : > { %5498 = vrot.lane.b32.xlu1 %v5336_v16, %s9275_s20  ;;  %v3895_v10 = vsel %vm370_vm0, %v9205_v1, %v3732_v46  ;;  %v5342_v1 = vrot.slane %v12281_v19, 2 }
 0x491   : > { %5496 = vrot.lane.b32.xlu0 %v5334_v47, %s9275_s20  ;;  %v5266_v47 = vsel %vm573_vm5, %v5263_v54, %v5265_v32  ;;  %v5347_v32 = vrot.slane %v12298_v28, 2 }
 0x492   : > { %v3830_v27 = vpop.permute.xlu1 %3829 }
 0x493   : > { %v3828_v56 = vpop.permute.xlu0 %3827  ;;  %v3928_v4 = vsel %vm959_vm8, %v3896_v50, %v3830_v27  ;;  %v5264_v50 = vsel %vm573_vm5, %v5262_v11, %v5263_v54  ;;  %v5270_v27 = vrot.slane %v5143_v33, 1  ;;  %v5350_v54 = vrot.slane %v5143_v33, 2 }
 0x494   : > { %v3927_v5 = vsel %vm959_vm8, %v3895_v10, %v3828_v56  ;;  %5406 = vrot.lane.b32.xlu1 %v5261_v3, %s9276_s21  ;;  %v5268_v10 = vrot.slane %v12293_v55, 1  ;;  %v5267_v56 = vrot.slane %v12298_v28, 1  ;;  %v7907_v3 = vld [vmem:[%s14122_s5] sm:$0xff]  ;;  %v3310_v33 = vmul.f32 %v9141_v12, %v14516_v44 }
 0x495   : > { %5404 = vrot.lane.b32.xlu0 %v5259_v52, %s9276_s21  ;;  %8854 = vmatprep.mubr.msk.f32.mxu1 %vm1509_vm9, %v3927_v5  ;;  %v5344_v5 = vsel %vm654_vm4, %v5342_v1, %v5343_v29 }
 0x496   : > { %8855 = vmatmul.mubr.msk.f32.gmra.mrb[28].mxu1 %vm1509_vm9, %v3928_v4  ;;  %v3738_v40 = vpop.permute.xlu1 %3737  ;;  %v5346_v4 = vsel %vm654_vm4, %v5343_v29, %v5345_v39  ;;  %v5271_v52 = vsel %vm573_vm5, %v5268_v10, %v5270_v27  ;;  %8913 = vmatpush3.msra.mxu0 %v7907_v3 }
 0x497   : > { %v3736_v38 = vpop.permute.xlu0 %3735  ;;  %v3898_v51 = vsel %vm370_vm0, %v9206_v26, %v3738_v40  ;;  %v5269_v40 = vsel %vm573_vm5, %v5267_v56, %v5268_v10 }
 0x498   : > { %5502 = vrot.lane.b32.xlu1 %v5341_v61, %s9275_s20  ;;  %v3897_v46 = vsel %vm370_vm0, %v9207_v17, %v3736_v38  ;;  %v5348_v38 = vrot.slane %v12293_v55, 2  ;;  %v14517_v61 = vmov 0.0  }
 0x499   : > { %5500 = vrot.lane.b32.xlu0 %v5339_v41, %s9275_s20  ;;  %8914 = vmatprep.mubr.msk.f32.mxu0 %vm9277_vm10, %v14517_v61 }
 0x49a   : > { %v3834_v9 = vpop.permute.xlu1 %3833 }
 0x49b   : > { %v3832_v16 = vpop.permute.xlu0 %3831  ;;  %v3930_v22 = vsel %vm959_vm8, %v3898_v51, %v3834_v9 }
 0x49c   : > { %v3929_v0 = vsel %vm959_vm8, %v3897_v46, %v3832_v16  ;;  %5410 = vrot.lane.b32.xlu1 %v5266_v47, %s9276_s21  ;;  %v5351_v46 = vsel %vm654_vm4, %v5348_v38, %v5350_v54  ;;  %v3312_v16 = vsel %vm3311_vm11, %v14516_v44, %v3310_v33  ;;  %v3314_v47 = vand.u32 2147483648, %v14516_v44 }
 0x49d   : > { %5408 = vrot.lane.b32.xlu0 %v5264_v50, %s9276_s21  ;;  %8857 = vmatprep.mubr.msk.f32.mxu1 %vm1509_vm9, %v3929_v0 }
 0x49e   : > { %8858 = vmatmul.mubr.msk.f32.gmra.mrb[30].mxu1 %vm1509_vm9, %v3930_v22  ;;  %v5355_v2 = vpop.permute.xlu1 %5354  ;;  %v3315_v27 = vsel %vm3313_vm12, %v3314_v47, %v3312_v16 }
 0x49f   : > { %v5353_v18 = vpop.permute.xlu0 %5352  ;;  %v5545_v41 = vsel %vm370_vm0, %v11955_v14, %v5355_v2  ;;  %v5349_v14 = vsel %vm654_vm4, %v5347_v32, %v5348_v38  ;;  %vm7162_vm4 = vcmask 1047559  }
 0x4a0   : > { %5506 = vrot.lane.b32.xlu1 %v5346_v4, %s9275_s20  ;;  %v5544_v11 = vsel %vm370_vm0, %v11962_v45, %v5353_v18 }
 0x4a1   : > { %5504 = vrot.lane.b32.xlu0 %v5344_v5, %s9275_s20 }
 0x4a2   : > { %v5451_v29 = vpop.permute.xlu1 %5450 }
 0x4a3   : > { %v5449_v26 = vpop.permute.xlu0 %5448  ;;  %v5577_v51 = vsel %vm959_vm8, %v5545_v41, %v5451_v29 }
 0x4a4   : > { %v5576_v17 = vsel %vm959_vm8, %v5544_v11, %v5449_v26  ;;  %5414 = vrot.lane.b32.xlu1 %v5271_v52, %s9276_s21 }
 0x4a5   : > { %5412 = vrot.lane.b32.xlu0 %v5269_v40, %s9276_s21  ;;  %8864 = vmatprep.mubr.msk.f32.mxu1 %vm1509_vm9, %v5576_v17 }
 0x4a6   : > { %8865 = vmatmul.mubr.msk.f32.vlgmr.msra.gmra.mrb[0].mxu1 %vm1509_vm9, %v5577_v51  ;;  %v5359_v45 = vpop.permute.xlu1 %5358 }
 0x4a7   : > { %v5357_v9 = vpop.permute.xlu0 %5356  ;;  %v5547_v39 = vsel %vm370_vm0, %v11989_v23, %v5359_v45 }
 0x4a8   : > { %5510 = vrot.lane.b32.xlu1 %v5351_v46, %s9275_s20  ;;  %v5546_v22 = vsel %vm370_vm0, %v11995_v13, %v5357_v9 }
 0x4a9   : > { %5508 = vrot.lane.b32.xlu0 %v5349_v14, %s9275_s20 }
 0x4aa   : > { %v5455_v0 = vpop.permute.xlu1 %5454 }
 0x4ab   : > { %v5453_v50 = vpop.permute.xlu0 %5452  ;;  %v5579_v1 = vsel %vm959_vm8, %v5547_v39, %v5455_v0 }
 0x4ac   : > { %v5578_v10 = vsel %vm959_vm8, %v5546_v22, %v5453_v50  ;;  %3317 = vrot.lane.b32.xlu1 %v3315_v27, %s9276_s21 }
 0x4ad   : > { %8867 = vmatprep.mubr.msk.f32.mxu1 %vm1509_vm9, %v5578_v10 }
 0x4ae   : > { %8868 = vmatmul.mubr.msk.f32.gmra.mrb[2].mxu1 %vm1509_vm9, %v5579_v1  ;;  %v5363_v56 = vpop.permute.xlu1 %5362 }
 0x4af   : > { %v5361_v23 = vpop.permute.xlu0 %5360  ;;  %v5549_v13 = vsel %vm370_vm0, %v12013_v42, %v5363_v56 }
 0x4b0   : > { %v5548_v2 = vsel %vm370_vm0, %v12017_v60, %v5361_v23 }
 0x4b2   : > { %v5459_v44 = vpop.permute.xlu1 %5458 }
 0x4b3   : > { %v5457_v18 = vpop.permute.xlu0 %5456  ;;  %v5581_v4 = vsel %vm959_vm8, %v5549_v13, %v5459_v44 }
 0x4b4   : > { %v5580_v5 = vsel %vm959_vm8, %v5548_v2, %v5457_v18 }
 0x4b5   : > { %8870 = vmatprep.mubr.msk.f32.mxu1 %vm1509_vm9, %v5580_v5 }
 0x4b6   : > { %8871 = vmatmul.mubr.msk.f32.gmra.mrb[4].mxu1 %vm1509_vm9, %v5581_v4  ;;  %v5367_v3 = vpop.permute.xlu1 %5366 }
 0x4b7   : > { %v5365_v52 = vpop.permute.xlu0 %5364  ;;  %v5551_v12 = vsel %vm370_vm0, %v12035_v48, %v5367_v3 }
 0x4b8   : > { %v5550_v42 = vsel %vm370_vm0, %v12039_v6, %v5365_v52 }
 0x4ba   : > { %v5463_v40 = vpop.permute.xlu1 %5462 }
 0x4bb   : > { %v5461_v60 = vpop.permute.xlu0 %5460  ;;  %v5583_v38 = vsel %vm959_vm8, %v5551_v12, %v5463_v40 }
 0x4bc   : > { %v5582_v54 = vsel %vm959_vm8, %v5550_v42, %v5461_v60 }
 0x4bd   : > { %8873 = vmatprep.mubr.msk.f32.mxu1 %vm1509_vm9, %v5582_v54 }
 0x4be   : > { %8874 = vmatmul.mubr.msk.f32.gmra.mrb[6].mxu1 %vm1509_vm9, %v5583_v38  ;;  %v5371_v32 = vpop.permute.xlu1 %5370 }
 0x4bf   : > { %v5369_v41 = vpop.permute.xlu0 %5368  ;;  %v5553_v11 = vsel %vm370_vm0, %v12057_v21, %v5371_v32 }
 0x4c0   : > { %v5552_v48 = vsel %vm370_vm0, %v12061_v43, %v5369_v41 }
 0x4c2   : > { %v5467_v29 = vpop.permute.xlu1 %5466 }
 0x4c3   : > { %v5465_v6 = vpop.permute.xlu0 %5464  ;;  %v5585_v26 = vsel %vm959_vm8, %v5553_v11, %v5467_v29 }
 0x4c4   : > { %v5584_v51 = vsel %vm959_vm8, %v5552_v48, %v5465_v6 }
 0x4c5   : > { %8876 = vmatprep.mubr.msk.f32.mxu1 %vm1509_vm9, %v5584_v51 }
 0x4c6   : > { %8877 = vmatmul.mubr.msk.f32.gmra.mrb[8].mxu1 %vm1509_vm9, %v5585_v26  ;;  %v5375_v17 = vpop.permute.xlu1 %5374 }
 0x4c7   : > { %v5373_v33 = vpop.permute.xlu0 %5372  ;;  %v5555_v46 = vsel %vm370_vm0, %v12079_v7, %v5375_v17 }
 0x4c8   : > { %v5554_v21 = vsel %vm370_vm0, %v12083_v62, %v5373_v33 }
 0x4ca   : > { %v5471_v14 = vpop.permute.xlu1 %5470 }
 0x4cb   : > { %v5469_v43 = vpop.permute.xlu0 %5468  ;;  %v5587_v45 = vsel %vm959_vm8, %v5555_v46, %v5471_v14 }
 0x4cc   : > { %v5586_v9 = vsel %vm959_vm8, %v5554_v21, %v5469_v43 }
 0x4cd   : > { %8879 = vmatprep.mubr.msk.f32.mxu1 %vm1509_vm9, %v5586_v9 }
 0x4ce   : > { %8880 = vmatmul.mubr.msk.f32.gmra.mrb[10].mxu1 %vm1509_vm9, %v5587_v45  ;;  %v5379_v16 = vpop.permute.xlu1 %5378 }
 0x4cf   : > { %v5377_v47 = vpop.permute.xlu0 %5376  ;;  %v5557_v39 = vsel %vm370_vm0, %v12101_v34, %v5379_v16 }
 0x4d0   : > { %v5556_v7 = vsel %vm370_vm0, %v12105_v35, %v5377_v47 }
 0x4d2   : > { %v5475_v22 = vpop.permute.xlu1 %5474 }
 0x4d3   : > { %v5473_v62 = vpop.permute.xlu0 %5472  ;;  %v5589_v0 = vsel %vm959_vm8, %v5557_v39, %v5475_v22 }
 0x4d4   : > { %v5588_v50 = vsel %vm959_vm8, %v5556_v7, %v5473_v62 }
 0x4d5   : > { %8882 = vmatprep.mubr.msk.f32.mxu1 %vm1509_vm9, %v5588_v50 }
 0x4d6   : > { %8883 = vmatmul.mubr.msk.f32.gmra.mrb[12].mxu1 %vm1509_vm9, %v5589_v0  ;;  %v5383_v1 = vpop.permute.xlu1 %5382 }
 0x4d7   : > { %v5381_v10 = vpop.permute.xlu0 %5380  ;;  %v5559_v27 = vsel %vm370_vm0, %v12123_v30, %v5383_v1 }
 0x4d8   : > { %v5558_v34 = vsel %vm370_vm0, %v12127_v53, %v5381_v10 }
 0x4da   : > { %v5479_v56 = vpop.permute.xlu1 %5478 }
 0x4db   : > { %v5477_v35 = vpop.permute.xlu0 %5476  ;;  %v5591_v23 = vsel %vm959_vm8, %v5559_v27, %v5479_v56 }
 0x4dc   : > { %v5590_v13 = vsel %vm959_vm8, %v5558_v34, %v5477_v35 }
 0x4dd   : > { %8885 = vmatprep.mubr.msk.f32.mxu1 %vm1509_vm9, %v5590_v13 }
 0x4de   : > { %8886 = vmatmul.mubr.msk.f32.gmra.mrb[14].mxu1 %vm1509_vm9, %v5591_v23  ;;  %v5387_v2 = vpop.permute.xlu1 %5386 }
 0x4df   : > { %v5385_v44 = vpop.permute.xlu0 %5384  ;;  %v5561_v18 = vsel %vm370_vm0, %v12145_v63, %v5387_v2 }
 0x4e0   : > { %v5560_v30 = vsel %vm370_vm0, %v12149_v24, %v5385_v44 }
 0x4e2   : > { %v5483_v4 = vpop.permute.xlu1 %5482 }
 0x4e3   : > { %v5481_v53 = vpop.permute.xlu0 %5480  ;;  %v5593_v5 = vsel %vm959_vm8, %v5561_v18, %v5483_v4  ;;  %v14518_v4 = vld [vmem:[#allocation12_spill] sm:$0xff] }
 0x4e4   : > { %v5592_v3 = vsel %vm959_vm8, %v5560_v30, %v5481_v53 }
 0x4e5   : > { %8888 = vmatprep.mubr.msk.f32.mxu1 %vm1509_vm9, %v5592_v3 }
 0x4e6   : > { %8889 = vmatmul.mubr.msk.f32.gmra.mrb[16].mxu1 %vm1509_vm9, %v5593_v5  ;;  %v5391_v52 = vpop.permute.xlu1 %5390  ;;  %v6035_v5 = vlaneseq }
 0x4e7   : > { %v5389_v12 = vpop.permute.xlu0 %5388  ;;  %v5563_v42 = vsel %vm370_vm0, %v12167_v37, %v5391_v52 }
 0x4e8   : > { %v5562_v63 = vsel %vm370_vm0, %v12171_v49, %v5389_v12 }
 0x4ea   : > { %v5487_v40 = vpop.permute.xlu1 %5486 }
 0x4eb   : > { %v5485_v24 = vpop.permute.xlu0 %5484  ;;  %v5595_v60 = vsel %vm959_vm8, %v5563_v42, %v5487_v40  ;;  %v12468_v42 = vshrl.u32 %v6035_v5, 7 }
 0x4ec   : > { %v5594_v38 = vsel %vm959_vm8, %v5562_v63, %v5485_v24 }
 0x4ed   : > { %8891 = vmatprep.mubr.msk.f32.mxu1 %vm1509_vm9, %v5594_v38  ;;  %14519 = vst [vmem:[#allocation17_spill] sm:$0xff] %v12468_v42 }
 0x4ee   : > { %8892 = vmatmul.mubr.msk.f32.gmra.mrb[18].mxu1 %vm1509_vm9, %v5595_v60  ;;  %v5395_v54 = vpop.permute.xlu1 %5394 }
 0x4ef   : > { %v5393_v32 = vpop.permute.xlu0 %5392  ;;  %v5565_v41 = vsel %vm370_vm0, %v12189_v57, %v5395_v54 }
 0x4f0   : > { %v5564_v37 = vsel %vm370_vm0, %v12193_v31, %v5393_v32 }
 0x4f2   : > { %v5491_v11 = vpop.permute.xlu1 %5490 }
 0x4f3   : > { %v5489_v49 = vpop.permute.xlu0 %5488  ;;  %v5597_v48 = vsel %vm959_vm8, %v5565_v41, %v5491_v11 }
 0x4f4   : > { %v5596_v29 = vsel %vm959_vm8, %v5564_v37, %v5489_v49 }
 0x4f5   : > { %8894 = vmatprep.mubr.msk.f32.mxu1 %vm1509_vm9, %v5596_v29 }
 0x4f6   : > { %8895 = vmatmul.mubr.msk.f32.gmra.mrb[20].mxu1 %vm1509_vm9, %v5597_v48  ;;  %v5399_v6 = vpop.permute.xlu1 %5398 }
 0x4f7   : > { %v5397_v26 = vpop.permute.xlu0 %5396  ;;  %v5567_v51 = vsel %vm370_vm0, %v12211_v8, %v5399_v6 }
 0x4f8   : > { %v5566_v57 = vsel %vm370_vm0, %v12215_v20, %v5397_v26 }
 0x4fa   : > { %v5495_v17 = vpop.permute.xlu1 %5494 }
 0x4fb   : > { %v5493_v31 = vpop.permute.xlu0 %5492  ;;  %v5599_v33 = vsel %vm959_vm8, %v5567_v51, %v5495_v17 }
 0x4fc   : > { %v5598_v46 = vsel %vm959_vm8, %v5566_v57, %v5493_v31 }
 0x4fd   : > { %8897 = vmatprep.mubr.msk.f32.mxu1 %vm1509_vm9, %v5598_v46 }
 0x4fe   : > { %8898 = vmatmul.mubr.msk.f32.gmra.mrb[22].mxu1 %vm1509_vm9, %v5599_v33  ;;  %v5403_v21 = vpop.permute.xlu1 %5402 }
 0x4ff   : > { %v5401_v14 = vpop.permute.xlu0 %5400  ;;  %v5569_v43 = vsel %vm370_vm0, %v12233_v25, %v5403_v21 }
 0x500   : > { %v5568_v8 = vsel %vm370_vm0, %v12237_v15, %v5401_v14 }
 0x502   : > { %v5499_v45 = vpop.permute.xlu1 %5498 }
 0x503   : > { %v5497_v20 = vpop.permute.xlu0 %5496  ;;  %v5601_v9 = vsel %vm959_vm8, %v5569_v43, %v5499_v45 }
 0x504   : > { %v5600_v16 = vsel %vm959_vm8, %v5568_v8, %v5497_v20 }
 0x505   : > { %8900 = vmatprep.mubr.msk.f32.mxu1 %vm1509_vm9, %v5600_v16 }
 0x506   : > { %8901 = vmatmul.mubr.msk.f32.gmra.mrb[24].mxu1 %vm1509_vm9, %v5601_v9  ;;  %v5407_v47 = vpop.permute.xlu1 %5406 }
 0x507   : > { %v5405_v39 = vpop.permute.xlu0 %5404  ;;  %v5571_v7 = vsel %vm370_vm0, %v12255_v58, %v5407_v47 }
 0x508   : > { %v5570_v25 = vsel %vm370_vm0, %v12259_v59, %v5405_v39 }
 0x50a   : > { %v5503_v22 = vpop.permute.xlu1 %5502 }
 0x50b   : > { %v5501_v15 = vpop.permute.xlu0 %5500  ;;  %v5603_v62 = vsel %vm959_vm8, %v5571_v7, %v5503_v22 }
 0x50c   : > { %v5602_v0 = vsel %vm959_vm8, %v5570_v25, %v5501_v15 }
 0x50d   : > { %8903 = vmatprep.mubr.msk.f32.mxu1 %vm1509_vm9, %v5602_v0 }
 0x50e   : > { %8904 = vmatmul.mubr.msk.f32.gmra.mrb[26].mxu1 %vm1509_vm9, %v5603_v62  ;;  %v5411_v50 = vpop.permute.xlu1 %5410 }
 0x50f   : > { %v5409_v1 = vpop.permute.xlu0 %5408  ;;  %v5573_v10 = vsel %vm370_vm0, %v12277_v36, %v5411_v50 }
 0x510   : > { %v5572_v58 = vsel %vm370_vm0, %v12281_v19, %v5409_v1 }
 0x512   : > { %v5507_v27 = vpop.permute.xlu1 %5506 }
 0x513   : > { %v5505_v59 = vpop.permute.xlu0 %5504  ;;  %v5605_v34 = vsel %vm959_vm8, %v5573_v10, %v5507_v27 }
 0x514   : > { %v5604_v56 = vsel %vm959_vm8, %v5572_v58, %v5505_v59 }
 0x515   : > { %8906 = vmatprep.mubr.msk.f32.mxu1 %vm1509_vm9, %v5604_v56 }
 0x516   : > { %8907 = vmatmul.mubr.msk.f32.gmra.mrb[28].mxu1 %vm1509_vm9, %v5605_v34  ;;  %v5415_v35 = vpop.permute.xlu1 %5414 }
 0x517   : > { %v5413_v23 = vpop.permute.xlu0 %5412  ;;  %v5575_v13 = vsel %vm370_vm0, %v12293_v55, %v5415_v35 }
 0x518   : > { %v5574_v36 = vsel %vm370_vm0, %v12298_v28, %v5413_v23  ;;  %v9278_v28 = vmov 1983009808  }
 0x519   : > { %v6033_v53 = vunpack.c.l.s4 %v9278_v28 }
 0x51a   : > { %v5511_v2 = vpop.permute.xlu1 %5510 }
 0x51b   : > { %v5509_v19 = vpop.permute.xlu0 %5508  ;;  %v5607_v44 = vsel %vm959_vm8, %v5575_v13, %v5511_v2  ;;  %v6034_v12 = vunpack.c.0.s8 %v6033_v53 }
 0x51c   : > { %v5606_v18 = vsel %vm959_vm8, %v5574_v36, %v5509_v19 }
 0x51d   : > { %8909 = vmatprep.mubr.msk.f32.mxu1 %vm1509_vm9, %v5606_v18  ;;  %v12471_v40 = vsub.s32 %v6034_v12, %v12468_v42 }
 0x51e   : > { %8910 = vmatmul.mubr.msk.f32.gmra.mrb[30].mxu1 %vm1509_vm9, %v5607_v44  ;;  %v3318_v30 = vpop.permute.xlu1 %3317  ;;  %vm8065_vm9 = vcmask 516096  }
 0x51f   : > { %8921 = vmatprep.mubr.msk.f32.mxu1 %vm9277_vm10, %v14517_v61  ;;  %v3320_v55 = vsel %vm370_vm0, %v14518_v4, %v3318_v30  ;;  %vm7150_vm0 = vcmask 1043459  }
 0x520   : > { %8915 = vmatmul.mubr.msk.f32.vlgmr.msra.gmra.mrb[32].mxu0 %vm959_vm8, %v3320_v55 }
 0x579   : > { %v8866_v3 = vpop.f32.mrb[0].mxu1 }
 0x57a   : > { %v5776_v52 = vpop.f32.mrb[1].mxu1  ;;  %v5970_v24 = vsel %vm959_vm8, %v8866_v3, 0.0 }
 0x57b   : > { %v5967_v38 = vsel %vm959_vm8, %v5776_v52, 0.0 }
 0x581   : > { %v8869_v63 = vpop.f32.mrb[2].mxu1 }
 0x582   : > { %v5971_v61 = vsel %vm959_vm8, %v8869_v63, 0.0  ;;  %v5786_v60 = vpop.f32.mrb[3].mxu1 }
 0x583   : > { %v5972_v54 = vadd.f32 %v5971_v61, %v5970_v24  ;;  %v5968_v32 = vsel %vm959_vm8, %v5786_v60, 0.0 }
 0x584   : > { %v5969_v41 = vadd.f32 %v5968_v32, %v5967_v38 }
 0x585   : > { %v6048_v37 = vcombine.high %v5972_v54, %v5972_v54  ;;  %v6055_v11 = vrot.slane %v5972_v54, %v12471_v40 }
 0x586   : > { %v6031_v49 = vcombine.high %v5969_v41, %v5969_v41  ;;  %v6038_v48 = vrot.slane %v5969_v41, %v12471_v40 }
 0x587   : > { %v6062_v29 = vrot.slane %v6048_v37, %v12471_v40  ;;  %v6063_v6 = vcombine.high %v6055_v11, %v6055_v11  ;;  %v6396_v26 = vsel %vm6367_vm13, %v6055_v11, 0.0 }
 0x588   : > { %v6397_v51 = vrot.slane %v6396_v26, 4  ;;  %v6045_v57 = vrot.slane %v6031_v49, %v12471_v40  ;;  %v6046_v17 = vcombine.high %v6038_v48, %v6038_v48  ;;  %v6368_v31 = vsel %vm6367_vm13, %v6038_v48, 0.0 }
 0x589   : > { %v6064_v33 = vcombine.high %v6062_v29, %v6062_v29  ;;  %v6403_v46 = vsel %vm6367_vm13, %v6063_v6, 0.0  ;;  %v6410_v21 = vsel %vm6367_vm13, %v6062_v29, 0.0  ;;  %v6369_v14 = vrot.slane %v6368_v31, 4  ;;  %v12485_v43 = vpop.f32.mrb[4].mxu1 }
 0x58a   : > { %v6398_v8 = vadd.f32 %v6397_v51, %v6396_v26  ;;  %v6404_v45 = vrot.slane %v6403_v46, 4  ;;  %v6411_v20 = vrot.slane %v6410_v21, 4  ;;  %v6047_v9 = vcombine.high %v6045_v57, %v6045_v57  ;;  %v12487_v16 = vpop.f32.mrb[5].mxu1 }
 0x58b   : > { %v6417_v47 = vsel %vm6367_vm13, %v6064_v33, 0.0  ;;  %v6370_v39 = vadd.f32 %v6369_v14, %v6368_v31  ;;  %v6375_v7 = vsel %vm6367_vm13, %v6046_v17, 0.0  ;;  %v6382_v25 = vsel %vm6367_vm13, %v6045_v57, 0.0  ;;  %v12500_v31 = vld [vmem:[%s14121_s4] ss:$0 sm:$0xff] }
 0x58c   : > { %v6418_v22 = vrot.slane %v6417_v47, 4  ;;  %v6376_v15 = vrot.slane %v6375_v7, 4  ;;  %v6383_v62 = vrot.slane %v6382_v25, 4  ;;  %v6389_v0 = vsel %vm6367_vm13, %v6047_v9, 0.0 }
 0x58d   : > { %v6405_v50 = vadd.f32 %v6404_v45, %v6403_v46  ;;  %v6412_v1 = vadd.f32 %v6411_v20, %v6410_v21  ;;  %v6399_v10 = vrot.slane %v6398_v8, 2  ;;  %v6371_v58 = vrot.slane %v6370_v39, 2 }
 0x58e   : > { %v6377_v27 = vadd.f32 %v6376_v15, %v6375_v7  ;;  %v6390_v59 = vrot.slane %v6389_v0, 4  ;;  %v6419_v34 = vadd.f32 %v6418_v22, %v6417_v47  ;;  %v6384_v56 = vadd.f32 %v6383_v62, %v6382_v25 }
 0x58f   : > { %v6406_v36 = vrot.slane %v6405_v50, 2  ;;  %v6413_v2 = vrot.slane %v6412_v1, 2  ;;  %v6400_v44 = vadd.f32 %v6399_v10, %v6398_v8  ;;  %v6372_v18 = vadd.f32 %v6371_v58, %v6370_v39 }
 0x590   : > { %v6378_v35 = vrot.slane %v6377_v27, 2  ;;  %v6391_v23 = vadd.f32 %v6390_v59, %v6389_v0  ;;  %v6420_v30 = vrot.slane %v6419_v34, 2  ;;  %v6385_v55 = vrot.slane %v6384_v56, 2 }
 0x591   : > { %v8875_v13 = vpop.f32.mrb[6].mxu1  ;;  %v6407_v53 = vadd.f32 %v6406_v36, %v6405_v50  ;;  %v6414_v5 = vadd.f32 %v6413_v2, %v6412_v1  ;;  %v6401_v3 = vrot.slane %v6400_v44, 1  ;;  %v6373_v52 = vrot.slane %v6372_v18, 1 }
 0x592   : > { %v5806_v19 = vpop.f32.mrb[7].mxu1  ;;  %v6379_v4 = vadd.f32 %v6378_v35, %v6377_v27  ;;  %v6392_v28 = vrot.slane %v6391_v23, 2  ;;  %v6421_v12 = vadd.f32 %v6420_v30, %v6419_v34  ;;  %v6386_v24 = vadd.f32 %v6385_v55, %v6384_v56 }
 0x593   : > { %v6408_v38 = vrot.slane %v6407_v53, 1  ;;  %v6415_v54 = vrot.slane %v6414_v5, 1  ;;  %v6402_v41 = vadd.f32 %v6401_v3, %v6400_v44  ;;  %v6374_v37 = vadd.f32 %v6373_v52, %v6372_v18 }
 0x594   : > { %v6380_v63 = vrot.slane %v6379_v4, 1  ;;  %v6393_v61 = vadd.f32 %v6392_v28, %v6391_v23  ;;  %v6422_v11 = vrot.slane %v6421_v12, 1  ;;  %v6387_v48 = vrot.slane %v6386_v24, 1 }
 0x595   : > { %v6409_v6 = vadd.f32 %v6408_v38, %v6407_v53  ;;  %v6416_v26 = vadd.f32 %v6415_v54, %v6414_v5  ;;  %v6820_v51 = vmul.f32 0.25, %v6402_v41  ;;  %v6816_v57 = vmul.f32 0.25, %v6374_v37 }
 0x596   : > { %v6381_v49 = vadd.f32 %v6380_v63, %v6379_v4  ;;  %v6394_v29 = vrot.slane %v6393_v61, 1  ;;  %v6423_v17 = vadd.f32 %v6422_v11, %v6421_v12  ;;  %v6388_v33 = vadd.f32 %v6387_v48, %v6386_v24 }
 0x597   : > { %v6821_v8 = vmul.f32 0.25, %v6409_v6  ;;  %v6822_v45 = vmul.f32 0.25, %v6416_v26  ;;  %v6891_v9 = vadd.f32 %v12500_v31, %v6820_v51  ;;  %v6887_v47 = vadd.f32 %v12500_v31, %v6816_v57 }
 0x598   : > { %v6395_v46 = vadd.f32 %v6394_v29, %v6393_v61  ;;  %v6817_v21 = vmul.f32 0.25, %v6381_v49  ;;  %v6823_v39 = vmul.f32 0.25, %v6423_v17  ;;  %v6818_v7 = vmul.f32 0.25, %v6388_v33 }
 0x599   : > { %v12493_v60 = vpop.f32.mrb[8].mxu1  ;;  %v5976_v15 = vsel %vm959_vm8, %v12485_v43, 0.0  ;;  %v5973_v62 = vsel %vm959_vm8, %v12487_v16, 0.0  ;;  %v5977_v0 = vsel %vm959_vm8, %v8875_v13, 0.0  ;;  %v5974_v50 = vsel %vm959_vm8, %v5806_v19, 0.0 }
 0x59a   : > { %v12495_v32 = vpop.f32.mrb[9].mxu1  ;;  %v6819_v25 = vmul.f32 0.25, %v6395_v46  ;;  %v6888_v22 = vadd.f32 %v12500_v31, %v6817_v21  ;;  %v6892_v1 = vadd.f32 %v12500_v31, %v6821_v8  ;;  %v12517_v10 = vadd.f32 %v12500_v31, %v6822_v45 }
 0x59b   : > { %v5978_v58 = vadd.f32 %v5977_v0, %v5976_v15  ;;  %v5975_v27 = vadd.f32 %v5974_v50, %v5973_v62  ;;  %v6955_v59 = vmul.f32 0.2, %v6891_v9  ;;  %v6951_v34 = vmul.f32 0.2, %v6887_v47 }
 0x59c   : > { %v12520_v56 = vadd.f32 %v12500_v31, %v6823_v39  ;;  %v6889_v43 = vadd.f32 %v12500_v31, %v6818_v7  ;;  %v6890_v23 = vadd.f32 %v12500_v31, %v6819_v25  ;;  %v6952_v13 = vmul.f32 0.2, %v6888_v22 }
 0x59d   : > { %v6082_v35 = vcombine.high %v5978_v58, %v5978_v58  ;;  %v6089_v16 = vrot.slane %v5978_v58, %v12471_v40  ;;  %v6065_v36 = vcombine.high %v5975_v27, %v5975_v27  ;;  %v6072_v2 = vrot.slane %v5975_v27, %v12471_v40 }
 0x59e   : > { %v6956_v44 = vmul.f32 0.2, %v6892_v1  ;;  %v6957_v18 = vmul.f32 0.2, %v12517_v10  ;;  %v12532_v28 = vmax.f32 %v6891_v9, %v6955_v59  ;;  %v12536_v52 = vmax.f32 %v6887_v47, %v6951_v34 }
 0x59f   : > { %v6096_v30 = vrot.slane %v6082_v35, %v12471_v40  ;;  %v6097_v4 = vcombine.high %v6089_v16, %v6089_v16  ;;  %v6452_v53 = vsel %vm6367_vm13, %v6089_v16, 0.0  ;;  %v6079_v5 = vrot.slane %v6065_v36, %v12471_v40 }
 0x5a0   : > { %14520 = vst [vmem:[#allocation18_spill] sm:$0xff] %v12532_v28  ;;  %v6080_v3 = vcombine.high %v6072_v2, %v6072_v2  ;;  %14521 = vst [vmem:[#allocation6_spill] sm:$0xff] %v12536_v52  ;;  %v6453_v63 = vrot.slane %v6452_v53, 4  ;;  %v6953_v61 = vmul.f32 0.2, %v6889_v43  ;;  %v12539_v54 = vmax.f32 %v6888_v22, %v6952_v13 }
 0x5a1   : > { %v12502_v14 = vpop.f32.mrb[10].mxu1  ;;  %v6098_v12 = vcombine.high %v6096_v30, %v6096_v30  ;;  %v6459_v24 = vsel %vm6367_vm13, %v6097_v4, 0.0  ;;  %v6954_v38 = vmul.f32 0.2, %v6890_v23  ;;  %v6466_v41 = vsel %vm6367_vm13, %v6096_v30, 0.0 }
 0x5a2   : > { %v12504_v20 = vpop.f32.mrb[11].mxu1  ;;  %14522 = vst [vmem:[#allocation8_spill] sm:$0xff] %v12539_v54  ;;  %v6460_v37 = vrot.slane %v6459_v24, 4  ;;  %v6081_v49 = vcombine.high %v6079_v5, %v6079_v5  ;;  %v6424_v48 = vsel %vm6367_vm13, %v6072_v2, 0.0  ;;  %v6454_v29 = vadd.f32 %v6453_v63, %v6452_v53 }
 0x5a3   : > { %v6473_v11 = vsel %vm6367_vm13, %v6098_v12, 0.0  ;;  %v6467_v6 = vrot.slane %v6466_v41, 4  ;;  %v6425_v26 = vrot.slane %v6424_v48, 4  ;;  %v6431_v51 = vsel %vm6367_vm13, %v6080_v3, 0.0 }
 0x5a4   : > { %v6958_v57 = vmul.f32 0.2, %v12520_v56  ;;  %v6474_v17 = vrot.slane %v6473_v11, 4  ;;  %v6432_v33 = vrot.slane %v6431_v51, 4  ;;  %v6438_v46 = vsel %vm6367_vm13, %v6079_v5, 0.0 }
 0x5a5   : > { %v12547_v21 = vmax.f32 %v6892_v1, %v6956_v44  ;;  %v12549_v8 = vmax.f32 %v6889_v43, %v6953_v61  ;;  %v6426_v45 = vadd.f32 %v6425_v26, %v6424_v48  ;;  %v6439_v9 = vrot.slane %v6438_v46, 4 }
 0x5a6   : > { %v7143_v39 = vrot.slane %v12539_v54, 7  ;;  %v6461_v7 = vadd.f32 %v6460_v37, %v6459_v24  ;;  %v6433_v25 = vadd.f32 %v6432_v33, %v6431_v51  ;;  %v6445_v22 = vsel %vm6367_vm13, %v6081_v49, 0.0 }
 0x5a7   : > { %14523 = vst [vmem:[#allocation9_spill] sm:$0xff] %v12547_v21  ;;  %14524 = vst [vmem:[#allocation10_spill] sm:$0xff] %v12549_v8  ;;  %v12557_v62 = vmax.f32 %v6890_v23, %v6954_v38  ;;  %v6455_v0 = vrot.slane %v6454_v29, 2  ;;  %v6468_v50 = vadd.f32 %v6467_v6, %v6466_v41  ;;  %v6440_v1 = vadd.f32 %v6439_v9, %v6438_v46 }
 0x5a8   : > { %v6475_v58 = vadd.f32 %v6474_v17, %v6473_v11  ;;  %v6427_v27 = vrot.slane %v6426_v45, 2  ;;  %v6434_v59 = vrot.slane %v6433_v25, 2  ;;  %v6446_v34 = vrot.slane %v6445_v22, 4 }
 0x5a9   : > { %v12526_v19 = vpop.f32.mrb[12].mxu1  ;;  %14525 = vst [vmem:[#allocation23_spill] sm:$0xff] %v12557_v62  ;;  %v12560_v43 = vmax.f32 %v12517_v10, %v6957_v18  ;;  %v7146_v35 = vrot.slane %v12549_v8, 6  ;;  %v7293_v16 = vmul.f32 %v12539_v54, %v12539_v54  ;;  %v6441_v13 = vrot.slane %v6440_v1, 2 }
 0x5aa   : > { %v12530_v55 = vpop.f32.mrb[13].mxu1  ;;  %v7145_v23 = vsel %vm7144_vm14, %v7143_v39, %v12536_v52  ;;  %v6462_v36 = vrot.slane %v6461_v7, 2  ;;  %v6435_v2 = vadd.f32 %v6434_v59, %v6433_v25  ;;  %v6447_v44 = vadd.f32 %v6446_v34, %v6445_v22 }
 0x5ab   : > { %14526 = vst [vmem:[#allocation24_spill] sm:$0xff] %v12560_v43  ;;  %v7149_v30 = vrot.slane %v12557_v62, 5  ;;  %v6456_v4 = vadd.f32 %v6455_v0, %v6454_v29  ;;  %v6469_v53 = vrot.slane %v6468_v50, 2  ;;  %v6442_v5 = vadd.f32 %v6441_v13, %v6440_v1 }
 0x5ac   : > { %v6476_v10 = vrot.slane %v6475_v58, 2  ;;  %v6428_v18 = vadd.f32 %v6427_v27, %v6426_v45  ;;  %v6436_v3 = vrot.slane %v6435_v2, 1  ;;  %v6448_v12 = vrot.slane %v6447_v44, 2 }
 0x5ad   : > { %v7152_v63 = vrot.slane %v12532_v28, 4  ;;  %v12571_v24 = vmul.f32 %v12532_v28, %v12532_v28  ;;  %v7148_v61 = vsel %vm7147_vm15, %v7146_v35, %v7145_v23  ;;  %v6443_v38 = vrot.slane %v6442_v5, 1 }
 0x5ae   : > { %v12577_v37 = vmax.f32 %v12520_v56, %v6958_v57  ;;  %v7155_v11 = vrot.slane %v12547_v21, 3  ;;  %v6463_v49 = vadd.f32 %v6462_v36, %v6461_v7  ;;  %v6449_v48 = vadd.f32 %v6448_v12, %v6447_v44 }
 0x5af   : > { %v7294_v6 = vmul.f32 %v12549_v8, %v12549_v8  ;;  %v7420_v26 = vrot.slane %v7293_v16, 7  ;;  %v6470_v51 = vadd.f32 %v6469_v53, %v6468_v50  ;;  %v6437_v17 = vadd.f32 %v6436_v3, %v6435_v2 }
 0x5b0   : > { %14527 = vst [vmem:[#allocation11_spill] sm:$0xff] %v12577_v37  ;;  %v7151_v33 = vsel %vm7150_vm0, %v7149_v30, %v7148_v61  ;;  %v6457_v46 = vrot.slane %v6456_v4, 1  ;;  %v6477_v45 = vadd.f32 %v6476_v10, %v6475_v58  ;;  %v6429_v9 = vrot.slane %v6428_v18, 1 }
 0x5b1   : > { %v12551_v47 = vpop.f32.mrb[14].mxu1  ;;  %v7158_v56 = vrot.slane %v12560_v43, 2  ;;  %v12588_v57 = vmul.f32 %v12547_v21, %v12547_v21  ;;  %v6444_v39 = vadd.f32 %v6443_v38, %v6442_v5  ;;  %v6450_v7 = vrot.slane %v6449_v48, 1 }
 0x5b2   : > { %v12555_v15 = vpop.f32.mrb[15].mxu1  ;;  %v12592_v25 = vmul.f32 %v12560_v43, %v12560_v43  ;;  %v7292_v22 = vmul.f32 %v12536_v52, %v12536_v52  ;;  %v7295_v0 = vmul.f32 %v12557_v62, %v12557_v62  ;;  %v6464_v50 = vrot.slane %v6463_v49, 1 }
 0x5b3   : > { %v7154_v1 = vsel %vm7153_vm1, %v7152_v63, %v7151_v33  ;;  %v7422_v58 = vrot.slane %v7294_v6, 6  ;;  %v6471_v27 = vrot.slane %v6470_v51, 1  ;;  %v6825_v59 = vmul.f32 0.25, %v6437_v17 }
 0x5b4   : > { %v7421_v34 = vsel %vm7144_vm14, %v7420_v26, %v7292_v22  ;;  %v6458_v35 = vadd.f32 %v6457_v46, %v6456_v4  ;;  %v6478_v16 = vrot.slane %v6477_v45, 1  ;;  %v6430_v13 = vadd.f32 %v6429_v9, %v6428_v18 }
 0x5b5   : > { %v7161_v23 = vrot.slane %v12577_v37, 1  ;;  %v7426_v36 = vrot.slane %v12571_v24, 4  ;;  %v6451_v2 = vadd.f32 %v6450_v7, %v6449_v48  ;;  %v6826_v44 = vmul.f32 0.25, %v6444_v39 }
 0x5b6   : > { %v12606_v53 = vmul.f32 %v12577_v37, %v12577_v37  ;;  %v7424_v10 = vrot.slane %v7295_v0, 5  ;;  %v6465_v3 = vadd.f32 %v6464_v50, %v6463_v49  ;;  %v7157_v4 = vsel %vm7156_vm2, %v7155_v11, %v7154_v1 }
 0x5b7   : > { %v7423_v18 = vsel %vm7147_vm15, %v7422_v58, %v7421_v34  ;;  %v6472_v63 = vadd.f32 %v6471_v27, %v6470_v51  ;;  %v6896_v24 = vadd.f32 %v12500_v31, %v6825_v59  ;;  %v6479_v61 = vadd.f32 %v6478_v16, %v6477_v45 }
 0x5b8   : > { %v6828_v38 = vmul.f32 0.25, %v6458_v35  ;;  %v6824_v48 = vmul.f32 0.25, %v6430_v13  ;;  %v5982_v6 = vsel %vm959_vm8, %v12493_v60, 0.0  ;;  %v6827_v26 = vmul.f32 0.25, %v6451_v2 }
 0x5b9   : > { %v12574_v41 = vpop.f32.mrb[16].mxu1  ;;  %v6897_v17 = vadd.f32 %v12500_v31, %v6826_v44  ;;  %v5983_v49 = vsel %vm959_vm8, %v12502_v14, 0.0  ;;  %v5980_v11 = vsel %vm959_vm8, %v12504_v20, 0.0  ;;  %v7160_v33 = vsel %vm7159_vm3, %v7158_v56, %v7157_v4 }
 0x5ba   : > { %v12580_v29 = vpop.f32.mrb[17].mxu1  ;;  %v7425_v51 = vsel %vm7150_vm0, %v7424_v10, %v7423_v18  ;;  %v6829_v46 = vmul.f32 0.25, %v6465_v3  ;;  %v5979_v45 = vsel %vm959_vm8, %v12495_v32, 0.0  ;;  %v6830_v9 = vmul.f32 0.25, %v6472_v63 }
 0x5bb   : > { %v6960_v39 = vmul.f32 0.2, %v6896_v24  ;;  %v5984_v60 = vadd.f32 %v5983_v49, %v5982_v6  ;;  %v5981_v7 = vadd.f32 %v5980_v11, %v5979_v45  ;;  %v6831_v0 = vmul.f32 0.25, %v6479_v61 }
 0x5bc   : > { %v6899_v14 = vadd.f32 %v12500_v31, %v6828_v38  ;;  %v6895_v50 = vadd.f32 %v12500_v31, %v6824_v48  ;;  %v6898_v20 = vadd.f32 %v12500_v31, %v6827_v26  ;;  %v6961_v56 = vmul.f32 0.2, %v6897_v17 }
 0x5bd   : > { %v6116_v1 = vcombine.high %v5984_v60, %v5984_v60  ;;  %v6123_v58 = vrot.slane %v5984_v60, %v12471_v40  ;;  %v7163_v59 = vsel %vm7162_vm4, %v7161_v23, %v7160_v33  ;;  %v12635_v34 = vsel %vm7153_vm1, %v7426_v36, %v7425_v51 }
 0x5be   : > { %v12638_v35 = vadd.f32 %v12500_v31, %v6829_v46  ;;  %v12643_v13 = vadd.f32 %v12500_v31, %v6830_v9  ;;  %v12645_v2 = vmax.f32 %v6896_v24, %v6960_v39  ;;  %v12649_v3 = vadd.f32 %v12500_v31, %v6831_v0 }
 0x5bf   : > { %v6130_v44 = vrot.slane %v6116_v1, %v12471_v40  ;;  %v6131_v10 = vcombine.high %v6123_v58, %v6123_v58  ;;  %v6963_v23 = vmul.f32 0.2, %v6899_v14  ;;  %v6959_v4 = vmul.f32 0.2, %v6895_v50 }
 0x5c0   : > { %14528 = vst [vmem:[#allocation13_spill] sm:$0xff] %v12645_v2  ;;  %v6508_v36 = vsel %vm6367_vm13, %v6123_v58, 0.0  ;;  %v6962_v18 = vmul.f32 0.2, %v6898_v20  ;;  %v12652_v63 = vmax.f32 %v6897_v17, %v6961_v56  ;;  %v6099_v6 = vcombine.high %v5981_v7, %v5981_v7 }
 0x5c1   : > { %v12602_v30 = vpop.f32.mrb[18].mxu1  ;;  %v6132_v61 = vcombine.high %v6130_v44, %v6130_v44  ;;  %v6509_v38 = vrot.slane %v6508_v36, 4  ;;  %v6515_v48 = vsel %vm6367_vm13, %v6131_v10, 0.0  ;;  %v6522_v24 = vsel %vm6367_vm13, %v6130_v44, 0.0 }
 0x5c2   : > { %v12609_v12 = vpop.f32.mrb[19].mxu1  ;;  %14529 = vst [vmem:[#allocation14_spill] sm:$0xff] %v12652_v63  ;;  %v6106_v26 = vrot.slane %v5981_v7, %v12471_v40  ;;  %v12658_v49 = vsel %vm959_vm8, %v7163_v59, 0.0  ;;  %v7164_v11 = vrot.slane %v12645_v2, 7  ;;  %v6516_v51 = vrot.slane %v6515_v48, 4 }
 0x5c3   : > { %v6510_v33 = vadd.f32 %v6509_v38, %v6508_v36  ;;  %v6964_v46 = vmul.f32 0.2, %v12638_v35  ;;  %v12663_v17 = vmul.f32 0.2, %v12643_v13  ;;  %v12666_v45 = vmul.f32 0.2, %v12649_v3 }
 0x5c4   : > { %v12668_v9 = vmax.f32 %v6899_v14, %v6963_v23  ;;  %v12670_v39 = vmax.f32 %v6895_v50, %v6959_v4  ;;  %v12672_v60 = vmax.f32 %v6898_v20, %v6962_v18  ;;  %v6523_v7 = vrot.slane %v6522_v24, 4 }
 0x5c5   : > { %v6529_v0 = vsel %vm6367_vm13, %v6132_v61, 0.0  ;;  %v7166_v1 = vrot.slane %v12652_v63, 6  ;;  %v7301_v58 = vmul.f32 %v12645_v2, %v12645_v2  ;;  %v6113_v59 = vrot.slane %v6099_v6, %v12471_v40 }
 0x5c6   : > { %14530 = vst [vmem:[#allocation15_spill] sm:$0xff] %v12668_v9  ;;  %14531 = vst [vmem:[#allocation29_spill] sm:$0xff] %v12670_v39  ;;  %v6114_v44 = vcombine.high %v6106_v26, %v6106_v26  ;;  %v7165_v14 = vsel %vm7144_vm14, %v7164_v11, %v12670_v39  ;;  %v6511_v50 = vrot.slane %v6510_v33, 2  ;;  %v6517_v20 = vadd.f32 %v6516_v51, %v6515_v48 }
 0x5c7   : > { %14532 = vst [vmem:[#allocation30_spill] sm:$0xff] %v12672_v60  ;;  %v6480_v23 = vsel %vm6367_vm13, %v6106_v26, 0.0  ;;  %v6530_v4 = vrot.slane %v6529_v0, 4  ;;  %v6115_v36 = vcombine.high %v6113_v59, %v6113_v59  ;;  %v7168_v38 = vrot.slane %v12672_v60, 5 }
 0x5c8   : > { %v6481_v18 = vrot.slane %v6480_v23, 4  ;;  %v6487_v61 = vsel %vm6367_vm13, %v6114_v44, 0.0  ;;  %v7302_v6 = vmul.f32 %v12652_v63, %v12652_v63  ;;  %v6524_v32 = vadd.f32 %v6523_v7, %v6522_v24 }
 0x5c9   : > { %v12630_v27 = vpop.f32.mrb[20].mxu1  ;;  %v6488_v22 = vrot.slane %v6487_v61, 4  ;;  %v7434_v5 = vrot.slane %v7301_v58, 7  ;;  %v6494_v11 = vsel %vm6367_vm13, %v6113_v59, 0.0  ;;  %v6501_v48 = vsel %vm6367_vm13, %v6115_v36, 0.0 }
 0x5ca   : > { %v12640_v16 = vpop.f32.mrb[21].mxu1  ;;  %v6482_v2 = vadd.f32 %v6481_v18, %v6480_v23  ;;  %v7167_v26 = vsel %vm7147_vm15, %v7166_v1, %v7165_v14  ;;  %v6512_v51 = vadd.f32 %v6511_v50, %v6510_v33  ;;  %v6518_v37 = vrot.slane %v6517_v20, 2 }
 0x5cb   : > { %v6489_v43 = vadd.f32 %v6488_v22, %v6487_v61  ;;  %v6531_v21 = vadd.f32 %v6530_v4, %v6529_v0  ;;  %v6495_v28 = vrot.slane %v6494_v11, 4  ;;  %v6502_v62 = vrot.slane %v6501_v48, 4 }
 0x5cc   : > { %v6483_v44 = vrot.slane %v6482_v2, 2  ;;  %v7300_v63 = vmul.f32 %v12670_v39, %v12670_v39  ;;  %v7303_v24 = vmul.f32 %v12672_v60, %v12672_v60  ;;  %v6525_v7 = vrot.slane %v6524_v32, 2 }
 0x5cd   : > { %v6490_v58 = vrot.slane %v6489_v43, 2  ;;  %v7436_v23 = vrot.slane %v7302_v6, 6  ;;  %v6496_v1 = vadd.f32 %v6495_v28, %v6494_v11  ;;  %v6503_v33 = vadd.f32 %v6502_v62, %v6501_v48 }
 0x5ce   : > { %v6484_v36 = vadd.f32 %v6483_v44, %v6482_v2  ;;  %v7169_v22 = vsel %vm7150_vm0, %v7168_v38, %v7167_v26  ;;  %v7435_v0 = vsel %vm7144_vm14, %v7434_v5, %v7300_v63  ;;  %v6513_v50 = vrot.slane %v6512_v51, 1 }
 0x5cf   : > { %v6491_v4 = vadd.f32 %v6490_v58, %v6489_v43  ;;  %v6519_v18 = vadd.f32 %v6518_v37, %v6517_v20  ;;  %v6532_v61 = vrot.slane %v6531_v21, 2  ;;  %v6497_v39 = vrot.slane %v6496_v1, 2 }
 0x5d0   : > { %v6504_v60 = vrot.slane %v6503_v33, 2  ;;  %v12704_v8 = vmax.f32 %v12638_v35, %v6964_v46  ;;  %v7170_v6 = vrot.slane %v12668_v9, 4  ;;  %v6526_v2 = vadd.f32 %v6525_v7, %v6524_v32 }
 0x5d1   : > { %v12675_v56 = vpop.f32.mrb[22].mxu1  ;;  %v6492_v28 = vrot.slane %v6491_v4, 1  ;;  %v7438_v62 = vrot.slane %v7303_v24, 5  ;;  %v6485_v11 = vrot.slane %v6484_v36, 1  ;;  %v6498_v48 = vadd.f32 %v6497_v39, %v6496_v1 }
 0x5d2   : > { %v12681_v10 = vpop.f32.mrb[23].mxu1  ;;  %14533 = vst [vmem:[#allocation16_spill] sm:$0xff] %v12704_v8  ;;  %v6505_v44 = vadd.f32 %v6504_v60, %v6503_v33  ;;  %v7171_v38 = vsel %vm7153_vm1, %v7170_v6, %v7169_v22  ;;  %v7437_v5 = vsel %vm7147_vm15, %v7436_v23, %v7435_v0  ;;  %v6514_v43 = vadd.f32 %v6513_v50, %v6512_v51 }
 0x5d3   : > { %v6493_v37 = vadd.f32 %v6492_v28, %v6491_v4  ;;  %v6520_v63 = vrot.slane %v6519_v18, 1  ;;  %v6533_v20 = vadd.f32 %v6532_v61, %v6531_v21  ;;  %v6499_v26 = vrot.slane %v6498_v48, 1 }
 0x5d4   : > { %v6506_v58 = vrot.slane %v6505_v44, 1  ;;  %v12711_v35 = vmax.f32 %v12643_v13, %v12663_v17  ;;  %v7172_v32 = vrot.slane %v12704_v8, 3  ;;  %v7304_v46 = vmul.f32 %v12668_v9, %v12668_v9 }
 0x5d5   : > { %v6527_v39 = vrot.slane %v6526_v2, 1  ;;  %v14535_v51 = vrot.slane %v12588_v57, 3  ;;  %v12724_v21 = vmax.f32 %v12649_v3, %v12666_v45  ;;  %v6486_v7 = vadd.f32 %v6485_v11, %v6484_v36 }
 0x5d6   : > { %14534 = vst [vmem:[#allocation19_spill] sm:$0xff] %v12711_v35  ;;  %v6500_v13 = vadd.f32 %v6499_v26, %v6498_v48  ;;  %v7305_v23 = vmul.f32 %v12704_v8, %v12704_v8  ;;  %v7173_v1 = vsel %vm7156_vm2, %v7172_v32, %v7171_v38  ;;  %v7439_v33 = vsel %vm7150_vm0, %v7438_v62, %v7437_v5 }
 0x5d7   : > { %v7429_v24 = vsel %vm7156_vm2, %v14535_v51, %v12635_v34  ;;  %14536 = vst [vmem:[#allocation20_spill] sm:$0xff] %v12724_v21  ;;  %v6833_v22 = vmul.f32 0.25, %v6493_v37  ;;  %v6521_v0 = vadd.f32 %v6520_v63, %v6519_v18  ;;  %v6534_v57 = vrot.slane %v6533_v20, 1 }
 0x5d8   : > { %v6836_v50 = vmul.f32 0.25, %v6514_v43  ;;  %v6507_v34 = vadd.f32 %v6506_v58, %v6505_v44  ;;  %v14537_v4 = vrot.slane %v12592_v25, 2  ;;  %v7174_v45 = vrot.slane %v12711_v35, 2 }
 0x5d9   : > { %v12697_v59 = vpop.f32.mrb[24].mxu1  ;;  %v7440_v36 = vrot.slane %v7304_v46, 4  ;;  %v6528_v61 = vadd.f32 %v6527_v39, %v6526_v2  ;;  %v7176_v6 = vrot.slane %v12724_v21, 1  ;;  %v7306_v28 = vmul.f32 %v12711_v35, %v12711_v35 }
 0x5da   : > { %v12699_v14 = vpop.f32.mrb[25].mxu1  ;;  %v7431_v3 = vsel %vm7159_vm3, %v14537_v4, %v7429_v24  ;;  %v6832_v11 = vmul.f32 0.25, %v6486_v7  ;;  %v6834_v62 = vmul.f32 0.25, %v6500_v13  ;;  %v7442_v48 = vrot.slane %v7305_v23, 3 }
 0x5db   : > { %v7175_v18 = vsel %vm7159_vm3, %v7174_v45, %v7173_v1  ;;  %v7441_v44 = vsel %vm7153_vm1, %v7440_v36, %v7439_v33  ;;  %v6904_v25 = vadd.f32 %v12500_v31, %v6833_v22  ;;  %v6535_v38 = vadd.f32 %v6534_v57, %v6533_v20 }
 0x5dc   : > { %v6837_v5 = vmul.f32 0.25, %v6521_v0  ;;  %v6907_v43 = vadd.f32 %v12500_v31, %v6836_v50  ;;  %v6835_v37 = vmul.f32 0.25, %v6507_v34  ;;  %v6838_v2 = vmul.f32 0.25, %v6528_v61 }
 0x5dd   : > { %v5988_v63 = vsel %vm959_vm8, %v12526_v19, 0.0  ;;  %v5989_v26 = vsel %vm959_vm8, %v12551_v47, 0.0  ;;  %v5986_v58 = vsel %vm959_vm8, %v12555_v15, 0.0  ;;  %v6903_v32 = vadd.f32 %v12500_v31, %v6832_v11 }
 0x5de   : > { %v6905_v46 = vadd.f32 %v12500_v31, %v6834_v62  ;;  %v5985_v20 = vsel %vm959_vm8, %v12530_v55, 0.0  ;;  %v5990_v39 = vadd.f32 %v5989_v26, %v5988_v63  ;;  %v14538_v51 = vrot.slane %v12606_v53, 1 }
 0x5df   : > { %v12760_v19 = vmul.f32 %v12724_v21, %v12724_v21  ;;  %v6968_v47 = vmul.f32 0.2, %v6904_v25  ;;  %v5987_v7 = vadd.f32 %v5986_v58, %v5985_v20  ;;  %v7177_v15 = vsel %vm7162_vm4, %v7176_v6, %v7175_v18 }
 0x5e0   : > { %v12756_v24 = vsel %vm7162_vm4, %v14538_v51, %v7431_v3  ;;  %v7443_v13 = vsel %vm7156_vm2, %v7442_v48, %v7441_v44  ;;  %v6839_v23 = vmul.f32 0.25, %v6535_v38  ;;  %v6906_v1 = vadd.f32 %v12500_v31, %v6835_v37 }
 0x5e1   : > { %v12716_v60 = vpop.f32.mrb[26].mxu1  ;;  %v6908_v55 = vadd.f32 %v12500_v31, %v6837_v5  ;;  %v6971_v33 = vmul.f32 0.2, %v6907_v43  ;;  %v6150_v53 = vcombine.high %v5990_v39, %v5990_v39  ;;  %v6157_v22 = vrot.slane %v5990_v39, %v12471_v40 }
 0x5e2   : > { %v12726_v17 = vpop.f32.mrb[27].mxu1  ;;  %v7444_v57 = vrot.slane %v7306_v28, 2  ;;  %v6909_v50 = vadd.f32 %v12500_v31, %v6838_v2  ;;  %v6967_v34 = vmul.f32 0.2, %v6903_v32  ;;  %v6969_v4 = vmul.f32 0.2, %v6905_v46 }
 0x5e3   : > { %v12774_v36 = vsel %vm959_vm8, %v7177_v15, 0.0  ;;  %v12776_v61 = vmax.f32 %v6904_v25, %v6968_v47  ;;  %v6164_v6 = vrot.slane %v6150_v53, %v12471_v40  ;;  %v6970_v62 = vmul.f32 0.2, %v6906_v1 }
 0x5e4   : > { %v12780_v11 = vsel %vm7159_vm3, %v7444_v57, %v7443_v13  ;;  %v6165_v28 = vcombine.high %v6157_v22, %v6157_v22  ;;  %v6564_v48 = vsel %vm6367_vm13, %v6157_v22, 0.0  ;;  %v6910_v18 = vadd.f32 %v12500_v31, %v6839_v23 }
 0x5e5   : > { %14539 = vst [vmem:[#allocation21_spill] sm:$0xff] %v12776_v61  ;;  %v6972_v44 = vmul.f32 0.2, %v6908_v55  ;;  %v12784_v38 = vmax.f32 %v6907_v43, %v6971_v33  ;;  %v6565_v5 = vrot.slane %v6564_v48, 4  ;;  %v6973_v37 = vmul.f32 0.2, %v6909_v50 }
 0x5e6   : > { %v12786_v2 = vmax.f32 %v6903_v32, %v6967_v34  ;;  %v12788_v25 = vmax.f32 %v6905_v46, %v6969_v4  ;;  %v6571_v63 = vsel %vm6367_vm13, %v6165_v28, 0.0  ;;  %v7178_v26 = vrot.slane %v12776_v61, 7 }
 0x5e7   : > { %14540 = vst [vmem:[#allocation35_spill] sm:$0xff] %v12784_v38  ;;  %v6572_v58 = vrot.slane %v6571_v63, 4  ;;  %v6578_v20 = vsel %vm6367_vm13, %v6164_v6, 0.0  ;;  %v6133_v39 = vcombine.high %v5987_v7, %v5987_v7  ;;  %v12793_v51 = vmax.f32 %v6906_v1, %v6970_v62 }
 0x5e8   : > { %14541 = vst [vmem:[#allocation36_spill] sm:$0xff] %v12786_v2  ;;  %14542 = vst [vmem:[#allocation22_spill] sm:$0xff] %v12788_v25  ;;  %v6166_v47 = vcombine.high %v6164_v6, %v6164_v6  ;;  %v6566_v15 = vadd.f32 %v6565_v5, %v6564_v48  ;;  %v6140_v43 = vrot.slane %v5987_v7, %v12471_v40  ;;  %v6974_v13 = vmul.f32 0.2, %v6910_v18 }
 0x5e9   : > { %v12767_v0 = vpop.f32.mrb[28].mxu1  ;;  %v12796_v23 = vmax.f32 %v6908_v55, %v6972_v44  ;;  %v7184_v32 = vrot.slane %v12784_v38, 4  ;;  %v7309_v46 = vmul.f32 %v12776_v61, %v12776_v61  ;;  %v12801_v33 = vmax.f32 %v6909_v50, %v6973_v37 }
 0x5ea   : > { %v12770_v3 = vpop.f32.mrb[29].mxu1  ;;  %v12805_v53 = vmul.f32 %v12784_v38, %v12784_v38  ;;  %v7180_v1 = vrot.slane %v12788_v25, 6  ;;  %v6579_v22 = vrot.slane %v6578_v20, 4  ;;  %v7179_v7 = vsel %vm7144_vm14, %v7178_v26, %v12786_v2 }
 0x5eb   : > { %v7308_v55 = vmul.f32 %v12786_v2, %v12786_v2  ;;  %v6573_v34 = vadd.f32 %v6572_v58, %v6571_v63  ;;  %v6147_v4 = vrot.slane %v6133_v39, %v12471_v40  ;;  %v7182_v6 = vrot.slane %v12793_v51, 5 }
 0x5ec   : > { %v6567_v62 = vrot.slane %v6566_v15, 2  ;;  %v6585_v28 = vsel %vm6367_vm13, %v6166_v47, 0.0  ;;  %v6148_v48 = vcombine.high %v6140_v43, %v6140_v43  ;;  %v7310_v44 = vmul.f32 %v12788_v25, %v12788_v25 }
 0x5ed   : > { %v7448_v5 = vrot.slane %v7309_v46, 7  ;;  %v6149_v37 = vcombine.high %v6147_v4, %v6147_v4  ;;  %v6536_v26 = vsel %vm6367_vm13, %v6140_v43, 0.0  ;;  %v7181_v45 = vsel %vm7147_vm15, %v7180_v1, %v7179_v7 }
 0x5ee   : > { %v6580_v63 = vadd.f32 %v6579_v22, %v6578_v20  ;;  %v6537_v58 = vrot.slane %v6536_v26, 4  ;;  %v6543_v39 = vsel %vm6367_vm13, %v6148_v48, 0.0  ;;  %v6574_v38 = vrot.slane %v6573_v34, 2 }
 0x5ef   : > { %v6586_v61 = vrot.slane %v6585_v28, 4  ;;  %v6544_v2 = vrot.slane %v6543_v39, 4  ;;  %v6550_v21 = vsel %vm6367_vm13, %v6147_v4, 0.0  ;;  %v7311_v47 = vmul.f32 %v12793_v51, %v12793_v51 }
 0x5f0   : > { %v6568_v35 = vadd.f32 %v6567_v62, %v6566_v15  ;;  %v6538_v25 = vadd.f32 %v6537_v58, %v6536_v26  ;;  %v6551_v46 = vrot.slane %v6550_v21, 4  ;;  %v7183_v8 = vsel %vm7150_vm0, %v7182_v6, %v7181_v45 }
 0x5f1   : > { %v12808_v57 = vpop.f32.mrb[30].mxu1  ;;  %v7450_v43 = vrot.slane %v7310_v44, 6  ;;  %v6545_v9 = vadd.f32 %v6544_v2, %v6543_v39  ;;  %v6557_v20 = vsel %vm6367_vm13, %v6149_v37, 0.0  ;;  %v7449_v1 = vsel %vm7144_vm14, %v7448_v5, %v7308_v55 }
 0x5f2   : > { %v12815_v50 = vpop.f32.mrb[31].mxu1  ;;  %v6581_v22 = vrot.slane %v6580_v63, 2  ;;  %v6539_v7 = vrot.slane %v6538_v25, 2  ;;  %v6552_v48 = vadd.f32 %v6551_v46, %v6550_v21  ;;  %v6575_v54 = vadd.f32 %v6574_v38, %v6573_v34 }
 0x5f3   : > { %14543 = vst [vmem:[#allocation25_spill] sm:$0xff] %v12815_v50  ;;  %v6587_v52 = vadd.f32 %v6586_v61, %v6585_v28  ;;  %v6546_v4 = vrot.slane %v6545_v9, 2  ;;  %v6558_v42 = vrot.slane %v6557_v20, 4  ;;  %v12830_v50 = vmax.f32 %v6910_v18, %v6974_v13 }
 0x5f4   : > { %v7452_v15 = vrot.slane %v7311_v47, 5  ;;  %v6569_v62 = vrot.slane %v6568_v35, 1  ;;  %v6553_v26 = vrot.slane %v6552_v48, 2  ;;  %v7451_v45 = vsel %vm7147_vm15, %v7450_v43, %v7449_v1 }
 0x5f5   : > { %v6540_v6 = vadd.f32 %v6539_v7, %v6538_v25  ;;  %v6547_v2 = vadd.f32 %v6546_v4, %v6545_v9  ;;  %v6559_v44 = vadd.f32 %v6558_v42, %v6557_v20  ;;  %v7186_v37 = vrot.slane %v12796_v23, 3 }
 0x5f6   : > { %v7185_v55 = vsel %vm7153_vm1, %v7184_v32, %v7183_v8  ;;  %v6582_v5 = vadd.f32 %v6581_v22, %v6580_v63  ;;  %v6554_v21 = vadd.f32 %v6553_v26, %v6552_v48  ;;  %v6576_v38 = vrot.slane %v6575_v54, 1 }
 0x5f7   : > { %v6588_v61 = vrot.slane %v6587_v52, 2  ;;  %v6548_v34 = vrot.slane %v6547_v2, 1  ;;  %v6560_v28 = vrot.slane %v6559_v44, 2  ;;  %v7313_v18 = vmul.f32 %v12796_v23, %v12796_v23 }
 0x5f8   : > { %v7454_v13 = vrot.slane %v12805_v53, 4  ;;  %v7453_v58 = vsel %vm7150_vm0, %v7452_v15, %v7451_v45  ;;  %v6570_v25 = vadd.f32 %v6569_v62, %v6568_v35  ;;  %v7188_v42 = vrot.slane %v12801_v33, 2 }
 0x5f9   : > { %v7314_v9 = vmul.f32 %v12801_v33, %v12801_v33  ;;  %v6541_v8 = vrot.slane %v6540_v6, 1  ;;  %v6555_v32 = vrot.slane %v6554_v21, 1  ;;  %v7190_v63 = vrot.slane %v12830_v50, 1 }
 0x5fa   : > { %v7187_v39 = vsel %vm7156_vm2, %v7186_v37, %v7185_v55  ;;  %v6549_v47 = vadd.f32 %v6548_v34, %v6547_v2  ;;  %v6561_v46 = vadd.f32 %v6560_v28, %v6559_v44  ;;  %v7455_v43 = vsel %vm7153_vm1, %v7454_v13, %v7453_v58 }
 0x5fb   : > { %v6577_v20 = vadd.f32 %v6576_v38, %v6575_v54  ;;  %v6583_v53 = vrot.slane %v6582_v5, 1  ;;  %v6589_v1 = vadd.f32 %v6588_v61, %v6587_v52  ;;  %v7315_v35 = vmul.f32 %v12830_v50, %v12830_v50 }
 0x5fc   : > { %v7456_v22 = vrot.slane %v7313_v18, 3  ;;  %v6844_v7 = vmul.f32 0.25, %v6570_v25  ;;  %v5995_v48 = vsel %vm959_vm8, %v12602_v30, 0.0  ;;  %v7458_v4 = vrot.slane %v7314_v9, 2 }
 0x5fd   : > { %v6542_v15 = vadd.f32 %v6541_v8, %v6540_v6  ;;  %v6556_v62 = vadd.f32 %v6555_v32, %v6554_v21  ;;  %v5994_v26 = vsel %vm959_vm8, %v12574_v41, 0.0  ;;  %v7189_v45 = vsel %vm7159_vm3, %v7188_v42, %v7187_v39 }
 0x5fe   : > { %v7457_v54 = vsel %vm7156_vm2, %v7456_v22, %v7455_v43  ;;  %v6562_v2 = vrot.slane %v6561_v46, 1  ;;  %v6841_v52 = vmul.f32 0.25, %v6549_v47  ;;  %v6584_v44 = vadd.f32 %v6583_v53, %v6582_v5 }
 0x5ff   : > { %v6590_v37 = vrot.slane %v6589_v1, 1  ;;  %v6845_v55 = vmul.f32 0.25, %v6577_v20  ;;  %v5996_v38 = vadd.f32 %v5995_v48, %v5994_v26  ;;  %v14544_v61 = vrot.slane %v12760_v19, 1 }
 0x600   : > { %v6915_v6 = vadd.f32 %v12500_v31, %v6844_v7  ;;  %v5991_v41 = vsel %vm959_vm8, %v12580_v29, 0.0  ;;  %v5992_v21 = vsel %vm959_vm8, %v12609_v12, 0.0  ;;  %v7191_v34 = vsel %vm7162_vm4, %v7190_v63, %v7189_v45 }
 0x601   : > { %v7447_v30 = vsel %vm7162_vm4, %v14544_v61, %v12780_v11  ;;  %v7459_v5 = vsel %vm7159_vm3, %v7458_v4, %v7457_v54  ;;  %v6840_v28 = vmul.f32 0.25, %v6542_v15  ;;  %v6842_v18 = vmul.f32 0.25, %v6556_v62 }
 0x602   : > { %v6563_v13 = vadd.f32 %v6562_v2, %v6561_v46  ;;  %v6912_v58 = vadd.f32 %v12500_v31, %v6841_v52  ;;  %v6191_v19 = vrot.slane %v5996_v38, %v12471_v40  ;;  %v5993_v11 = vadd.f32 %v5992_v21, %v5991_v41 }
 0x603   : > { %v7460_v25 = vrot.slane %v7315_v35, 1  ;;  %v6591_v42 = vadd.f32 %v6590_v37, %v6589_v1  ;;  %v6846_v9 = vmul.f32 0.25, %v6584_v44  ;;  %v6916_v29 = vadd.f32 %v12500_v31, %v6845_v55 }
 0x604   : > { %v6979_v8 = vmul.f32 0.2, %v6915_v6  ;;  %v6184_v32 = vcombine.high %v5996_v38, %v5996_v38  ;;  %v6199_v12 = vcombine.high %v6191_v19, %v6191_v19  ;;  %v6620_v63 = vsel %vm6367_vm13, %v6191_v19, 0.0 }
 0x605   : > { %v7541_v39 = vsel %vm959_vm8, %v7447_v30, 0.0  ;;  %v7273_v47 = vsel %vm959_vm8, %v7191_v34, 0.0  ;;  %v7461_v46 = vsel %vm7162_vm4, %v7460_v25, %v7459_v5  ;;  %v6911_v43 = vadd.f32 %v12500_v31, %v6840_v28 }
 0x606   : > { %v6843_v20 = vmul.f32 0.25, %v6563_v13  ;;  %v6913_v53 = vadd.f32 %v12500_v31, %v6842_v18  ;;  %v6976_v1 = vmul.f32 0.2, %v6912_v58  ;;  %v6627_v35 = vsel %vm6367_vm13, %v6199_v12, 0.0 }
 0x607   : > { %v6847_v22 = vmul.f32 0.25, %v6591_v42  ;;  %v6917_v7 = vadd.f32 %v12500_v31, %v6846_v9  ;;  %v6980_v48 = vmul.f32 0.2, %v6916_v29  ;;  %v6621_v4 = vrot.slane %v6620_v63, 4 }
 0x608   : > { %v7540_v15 = vsel %vm959_vm8, %v12756_v24, 0.0  ;;  %v7272_v62 = vadd.f32 %v12774_v36, %v12658_v49  ;;  %v12879_v26 = vmax.f32 %v6915_v6, %v6979_v8  ;;  %v6198_v45 = vrot.slane %v6184_v32, %v12471_v40 }
 0x609   : > { %v7542_v54 = vadd.f32 %v7541_v39, %v7540_v15  ;;  %v7543_v2 = vsel %vm959_vm8, %v7461_v46, 0.0  ;;  %v6975_v52 = vmul.f32 0.2, %v6911_v43  ;;  %v6628_v44 = vrot.slane %v6627_v35, 4 }
 0x60a   : > { %v12883_v37 = vadd.f32 %v7273_v47, %v7272_v62  ;;  %v6914_v55 = vadd.f32 %v12500_v31, %v6843_v20  ;;  %v6977_v38 = vmul.f32 0.2, %v6913_v53  ;;  %v12886_v61 = vmax.f32 %v6912_v58, %v6976_v1 }
 0x60b   : > { %v6918_v24 = vadd.f32 %v12500_v31, %v6847_v22  ;;  %v6981_v30 = vmul.f32 0.2, %v6917_v7  ;;  %v12889_v49 = vmax.f32 %v6916_v29, %v6980_v48  ;;  %v6622_v36 = vadd.f32 %v6621_v4, %v6620_v63 }
 0x60c   : > { %v12891_v6 = vadd.f32 %v7543_v2, %v7542_v54  ;;  %v7198_v41 = vrot.slane %v12879_v26, 4  ;;  %v12896_v21 = vmul.f32 %v12879_v26, %v12879_v26  ;;  %v6200_v34 = vcombine.high %v6198_v45, %v6198_v45 }
 0x60d   : > { %14545 = vst [vmem:[#allocation26_spill] sm:$0xff] %v12889_v49  ;;  %v12898_v5 = vmax.f32 %v6911_v43, %v6975_v52  ;;  %v6629_v28 = vadd.f32 %v6628_v44, %v6627_v35  ;;  %v6634_v18 = vsel %vm6367_vm13, %v6198_v45, 0.0  ;;  %v6167_v13 = vcombine.high %v5993_v11, %v5993_v11 }
 0x60e   : > { %v6978_v31 = vmul.f32 0.2, %v6914_v55  ;;  %v12901_v58 = vmax.f32 %v6913_v53, %v6977_v38  ;;  %v7192_v19 = vrot.slane %v12886_v61, 7  ;;  %v6174_v25 = vrot.slane %v5993_v11, %v12471_v40 }
 0x60f   : > { %v6982_v42 = vmul.f32 0.2, %v6918_v24  ;;  %v12905_v9 = vmax.f32 %v6917_v7, %v6981_v30  ;;  %v7200_v29 = vrot.slane %v12889_v49, 3  ;;  %v6623_v8 = vrot.slane %v6622_v36, 2 }
 0x610   : > { %v12910_v32 = vmul.f32 %v12889_v49, %v12889_v49  ;;  %v6635_v63 = vrot.slane %v6634_v18, 4  ;;  %v6641_v39 = vsel %vm6367_vm13, %v6200_v34, 0.0  ;;  %v7316_v47 = vmul.f32 %v12898_v5, %v12898_v5 }
 0x611   : > { %14546 = vst [vmem:[#allocation27_spill] sm:$0xff] %v12905_v9  ;;  %v7317_v11 = vmul.f32 %v12886_v61, %v12886_v61  ;;  %v6630_v46 = vrot.slane %v6629_v28, 2  ;;  %v6181_v43 = vrot.slane %v6167_v13, %v12471_v40  ;;  %v12919_v20 = vmax.f32 %v6914_v55, %v6978_v31 }
 0x612   : > { %v7193_v53 = vsel %vm7144_vm14, %v7192_v19, %v12898_v5  ;;  %v7194_v1 = vrot.slane %v12901_v58, 6  ;;  %v6182_v35 = vcombine.high %v6174_v25, %v6174_v25  ;;  %v6624_v22 = vadd.f32 %v6623_v8, %v6622_v36 }
 0x613   : > { %v6642_v7 = vrot.slane %v6641_v39, 4  ;;  %v6183_v48 = vcombine.high %v6181_v43, %v6181_v43  ;;  %v6592_v4 = vsel %vm6367_vm13, %v6174_v25, 0.0  ;;  %v7318_v15 = vmul.f32 %v12901_v58, %v12901_v58 }
 0x614   : > { %v6636_v62 = vadd.f32 %v6635_v63, %v6634_v18  ;;  %v6593_v45 = vrot.slane %v6592_v4, 4  ;;  %v6599_v54 = vsel %vm6367_vm13, %v6182_v35, 0.0  ;;  %v7462_v2 = vrot.slane %v7317_v11, 7 }
 0x615   : > { %v6631_v52 = vadd.f32 %v6630_v46, %v6629_v28  ;;  %v6600_v44 = vrot.slane %v6599_v54, 4  ;;  %v6606_v55 = vsel %vm6367_vm13, %v6181_v43, 0.0  ;;  %v7195_v38 = vsel %vm7147_vm15, %v7194_v1, %v7193_v53 }
 0x616   : > { %v7196_v30 = vrot.slane %v12919_v20, 5  ;;  %v6594_v36 = vadd.f32 %v6593_v45, %v6592_v4  ;;  %v6607_v34 = vrot.slane %v6606_v55, 4  ;;  %v6625_v13 = vrot.slane %v6624_v22, 1 }
 0x617   : > { %v6643_v31 = vadd.f32 %v6642_v7, %v6641_v39  ;;  %v6601_v19 = vadd.f32 %v6600_v44, %v6599_v54  ;;  %v6613_v25 = vsel %vm6367_vm13, %v6183_v48, 0.0  ;;  %v7464_v18 = vrot.slane %v7318_v15, 6 }
 0x618   : > { %v6637_v8 = vrot.slane %v6636_v62, 2  ;;  %v6595_v63 = vrot.slane %v6594_v36, 2  ;;  %v6608_v35 = vadd.f32 %v6607_v34, %v6606_v55  ;;  %v7463_v28 = vsel %vm7144_vm14, %v7462_v2, %v7316_v47 }
 0x619   : > { %v6632_v11 = vrot.slane %v6631_v52, 1  ;;  %v6602_v46 = vrot.slane %v6601_v19, 2  ;;  %v6614_v43 = vrot.slane %v6613_v25, 4  ;;  %v12933_v12 = vmax.f32 %v6918_v24, %v6982_v42 }
 0x61a   : > { %v7197_v53 = vsel %vm7150_vm0, %v7196_v30, %v7195_v38  ;;  %v7319_v1 = vmul.f32 %v12919_v20, %v12919_v20  ;;  %v6596_v39 = vadd.f32 %v6595_v63, %v6594_v36  ;;  %v7202_v7 = vrot.slane %v12905_v9, 2 }
 0x61b   : > { %v6626_v48 = vadd.f32 %v6625_v13, %v6624_v22  ;;  %v6644_v4 = vrot.slane %v6643_v31, 2  ;;  %v6603_v15 = vadd.f32 %v6602_v46, %v6601_v19  ;;  %v7465_v45 = vsel %vm7147_vm15, %v7464_v18, %v7463_v28 }
 0x61c   : > { %v6638_v54 = vadd.f32 %v6637_v8, %v6636_v62  ;;  %v6609_v47 = vrot.slane %v6608_v35, 2  ;;  %v6000_v2 = vsel %vm959_vm8, %v12630_v27, 0.0  ;;  %v7199_v24 = vsel %vm7153_vm1, %v7198_v41, %v7197_v53 }
 0x61d   : > { %v6633_v42 = vadd.f32 %v6632_v11, %v6631_v52  ;;  %v6604_v44 = vrot.slane %v6603_v15, 1  ;;  %v6615_v55 = vadd.f32 %v6614_v43, %v6613_v25  ;;  %v7466_v38 = vrot.slane %v7319_v1, 5 }
 0x61e   : > { %v6597_v30 = vrot.slane %v6596_v39, 1  ;;  %v6610_v36 = vadd.f32 %v6609_v47, %v6608_v35  ;;  %v6001_v22 = vsel %vm959_vm8, %v12675_v56, 0.0  ;;  %v6645_v34 = vadd.f32 %v6644_v4, %v6643_v31 }
 0x61f   : > { %v6852_v13 = vmul.f32 0.25, %v6626_v48  ;;  %v6605_v62 = vadd.f32 %v6604_v44, %v6603_v15  ;;  %v6616_v19 = vrot.slane %v6615_v55, 2  ;;  %v7201_v27 = vsel %vm7156_vm2, %v7200_v29, %v7199_v24  ;;  %v12958_v29 = vld [vmem:[%s14121_s4] ss:$0 sm:$0xff] }
 0x620   : > { %v6639_v18 = vrot.slane %v6638_v54, 1  ;;  %v6611_v8 = vrot.slane %v6610_v36, 1  ;;  %v5997_v41 = vsel %vm959_vm8, %v12640_v16, 0.0  ;;  %v6853_v52 = vmul.f32 0.25, %v6633_v42 }
 0x621   : > { %v6617_v25 = vadd.f32 %v6616_v19, %v6615_v55  ;;  %v6849_v63 = vmul.f32 0.25, %v6605_v62  ;;  %v6002_v35 = vadd.f32 %v6001_v22, %v6000_v2  ;;  %v7467_v28 = vsel %vm7150_vm0, %v7466_v38, %v7465_v45 }
 0x622   : > { %v6598_v56 = vadd.f32 %v6597_v30, %v6596_v39  ;;  %v6612_v31 = vadd.f32 %v6611_v8, %v6610_v36  ;;  %v5998_v11 = vsel %vm959_vm8, %v12681_v10, 0.0  ;;  %v6646_v46 = vrot.slane %v6645_v34, 1 }
 0x623   : > { %v6923_v43 = vadd.f32 %v12958_v29, %v6852_v13  ;;  %v6618_v16 = vrot.slane %v6617_v25, 1  ;;  %v6920_v53 = vadd.f32 %v12958_v29, %v6849_v63  ;;  %v6218_v48 = vcombine.high %v6002_v35, %v6002_v35 }
 0x624   : > { %v6850_v1 = vmul.f32 0.25, %v6612_v31  ;;  %v6225_v4 = vrot.slane %v6002_v35, %v12471_v40  ;;  %v12963_v39 = vadd.f32 %v5998_v11, %v5997_v41  ;;  %v7322_v10 = vmul.f32 %v12905_v9, %v12905_v9 }
 0x625   : > { %v6640_v15 = vadd.f32 %v6639_v18, %v6638_v54  ;;  %v6924_v45 = vadd.f32 %v12958_v29, %v6853_v52  ;;  %v6619_v47 = vadd.f32 %v6618_v16, %v6617_v25  ;;  %v7470_v2 = vrot.slane %v12910_v32, 3 }
 0x626   : > { %v7203_v24 = vsel %vm7159_vm3, %v7202_v7, %v7201_v27  ;;  %v14547_v42 = vrot.slane %v12896_v21, 4  ;;  %v6848_v55 = vmul.f32 0.25, %v6598_v56  ;;  %v6647_v38 = vadd.f32 %v6646_v46, %v6645_v34 }
 0x627   : > { %v6987_v30 = vmul.f32 0.2, %v6923_v43  ;;  %v6851_v36 = vmul.f32 0.25, %v6619_v47  ;;  %v6921_v22 = vadd.f32 %v12958_v29, %v6850_v1  ;;  %v6984_v13 = vmul.f32 0.2, %v6920_v53 }
 0x628   : > { %v7469_v44 = vsel %vm7153_vm1, %v14547_v42, %v7467_v28  ;;  %v6232_v54 = vrot.slane %v6218_v48, %v12471_v40  ;;  %v6233_v62 = vcombine.high %v6225_v4, %v6225_v4  ;;  %v6676_v19 = vsel %vm6367_vm13, %v6225_v4, 0.0 }
 0x629   : > { %v7204_v32 = vrot.slane %v12933_v12, 1  ;;  %v7323_v7 = vmul.f32 %v12933_v12, %v12933_v12  ;;  %v6854_v21 = vmul.f32 0.25, %v6640_v15  ;;  %v6988_v27 = vmul.f32 0.2, %v6924_v45 }
 0x62a   : > { %v7472_v18 = vrot.slane %v7322_v10, 2  ;;  %v7471_v34 = vsel %vm7156_vm2, %v7470_v2, %v7469_v44  ;;  %v6919_v8 = vadd.f32 %v12958_v29, %v6848_v55  ;;  %v6922_v41 = vadd.f32 %v12958_v29, %v6851_v36 }
 0x62b   : > { %v7205_v52 = vsel %vm7162_vm4, %v7204_v32, %v7203_v24  ;;  %v6855_v25 = vmul.f32 0.25, %v6647_v38  ;;  %v6985_v63 = vmul.f32 0.2, %v6921_v22  ;;  %v6677_v35 = vrot.slane %v6676_v19, 4  ;;  %v13020_v32 = vpop.f32.mrb[32].mxu0 }
 0x62c   : > { %v12983_v28 = vmax.f32 %v6923_v43, %v6987_v30  ;;  %v12985_v56 = vmax.f32 %v6920_v53, %v6984_v13  ;;  %v6683_v31 = vsel %vm6367_vm13, %v6233_v62, 0.0  ;;  %v6690_v11 = vsel %vm6367_vm13, %v6232_v54, 0.0  ;;  %14554 = vst [vmem:[#allocation47_spill] sm:$0xff] %v13020_v32 }
 0x62d   : > { %v7474_v46 = vrot.slane %v7323_v7, 1  ;;  %v7473_v16 = vsel %vm7159_vm3, %v7472_v18, %v7471_v34  ;;  %v6925_v1 = vadd.f32 %v12958_v29, %v6854_v21  ;;  %v12991_v48 = vmax.f32 %v6924_v45, %v6988_v27  ;;  %v8916_v34 = vpop.f32.mrb[33].mxu0 }
 0x62e   : > { %14548 = vst [vmem:[#allocation41_spill] sm:$0xff] %v12983_v28  ;;  %14549 = vst [vmem:[#allocation42_spill] sm:$0xff] %v12985_v56  ;;  %v12994_v4 = vsel %vm959_vm8, %v7205_v52, 0.0  ;;  %v6983_v10 = vmul.f32 0.2, %v6919_v8  ;;  %v6234_v43 = vcombine.high %v6232_v54, %v6232_v54  ;;  %v12996_v47 = vmax.f32 %v6921_v22, %v6985_v63 }
 0x62f   : > { %14550 = vst [vmem:[#allocation28_spill] sm:$0xff] %v12991_v48  ;;  %v6986_v15 = vmul.f32 0.2, %v6922_v41  ;;  %v6678_v53 = vadd.f32 %v6677_v35, %v6676_v19  ;;  %v6684_v2 = vrot.slane %v6683_v31, 4  ;;  %v6691_v24 = vrot.slane %v6690_v11, 4 }
 0x630   : > { %14551 = vst [vmem:[#allocation31_spill] sm:$0xff] %v12996_v47  ;;  %v12999_v42 = vsel %vm7162_vm4, %v7474_v46, %v7473_v16  ;;  %v6926_v44 = vadd.f32 %v12958_v29, %v6855_v25  ;;  %v7212_v55 = vrot.slane %v12983_v28, 4  ;;  %v7206_v45 = vrot.slane %v12985_v56, 7 }
 0x631   : > { %v6989_v38 = vmul.f32 0.2, %v6925_v1  ;;  %v7214_v30 = vrot.slane %v12991_v48, 3  ;;  %v13007_v36 = vmul.f32 %v12983_v28, %v12983_v28  ;;  %v7325_v22 = vmul.f32 %v12985_v56, %v12985_v56 }
 0x632   : > { %v13013_v13 = vmul.f32 %v12991_v48, %v12991_v48  ;;  %v13015_v54 = vmax.f32 %v6919_v8, %v6983_v10  ;;  %v13017_v62 = vmax.f32 %v6922_v41, %v6986_v15  ;;  %v6697_v19 = vsel %vm6367_vm13, %v6234_v43, 0.0 }
 0x633   : > { %v7208_v7 = vrot.slane %v12996_v47, 6  ;;  %v6679_v21 = vrot.slane %v6678_v53, 2  ;;  %v6685_v27 = vadd.f32 %v6684_v2, %v6683_v31  ;;  %v6692_v18 = vadd.f32 %v6691_v24, %v6690_v11 }
 0x634   : > { %14552 = vst [vmem:[#allocation32_spill] sm:$0xff] %v13015_v54  ;;  %14553 = vst [vmem:[#allocation33_spill] sm:$0xff] %v13017_v62  ;;  %v6990_v52 = vmul.f32 0.2, %v6926_v44  ;;  %v7207_v25 = vsel %vm7144_vm14, %v7206_v45, %v13015_v54  ;;  %v6201_v8 = vcombine.high %v12963_v39, %v12963_v39  ;;  %v6208_v41 = vrot.slane %v12963_v39, %v12471_v40 }
 0x635   : > { %v13029_v63 = vmax.f32 %v6925_v1, %v6989_v38  ;;  %v7476_v46 = vrot.slane %v7325_v22, 7  ;;  %v6698_v16 = vrot.slane %v6697_v19, 4  ;;  %v7210_v11 = vrot.slane %v13017_v62, 5 }
 0x636   : > { %v7324_v10 = vmul.f32 %v13015_v54, %v13015_v54  ;;  %v7326_v15 = vmul.f32 %v12996_v47, %v12996_v47  ;;  %v7209_v43 = vsel %vm7147_vm15, %v7208_v7, %v7207_v25  ;;  %v6680_v2 = vadd.f32 %v6679_v21, %v6678_v53 }
 0x637   : > { %14555 = vst [vmem:[#allocation48_spill] sm:$0xff] %v13029_v63  ;;  %v6686_v39 = vrot.slane %v6685_v27, 2  ;;  %v6693_v1 = vrot.slane %v6692_v18, 2  ;;  %v13039_v24 = vmax.f32 %v6926_v44, %v6990_v52  ;;  %v7327_v45 = vmul.f32 %v13017_v62, %v13017_v62 }
 0x638   : > { %v6215_v38 = vrot.slane %v6201_v8, %v12471_v40  ;;  %v6216_v22 = vcombine.high %v6208_v41, %v6208_v41  ;;  %v13047_v31 = vmul.f32 %v13029_v63, %v13029_v63  ;;  %v7477_v35 = vsel %vm7144_vm14, %v7476_v46, %v7324_v10 }
 0x639   : > { %14556 = vst [vmem:[#allocation34_spill] sm:$0xff] %v13039_v24  ;;  %v6699_v7 = vadd.f32 %v6698_v16, %v6697_v19  ;;  %v7211_v53 = vsel %vm7150_vm0, %v7210_v11, %v7209_v43  ;;  %v7478_v21 = vrot.slane %v7326_v15, 6  ;;  %v6648_v44 = vsel %vm6367_vm13, %v6208_v41, 0.0 }
 0x63a   : > { %v6655_v52 = vsel %vm6367_vm13, %v6216_v22, 0.0  ;;  %v6681_v25 = vrot.slane %v6680_v2, 1  ;;  %v6687_v32 = vadd.f32 %v6686_v39, %v6685_v27  ;;  %v6694_v8 = vadd.f32 %v6693_v1, %v6692_v18 }
 0x63b   : > { %v6649_v48 = vrot.slane %v6648_v44, 4  ;;  %v7480_v28 = vrot.slane %v7327_v45, 5  ;;  %v6217_v34 = vcombine.high %v6215_v38, %v6215_v38  ;;  %v6656_v62 = vrot.slane %v6655_v52, 4 }
 0x63c   : > { %v6662_v47 = vsel %vm6367_vm13, %v6215_v38, 0.0  ;;  %v7213_v56 = vsel %vm7153_vm1, %v7212_v55, %v7211_v53  ;;  %v6700_v46 = vrot.slane %v6699_v7, 2  ;;  %v7218_v11 = vrot.slane %v13039_v24, 1 }
 0x63d   : > { %v6650_v19 = vadd.f32 %v6649_v48, %v6648_v44  ;;  %v6663_v16 = vrot.slane %v6662_v47, 4  ;;  %v13058_v41 = vmul.f32 %v13039_v24, %v13039_v24  ;;  %v7479_v27 = vsel %vm7147_vm15, %v7478_v21, %v7477_v35 }
 0x63e   : > { %v6006_v18 = vsel %vm959_vm8, %v12697_v59, 0.0  ;;  %v6682_v10 = vadd.f32 %v6681_v25, %v6680_v2  ;;  %v6657_v43 = vadd.f32 %v6656_v62, %v6655_v52  ;;  %v7215_v55 = vsel %vm7156_vm2, %v7214_v30, %v7213_v56 }
 0x63f   : > { %v6651_v15 = vrot.slane %v6650_v19, 2  ;;  %v6664_v39 = vadd.f32 %v6663_v16, %v6662_v47  ;;  %v6688_v1 = vrot.slane %v6687_v32, 1  ;;  %v6695_v48 = vrot.slane %v6694_v8, 1 }
 0x640   : > { %v6669_v45 = vsel %vm6367_vm13, %v6217_v34, 0.0  ;;  %v7481_v38 = vsel %vm7150_vm0, %v7480_v28, %v7479_v27  ;;  %v6701_v22 = vadd.f32 %v6700_v46, %v6699_v7  ;;  %v6658_v44 = vrot.slane %v6657_v43, 2 }
 0x641   : > { %v6652_v53 = vadd.f32 %v6651_v15, %v6650_v19  ;;  %v6665_v24 = vrot.slane %v6664_v39, 2  ;;  %v6670_v35 = vrot.slane %v6669_v45, 4  ;;  %v6007_v59 = vsel %vm959_vm8, %v12716_v60, 0.0 }
 0x642   : > { %v6004_v62 = vsel %vm959_vm8, %v12726_v17, 0.0  ;;  %v6860_v47 = vmul.f32 0.25, %v6682_v10  ;;  %v6659_v2 = vadd.f32 %v6658_v44, %v6657_v43  ;;  %v6003_v56 = vsel %vm959_vm8, %v12699_v14, 0.0 }
 0x643   : > { %v6008_v30 = vadd.f32 %v6007_v59, %v6006_v18  ;;  %v6689_v34 = vadd.f32 %v6688_v1, %v6687_v32  ;;  %v6666_v21 = vadd.f32 %v6665_v24, %v6664_v39  ;;  %v6671_v28 = vadd.f32 %v6670_v35, %v6669_v45 }
 0x644   : > { %v13072_v7 = vadd.f32 %v6004_v62, %v6003_v56  ;;  %v6696_v52 = vadd.f32 %v6695_v48, %v6694_v8  ;;  %v6660_v25 = vrot.slane %v6659_v2, 1  ;;  %v14557_v60 = vrot.slane %v13007_v36, 4 }
 0x645   : > { %v6252_v46 = vcombine.high %v6008_v30, %v6008_v30  ;;  %v6259_v19 = vrot.slane %v6008_v30, %v12471_v40  ;;  %v6653_v16 = vrot.slane %v6652_v53, 1  ;;  %v6667_v27 = vrot.slane %v6666_v21, 1 }
 0x646   : > { %v7483_v17 = vsel %vm7153_vm1, %v14557_v60, %v7481_v38  ;;  %v6672_v10 = vrot.slane %v6671_v28, 2  ;;  %v6702_v15 = vrot.slane %v6701_v22, 1  ;;  %v6931_v14 = vadd.f32 %v12958_v29, %v6860_v47 }
 0x647   : > { %v6661_v32 = vadd.f32 %v6660_v25, %v6659_v2  ;;  %v6267_v24 = vcombine.high %v6259_v19, %v6259_v19  ;;  %v6861_v18 = vmul.f32 0.25, %v6689_v34  ;;  %v6668_v43 = vadd.f32 %v6667_v27, %v6666_v21 }
 0x648   : > { %v6673_v39 = vadd.f32 %v6672_v10, %v6671_v28  ;;  %v6732_v8 = vsel %vm6367_vm13, %v6259_v19, 0.0  ;;  %v14558_v1 = vrot.slane %v13029_v63, 2  ;;  %v6862_v36 = vmul.f32 0.25, %v6696_v52 }
 0x649   : > { %v6857_v45 = vmul.f32 0.25, %v6661_v32  ;;  %v6266_v38 = vrot.slane %v6252_v46, %v12471_v40  ;;  %v6654_v44 = vadd.f32 %v6653_v16, %v6652_v53  ;;  %v6733_v59 = vrot.slane %v6732_v8, 4 }
 0x64a   : > { %v7217_v48 = vsel %vm7159_vm3, %v14558_v1, %v7215_v55  ;;  %v6674_v35 = vrot.slane %v6673_v39, 1  ;;  %v6739_v62 = vsel %vm6367_vm13, %v6267_v24, 0.0  ;;  %v14559_v47 = vrot.slane %v13013_v13, 3 }
 0x64b   : > { %v6703_v56 = vadd.f32 %v6702_v15, %v6701_v22  ;;  %v6995_v30 = vmul.f32 0.2, %v6931_v14  ;;  %v6858_v34 = vmul.f32 0.25, %v6668_v43  ;;  %v7486_v21 = vrot.slane %v13047_v31, 2 }
 0x64c   : > { %v7485_v2 = vsel %vm7156_vm2, %v14559_v47, %v7483_v17  ;;  %v6932_v55 = vadd.f32 %v12958_v29, %v6861_v18  ;;  %v6928_v28 = vadd.f32 %v12958_v29, %v6857_v45  ;;  %v6740_v52 = vrot.slane %v6739_v62, 4 }
 0x64d   : > { %v7545_v53 = vsel %vm959_vm8, %v12999_v42, 0.0  ;;  %v7219_v25 = vsel %vm7162_vm4, %v7218_v11, %v7217_v48  ;;  %v6675_v46 = vadd.f32 %v6674_v35, %v6673_v39  ;;  %v6746_v13 = vsel %vm6367_vm13, %v6266_v38, 0.0 }
 0x64e   : > { %v7487_v19 = vsel %vm7159_vm3, %v7486_v21, %v7485_v2  ;;  %v6933_v22 = vadd.f32 %v12958_v29, %v6862_v36  ;;  %v6856_v60 = vmul.f32 0.25, %v6654_v44  ;;  %v6734_v17 = vadd.f32 %v6733_v59, %v6732_v8 }
 0x64f   : > { %v7488_v31 = vrot.slane %v13058_v41, 1  ;;  %v6863_v16 = vmul.f32 0.25, %v6703_v56  ;;  %v13098_v27 = vmax.f32 %v6931_v14, %v6995_v30  ;;  %v6929_v10 = vadd.f32 %v12958_v29, %v6858_v34 }
 0x650   : > { %v6996_v15 = vmul.f32 0.2, %v6932_v55  ;;  %v6992_v42 = vmul.f32 0.2, %v6928_v28  ;;  %v6741_v32 = vadd.f32 %v6740_v52, %v6739_v62  ;;  %v6747_v11 = vrot.slane %v6746_v13, 4 }
 0x651   : > { %14560 = vst [vmem:[#allocation37_spill] sm:$0xff] %v13098_v27  ;;  %v7276_v24 = vadd.f32 %v12994_v4, %v12883_v37  ;;  %v7277_v18 = vsel %vm959_vm8, %v7219_v25, 0.0  ;;  %v7489_v43 = vsel %vm7162_vm4, %v7488_v31, %v7487_v19  ;;  %v6859_v39 = vmul.f32 0.25, %v6675_v46 }
 0x652   : > { %v6997_v8 = vmul.f32 0.2, %v6933_v22  ;;  %v6927_v41 = vadd.f32 %v12958_v29, %v6856_v60  ;;  %v6268_v1 = vcombine.high %v6266_v38, %v6266_v38  ;;  %v6735_v14 = vrot.slane %v6734_v17, 2 }
 0x653   : > { %v13107_v48 = vadd.f32 %v7545_v53, %v12891_v6  ;;  %v6934_v36 = vadd.f32 %v12958_v29, %v6863_v16  ;;  %v13112_v45 = vmul.f32 %v13098_v27, %v13098_v27  ;;  %v6993_v37 = vmul.f32 0.2, %v6929_v10 }
 0x654   : > { %v13114_v4 = vmax.f32 %v6932_v55, %v6996_v15  ;;  %v13116_v44 = vmax.f32 %v6928_v28, %v6992_v42  ;;  %v6742_v35 = vrot.slane %v6741_v32, 2  ;;  %v6748_v59 = vadd.f32 %v6747_v11, %v6746_v13 }
 0x655   : > { %v13118_v62 = vadd.f32 %v7277_v18, %v7276_v24  ;;  %v13121_v38 = vsel %vm959_vm8, %v7489_v43, 0.0  ;;  %v6930_v47 = vadd.f32 %v12958_v29, %v6859_v39  ;;  %v13125_v2 = vmax.f32 %v6933_v22, %v6997_v8 }
 0x656   : > { %14561 = vst [vmem:[#allocation38_spill] sm:$0xff] %v13114_v4  ;;  %14562 = vst [vmem:[#allocation39_spill] sm:$0xff] %v13116_v44  ;;  %v6991_v56 = vmul.f32 0.2, %v6927_v41  ;;  %v6736_v30 = vadd.f32 %v6735_v14, %v6734_v17  ;;  %v6753_v34 = vsel %vm6367_vm13, %v6268_v1, 0.0  ;;  %v13129_v28 = vmax.f32 %v6929_v10, %v6993_v37 }
 0x657   : > { %14563 = vst [vmem:[#allocation46_spill] sm:$0xff] %v13125_v2  ;;  %v6998_v21 = vmul.f32 0.2, %v6934_v36  ;;  %v6235_v52 = vcombine.high %v13072_v7, %v13072_v7  ;;  %v7333_v25 = vmul.f32 %v13116_v44, %v13116_v44  ;;  %v6743_v46 = vadd.f32 %v6742_v35, %v6741_v32 }
 0x658   : > { %14564 = vst [vmem:[#allocation49_spill] sm:$0xff] %v13129_v28  ;;  %v6749_v13 = vrot.slane %v6748_v59, 2  ;;  %v6994_v19 = vmul.f32 0.2, %v6930_v47  ;;  %v7220_v22 = vrot.slane %v13116_v44, 7  ;;  %v6754_v60 = vrot.slane %v6753_v34, 4 }
 0x659   : > { %v6242_v17 = vrot.slane %v13072_v7, %v12471_v40  ;;  %v13142_v16 = vmul.f32 %v13114_v4, %v13114_v4  ;;  %v13144_v10 = vmax.f32 %v6927_v41, %v6991_v56  ;;  %v6737_v15 = vrot.slane %v6736_v30, 1 }
 0x65a   : > { %v13146_v42 = vmax.f32 %v6934_v36, %v6998_v21  ;;  %v13150_v32 = vmul.f32 %v13125_v2, %v13125_v2  ;;  %v7334_v11 = vmul.f32 %v13129_v28, %v13129_v28  ;;  %v6249_v7 = vrot.slane %v6235_v52, %v12471_v40 }
 0x65b   : > { %14565 = vst [vmem:[#allocation40_spill] sm:$0xff] %v13144_v10  ;;  %v7222_v24 = vrot.slane %v13129_v28, 6  ;;  %v7490_v18 = vrot.slane %v7333_v25, 7  ;;  %v6744_v43 = vrot.slane %v6743_v46, 1  ;;  %v6750_v39 = vadd.f32 %v6749_v13, %v6748_v59 }
 0x65c   : > { %14566 = vst [vmem:[#allocation43_spill] sm:$0xff] %v13146_v42  ;;  %v13156_v8 = vmax.f32 %v6930_v47, %v6994_v19  ;;  %v7221_v41 = vsel %vm7144_vm14, %v7220_v22, %v13144_v10  ;;  %v6755_v1 = vadd.f32 %v6754_v60, %v6753_v34  ;;  %v6250_v14 = vcombine.high %v6242_v17, %v6242_v17 }
 0x65d   : > { %v7332_v37 = vmul.f32 %v13144_v10, %v13144_v10  ;;  %v6738_v35 = vadd.f32 %v6737_v15, %v6736_v30  ;;  %v6704_v56 = vsel %vm6367_vm13, %v6242_v17, 0.0  ;;  %v7492_v52 = vrot.slane %v7334_v11, 6 }
 0x65e   : > { %14567 = vst [vmem:[#allocation44_spill] sm:$0xff] %v13156_v8  ;;  %v6251_v25 = vcombine.high %v6249_v7, %v6249_v7  ;;  %v6012_v59 = vsel %vm959_vm8, %v12767_v0, 0.0  ;;  %v7223_v47 = vsel %vm7147_vm15, %v7222_v24, %v7221_v41  ;;  %v6745_v13 = vadd.f32 %v6744_v43, %v6743_v46  ;;  %v14613_v54 = vld [vmem:[#allocation46_spill] sm:$0xff] }
 0x65f   : > { %v7491_v34 = vsel %vm7144_vm14, %v7490_v18, %v7332_v37  ;;  %v6751_v19 = vrot.slane %v6750_v39, 1  ;;  %v7224_v22 = vrot.slane %v13156_v8, 5  ;;  %v6756_v60 = vrot.slane %v6755_v1, 2 }
 0x660   : > { %v6705_v36 = vrot.slane %v6704_v56, 4  ;;  %v6711_v30 = vsel %vm6367_vm13, %v6250_v14, 0.0  ;;  %v7335_v17 = vmul.f32 %v13156_v8, %v13156_v8  ;;  %v6868_v15 = vmul.f32 0.25, %v6738_v35 }
 0x661   : > { %v6712_v11 = vrot.slane %v6711_v30, 4  ;;  %v6718_v21 = vsel %vm6367_vm13, %v6249_v7, 0.0  ;;  %v7493_v0 = vsel %vm7147_vm15, %v7492_v52, %v7491_v34  ;;  %v6725_v46 = vsel %vm6367_vm13, %v6251_v25, 0.0 }
 0x662   : > { %v6706_v24 = vadd.f32 %v6705_v36, %v6704_v56  ;;  %v6719_v41 = vrot.slane %v6718_v21, 4  ;;  %v6752_v18 = vadd.f32 %v6751_v19, %v6750_v39  ;;  %v6726_v37 = vrot.slane %v6725_v46, 4  ;;  %v14568_v36 = vld [vmem:[#allocation25_spill] sm:$0xff] }
 0x663   : > { %v6713_v43 = vadd.f32 %v6712_v11, %v6711_v30  ;;  %v6013_v55 = vsel %vm959_vm8, %v12808_v57, 0.0  ;;  %v7225_v14 = vsel %vm7150_vm0, %v7224_v22, %v7223_v47  ;;  %v6009_v35 = vsel %vm959_vm8, %v12770_v3, 0.0 }
 0x664   : > { %v6707_v31 = vrot.slane %v6706_v24, 2  ;;  %v6720_v53 = vadd.f32 %v6719_v41, %v6718_v21  ;;  %v6727_v6 = vadd.f32 %v6726_v37, %v6725_v46  ;;  %v6014_v52 = vadd.f32 %v6013_v55, %v6012_v59 }
 0x665   : > { %v6714_v7 = vrot.slane %v6713_v43, 2  ;;  %v6010_v56 = vsel %vm959_vm8, %v14568_v36, 0.0  ;;  %v7494_v25 = vrot.slane %v7335_v17, 5  ;;  %v14569_v21 = vrot.slane %v13098_v27, 4 }
 0x666   : > { %v6708_v39 = vadd.f32 %v6707_v31, %v6706_v24  ;;  %v6721_v34 = vrot.slane %v6720_v53, 2  ;;  %v13183_v19 = vadd.f32 %v6010_v56, %v6009_v35  ;;  %v6728_v57 = vrot.slane %v6727_v6, 2 }
 0x667   : > { %v6715_v30 = vadd.f32 %v6714_v7, %v6713_v43  ;;  %v6286_v11 = vcombine.high %v6014_v52, %v6014_v52  ;;  %v6293_v47 = vrot.slane %v6014_v52, %v12471_v40  ;;  %v7227_v3 = vsel %vm7153_vm1, %v14569_v21, %v7225_v14 }
 0x668   : > { %v6757_v22 = vadd.f32 %v6756_v60, %v6755_v1  ;;  %v6709_v41 = vrot.slane %v6708_v39, 1  ;;  %v6722_v55 = vadd.f32 %v6721_v34, %v6720_v53  ;;  %v6869_v59 = vmul.f32 0.25, %v6745_v13 }
 0x669   : > { %v6716_v46 = vrot.slane %v6715_v30, 1  ;;  %v6729_v37 = vadd.f32 %v6728_v57, %v6727_v6  ;;  %v6301_v17 = vcombine.high %v6293_v47, %v6293_v47  ;;  %v6870_v31 = vmul.f32 0.25, %v6752_v18 }
 0x66a   : > { %v6939_v24 = vadd.f32 %v12958_v29, %v6868_v15  ;;  %v6723_v35 = vrot.slane %v6722_v55, 1  ;;  %v6300_v43 = vrot.slane %v6286_v11, %v12471_v40  ;;  %v14570_v7 = vrot.slane %v13114_v4, 3 }
 0x66b   : > { %v7495_v36 = vsel %vm7150_vm0, %v7494_v25, %v7493_v0  ;;  %v6717_v14 = vadd.f32 %v6716_v46, %v6715_v30  ;;  %v6730_v1 = vrot.slane %v6729_v37, 1  ;;  %v6710_v60 = vadd.f32 %v6709_v41, %v6708_v39 }
 0x66c   : > { %v7229_v52 = vsel %vm7156_vm2, %v14570_v7, %v7227_v3  ;;  %v6724_v53 = vadd.f32 %v6723_v35, %v6722_v55  ;;  %v6788_v13 = vsel %vm6367_vm13, %v6293_v47, 0.0  ;;  %v6795_v6 = vsel %vm6367_vm13, %v6301_v17, 0.0 }
 0x66d   : > { %v6758_v18 = vrot.slane %v6757_v22, 1  ;;  %v6940_v15 = vadd.f32 %v12958_v29, %v6869_v59  ;;  %v6731_v56 = vadd.f32 %v6730_v1, %v6729_v37  ;;  %v6865_v34 = vmul.f32 0.25, %v6717_v14 }
 0x66e   : > { %v14571_v57 = vrot.slane %v13125_v2, 2  ;;  %v14572_v21 = vrot.slane %v13112_v45, 4  ;;  %v6866_v25 = vmul.f32 0.25, %v6724_v53  ;;  %v6302_v39 = vcombine.high %v6300_v43, %v6300_v43 }
 0x66f   : > { %v6936_v30 = vadd.f32 %v12958_v29, %v6865_v34  ;;  %v6789_v47 = vrot.slane %v6788_v13, 4  ;;  %v6796_v3 = vrot.slane %v6795_v6, 4  ;;  %v6802_v41 = vsel %vm6367_vm13, %v6300_v43, 0.0 }
 0x670   : > { %v7231_v11 = vsel %vm7159_vm3, %v14571_v57, %v7229_v52  ;;  %v7497_v0 = vsel %vm7153_vm1, %v14572_v21, %v7495_v36  ;;  %v6941_v55 = vadd.f32 %v12958_v29, %v6870_v31  ;;  %v7003_v59 = vmul.f32 0.2, %v6939_v24 }
 0x671   : > { %v6864_v46 = vmul.f32 0.25, %v6710_v60  ;;  %v6867_v37 = vmul.f32 0.25, %v6731_v56  ;;  %v7339_v17 = vmul.f32 %v13146_v42, %v13146_v42  ;;  %v7500_v45 = vrot.slane %v13150_v32, 2 }
 0x672   : > { %v14573_v35 = vrot.slane %v13146_v42, 1  ;;  %v6937_v52 = vadd.f32 %v12958_v29, %v6866_v25  ;;  %v14574_v36 = vrot.slane %v13142_v16, 3  ;;  %v7000_v14 = vmul.f32 0.2, %v6936_v30 }
 0x673   : > { %v6803_v31 = vrot.slane %v6802_v41, 4  ;;  %v6809_v1 = vsel %vm6367_vm13, %v6302_v39, 0.0  ;;  %v6759_v60 = vadd.f32 %v6758_v18, %v6757_v22  ;;  %v7004_v53 = vmul.f32 0.2, %v6940_v15 }
 0x674   : > { %v7233_v7 = vsel %vm7162_vm4, %v14573_v35, %v7231_v11  ;;  %v7499_v43 = vsel %vm7156_vm2, %v14574_v36, %v7497_v0  ;;  %v6790_v56 = vadd.f32 %v6789_v47, %v6788_v13  ;;  %v6797_v34 = vadd.f32 %v6796_v3, %v6795_v6 }
 0x675   : > { %v7005_v57 = vmul.f32 0.2, %v6941_v55  ;;  %v13218_v32 = vmax.f32 %v6939_v24, %v7003_v59  ;;  %v6935_v21 = vadd.f32 %v12958_v29, %v6864_v46  ;;  %v6938_v11 = vadd.f32 %v12958_v29, %v6867_v37 }
 0x676   : > { %v7279_v25 = vsel %vm959_vm8, %v7233_v7, 0.0  ;;  %v7501_v16 = vsel %vm7159_vm3, %v7500_v45, %v7499_v43  ;;  %v7001_v0 = vmul.f32 0.2, %v6937_v52  ;;  %v6810_v35 = vrot.slane %v6809_v1, 4 }
 0x677   : > { %14575 = vst [vmem:[#allocation51_spill] sm:$0xff] %v13218_v32  ;;  %v13226_v39 = vadd.f32 %v13121_v38, %v13107_v48  ;;  %v7502_v22 = vrot.slane %v7339_v17, 1  ;;  %v13228_v13 = vmax.f32 %v6936_v30, %v7000_v14  ;;  %v6804_v6 = vadd.f32 %v6803_v31, %v6802_v41 }
 0x678   : > { %v6871_v24 = vmul.f32 0.25, %v6759_v60  ;;  %v13230_v18 = vmax.f32 %v6940_v15, %v7004_v53  ;;  %v6791_v47 = vrot.slane %v6790_v56, 2  ;;  %v6798_v3 = vrot.slane %v6797_v34, 2 }
 0x679   : > { %14576 = vst [vmem:[#allocation45_spill] sm:$0xff] %v13228_v13  ;;  %v13233_v59 = vadd.f32 %v7279_v25, %v13118_v62  ;;  %v13236_v46 = vsel %vm7162_vm4, %v7502_v22, %v7501_v16  ;;  %v6999_v37 = vmul.f32 0.2, %v6935_v21  ;;  %v7002_v45 = vmul.f32 0.2, %v6938_v11 }
 0x67a   : > { %14577 = vst [vmem:[#allocation57_spill] sm:$0xff] %v13230_v18  ;;  %v13238_v7 = vmax.f32 %v6941_v55, %v7005_v57  ;;  %v7240_v48 = vrot.slane %v13218_v32, 4  ;;  %v13241_v38 = vmax.f32 %v6937_v52, %v7001_v0  ;;  %v6811_v30 = vadd.f32 %v6810_v35, %v6809_v1 }
 0x67b   : > { %v7234_v15 = vrot.slane %v13228_v13, 7  ;;  %v7341_v41 = vmul.f32 %v13228_v13, %v13228_v13  ;;  %v6805_v17 = vrot.slane %v6804_v6, 2  ;;  %v6269_v62 = vcombine.high %v13183_v19, %v13183_v19 }
 0x67c   : > { %14578 = vst [vmem:[#allocation52_spill] sm:$0xff] %v13241_v38  ;;  %v13249_v36 = vadd.f32 %v12958_v29, %v6871_v24  ;;  %v6792_v43 = vadd.f32 %v6791_v47, %v6790_v56  ;;  %v6799_v14 = vadd.f32 %v6798_v3, %v6797_v34  ;;  %v13254_v52 = vmul.f32 %v13218_v32, %v13218_v32 }
 0x67d   : > { %v13256_v31 = vmax.f32 %v6935_v21, %v6999_v37  ;;  %v13258_v1 = vmax.f32 %v6938_v11, %v7002_v45  ;;  %v6276_v60 = vrot.slane %v13183_v19, %v12471_v40  ;;  %v7236_v57 = vrot.slane %v13241_v38, 6 }
 0x67e   : > { %v7342_v25 = vmul.f32 %v13241_v38, %v13241_v38  ;;  %v6812_v56 = vrot.slane %v6811_v30, 2  ;;  %v7504_v16 = vrot.slane %v7341_v41, 7  ;;  %v6806_v0 = vadd.f32 %v6805_v17, %v6804_v6 }
 0x67f   : > { %14579 = vst [vmem:[#allocation56_spill] sm:$0xff] %v13256_v31  ;;  %14580 = vst [vmem:[#allocation50_spill] sm:$0xff] %v13258_v1  ;;  %v7235_v34 = vsel %vm7144_vm14, %v7234_v15, %v13256_v31  ;;  %v6283_v21 = vrot.slane %v6269_v62, %v12471_v40  ;;  %v13271_v11 = vmul.f32 %v13230_v18, %v13230_v18  ;;  %v6793_v35 = vrot.slane %v6792_v43, 1 }
 0x680   : > { %v13275_v19 = vmul.f32 %v13238_v7, %v13238_v7  ;;  %v6800_v22 = vrot.slane %v6799_v14, 1  ;;  %v7238_v24 = vrot.slane %v13258_v1, 5  ;;  %v7340_v47 = vmul.f32 %v13256_v31, %v13256_v31 }
 0x681   : > { %v7343_v6 = vmul.f32 %v13258_v1, %v13258_v1  ;;  %v6284_v3 = vcombine.high %v6276_v60, %v6276_v60  ;;  %v7006_v40 = vmul.f32 0.2, %v13249_v36  ;;  %v7237_v37 = vsel %vm7147_vm15, %v7236_v57, %v7235_v34 }
 0x682   : > { %v7506_v45 = vrot.slane %v7342_v25, 6  ;;  %v6813_v15 = vadd.f32 %v6812_v56, %v6811_v30  ;;  %v7510_v41 = vrot.slane %v13254_v52, 4  ;;  %v7505_v17 = vsel %vm7144_vm14, %v7504_v16, %v7340_v47 }
 0x683   : > { %v6807_v62 = vrot.slane %v6806_v0, 1  ;;  %v6285_v53 = vcombine.high %v6283_v21, %v6283_v21  ;;  %v7512_v55 = vrot.slane %v13271_v11, 3  ;;  %v6794_v32 = vadd.f32 %v6793_v35, %v6792_v43  ;;  %v14617_v49 = vld [vmem:[#allocation52_spill] sm:$0xff] }
 0x684   : > { %v6801_v38 = vadd.f32 %v6800_v22, %v6799_v14  ;;  %v6760_v13 = vsel %vm6367_vm13, %v6276_v60, 0.0  ;;  %v7239_v1 = vsel %vm7150_vm0, %v7238_v24, %v7237_v37  ;;  %v7508_v31 = vrot.slane %v7343_v6, 5  ;;  %v7982_v14 = vld [vmem:[%s14124_s7] sm:$0xff]  ;;  %v7983_v60 = vld [vmem:[%s14124_s7 + $0x8] sm:$0xff] }
 0x685   : > { %v6761_v42 = vrot.slane %v6760_v13, 4  ;;  %v6767_v57 = vsel %vm6367_vm13, %v6284_v3, 0.0  ;;  %v7507_v30 = vsel %vm7147_vm15, %v7506_v45, %v7505_v17  ;;  %v6814_v25 = vrot.slane %v6813_v15, 1 }
 0x686   : > { %v6768_v52 = vrot.slane %v6767_v57, 4  ;;  %v6774_v56 = vsel %vm6367_vm13, %v6283_v21, 0.0  ;;  %v6808_v34 = vadd.f32 %v6807_v62, %v6806_v0  ;;  %v6781_v43 = vsel %vm6367_vm13, %v6285_v53, 0.0  ;;  %v14618_v9 = vld [vmem:[#allocation50_spill] sm:$0xff] }
 0x687   : > { %v6762_v16 = vadd.f32 %v6761_v42, %v6760_v13  ;;  %v6775_v47 = vrot.slane %v6774_v56, 4  ;;  %v7241_v11 = vsel %vm7153_vm1, %v7240_v48, %v7239_v1  ;;  %v6876_v35 = vmul.f32 0.25, %v6794_v32 }
 0x688   : > { %v6769_v22 = vadd.f32 %v6768_v52, %v6767_v57  ;;  %v6782_v24 = vrot.slane %v6781_v43, 4  ;;  %v7509_v21 = vsel %vm7150_vm0, %v7508_v31, %v7507_v30  ;;  %v6815_v13 = vadd.f32 %v6814_v25, %v6813_v15 }
 0x689   : > { %v6763_v0 = vrot.slane %v6762_v16, 2  ;;  %v6776_v42 = vadd.f32 %v6775_v47, %v6774_v56  ;;  %v9279_v3 = vmov 0.0|0.0   ;;  %v8961_v37 = vpack.c.bf16 %v7983_v60, %v7982_v14 }
 0x68a   : > { %v6770_v6 = vrot.slane %v6769_v22, 2  ;;  %v6783_v53 = vadd.f32 %v6782_v24, %v6781_v43  ;;  %8960 = vmatprep.subr.bf16.mxu1 %v9279_v3  ;;  %v13302_v45 = vmax.f32 %v13249_v36, %v7006_v40  ;;  %v6877_v17 = vmul.f32 0.25, %v6801_v38 }
 0x68b   : > { %v6764_v62 = vadd.f32 %v6763_v0, %v6762_v16  ;;  %v6777_v2 = vrot.slane %v6776_v42, 2  ;;  %v14582_v32 = vrot.slane %v13230_v18, 3  ;;  %v6878_v1 = vmul.f32 0.25, %v6808_v34  ;;  %8962 = vmatpush3.bf16.msra.mxu1 %v8961_v37 }
 0x68c   : > { %14581 = vst [vmem:[#allocation53_spill] sm:$0xff] %v13302_v45  ;;  %v6771_v31 = vadd.f32 %v6770_v6, %v6769_v22  ;;  %v6784_v57 = vrot.slane %v6783_v53, 2  ;;  %v7511_v15 = vsel %vm7153_vm1, %v7510_v41, %v7509_v21  ;;  %v6947_v30 = vadd.f32 %v12958_v29, %v6876_v35 }
 0x68d   : > { %v7243_v48 = vsel %vm7156_vm2, %v14582_v32, %v7241_v11  ;;  %v6765_v25 = vrot.slane %v6764_v62, 1  ;;  %v6778_v52 = vadd.f32 %v6777_v2, %v6776_v42  ;;  %v7514_v36 = vrot.slane %v13275_v19, 2 }
 0x68e   : > { %v6879_v40 = vmul.f32 0.25, %v6815_v13  ;;  %v6772_v38 = vrot.slane %v6771_v31, 1  ;;  %v6785_v56 = vadd.f32 %v6784_v57, %v6783_v53  ;;  %v7246_v16 = vrot.slane %v13302_v45, 1 }
 0x68f   : > { %v6948_v47 = vadd.f32 %v12958_v29, %v6877_v17  ;;  %v6766_v43 = vadd.f32 %v6765_v25, %v6764_v62  ;;  %v6779_v34 = vrot.slane %v6778_v52, 1  ;;  %v14583_v14 = vrot.slane %v13238_v7, 2 }
 0x690   : > { %v7513_v41 = vsel %vm7156_vm2, %v7512_v55, %v7511_v15  ;;  %v6773_v11 = vadd.f32 %v6772_v38, %v6771_v31  ;;  %v6786_v35 = vrot.slane %v6785_v56, 1  ;;  %v6949_v2 = vadd.f32 %v12958_v29, %v6878_v1 }
 0x691   : > { %v7245_v60 = vsel %vm7159_vm3, %v14583_v14, %v7243_v48  ;;  %v7011_v19 = vmul.f32 0.2, %v6947_v30  ;;  %v6780_v22 = vadd.f32 %v6779_v34, %v6778_v52  ;;  %v6872_v24 = vmul.f32 0.25, %v6766_v43 }
 0x692   : > { %v7347_v21 = vmul.f32 %v13302_v45, %v13302_v45  ;;  %v6950_v0 = vadd.f32 %v12958_v29, %v6879_v40  ;;  %v6787_v42 = vadd.f32 %v6786_v35, %v6785_v56  ;;  %v6873_v13 = vmul.f32 0.25, %v6773_v11 }
 0x693   : > { %v7549_v6 = vsel %vm959_vm8, %v13236_v46, 0.0  ;;  %v7012_v53 = vmul.f32 0.2, %v6948_v47  ;;  %v6874_v3 = vmul.f32 0.25, %v6780_v22  ;;  %v6943_v55 = vadd.f32 %v12958_v29, %v6872_v24 }
 0x694   : > { %v7247_v37 = vsel %vm7162_vm4, %v7246_v16, %v7245_v60  ;;  %v7515_v17 = vsel %vm7159_vm3, %v7514_v36, %v7513_v41  ;;  %v6875_v62 = vmul.f32 0.25, %v6787_v42  ;;  %v6944_v32 = vadd.f32 %v12958_v29, %v6873_v13 }
 0x695   : > { %v7013_v48 = vmul.f32 0.2, %v6949_v2  ;;  %v13326_v1 = vmax.f32 %v6947_v30, %v7011_v19  ;;  %v6945_v31 = vadd.f32 %v12958_v29, %v6874_v3  ;;  %v7007_v57 = vmul.f32 0.2, %v6943_v55 }
 0x696   : > { %v7516_v15 = vrot.slane %v7347_v21, 1  ;;  %v7014_v25 = vmul.f32 0.2, %v6950_v0  ;;  %v6946_v46 = vadd.f32 %v12958_v29, %v6875_v62  ;;  %v7008_v52 = vmul.f32 0.2, %v6944_v32 }
 0x697   : > { %v7550_v40 = vadd.f32 %v7549_v6, %v13226_v39  ;;  %v13331_v38 = vmax.f32 %v6948_v47, %v7012_v53  ;;  %v7009_v56 = vmul.f32 0.2, %v6945_v31  ;;  %v13333_v36 = vmax.f32 %v6943_v55, %v7007_v57 }
 0x698   : > { %v7281_v16 = vsel %vm959_vm8, %v7247_v37, 0.0  ;;  %v7517_v30 = vsel %vm7162_vm4, %v7516_v15, %v7515_v17  ;;  %v7010_v43 = vmul.f32 0.2, %v6946_v46  ;;  %v13337_v34 = vmax.f32 %v6944_v32, %v7008_v52 }
 0x699   : > { %v13339_v14 = vmax.f32 %v6949_v2, %v7013_v48  ;;  %v7254_v60 = vrot.slane %v13326_v1, 4  ;;  %v7352_v29 = vmul.f32 %v13326_v1, %v13326_v1  ;;  %v13344_v39 = vmax.f32 %v6945_v31, %v7009_v56 }
 0x69a   : > { %v13346_v47 = vmax.f32 %v6950_v0, %v7014_v25  ;;  %v13348_v41 = vmax.f32 %v6946_v46, %v7010_v43  ;;  %v7248_v11 = vrot.slane %v13337_v34, 7  ;;  %v7349_v35 = vmul.f32 %v13337_v34, %v13337_v34 }
 0x69b   : > { %14584 = vst [vmem:[#allocation55_spill] sm:$0xff] %v13339_v14  ;;  %v7353_v2 = vmul.f32 %v13331_v38, %v13331_v38  ;;  %v7250_v19 = vrot.slane %v13344_v39, 6  ;;  %v7348_v22 = vmul.f32 %v13333_v36, %v13333_v36  ;;  %v7350_v24 = vmul.f32 %v13344_v39, %v13344_v39 }
 0x69c   : > { %v7249_v21 = vsel %vm7144_vm14, %v7248_v11, %v13333_v36  ;;  %v7252_v0 = vrot.slane %v13348_v41, 5  ;;  %v7351_v42 = vmul.f32 %v13348_v41, %v13348_v41  ;;  %v7518_v13 = vrot.slane %v7349_v35, 7 }
 0x69d   : > { %v7256_v6 = vrot.slane %v13331_v38, 3  ;;  %v7354_v53 = vmul.f32 %v13339_v14, %v13339_v14  ;;  %v7251_v3 = vsel %vm7147_vm15, %v7250_v19, %v7249_v21  ;;  %v7520_v55 = vrot.slane %v7350_v24, 6 }
 0x69e   : > { %v7355_v37 = vmul.f32 %v13346_v47, %v13346_v47  ;;  %v7253_v17 = vsel %vm7150_vm0, %v7252_v0, %v7251_v3  ;;  %v7519_v62 = vsel %vm7144_vm14, %v7518_v13, %v7348_v22  ;;  %v7522_v32 = vrot.slane %v7351_v42, 5 }
 0x69f   : > { %v7258_v48 = vrot.slane %v13339_v14, 2  ;;  %v7524_v31 = vrot.slane %v7352_v29, 4  ;;  %v7255_v57 = vsel %vm7153_vm1, %v7254_v60, %v7253_v17  ;;  %v7521_v15 = vsel %vm7147_vm15, %v7520_v55, %v7519_v62 }
 0x6a0   : > { %v7260_v25 = vrot.slane %v13346_v47, 1  ;;  %v7526_v46 = vrot.slane %v7353_v2, 3  ;;  %v7257_v52 = vsel %vm7156_vm2, %v7256_v6, %v7255_v57  ;;  %v7523_v56 = vsel %vm7150_vm0, %v7522_v32, %v7521_v15 }
 0x6a1   : > { %v7551_v43 = vsel %vm959_vm8, %v7517_v30, 0.0  ;;  %v7528_v11 = vrot.slane %v7354_v53, 2  ;;  %v7259_v35 = vsel %vm7159_vm3, %v7258_v48, %v7257_v52  ;;  %v7525_v19 = vsel %vm7153_vm1, %v7524_v31, %v7523_v56 }
 0x6a2   : > { %v7282_v29 = vadd.f32 %v7281_v16, %v13233_v59  ;;  %v7530_v22 = vrot.slane %v7355_v37, 1  ;;  %v7261_v60 = vsel %vm7162_vm4, %v7260_v25, %v7259_v35  ;;  %v7527_v24 = vsel %vm7156_vm2, %v7526_v46, %v7525_v19  ;;  %v14586_v46 = vld [vmem:[#allocation17_spill] sm:$0xff]  ;;  %v14587_v35 = vld [vmem:[#allocation6_spill] sm:$0xff]  ;;  %v14608_v19 = vld [vmem:[#allocation31_spill] sm:$0xff] }
 0x6a3   : > { %v7283_v2 = vsel %vm959_vm8, %v7261_v60, 0.0  ;;  %v7529_v21 = vsel %vm7159_vm3, %v7528_v11, %v7527_v24  ;;  %v7552_v0 = vadd.f32 %v7551_v43, %v7550_v40  ;;  %v14296_v52 = vsub.s32 0, %v14586_v46  ;;  %v14589_v60 = vld [vmem:[#allocation10_spill] sm:$0xff] }
 0x6a4   : > { %v7284_v42 = vadd.f32 %v7283_v2, %v7282_v29  ;;  %v7531_v30 = vsel %vm7162_vm4, %v7530_v22, %v7529_v21  ;;  %v14588_v29 = vld [vmem:[#allocation8_spill] sm:$0xff]  ;;  %v14590_v2 = vld [vmem:[#allocation23_spill] sm:$0xff]  ;;  %v14620_v24 = vsub.s32 0, %v14586_v46 }
 0x6a5   : > { %v7553_v13 = vsel %vm959_vm8, %v7531_v30, 0.0  ;;  %v14592_v30 = vld [vmem:[#allocation9_spill] sm:$0xff]  ;;  %v14614_v22 = vld [vmem:[#allocation43_spill] sm:$0xff] }
 0x6a6   : > { %v7285_v6 = vrot.slane %v7284_v42, 4  ;;  %v7554_v53 = vadd.f32 %v7553_v13, %v7552_v0  ;;  %v14591_v0 = vld [vmem:[#allocation18_spill] sm:$0xff]  ;;  %v14610_v13 = vld [vmem:[#allocation41_spill] sm:$0xff]  ;;  %v14619_v21 = vld [vmem:[#allocation51_spill] sm:$0xff] }
 0x6a8   : > { %v7286_v3 = vadd.f32 %v7285_v6, %v7284_v42  ;;  %v7555_v55 = vrot.slane %v7554_v53, 4  ;;  %v14593_v6 = vld [vmem:[#allocation24_spill] sm:$0xff] }
 0x6a9   : > { %v14611_v42 = vld [vmem:[#allocation28_spill] sm:$0xff] }
 0x6aa   : > { %v7287_v59 = vrot.slane %v7286_v3, 2  ;;  %v7556_v16 = vadd.f32 %v7555_v55, %v7554_v53  ;;  %v14606_v55 = vld [vmem:[#allocation35_spill] sm:$0xff]  ;;  %v14609_v53 = vld [vmem:[#allocation33_spill] sm:$0xff] }
 0x6ac   : > { %v7288_v37 = vadd.f32 %v7287_v59, %v7286_v3  ;;  %v7557_v17 = vrot.slane %v7556_v16, 2  ;;  %v14594_v3 = vld [vmem:[#allocation11_spill] sm:$0xff]  ;;  %v14595_v59 = vld [vmem:[#allocation29_spill] sm:$0xff] }
 0x6ae   : > { %v7289_v62 = vrot.slane %v7288_v37, 1  ;;  %v7558_v32 = vadd.f32 %v7557_v17, %v7556_v16  ;;  %v14601_v16 = vld [vmem:[#allocation19_spill] sm:$0xff]  ;;  %v14602_v17 = vld [vmem:[#allocation20_spill] sm:$0xff] }
 0x6b0   : > { %v7290_v48 = vadd.f32 %v7289_v62, %v7288_v37  ;;  %v7559_v31 = vrot.slane %v7558_v32, 1  ;;  %v14596_v37 = vld [vmem:[#allocation13_spill] sm:$0xff]  ;;  %v14597_v62 = vld [vmem:[#allocation14_spill] sm:$0xff] }
 0x6b2   : > { %v13389_v57 = vmul.f32 0.015625, %v7290_v48  ;;  %v7560_v40 = vadd.f32 %v7559_v31, %v7558_v32  ;;  %v14598_v48 = vld [vmem:[#allocation30_spill] sm:$0xff]  ;;  %v14603_v32 = vld [vmem:[#allocation36_spill] sm:$0xff]  ;;  %v14604_v31 = vld [vmem:[#allocation21_spill] sm:$0xff] }
 0x6b4   : > { %14585 = vst [vmem:[#allocation58_spill] sm:$0xff] %v13389_v57  ;;  %v7561_v15 = vmul.f32 0.015625, %v7560_v40  ;;  %v7562_v25 = vmul.f32 %v13389_v57, %v13389_v57  ;;  %v13397_v43 = vrot.slane %v13389_v57, %v14296_v52  ;;  %v14599_v40 = vld [vmem:[#allocation15_spill] sm:$0xff]  ;;  %v14616_v57 = vld [vmem:[#allocation45_spill] sm:$0xff] }
 0x6b6   : > { %v7563_v56 = vsub.f32 %v7561_v15, %v7562_v25  ;;  %v14605_v15 = vld [vmem:[#allocation22_spill] sm:$0xff] }
 0x6b8   : > { %v13399_v11 = vmax.f32 %v7563_v56, 0.0  ;;  %v14600_v56 = vld [vmem:[#allocation16_spill] sm:$0xff] }
 0x6ba   : > { %v7645_v25 = vadd.f32 1e-05, %v13399_v11  ;;  %9142 = vrsqrt.f32 %v13399_v11  ;;  %vm7567_vm5 = vcmp.eq.f32.partialorder %v13399_v11, inf  ;;  %v7570_v27 = vand.u32 2147483648, %v13399_v11 }
 0x6bb   : > { %vm7569_vm6 = vcmp.eq.f32.partialorder %v13399_v11, 0.0 }
 0x6bc   : > { %9144 = vrsqrt.f32 %v7645_v25  ;;  %v14607_v25 = vld [vmem:[#allocation42_spill] sm:$0xff] }
 0x6c4   : > { %v9143_v63 = vpop.eup %9142 }
 0x6c5   : > { %v7566_v44 = vmul.f32 %v9143_v63, %v13399_v11 }
 0x6c6   : > { %v9145_v52 = vpop.eup %9144 }
 0x6c7   : > { %v13524_v18 = vrot.slane %v9145_v52, %v14620_v24  ;;  %v7568_v63 = vsel %vm7567_vm5, %v13399_v11, %v7566_v44  ;;  %v7644_v44 = vsub.f32 %v13346_v47, %v13397_v43  ;;  %v14621_v52 = vsub.f32 %v14587_v35, %v13397_v43 }
 0x6c8   : > { %v7571_v45 = vsel %vm7569_vm6, %v7570_v27, %v7568_v63  ;;  %v14622_v27 = vsub.f32 %v14588_v29, %v13397_v43  ;;  %v14623_v63 = vsub.f32 %v14589_v60, %v13397_v43  ;;  %v14624_v47 = vsub.f32 %v14590_v2, %v13397_v43 }
 0x6c9   : > { %v13544_v11 = vmul.f32 %v13524_v18, %v14621_v52  ;;  %7573 = vrot.lane.b32.xlu0 %v7571_v45, %s9275_s20  ;;  %v14625_v45 = vsub.f32 %v14591_v0, %v13397_v43  ;;  %v14626_v52 = vsub.f32 %v14592_v30, %v13397_v43  ;;  %s8390_s20 = sshll.u32 %s9461_s25, 6 }
 0x6ca   : > { %v13551_v24 = vmul.f32 %v13524_v18, %v14622_v27  ;;  %v13557_v46 = vmul.f32 %v13524_v18, %v14623_v63  ;;  %v13563_v35 = vmul.f32 %v13524_v18, %v14624_v47  ;;  %v14627_v27 = vsub.f32 %v14593_v6, %v13397_v43  ;;  %s13939_s21 = scalar_lea.vmem %s14126_s9, %s8390_s20  ;;  %s359_s20 = scalar_lea.vmem [#allocation3], %s358_s29 }
 0x6cb   : > { %v13569_v29 = vmul.f32 %v13524_v18, %v14625_v45  ;;  %v13575_v60 = vmul.f32 %v13524_v18, %v14626_v52  ;;  %v14628_v63 = vsub.f32 %v14594_v3, %v13397_v43  ;;  %v14629_v47 = vsub.f32 %v14595_v59, %v13397_v43  ;;  %s8088_s25 = sshll.u32 %s359_s20, 4  ;;  %s14077_s25 = int_to_ptr.vmem [resolvable:$true] %s8088_s25 }
 0x6cc   : > { %v13581_v2 = vmul.f32 %v13524_v18, %v14627_v27  ;;  %v14630_v45 = vsub.f32 %v14596_v37, %v13397_v43  ;;  %v14631_v52 = vsub.f32 %v14597_v62, %v13397_v43  ;;  %v14632_v27 = vsub.f32 %v14598_v48, %v13397_v43  ;;  %s9209_s27 = scalar_lea.vmem %s14077_s25, 16 }
 0x6cd   : > { %v13587_v0 = vmul.f32 %v13524_v18, %v14628_v63  ;;  %v13593_v30 = vmul.f32 %v13524_v18, %v14629_v47  ;;  %v14633_v63 = vsub.f32 %v14599_v40, %v13397_v43  ;;  %v14634_v47 = vsub.f32 %v14600_v56, %v13397_v43  ;;  %p9210_p11 = scmp.ne.s32.totalorder %s14077_s25, %s9209_s27 }
 0x6ce   : > { %v13599_v6 = vmul.f32 %v13524_v18, %v14630_v45  ;;  %v13605_v3 = vmul.f32 %v13524_v18, %v14631_v52  ;;  %v13611_v59 = vmul.f32 %v13524_v18, %v14632_v27  ;;  %v14635_v45 = vsub.f32 %v14601_v16, %v13397_v43 }
 0x6cf   : > { %v13617_v37 = vmul.f32 %v13524_v18, %v14633_v63  ;;  %v13623_v62 = vmul.f32 %v13524_v18, %v14634_v47  ;;  %v14636_v52 = vsub.f32 %v14602_v17, %v13397_v43  ;;  %v14637_v27 = vsub.f32 %v14603_v32, %v13397_v43  ;;  %p9211_p12 = pnand %p9210_p11, %p9375_p5 }
 0x6d0   : > { %v13629_v48 = vmul.f32 %v13524_v18, %v14635_v45  ;;  %v14638_v63 = vsub.f32 %v14604_v31, %v13397_v43  ;;  %v14639_v47 = vsub.f32 %v14605_v15, %v13397_v43  ;;  %v14640_v45 = vsub.f32 %v12793_v51, %v13397_v43 }
 0x6d1   : > { %v13635_v40 = vmul.f32 %v13524_v18, %v14636_v52  ;;  %v13641_v56 = vmul.f32 %v13524_v18, %v14637_v27  ;;  %v14641_v52 = vsub.f32 %v14606_v55, %v13397_v43  ;;  %v14642_v27 = vsub.f32 %v12796_v23, %v13397_v43  ;;  %p9212_p13 = pneg %p9211_p12 }
 0x6d2   : > { %v13647_v16 = vmul.f32 %v13524_v18, %v14638_v63  ;;  %v13653_v17 = vmul.f32 %v13524_v18, %v14639_v47  ;;  %v13659_v32 = vmul.f32 %v13524_v18, %v14640_v45  ;;  %v14643_v63 = vsub.f32 %v12801_v33, %v13397_v43 }
 0x6d3   : > { %v13665_v31 = vmul.f32 %v13524_v18, %v14641_v52  ;;  %v13671_v15 = vmul.f32 %v13524_v18, %v14642_v27  ;;  %v14644_v47 = vsub.f32 %v12830_v50, %v13397_v43  ;;  %v14645_v45 = vsub.f32 %v12898_v5, %v13397_v43 }
 0x6d4   : > { %v13677_v51 = vmul.f32 %v13524_v18, %v14643_v63  ;;  %v14646_v52 = vsub.f32 %v12886_v61, %v13397_v43  ;;  %v14647_v27 = vsub.f32 %v12901_v58, %v13397_v43  ;;  %v14648_v63 = vsub.f32 %v12919_v20, %v13397_v43 }
 0x6d5   : > { %v13683_v55 = vmul.f32 %v13524_v18, %v14644_v47  ;;  %v13689_v23 = vmul.f32 %v13524_v18, %v14645_v45  ;;  %v14649_v47 = vsub.f32 %v12879_v26, %v13397_v43  ;;  %v14650_v45 = vld [vmem:[#allocation26_spill] sm:$0xff] }
 0x6d6   : > { %v13695_v33 = vmul.f32 %v13524_v18, %v14646_v52  ;;  %v13701_v50 = vmul.f32 %v13524_v18, %v14647_v27  ;;  %v13707_v5 = vmul.f32 %v13524_v18, %v14648_v63  ;;  %v14651_v52 = vsub.f32 %v14650_v45, %v13397_v43  ;;  %v14652_v27 = vld [vmem:[#allocation27_spill] sm:$0xff] }
 0x6d7   : > { %v13713_v61 = vmul.f32 %v13524_v18, %v14649_v47  ;;  %v14653_v4 = vsub.f32 %v14652_v27, %v13397_v43  ;;  %v14654_v63 = vsub.f32 %v12933_v12, %v13397_v43  ;;  %v14655_v47 = vld [vmem:[#allocation32_spill] sm:$0xff] }
 0x6d8   : > { %v13719_v58 = vmul.f32 %v13524_v18, %v14651_v52  ;;  %v14656_v8 = vsub.f32 %v14655_v47, %v13397_v43  ;;  %v14657_v52 = vsub.f32 %v14607_v25, %v13397_v43 }
 0x6d9   : > { %v13725_v20 = vmul.f32 %v13524_v18, %v14653_v4  ;;  %v13731_v26 = vmul.f32 %v13524_v18, %v14654_v63  ;;  %v14658_v4 = vsub.f32 %v14608_v19, %v13397_v43  ;;  %v14659_v63 = vsub.f32 %v14609_v53, %v13397_v43 }
 0x6da   : > { %v13737_v45 = vmul.f32 %v13524_v18, %v14656_v8  ;;  %v13743_v27 = vmul.f32 %v13524_v18, %v14657_v52  ;;  %v14660_v8 = vsub.f32 %v14610_v13, %v13397_v43  ;;  %v14661_v52 = vsub.f32 %v14611_v42, %v13397_v43 }
 0x6db   : > { %v13749_v12 = vmul.f32 %v13524_v18, %v14658_v4  ;;  %v13755_v47 = vmul.f32 %v13524_v18, %v14659_v63  ;;  %v14663_v4 = vld [vmem:[#allocation48_spill] sm:$0xff]  ;;  %v14666_v63 = vld [vmem:[#allocation34_spill] sm:$0xff] }
 0x6dc   : > { %v13761_v25 = vmul.f32 %v13524_v18, %v14660_v8  ;;  %v13767_v19 = vmul.f32 %v13524_v18, %v14661_v52  ;;  %v14664_v10 = vsub.f32 %v14663_v4, %v13397_v43  ;;  %v14667_v28 = vsub.f32 %v14666_v63, %v13397_v43  ;;  %v14669_v8 = vld [vmem:[#allocation40_spill] sm:$0xff]  ;;  %v14672_v52 = vld [vmem:[#allocation39_spill] sm:$0xff] }
 0x6dd   : > { %v14670_v14 = vsub.f32 %v14669_v8, %v13397_v43 }
 0x6de   : > { %14662 = vst [vmem:[#allocation54_spill] sm:$0xff] %v13767_v19  ;;  %v13773_v53 = vmul.f32 %v13524_v18, %v14664_v10  ;;  %v13779_v13 = vmul.f32 %v13524_v18, %v14667_v28  ;;  %v14673_v19 = vsub.f32 %v14672_v52, %v13397_v43  ;;  %v14675_v10 = vld [vmem:[#allocation49_spill] sm:$0xff]  ;;  %v14677_v28 = vld [vmem:[#allocation44_spill] sm:$0xff] }
 0x6df   : > { %v13785_v42 = vmul.f32 %v13524_v18, %v14670_v14  ;;  %v14679_v14 = vld [vmem:[#allocation37_spill] sm:$0xff] }
 0x6e0   : > { %14665 = vst [vmem:[#allocation7_spill] sm:$0xff] %v13773_v53  ;;  %14668 = vst [vmem:[#allocation12_spill] sm:$0xff] %v13779_v13  ;;  %v13791_v4 = vmul.f32 %v13524_v18, %v14673_v19  ;;  %v14676_v53 = vsub.f32 %v14675_v10, %v13397_v43  ;;  %v14678_v13 = vsub.f32 %v14677_v28, %v13397_v43  ;;  %v14682_v19 = vld [vmem:[#allocation38_spill] sm:$0xff] }
 0x6e1   : > { %14671 = vst [vmem:[#allocation25_spill] sm:$0xff] %v13785_v42  ;;  %v14680_v42 = vsub.f32 %v14679_v14, %v13397_v43 }
 0x6e2   : > { %14674 = vst [vmem:[#allocation17_spill] sm:$0xff] %v13791_v4  ;;  %v13797_v63 = vmul.f32 %v13524_v18, %v14676_v53  ;;  %v13803_v8 = vmul.f32 %v13524_v18, %v14678_v13  ;;  %v14683_v4 = vsub.f32 %v14682_v19, %v13397_v43  ;;  %v14684_v53 = vsub.f32 %v14613_v54, %v13397_v43 }
 0x6e3   : > { %v13809_v52 = vmul.f32 %v13524_v18, %v14680_v42  ;;  %v14685_v13 = vsub.f32 %v14614_v22, %v13397_v43  ;;  %v14686_v42 = vld [vmem:[#allocation56_spill] sm:$0xff] }
 0x6e4   : > { %v13815_v10 = vmul.f32 %v13524_v18, %v14683_v4  ;;  %v13821_v28 = vmul.f32 %v13524_v18, %v14684_v53  ;;  %v14688_v4 = vsub.f32 %v14616_v57, %v13397_v43  ;;  %v14689_v53 = vsub.f32 %v14617_v49, %v13397_v43 }
 0x6e5   : > { %14681 = vst [vmem:[#allocation6_spill] sm:$0xff] %v13809_v52  ;;  %v13827_v14 = vmul.f32 %v13524_v18, %v14685_v13  ;;  %v14687_v52 = vsub.f32 %v14686_v42, %v13397_v43  ;;  %v14690_v13 = vsub.f32 %v14618_v9, %v13397_v43 }
 0x6e6   : > { %v13839_v54 = vmul.f32 %v13524_v18, %v14688_v4  ;;  %v13845_v22 = vmul.f32 %v13524_v18, %v14689_v53  ;;  %v14692_v4 = vsub.f32 %v13333_v36, %v13397_v43  ;;  %v14694_v53 = vsub.f32 %v13337_v34, %v13397_v43 }
 0x6e7   : > { %v13833_v19 = vmul.f32 %v13524_v18, %v14687_v52  ;;  %v13851_v42 = vmul.f32 %v13524_v18, %v14690_v13  ;;  %v14691_v52 = vsub.f32 %v14619_v21, %v13397_v43  ;;  %v14695_v13 = vsub.f32 %v13344_v39, %v13397_v43 }
 0x6e8   : > { %v13863_v49 = vmul.f32 %v13524_v18, %v14692_v4  ;;  %v13869_v9 = vmul.f32 %v13524_v18, %v14694_v53  ;;  %v14699_v4 = vld [vmem:[#allocation57_spill] sm:$0xff]  ;;  %v14701_v53 = vsub.f32 %v13238_v7, %v13397_v43  ;;  %v7779_v7 = vrot.slane %v13551_v24, 7 }
 0x6e9   : > { %v13857_v57 = vmul.f32 %v13524_v18, %v14691_v52  ;;  %v13875_v21 = vmul.f32 %v13524_v18, %v14695_v13  ;;  %v14697_v52 = vsub.f32 %v13348_v41, %v13397_v43  ;;  %v14702_v13 = vld [vmem:[#allocation53_spill] sm:$0xff]  ;;  %v7797_v24 = vrot.slane %v13611_v59, 5 }
 0x6ea   : > { %14693 = vst [vmem:[#allocation8_spill] sm:$0xff] %v13863_v49  ;;  %v14700_v49 = vsub.f32 %v14699_v4, %v13397_v43  ;;  %v13893_v39 = vmul.f32 %v13524_v18, %v14701_v53  ;;  %v7781_v53 = vrot.slane %v13557_v46, 6 }
 0x6eb   : > { %14696 = vst [vmem:[#allocation10_spill] sm:$0xff] %v13875_v21  ;;  %v13881_v36 = vmul.f32 %v13524_v18, %v14697_v52  ;;  %v14703_v21 = vsub.f32 %v14702_v13, %v13397_v43  ;;  %v13902_v52 = vmul.f32 %v13524_v18, %v7644_v44  ;;  %v7785_v13 = vrot.slane %v13569_v29, 4 }
 0x6ec   : > { %v13887_v34 = vmul.f32 %v13524_v18, %v14700_v49  ;;  %v14706_v49 = vsub.f32 %v13326_v1, %v13397_v43  ;;  %v7793_v44 = vrot.slane %v13599_v6, 7  ;;  %v7780_v1 = vsel %vm7144_vm14, %v7779_v7, %v13544_v11 }
 0x6ed   : > { %14698 = vst [vmem:[#allocation23_spill] sm:$0xff] %v13881_v36  ;;  %v13899_v41 = vmul.f32 %v13524_v18, %v14703_v21  ;;  %14705 = vst [vmem:[#allocation9_spill] sm:$0xff] %v13902_v52  ;;  %v7783_v36 = vrot.slane %v13563_v35, 5  ;;  %v7787_v21 = vrot.slane %v13575_v60, 3  ;;  %v7795_v52 = vrot.slane %v13605_v3, 6 }
 0x6ee   : > { %v13908_v4 = vmul.f32 %v13524_v18, %v14706_v49  ;;  %v7791_v49 = vrot.slane %v13587_v0, 1  ;;  %v7782_v46 = vsel %vm7147_vm15, %v7781_v53, %v7780_v1  ;;  %v7794_v35 = vsel %vm7144_vm14, %v7793_v44, %v13593_v30 }
 0x6ef   : > { %14704 = vst [vmem:[#allocation18_spill] sm:$0xff] %v13899_v41  ;;  %v7789_v41 = vrot.slane %v13581_v2, 2  ;;  %v7799_v29 = vrot.slane %v13617_v37, 4  ;;  %v7801_v60 = vrot.slane %v13623_v62, 3  ;;  %v7784_v2 = vsel %vm7150_vm0, %v7783_v36, %v7782_v46 }
 0x6f0   : > { %v7796_v11 = vsel %vm7147_vm15, %v7795_v52, %v7794_v35  ;;  %v7803_v0 = vrot.slane %v13629_v48, 2  ;;  %v7807_v6 = vrot.slane %v13647_v16, 7  ;;  %v7786_v3 = vsel %vm7153_vm1, %v7785_v13, %v7784_v2 }
 0x6f1   : > { %v7798_v59 = vsel %vm7150_vm0, %v7797_v24, %v7796_v11  ;;  %v7805_v7 = vrot.slane %v13635_v40, 1  ;;  %v7809_v30 = vrot.slane %v13653_v17, 6  ;;  %v7788_v37 = vsel %vm7156_vm2, %v7787_v21, %v7786_v3  ;;  %v14708_v3 = vld [vmem:[#allocation54_spill] sm:$0xff] }
 0x6f2   : > { %v7800_v62 = vsel %vm7153_vm1, %v7799_v29, %v7798_v59  ;;  %v7808_v48 = vsel %vm7144_vm14, %v7807_v6, %v13641_v56  ;;  %v7811_v16 = vrot.slane %v13659_v32, 5  ;;  %v7790_v36 = vsel %vm7159_vm3, %v7789_v41, %v7788_v37  ;;  %v14709_v59 = vld [vmem:[#allocation17_spill] sm:$0xff]  ;;  %v14710_v37 = vld [vmem:[#allocation7_spill] sm:$0xff] }
 0x6f3   : > { %v7802_v40 = vsel %vm7156_vm2, %v7801_v60, %v7800_v62  ;;  %v7810_v17 = vsel %vm7147_vm15, %v7809_v30, %v7808_v48  ;;  %v7813_v52 = vrot.slane %v13665_v31, 4  ;;  %v7792_v53 = vsel %vm7162_vm4, %v7791_v49, %v7790_v36  ;;  %v14711_v48 = vld [vmem:[#allocation25_spill] sm:$0xff] }
 0x6f4   : > { %v7804_v13 = vsel %vm7159_vm3, %v7803_v0, %v7802_v40  ;;  %v7812_v21 = vsel %vm7150_vm0, %v7811_v16, %v7810_v17  ;;  %v7815_v44 = vrot.slane %v13671_v15, 3  ;;  %v7817_v41 = vrot.slane %v13677_v51, 2  ;;  %7899 = vst.msk [vmem:[%s13939_s21] sm:$0xff] %vm959_vm8, %v7792_v53  ;;  %v14712_v17 = vld [vmem:[#allocation12_spill] sm:$0xff] }
 0x6f5   : > { %v7806_v56 = vsel %vm7162_vm4, %v7805_v7, %v7804_v13  ;;  %v7814_v32 = vsel %vm7153_vm1, %v7813_v52, %v7812_v21  ;;  %v7821_v1 = vrot.slane %v13695_v33, 7  ;;  %v14707_v31 = vsub.f32 %v13331_v38, %v13397_v43  ;;  %v14713_v13 = vld [vmem:[#allocation6_spill] sm:$0xff] }
 0x6f6   : > { %v7816_v24 = vsel %vm7156_vm2, %v7815_v44, %v7814_v32  ;;  %v7819_v15 = vrot.slane %v13683_v55, 1  ;;  %v7823_v46 = vrot.slane %v13701_v50, 6  ;;  %7900 = vst.msk [vmem:[%s13939_s21 + $0x8] sm:$0xff] %vm959_vm8, %v7806_v56  ;;  %v7825_v35 = vrot.slane %v13707_v5, 5 }
 0x6f7   : > { %v13964_v49 = vmul.f32 %v13524_v18, %v14707_v31  ;;  %v7818_v51 = vsel %vm7159_vm3, %v7817_v41, %v7816_v24  ;;  %v7822_v33 = vsel %vm7144_vm14, %v7821_v1, %v13689_v23  ;;  %v7827_v38 = vrot.slane %v13713_v61, 4 }
 0x6f8   : > { %v7820_v29 = vsel %vm7162_vm4, %v7819_v15, %v7818_v51  ;;  %v7824_v60 = vsel %vm7147_vm15, %v7823_v46, %v7822_v33  ;;  %v7829_v2 = vrot.slane %v13719_v58, 3  ;;  %v7835_v55 = vrot.slane %v13743_v27, 7 }
 0x6f9   : > { %v7826_v50 = vsel %vm7150_vm0, %v7825_v35, %v7824_v60  ;;  %v7831_v11 = vrot.slane %v13725_v20, 2  ;;  %v7833_v0 = vrot.slane %v13731_v26, 1  ;;  %v7837_v23 = vrot.slane %v13749_v12, 6  ;;  %7901 = vst.msk [vmem:[%s13939_s21 + $0x10] sm:$0xff] %vm959_vm8, %v7820_v29  ;;  %v14715_v29 = vld [vmem:[#allocation55_spill] sm:$0xff] }
 0x6fa   : > { %v7828_v5 = vsel %vm7153_vm1, %v7827_v38, %v7826_v50  ;;  %v7836_v61 = vsel %vm7144_vm14, %v7835_v55, %v13737_v45  ;;  %v7839_v6 = vrot.slane %v13755_v47, 5  ;;  %v7841_v58 = vrot.slane %v13761_v25, 4  ;;  %v14714_v38 = vld [vmem:[#allocation10_spill] sm:$0xff] }
 0x6fb   : > { %v7830_v27 = vsel %vm7156_vm2, %v7829_v2, %v7828_v5  ;;  %v7838_v20 = vsel %vm7147_vm15, %v7837_v23, %v7836_v61  ;;  %v7843_v26 = vrot.slane %v14708_v3, 3  ;;  %v7849_v12 = vrot.slane %v14709_v59, 7  ;;  %v14717_v55 = vld [vmem:[#allocation18_spill] sm:$0xff]  ;;  %v14720_v3 = vld [vmem:[#allocation9_spill] sm:$0xff] }
 0x6fc   : > { %v7832_v7 = vsel %vm7159_vm3, %v7831_v11, %v7830_v27  ;;  %v7840_v30 = vsel %vm7150_vm0, %v7839_v6, %v7838_v20  ;;  %v7845_v62 = vrot.slane %v14710_v37, 2  ;;  %v7851_v45 = vrot.slane %v13797_v63, 6  ;;  %v14718_v11 = vld [vmem:[#allocation8_spill] sm:$0xff] }
 0x6fd   : > { %v7834_v47 = vsel %vm7162_vm4, %v7833_v0, %v7832_v7  ;;  %v7842_v25 = vsel %vm7153_vm1, %v7841_v58, %v7840_v30  ;;  %v7850_v16 = vsel %vm7144_vm14, %v7849_v12, %v14711_v48  ;;  %v7853_v36 = vrot.slane %v13803_v8, 5  ;;  %v14719_v0 = vld [vmem:[#allocation23_spill] sm:$0xff] }
 0x6fe   : > { %v7844_v40 = vsel %vm7156_vm2, %v7843_v26, %v7842_v25  ;;  %v7847_v52 = vrot.slane %v14712_v17, 1  ;;  %v7852_v53 = vsel %vm7147_vm15, %v7851_v45, %v7850_v16  ;;  %v7855_v21 = vrot.slane %v14713_v13, 4  ;;  %7902 = vst.msk [vmem:[%s13939_s21 + $0x18] sm:$0xff] %vm959_vm8, %v7834_v47  ;;  %v7984_v30 = vld [vmem:[%s14125_s8] sm:$0x1] }
 0x6ff   : > { %v7846_v63 = vsel %vm7159_vm3, %v7845_v62, %v7844_v40  ;;  %v7854_v44 = vsel %vm7150_vm0, %v7853_v36, %v7852_v53  ;;  %v7857_v56 = vrot.slane %v13815_v10, 3  ;;  %v7863_v32 = vrot.slane %v13839_v54, 7  ;;  %v7908_v47 = vld [vmem:[%s14123_s6] sm:$0x1] }
 0x700   : > { %v7848_v8 = vsel %vm7162_vm4, %v7847_v52, %v7846_v63  ;;  %v7856_v41 = vsel %vm7153_vm1, %v7855_v21, %v7854_v44  ;;  %v7859_v1 = vrot.slane %v13821_v28, 2  ;;  %v7865_v31 = vrot.slane %v13845_v22, 6  ;;  %v14722_v25 = vld [vmem:[#allocation47_spill] sm:$0xff] }
 0x701   : > { %v7858_v24 = vsel %vm7156_vm2, %v7857_v56, %v7856_v41  ;;  %v7861_v15 = vrot.slane %v13827_v14, 1  ;;  %v7864_v46 = vsel %vm7144_vm14, %v7863_v32, %v13833_v19  ;;  %v7867_v10 = vrot.slane %v13851_v42, 5  ;;  %7903 = vst.msk [vmem:[%s13939_s21 + $0x20] sm:$0xff] %vm959_vm8, %v7848_v8 }
 0x702   : > { %v7860_v54 = vsel %vm7159_vm3, %v7859_v1, %v7858_v24  ;;  %v7866_v51 = vsel %vm7147_vm15, %v7865_v31, %v7864_v46  ;;  %v7869_v28 = vrot.slane %v13857_v57, 4  ;;  %v7871_v22 = vrot.slane %v13887_v34, 3 }
 0x703   : > { %v7862_v33 = vsel %vm7162_vm4, %v7861_v15, %v7860_v54  ;;  %v7868_v35 = vsel %vm7150_vm0, %v7867_v10, %v7866_v51  ;;  %v7877_v14 = vrot.slane %v13869_v9, 7  ;;  %v7879_v19 = vrot.slane %v14714_v38, 6 }
 0x704   : > { %v14716_v42 = vsub.f32 %v14715_v29, %v13397_v43  ;;  %v7870_v2 = vsel %vm7153_vm1, %v7869_v28, %v7868_v35  ;;  %v7873_v57 = vrot.slane %v13893_v39, 2  ;;  %7904 = vst.msk [vmem:[%s13939_s21 + $0x28] sm:$0xff] %vm959_vm8, %v7862_v33  ;;  %v7875_v50 = vrot.slane %v14717_v55, 1 }
 0x705   : > { %v7872_v34 = vsel %vm7156_vm2, %v7871_v22, %v7870_v2  ;;  %v7878_v9 = vsel %vm7144_vm14, %v7877_v14, %v14718_v11  ;;  %v7881_v23 = vrot.slane %v14719_v0, 5  ;;  %v7883_v5 = vrot.slane %v13908_v4, 4 }
 0x706   : > { %v7713_v60 = vmul.f32 %v13524_v18, %v14716_v42  ;;  %v7874_v43 = vsel %vm7159_vm3, %v7873_v57, %v7872_v34  ;;  %v7880_v18 = vsel %vm7147_vm15, %v7879_v19, %v7878_v9  ;;  %v7885_v6 = vrot.slane %v13964_v49, 3  ;;  %v14721_v49 = vld [vmem:[#allocation58_spill] sm:$0xff] }
 0x707   : > { %v7876_v39 = vsel %vm7162_vm4, %v7875_v50, %v7874_v43  ;;  %v7882_v61 = vsel %vm7150_vm0, %v7881_v23, %v7880_v18  ;;  %v7889_v26 = vrot.slane %v14720_v3, 1  ;;  %v7979_v48 = vadd.f32 %v14722_v25, %v7908_v47 }
 0x708   : > { %v7884_v58 = vsel %vm7153_vm1, %v7883_v5, %v7882_v61  ;;  %v7887_v27 = vrot.slane %v7713_v60, 2  ;;  %7905 = vst.msk [vmem:[%s13939_s21 + $0x30] sm:$0xff] %vm959_vm8, %v7876_v39 }
 0x709   : > { %v7886_v20 = vsel %vm7156_vm2, %v7885_v6, %v7884_v58 }
 0x70a   : > { %v7888_v59 = vsel %vm7159_vm3, %v7887_v27, %v7886_v20 }
 0x70b   : > { %v7890_v4 = vsel %vm7162_vm4, %v7889_v26, %v7888_v59 }
 0x70c   : > { %7906 = vst.msk [vmem:[%s13939_s21 + $0x38] sm:$0xff] %vm959_vm8, %v7890_v4 }
 0x73b   : > { %v7574_v12 = vpop.permute.xlu0 %7573 }
 0x73c   : > { %v7576_v7 = vsel %vm959_vm8, %v14721_v49, %v7574_v12  ;;  %vm8063_vm8 = vcmask 261120  }
 0x73d   : > { %8922 = vmatmul.mubr.msk.f32.vlgmr.msra.gmra.mrb[32].mxu1 %vm7985_vm7, %v7576_v7 }
 0x810   : > { %v8055_v37 = vpop.f32.mrb[32].mxu1 }
 0x811   : > { %v8056_v62 = vadd.f32 %v8055_v37, %v7984_v30  ;;  %v8923_v45 = vpop.f32.mrb[33].mxu1 }
 0x813   : > { %8060 = vrot.lane.b32.xlu0 %v8056_v62, %s9280_s28  ;;  %s9281_s28 = smov [#allocation3]  }
 0x814   : > { %s9213_s30 = sshll.u32 %s9281_s28, 4  ;;  %s9214_s30 = int_to_ptr.vmem [resolvable:$false] %s9213_s30 }
 0x815   : > { %s9215_s11 = scalar_lea.vmem %s9214_s30, 32  ;;  %p9216_p0 = scmp.lt.s32.totalorder %s14077_s25, %s9214_s30 }
 0x816   : > { %p9217_p1 = scmp.lt.s32.totalorder %s9215_s11, %s9209_s27 }
 0x818   : > { %p9218_p2 = por %p9217_p1, %p9216_p0 }
 0x81a   : > { %p9219_p3 = pnand %p9218_p2, %p9212_p13 }
 0x885   : > { %v8061_v16 = vpop.permute.xlu0 %8060 }
 0x886   : > { %v8064_v36 = vsel %vm8063_vm8, %v7979_v48, %v8061_v16 }
 0x887   : > { %8066 = vst.msk [vmem:[%s359_s20] sm:$0x1] %vm8065_vm9, %v8064_v36 }
 0x888   : > { %9222 = shalt.err (!%p9219_p3)
}
 0x889   : > { %s9223_s29 = scalar_lea.hbm %s14075_s26, 16  ;;  %s9227_s18 = scalar_lea.hbm %s14127_s10, 32 }
 0x88a   : > { %p9224_p4 = scmp.ne.s32.totalorder %s14075_s26, %s9223_s29  ;;  %p9228_p9 = scmp.lt.u32.totalorder %s14075_s26, %s14127_s10 }
 0x88b   : > { %p9229_p10 = scmp.lt.u32.totalorder %s9227_s18, %s9223_s29  ;;  %p9231_p12 = scmp.lt.u32.totalorder %s9223_s29, %s14075_s26 }
 0x88c   : > { %p9225_p7 = pnand %p9224_p4, %p9375_p5 }
 0x88d   : > { %p9230_p11 = por %p9229_p10, %p9228_p9 }
 0x88e   : > { %p9226_p8 = pneg %p9225_p7 }
 0x88f   : > { %p9232_p13 = por %p9231_p12, %p9230_p11 }
 0x891   : > { %p9233_p0 = pnand %p9232_p13, %p9226_p8 }
 0x893   : > { %9236 = shalt.err (!%p9233_p0)
}
 0x894   : > { %9091 = dma.vmem_to_hbm [thread:$0]  (%p9375_p5), %s14077_s25, 16, %s14075_s26, %s8073_s17  }
 0x895 PF: > { %p9097_p1 = scmp.ge.s32.totalorder %s9271_s16, 2  ;;  %s8108_s27 = sand.u32 1, %s9259_s13  }
 0x896   : > { %s8109_s30 = scalar_lea.sflag [#allocation4], %s8108_s27 }
 0x897   : > { %p9094_p2 = pnand %p9097_p1, %p9379_p6 }
 0x899   : > { %9254 = dma.done.wait (!%p9094_p2), %s8109_s30, 16  }
 0x89a   : > { %9256 = vsyncadd (!%p9094_p2), %s8109_s30, 4294967280  ;;  %p21_p3 = scmp.ge.s32.totalorder %s9362_s19, 4   ;;  %s14723_s13 = smov %s9263_s14 }
 0x89b   : > { %s14724_s14 = smov %s9267_s15  ;;  %s14725_s15 = smov %s9373_s22 }
 0x89c   : > { %s14726_s16 = smov %s9362_s19  ;;  %23 = sbr.rel (!%p21_p3) target bundleno = 3 (0x3), region = 110 }
 0x8a3   :  { %8113 = vsyncpa [#allocation4], 1 }
 0x8a4   :  { %8115 = vsyncpa [#allocation4 + $0x1], 1 }

</bundles_post_ra>
